<compile_context>
chip_gen: v5e
topology: v5e:2x2
jax: 0.10.0
libtpu: 0.0.40
codegen_flags: <defaults>
</compile_context>

<pallas_src>
import functools

import jax
import jax.numpy as jnp
from jax.experimental import pallas as pl
from jax.experimental.pallas import tpu as pltpu

_BN_EPS = 1e-5                       # torch.nn.BatchNorm2d default
_VMEM_LIMIT = 48 * 1024 * 1024       # safe scoped-VMEM raise on v5e/v6e/v7x


def _pick_row_tile(H, target=8):
    """Largest row-tile <= target that divides H."""
    t = max(1, min(H, target))
    while H % t:
        t -= 1
    return t


# ---------------------------------------------------------------------------
# Kernels
# ---------------------------------------------------------------------------

def _stage1_kernel(x_ref, wm_ref, wp_ref,
                   zr3_ref, zr5_ref, zdir_ref, ssum_ref, ssq_ref,
                   *, H, W, Cin, TH, r3, r5, o1, op):
    """Fused 1x1 convs (branches 1/2-red/3-red) + MaxPool3x3 -> 1x1 (branch 4).

    x_ref   : (1, H, W, Cin) f32 full image (fetched once per n, row-sliced here).
    wm_ref  : (Cin, r3+r5+o1) bf16  columns [b2_red | b3_red | b1].
    wp_ref  : (Cin, op)       bf16  branch-4 post-pool 1x1.
    Outputs are one row tile each; ssum/ssq are per-(n, row-tile) partial
    BN statistics in channel order [b2_red | b3_red | b1 | b4].
    """
    h = pl.program_id(1)
    r0 = h * TH
    if TH % 8 == 0:
        r0 = pl.multiple_of(r0, 8)

    center = x_ref[0, pl.ds(r0, TH), :, :]                       # (TH, W, Cin) f32

    # --- separable 3x3 max-pool, stride 1, 'same' (edge replication == -inf pad)
    top = x_ref[0, pl.ds(jnp.maximum(r0 - 1, 0), 1), :, :]
    bot = x_ref[0, pl.ds(jnp.minimum(r0 + TH, H - 1), 1), :, :]
    stk = jnp.concatenate([top, center, bot], axis=0)            # (TH+2, W, Cin)
    s_l = jnp.concatenate([stk[:, 1:, :], stk[:, W - 1:, :]], axis=1)
    s_r = jnp.concatenate([stk[:, :1, :], stk[:, :W - 1, :]], axis=1)
    hm = jnp.maximum(jnp.maximum(stk, s_l), s_r)                 # horizontal 3-max
    pooled = jnp.maximum(jnp.maximum(hm[0:TH], hm[1:TH + 1]), hm[2:TH + 2])

    # --- two MXU matmuls (no zero-padded block-diagonal weight) --------------
    c2d = center.astype(jnp.bfloat16).reshape(TH * W, Cin)
    p2d = pooled.astype(jnp.bfloat16).reshape(TH * W, Cin)
    z_main = jnp.dot(c2d, wm_ref[...], preferred_element_type=jnp.float32)
    z_pool = jnp.dot(p2d, wp_ref[...], preferred_element_type=jnp.float32)

    zr3_ref[...] = z_main[:, :r3].astype(zr3_ref.dtype).reshape(1, TH, W, r3)
    zr5_ref[...] = z_main[:, r3:r3 + r5].astype(zr5_ref.dtype).reshape(1, TH, W, r5)
    zdir = jnp.concatenate([z_main[:, r3 + r5:], z_pool], axis=-1)   # [b1 | b4]
    zdir_ref[...] = zdir.astype(zdir_ref.dtype).reshape(1, TH, W, o1 + op)

    # per-(n, row-tile) partial BN statistics (reduced in the wrapper, f32)
    ssum_ref[...] = jnp.concatenate(
        [jnp.sum(z_main, axis=0, keepdims=True),
         jnp.sum(z_pool, axis=0, keepdims=True)], axis=-1)[None]
    ssq_ref[...] = jnp.concatenate(
        [jnp.sum(z_main * z_main, axis=0, keepdims=True),
         jnp.sum(z_pool * z_pool, axis=0, keepdims=True)], axis=-1)[None]


def _convk_kernel(zin_ref, sc_ref, sh_ref, w_ref,
                  z_ref, ssum_ref, ssq_ref,
                  *, K, H, W, TH, Cr, Cout):
    """(BN + ReLU of the 1x1-reduce output) fused with a KxK 'same' conv.

    zin_ref : (1, H, W, Cr) bf16 pre-BN reduce channels (full image per n).
    sc/sh   : (1, Cr) f32 per-channel BN scale/shift.
    w_ref   : (K*K, Cr, Cout) bf16 conv taps.
    Conv is computed as K*K accumulating MXU dots (no im2col lane concat).
    """
    h = pl.program_id(1)
    r0 = h * TH
    if TH % 8 == 0:
        r0 = pl.multiple_of(r0, 8)
    P = K // 2

    def bn_relu(rows_bf16):
        rows = rows_bf16.astype(jnp.float32)
        return jnp.maximum(rows * sc_ref[...] + sh_ref[...], 0.0)

    pieces = []
    for j in range(P):                                   # halo rows above
        g = r0 - P + j
        row = zin_ref[0, pl.ds(jnp.clip(g, 0, H - 1), 1), :, :]
        pieces.append(jnp.where(g >= 0, bn_relu(row), 0.0))
    pieces.append(bn_relu(zin_ref[0, pl.ds(r0, TH), :, :]))
    for j in range(P):                                   # halo rows below
        g = r0 + TH + j
        row = zin_ref[0, pl.ds(jnp.clip(g, 0, H - 1), 1), :, :]
        pieces.append(jnp.where(g < H, bn_relu(row), 0.0))
    y = jnp.concatenate(pieces, axis=0)                  # (TH+2P, W, Cr) f32

    zcol = jnp.zeros((TH + 2 * P, P, Cr), jnp.float32)   # zero 'same' W padding
    ypad = jnp.concatenate([zcol, y, zcol], axis=1).astype(jnp.bfloat16)

    acc = jnp.zeros((TH * W, Cout), jnp.float32)
    for dy in range(K):
        for dx in range(K):
            tap = ypad[dy:dy + TH, dx:dx + W, :].reshape(TH * W, Cr)
            acc = acc + jnp.dot(tap, w_ref[dy * K + dx],
                                preferred_element_type=jnp.float32)

    z_ref[...] = acc.astype(z_ref.dtype).reshape(1, TH, W, Cout)
    ssum_ref[...] = jnp.sum(acc, axis=0, keepdims=True)[None]
    ssq_ref[...] = jnp.sum(acc * acc, axis=0, keepdims=True)[None]


def _finalize_kernel(zdir_ref, z2_ref, z3_ref, sc_ref, sh_ref, o_ref, *, o1):
    """BN + ReLU of all branch outputs, written as the concatenated slab in
    torch.cat([b1, b2, b3, b4], 1) channel order (one row tile per step)."""
    zd = zdir_ref[0].astype(jnp.float32)                 # (TH, W, o1+op)
    z2 = z2_ref[0].astype(jnp.float32)
    z3 = z3_ref[0].astype(jnp.float32)
    zcat = jnp.concatenate([zd[:, :, :o1], z2, z3, zd[:, :, o1:]], axis=-1)
    y = jnp.maximum(zcat * sc_ref[...] + sh_ref[...], 0.0)
    o_ref[...] = y[None]


# ---------------------------------------------------------------------------
# pallas_call wrappers
# ---------------------------------------------------------------------------

def _run_stage1(x, w_main, w_pool, TH, o1, r3, r5, op):
    N, H, W, Cin = x.shape
    HT = H // TH
    C1 = o1 + r3 + r5 + op
    kernel = functools.partial(_stage1_kernel, H=H, W=W, Cin=Cin, TH=TH,
                               r3=r3, r5=r5, o1=o1, op=op)
    return pl.pallas_call(
        kernel,
        out_shape=(
            jax.ShapeDtypeStruct((N, H, W, r3), jnp.bfloat16),
            jax.ShapeDtypeStruct((N, H, W, r5), jnp.bfloat16),
            jax.ShapeDtypeStruct((N, H, W, o1 + op), jnp.bfloat16),
            jax.ShapeDtypeStruct((N * HT, 1, C1), jnp.float32),
            jax.ShapeDtypeStruct((N * HT, 1, C1), jnp.float32),
        ),
        grid=(N, HT),
        in_specs=[
            pl.BlockSpec((1, H, W, Cin), lambda n, h: (n, 0, 0, 0)),
            pl.BlockSpec(w_main.shape, lambda n, h: (0, 0)),
            pl.BlockSpec(w_pool.shape, lambda n, h: (0, 0)),
        ],
        out_specs=(
            pl.BlockSpec((1, TH, W, r3), lambda n, h: (n, h, 0, 0)),
            pl.BlockSpec((1, TH, W, r5), lambda n, h: (n, h, 0, 0)),
            pl.BlockSpec((1, TH, W, o1 + op), lambda n, h: (n, h, 0, 0)),
            pl.BlockSpec((1, 1, C1), lambda n, h: (n * HT + h, 0, 0)),
            pl.BlockSpec((1, 1, C1), lambda n, h: (n * HT + h, 0, 0)),
        ),
        compiler_params=pltpu.CompilerParams(
            dimension_semantics=("parallel", "parallel"),
            vmem_limit_bytes=_VMEM_LIMIT),
    )(x, w_main, w_pool)


def _run_convk(zin, scale, shift, w_taps, K, TH):
    N, H, W, Cr = zin.shape
    HT = H // TH
    Cout = w_taps.shape[-1]
    kernel = functools.partial(_convk_kernel, K=K, H=H, W=W, TH=TH,
                               Cr=Cr, Cout=Cout)
    return pl.pallas_call(
        kernel,
        out_shape=(
            jax.ShapeDtypeStruct((N, H, W, Cout), jnp.bfloat16),
            jax.ShapeDtypeStruct((N * HT, 1, Cout), jnp.float32),
            jax.ShapeDtypeStruct((N * HT, 1, Cout), jnp.float32),
        ),
        grid=(N, HT),
        in_specs=[
            pl.BlockSpec((1, H, W, Cr), lambda n, h: (n, 0, 0, 0)),
            pl.BlockSpec((1, Cr), lambda n, h: (0, 0)),
            pl.BlockSpec((1, Cr), lambda n, h: (0, 0)),
            pl.BlockSpec((K * K, Cr, Cout), lambda n, h: (0, 0, 0)),
        ],
        out_specs=(
            pl.BlockSpec((1, TH, W, Cout), lambda n, h: (n, h, 0, 0)),
            pl.BlockSpec((1, 1, Cout), lambda n, h: (n * HT + h, 0, 0)),
            pl.BlockSpec((1, 1, Cout), lambda n, h: (n * HT + h, 0, 0)),
        ),
        compiler_params=pltpu.CompilerParams(
            dimension_semantics=("parallel", "parallel"),
            vmem_limit_bytes=_VMEM_LIMIT),
    )(zin, scale, shift, w_taps)


def _bn_scale_shift(ssum, ssq, count, gamma, beta):
    """Fold train-mode (biased) batch statistics + affine into scale/shift."""
    mean = jnp.sum(ssum, axis=(0, 1)) / count
    ex2 = jnp.sum(ssq, axis=(0, 1)) / count
    var = jnp.maximum(ex2 - mean * mean, 0.0)
    scale = gamma * jax.lax.rsqrt(var + _BN_EPS)
    shift = beta - mean * scale
    return scale, shift


def inception_block(x_nchw, params, row_tile=8):
    """Forward of InceptionBlock. Input/output NCHW like the PyTorch module."""
    # TODO(synk): boundary transposes could be fused into stage-1 / finalize.
    x = jnp.transpose(x_nchw, (0, 2, 3, 1)).astype(jnp.float32)   # -> NHWC
    N, H, W, Cin = x.shape
    TH = _pick_row_tile(H, row_tile)
    HT = H // TH

    o1 = params["b1"]["w"].shape[-1]
    r3 = params["b2_red"]["w"].shape[-1]
    out3 = params["b2_out"]["w"].shape[-1]
    r5 = params["b3_red"]["w"].shape[-1]
    out5 = params["b3_out"]["w"].shape[-1]
    op = params["b4"]["w"].shape[-1]
    Ctot = o1 + out3 + out5 + op
    count = float(N * H * W)

    # Stage-1 weights. Column order [b2_red | b3_red | b1] on the raw input,
    # [b4] on the pooled input.  Conv biases are dropped: the train-mode BN
    # mean subtraction cancels them exactly.
    w_main = jnp.concatenate(
        [params["b2_red"]["w"].reshape(Cin, r3),
         params["b3_red"]["w"].reshape(Cin, r5),
         params["b1"]["w"].reshape(Cin, o1)], axis=-1).astype(jnp.bfloat16)
    w_pool = params["b4"]["w"].reshape(Cin, op).astype(jnp.bfloat16)

    zr3, zr5, zdir, ssum1, ssq1 = _run_stage1(x, w_main, w_pool, TH,
                                              o1, r3, r5, op)

    gamma1 = jnp.concatenate([params["b2_red"]["gamma"], params["b3_red"]["gamma"],
                              params["b1"]["gamma"], params["b4"]["gamma"]])
    beta1 = jnp.concatenate([params["b2_red"]["beta"], params["b3_red"]["beta"],
                             params["b1"]["beta"], params["b4"]["beta"]])
    scale1, shift1 = _bn_scale_shift(ssum1, ssq1, count, gamma1, beta1)

    sc3 = scale1[:r3].reshape(1, r3)
    sh3 = shift1[:r3].reshape(1, r3)
    sc5 = scale1[r3:r3 + r5].reshape(1, r5)
    sh5 = shift1[r3:r3 + r5].reshape(1, r5)

    w3 = params["b2_out"]["w"].reshape(9, r3, out3).astype(jnp.bfloat16)
    w5 = params["b3_out"]["w"].reshape(25, r5, out5).astype(jnp.bfloat16)

    # Stage 2: (BN+ReLU of reduce channels) fused with the 3x3 / 5x5 convs.
    z2, ssum2, ssq2 = _run_convk(zr3, sc3, sh3, w3, 3, TH)
    z3, ssum3, ssq3 = _run_convk(zr5, sc5, sh5, w5, 5, TH)

    scale2, shift2 = _bn_scale_shift(ssum2, ssq2, count,
                                     params["b2_out"]["gamma"],
                                     params["b2_out"]["beta"])
    scale3, shift3 = _bn_scale_shift(ssum3, ssq3, count,
                                     params["b3_out"]["gamma"],
                                     params["b3_out"]["beta"])

    sc_out = jnp.concatenate([scale1[r3 + r5:r3 + r5 + o1], scale2, scale3,
                              scale1[r3 + r5 + o1:]]).reshape(1, Ctot)
    sh_out = jnp.concatenate([shift1[r3 + r5:r3 + r5 + o1], shift2, shift3,
                              shift1[r3 + r5 + o1:]]).reshape(1, Ctot)

    kf = functools.partial(_finalize_kernel, o1=o1)
    out = pl.pallas_call(
        kf,
        out_shape=jax.ShapeDtypeStruct((N, H, W, Ctot), jnp.float32),
        grid=(N, HT),
        in_specs=[
            pl.BlockSpec((1, TH, W, o1 + op), lambda n, h: (n, h, 0, 0)),
            pl.BlockSpec((1, TH, W, out3), lambda n, h: (n, h, 0, 0)),
            pl.BlockSpec((1, TH, W, out5), lambda n, h: (n, h, 0, 0)),
            pl.BlockSpec((1, Ctot), lambda n, h: (0, 0)),
            pl.BlockSpec((1, Ctot), lambda n, h: (0, 0)),
        ],
        out_specs=pl.BlockSpec((1, TH, W, Ctot), lambda n, h: (n, h, 0, 0)),
        compiler_params=pltpu.CompilerParams(
            dimension_semantics=("parallel", "parallel"),
            vmem_limit_bytes=_VMEM_LIMIT),
    )(zdir, z2, z3, sc_out, sh_out)

    return jnp.transpose(out, (0, 3, 1, 2))                        # -> NCHW


# ---------------------------------------------------------------------------
# Parameter init (bias kept for parity with nn.Conv2d; cancelled by BN)
# ---------------------------------------------------------------------------

def init_conv_block(key, cin, cout, k):
    kw, kb, kg, kbe = jax.random.split(key, 4)
    return dict(
        w=0.1 * jax.random.normal(kw, (k, k, cin, cout), jnp.float32),
        b=0.1 * jax.random.normal(kb, (cout,), jnp.float32),
        gamma=1.0 + 0.1 * jax.random.normal(kg, (cout,), jnp.float32),
        beta=0.1 * jax.random.normal(kbe, (cout,), jnp.float32),
    )


def init_inception_block(key, in_ch, out_1x1, red_3x3, out_3x3,
                         red_5x5, out_5x5, out_1x1pool):
    keys = jax.random.split(key, 6)
    return dict(
        b1=init_conv_block(keys[0], in_ch, out_1x1, 1),
        b2_red=init_conv_block(keys[1], in_ch, red_3x3, 1),
        b2_out=init_conv_block(keys[2], red_3x3, out_3x3, 3),
        b3_red=init_conv_block(keys[3], in_ch, red_5x5, 1),
        b3_out=init_conv_block(keys[4], red_5x5, out_5x5, 5),
        b4=init_conv_block(keys[5], in_ch, out_1x1pool, 1),
    )


# ---------------------------------------------------------------------------
# Pure-JAX (f32) reference implementing the exact PyTorch forward semantics
# ---------------------------------------------------------------------------

def _ref_conv_block(x, p):
    z = jax.lax.conv_general_dilated(
        x, p["w"], window_strides=(1, 1), padding="SAME",
        dimension_numbers=("NHWC", "HWIO", "NHWC")) + p["b"]
    mean = jnp.mean(z, axis=(0, 1, 2))
    var = jnp.mean((z - mean) ** 2, axis=(0, 1, 2))
    y = (z - mean) * p["gamma"] / jnp.sqrt(var + _BN_EPS) + p["beta"]
    return jnp.maximum(y, 0.0)


def _ref_inception(x_nchw, params):
    x = jnp.transpose(x_nchw, (0, 2, 3, 1)).astype(jnp.float32)
    b1 = _ref_conv_block(x, params["b1"])
    b2 = _ref_conv_block(_ref_conv_block(x, params["b2_red"]), params["b2_out"])
    b3 = _ref_conv_block(_ref_conv_block(x, params["b3_red"]), params["b3_out"])
    xp = jax.lax.reduce_window(x, -jnp.inf, jax.lax.max, (1, 3, 3, 1),
                               (1, 1, 1, 1),
                               ((0, 0), (1, 1), (1, 1), (0, 0)))
    b4 = _ref_conv_block(xp, params["b4"])
    out = jnp.concatenate([b1, b2, b3, b4], axis=-1)
    return jnp.transpose(out, (0, 3, 1, 2))


if __name__ == "__main__":
    key = jax.random.PRNGKey(0)
    k_x, k_p = jax.random.split(key)

    N, C, H, W = 2, 8, 16, 16
    x = jax.random.normal(k_x, (N, C, H, W), jnp.float32)

    params = init_inception_block(
        k_p, in_ch=C, out_1x1=8, red_3x3=8, out_3x3=16,
        red_5x5=4, out_5x5=8, out_1x1pool=8,
    )

    fwd = jax.jit(inception_block)
    out = jax.block_until_ready(fwd(x, params))

    expected = (N, 8 + 16 + 8 + 8, H, W)
    assert out.shape == expected, (out.shape, expected)
    assert bool(jnp.all(out >= 0.0))                    # ReLU output

    ref = _ref_inception(x, params)                     # f32 PyTorch semantics
    err = float(jnp.max(jnp.abs(out - ref)))
    assert err < 0.15, f"max |out - ref| = {err}"       # bf16 matmul tolerance

    print("KERNEL_OK")
</pallas_src>

<mosaic_0001>
module attributes {stable_mosaic.version = 11 : i64} {
  func.func @_stage1_kernel(%arg0: i32, %arg1: i32, %arg2: memref<1x16x16x8xf32, #tpu.memory_space<vmem>>, %arg3: memref<8x20xbf16, #tpu.memory_space<vmem>>, %arg4: memref<8x8xbf16, #tpu.memory_space<vmem>>, %arg5: memref<1x8x16x8xbf16, #tpu.memory_space<vmem>>, %arg6: memref<1x8x16x4xbf16, #tpu.memory_space<vmem>>, %arg7: memref<1x8x16x16xbf16, #tpu.memory_space<vmem>>, %arg8: memref<1x1x28xf32, #tpu.memory_space<vmem>>, %arg9: memref<1x1x28xf32, #tpu.memory_space<vmem>>) attributes {dimension_semantics = [#tpu.dimension_semantics<parallel>, #tpu.dimension_semantics<parallel>], iteration_bounds = array<i64: 2, 2>, scalar_prefetch = 0 : i64, scratch_operands = 0 : i64, tpu.core_type = #tpu.core_type<tc>, window_params = [{transform_indices = @transform_0, window_bounds = array<i64: 1, 16, 16, 8>}, {pipeline_mode = #tpu.pipeline_mode<synchronous>, transform_indices = @transform_1, window_bounds = array<i64: 8, 20>}, {pipeline_mode = #tpu.pipeline_mode<synchronous>, transform_indices = @transform_2, window_bounds = array<i64: 8, 8>}, {transform_indices = @transform_3, window_bounds = array<i64: 1, 8, 16, 8>}, {transform_indices = @transform_4, window_bounds = array<i64: 1, 8, 16, 4>}, {transform_indices = @transform_5, window_bounds = array<i64: 1, 8, 16, 16>}, {transform_indices = @transform_6, window_bounds = array<i64: 1, 1, 28>}, {transform_indices = @transform_7, window_bounds = array<i64: 1, 1, 28>}]} {
    %c8_i32 = arith.constant 8 : i32
    %0 = arith.muli %arg1, %c8_i32 : i32
    %1 = tpu.assume_multiple %0, 8 : i32
    %c0 = arith.constant 0 : index
    %2 = arith.index_cast %1 : i32 to index
    %c0_0 = arith.constant 0 : index
    %c0_1 = arith.constant 0 : index
    %3 = vector.load %arg2[%c0, %2, %c0_0, %c0_1] : memref<1x16x16x8xf32, #tpu.memory_space<vmem>>, vector<1x8x16x8xf32>
    %4 = vector.shape_cast %3 : vector<1x8x16x8xf32> to vector<8x16x8xf32>
    %c1_i32 = arith.constant 1 : i32
    %5 = arith.subi %1, %c1_i32 : i32
    %c0_i32 = arith.constant 0 : i32
    %6 = arith.maxsi %5, %c0_i32 : i32
    %c0_2 = arith.constant 0 : index
    %7 = arith.index_cast %6 : i32 to index
    %c0_3 = arith.constant 0 : index
    %c0_4 = arith.constant 0 : index
    %8 = vector.load %arg2[%c0_2, %7, %c0_3, %c0_4] : memref<1x16x16x8xf32, #tpu.memory_space<vmem>>, vector<1x1x16x8xf32>
    %9 = vector.shape_cast %8 : vector<1x1x16x8xf32> to vector<1x16x8xf32>
    %c8_i32_5 = arith.constant 8 : i32
    %10 = arith.addi %1, %c8_i32_5 : i32
    %c15_i32 = arith.constant 15 : i32
    %11 = arith.minsi %10, %c15_i32 : i32
    %c0_6 = arith.constant 0 : index
    %12 = arith.index_cast %11 : i32 to index
    %c0_7 = arith.constant 0 : index
    %c0_8 = arith.constant 0 : index
    %13 = vector.load %arg2[%c0_6, %12, %c0_7, %c0_8] : memref<1x16x16x8xf32, #tpu.memory_space<vmem>>, vector<1x1x16x8xf32>
    %14 = vector.shape_cast %13 : vector<1x1x16x8xf32> to vector<1x16x8xf32>
    %15 = tpu.concatenate %9, %4, %14 in 0 : vector<1x16x8xf32>, vector<8x16x8xf32>, vector<1x16x8xf32> -> vector<10x16x8xf32>
    %16 = vector.extract_strided_slice %15 {offsets = [0, 1, 0], sizes = [10, 15, 8], strides = [1, 1, 1]} : vector<10x16x8xf32> to vector<10x15x8xf32>
    %17 = vector.extract_strided_slice %15 {offsets = [0, 15, 0], sizes = [10, 1, 8], strides = [1, 1, 1]} : vector<10x16x8xf32> to vector<10x1x8xf32>
    %18 = tpu.concatenate %16, %17 in 1 : vector<10x15x8xf32>, vector<10x1x8xf32> -> vector<10x16x8xf32>
    %19 = vector.extract_strided_slice %15 {offsets = [0, 0, 0], sizes = [10, 1, 8], strides = [1, 1, 1]} : vector<10x16x8xf32> to vector<10x1x8xf32>
    %20 = vector.extract_strided_slice %15 {offsets = [0, 0, 0], sizes = [10, 15, 8], strides = [1, 1, 1]} : vector<10x16x8xf32> to vector<10x15x8xf32>
    %21 = tpu.concatenate %19, %20 in 1 : vector<10x1x8xf32>, vector<10x15x8xf32> -> vector<10x16x8xf32>
    %22 = arith.maximumf %15, %18 : vector<10x16x8xf32>
    %23 = arith.maximumf %22, %21 : vector<10x16x8xf32>
    %24 = vector.extract_strided_slice %23 {offsets = [0, 0, 0], sizes = [8, 16, 8], strides = [1, 1, 1]} : vector<10x16x8xf32> to vector<8x16x8xf32>
    %25 = vector.extract_strided_slice %23 {offsets = [1, 0, 0], sizes = [8, 16, 8], strides = [1, 1, 1]} : vector<10x16x8xf32> to vector<8x16x8xf32>
    %26 = arith.maximumf %24, %25 : vector<8x16x8xf32>
    %27 = vector.extract_strided_slice %23 {offsets = [2, 0, 0], sizes = [8, 16, 8], strides = [1, 1, 1]} : vector<10x16x8xf32> to vector<8x16x8xf32>
    %28 = arith.maximumf %26, %27 : vector<8x16x8xf32>
    %29 = arith.truncf %4 : vector<8x16x8xf32> to vector<8x16x8xbf16>
    %30 = vector.shape_cast %29 : vector<8x16x8xbf16> to vector<128x8xbf16>
    %31 = arith.truncf %28 : vector<8x16x8xf32> to vector<8x16x8xbf16>
    %32 = vector.shape_cast %31 : vector<8x16x8xbf16> to vector<128x8xbf16>
    %c0_9 = arith.constant 0 : index
    %c0_10 = arith.constant 0 : index
    %33 = vector.load %arg3[%c0_9, %c0_10] : memref<8x20xbf16, #tpu.memory_space<vmem>>, vector<8x20xbf16>
    %cst = arith.constant dense<0.000000e+00> : vector<128x20xf32>
    %34 = tpu.matmul %30, %33, %cst {dimension_numbers = #tpu.dot_dimension_numbers<[1], [0], [0], [1], [0, 0, 1, 1], [], []>} : vector<128x8xbf16>, vector<8x20xbf16>, vector<128x20xf32> -> vector<128x20xf32>
    %c0_11 = arith.constant 0 : index
    %c0_12 = arith.constant 0 : index
    %35 = vector.load %arg4[%c0_11, %c0_12] : memref<8x8xbf16, #tpu.memory_space<vmem>>, vector<8x8xbf16>
    %cst_13 = arith.constant dense<0.000000e+00> : vector<128x8xf32>
    %36 = tpu.matmul %32, %35, %cst_13 {dimension_numbers = #tpu.dot_dimension_numbers<[1], [0], [0], [1], [0, 0, 1, 1], [], []>} : vector<128x8xbf16>, vector<8x8xbf16>, vector<128x8xf32> -> vector<128x8xf32>
    %37 = vector.extract_strided_slice %34 {offsets = [0, 0], sizes = [128, 8], strides = [1, 1]} : vector<128x20xf32> to vector<128x8xf32>
    %38 = arith.truncf %37 : vector<128x8xf32> to vector<128x8xbf16>
    %39 = vector.shape_cast %38 : vector<128x8xbf16> to vector<1x8x16x8xbf16>
    %c0_14 = arith.constant 0 : index
    %c0_15 = arith.constant 0 : index
    %c0_16 = arith.constant 0 : index
    %c0_17 = arith.constant 0 : index
    %40 = vector.load %arg5[%c0_14, %c0_15, %c0_16, %c0_17] : memref<1x8x16x8xbf16, #tpu.memory_space<vmem>>, vector<1x8x16x8xbf16>
    tpu.vector_store %arg5[%c0_14, %c0_15, %c0_16, %c0_17], %39 {strides = array<i32>} : memref<1x8x16x8xbf16, #tpu.memory_space<vmem>>, vector<1x8x16x8xbf16>,
    %41 = vector.extract_strided_slice %34 {offsets = [0, 8], sizes = [128, 4], strides = [1, 1]} : vector<128x20xf32> to vector<128x4xf32>
    %42 = arith.truncf %41 : vector<128x4xf32> to vector<128x4xbf16>
    %43 = vector.shape_cast %42 : vector<128x4xbf16> to vector<1x8x16x4xbf16>
    %c0_18 = arith.constant 0 : index
    %c0_19 = arith.constant 0 : index
    %c0_20 = arith.constant 0 : index
    %c0_21 = arith.constant 0 : index
    %44 = vector.load %arg6[%c0_18, %c0_19, %c0_20, %c0_21] : memref<1x8x16x4xbf16, #tpu.memory_space<vmem>>, vector<1x8x16x4xbf16>
    tpu.vector_store %arg6[%c0_18, %c0_19, %c0_20, %c0_21], %43 {strides = array<i32>} : memref<1x8x16x4xbf16, #tpu.memory_space<vmem>>, vector<1x8x16x4xbf16>,
    %45 = vector.extract_strided_slice %34 {offsets = [0, 12], sizes = [128, 8], strides = [1, 1]} : vector<128x20xf32> to vector<128x8xf32>
    %46 = tpu.concatenate %45, %36 in 1 : vector<128x8xf32>, vector<128x8xf32> -> vector<128x16xf32>
    %47 = arith.truncf %46 : vector<128x16xf32> to vector<128x16xbf16>
    %48 = vector.shape_cast %47 : vector<128x16xbf16> to vector<1x8x16x16xbf16>
    %c0_22 = arith.constant 0 : index
    %c0_23 = arith.constant 0 : index
    %c0_24 = arith.constant 0 : index
    %c0_25 = arith.constant 0 : index
    %49 = vector.load %arg7[%c0_22, %c0_23, %c0_24, %c0_25] : memref<1x8x16x16xbf16, #tpu.memory_space<vmem>>, vector<1x8x16x16xbf16>
    tpu.vector_store %arg7[%c0_22, %c0_23, %c0_24, %c0_25], %48 {strides = array<i32>} : memref<1x8x16x16xbf16, #tpu.memory_space<vmem>>, vector<1x8x16x16xbf16>,
    %cst_26 = arith.constant dense<0.000000e+00> : vector<20xf32>
    %50 = vector.multi_reduction <add>, %34, %cst_26 [0] : vector<128x20xf32> to vector<20xf32>
    %51 = vector.shape_cast %50 : vector<20xf32> to vector<1x20xf32>
    %cst_27 = arith.constant dense<0.000000e+00> : vector<8xf32>
    %52 = vector.multi_reduction <add>, %36, %cst_27 [0] : vector<128x8xf32> to vector<8xf32>
    %53 = vector.shape_cast %52 : vector<8xf32> to vector<1x8xf32>
    %54 = tpu.concatenate %51, %53 in 1 : vector<1x20xf32>, vector<1x8xf32> -> vector<1x28xf32>
    %55 = vector.shape_cast %54 : vector<1x28xf32> to vector<1x1x28xf32>
    %c0_28 = arith.constant 0 : index
    %c0_29 = arith.constant 0 : index
    %c0_30 = arith.constant 0 : index
    %56 = vector.load %arg8[%c0_28, %c0_29, %c0_30] : memref<1x1x28xf32, #tpu.memory_space<vmem>>, vector<1x1x28xf32>
    tpu.vector_store %arg8[%c0_28, %c0_29, %c0_30], %55 {strides = array<i32>} : memref<1x1x28xf32, #tpu.memory_space<vmem>>, vector<1x1x28xf32>,
    %57 = arith.mulf %34, %34 : vector<128x20xf32>
    %cst_31 = arith.constant dense<0.000000e+00> : vector<20xf32>
    %58 = vector.multi_reduction <add>, %57, %cst_31 [0] : vector<128x20xf32> to vector<20xf32>
    %59 = vector.shape_cast %58 : vector<20xf32> to vector<1x20xf32>
    %60 = arith.mulf %36, %36 : vector<128x8xf32>
    %cst_32 = arith.constant dense<0.000000e+00> : vector<8xf32>
    %61 = vector.multi_reduction <add>, %60, %cst_32 [0] : vector<128x8xf32> to vector<8xf32>
    %62 = vector.shape_cast %61 : vector<8xf32> to vector<1x8xf32>
    %63 = tpu.concatenate %59, %62 in 1 : vector<1x20xf32>, vector<1x8xf32> -> vector<1x28xf32>
    %64 = vector.shape_cast %63 : vector<1x28xf32> to vector<1x1x28xf32>
    %c0_33 = arith.constant 0 : index
    %c0_34 = arith.constant 0 : index
    %c0_35 = arith.constant 0 : index
    %65 = vector.load %arg9[%c0_33, %c0_34, %c0_35] : memref<1x1x28xf32, #tpu.memory_space<vmem>>, vector<1x1x28xf32>
    tpu.vector_store %arg9[%c0_33, %c0_34, %c0_35], %64 {strides = array<i32>} : memref<1x1x28xf32, #tpu.memory_space<vmem>>, vector<1x1x28xf32>,
    return
  }
  func.func @transform_0(%arg0: i32, %arg1: i32) -> (i32, i32, i32, i32) {
    %c0_i32 = arith.constant 0 : i32
    %c0_i32_0 = arith.constant 0 : i32
    %c0_i32_1 = arith.constant 0 : i32
    %c0_i32_2 = arith.constant 0 : i32
    return %arg0, %c0_i32, %c0_i32_0, %c0_i32_1 : i32, i32, i32, i32
  }
  func.func @transform_1(%arg0: i32, %arg1: i32) -> (i32, i32) {
    %c0_i32 = arith.constant 0 : i32
    %c0_i32_0 = arith.constant 0 : i32
    %c0_i32_1 = arith.constant 0 : i32
    return %c0_i32, %c0_i32_0 : i32, i32
  }
  func.func @transform_2(%arg0: i32, %arg1: i32) -> (i32, i32) {
    %c0_i32 = arith.constant 0 : i32
    %c0_i32_0 = arith.constant 0 : i32
    %c0_i32_1 = arith.constant 0 : i32
    return %c0_i32, %c0_i32_0 : i32, i32
  }
  func.func @transform_3(%arg0: i32, %arg1: i32) -> (i32, i32, i32, i32) {
    %c0_i32 = arith.constant 0 : i32
    %c0_i32_0 = arith.constant 0 : i32
    %c0_i32_1 = arith.constant 0 : i32
    return %arg0, %arg1, %c0_i32, %c0_i32_0 : i32, i32, i32, i32
  }
  func.func @transform_4(%arg0: i32, %arg1: i32) -> (i32, i32, i32, i32) {
    %c0_i32 = arith.constant 0 : i32
    %c0_i32_0 = arith.constant 0 : i32
    %c0_i32_1 = arith.constant 0 : i32
    return %arg0, %arg1, %c0_i32, %c0_i32_0 : i32, i32, i32, i32
  }
  func.func @transform_5(%arg0: i32, %arg1: i32) -> (i32, i32, i32, i32) {
    %c0_i32 = arith.constant 0 : i32
    %c0_i32_0 = arith.constant 0 : i32
    %c0_i32_1 = arith.constant 0 : i32
    return %arg0, %arg1, %c0_i32, %c0_i32_0 : i32, i32, i32, i32
  }
  func.func @transform_6(%arg0: i32, %arg1: i32) -> (i32, i32, i32) {
    %c2_i32 = arith.constant 2 : i32
    %0 = arith.muli %arg0, %c2_i32 : i32
    %1 = arith.addi %0, %arg1 : i32
    %c0_i32 = arith.constant 0 : i32
    %c0_i32_0 = arith.constant 0 : i32
    %c0_i32_1 = arith.constant 0 : i32
    return %1, %c0_i32, %c0_i32_0 : i32, i32, i32
  }
  func.func @transform_7(%arg0: i32, %arg1: i32) -> (i32, i32, i32) {
    %c2_i32 = arith.constant 2 : i32
    %0 = arith.muli %arg0, %c2_i32 : i32
    %1 = arith.addi %0, %arg1 : i32
    %c0_i32 = arith.constant 0 : i32
    %c0_i32_0 = arith.constant 0 : i32
    %c0_i32_1 = arith.constant 0 : i32
    return %1, %c0_i32, %c0_i32_0 : i32, i32, i32
  }
}

module attributes {stable_mosaic.version = 11 : i64} {
  func.func @_convk_kernel(%arg0: i32, %arg1: i32, %arg2: memref<1x16x16x8xbf16, #tpu.memory_space<vmem>>, %arg3: memref<1x8xf32, #tpu.memory_space<vmem>>, %arg4: memref<1x8xf32, #tpu.memory_space<vmem>>, %arg5: memref<9x8x16xbf16, #tpu.memory_space<vmem>>, %arg6: memref<1x8x16x16xbf16, #tpu.memory_space<vmem>>, %arg7: memref<1x1x16xf32, #tpu.memory_space<vmem>>, %arg8: memref<1x1x16xf32, #tpu.memory_space<vmem>>) attributes {dimension_semantics = [#tpu.dimension_semantics<parallel>, #tpu.dimension_semantics<parallel>], iteration_bounds = array<i64: 2, 2>, scalar_prefetch = 0 : i64, scratch_operands = 0 : i64, tpu.core_type = #tpu.core_type<tc>, window_params = [{transform_indices = @transform_0, window_bounds = array<i64: 1, 16, 16, 8>}, {pipeline_mode = #tpu.pipeline_mode<synchronous>, transform_indices = @transform_1, window_bounds = array<i64: 1, 8>}, {pipeline_mode = #tpu.pipeline_mode<synchronous>, transform_indices = @transform_2, window_bounds = array<i64: 1, 8>}, {pipeline_mode = #tpu.pipeline_mode<synchronous>, transform_indices = @transform_3, window_bounds = array<i64: 9, 8, 16>}, {transform_indices = @transform_4, window_bounds = array<i64: 1, 8, 16, 16>}, {transform_indices = @transform_5, window_bounds = array<i64: 1, 1, 16>}, {transform_indices = @transform_6, window_bounds = array<i64: 1, 1, 16>}]} {
    %c8_i32 = arith.constant 8 : i32
    %0 = arith.muli %arg1, %c8_i32 : i32
    %1 = tpu.assume_multiple %0, 8 : i32
    %c1_i32 = arith.constant 1 : i32
    %2 = arith.subi %1, %c1_i32 : i32
    %c0_i32 = arith.constant 0 : i32
    %3 = arith.addi %2, %c0_i32 : i32
    %c0_i32_0 = arith.constant 0 : i32
    %c15_i32 = arith.constant 15 : i32
    %4 = arith.maxsi %c0_i32_0, %3 : i32
    %5 = arith.minsi %c15_i32, %4 : i32
    %c0 = arith.constant 0 : index
    %6 = arith.index_cast %5 : i32 to index
    %c0_1 = arith.constant 0 : index
    %c0_2 = arith.constant 0 : index
    %7 = vector.load %arg2[%c0, %6, %c0_1, %c0_2] : memref<1x16x16x8xbf16, #tpu.memory_space<vmem>>, vector<1x1x16x8xbf16>
    %8 = vector.shape_cast %7 : vector<1x1x16x8xbf16> to vector<1x16x8xbf16>
    %c0_i32_3 = arith.constant 0 : i32
    %9 = arith.cmpi sge, %3, %c0_i32_3 : i32
    %10 = arith.extf %8 : vector<1x16x8xbf16> to vector<1x16x8xf32>
    %c0_4 = arith.constant 0 : index
    %c0_5 = arith.constant 0 : index
    %11 = vector.load %arg3[%c0_4, %c0_5] : memref<1x8xf32, #tpu.memory_space<vmem>>, vector<1x8xf32>
    %12 = vector.shape_cast %11 : vector<1x8xf32> to vector<1x1x8xf32>
    %13 = vector.broadcast %12 : vector<1x1x8xf32> to vector<1x16x8xf32>
    %14 = arith.mulf %10, %13 : vector<1x16x8xf32>
    %c0_6 = arith.constant 0 : index
    %c0_7 = arith.constant 0 : index
    %15 = vector.load %arg4[%c0_6, %c0_7] : memref<1x8xf32, #tpu.memory_space<vmem>>, vector<1x8xf32>
    %16 = vector.shape_cast %15 : vector<1x8xf32> to vector<1x1x8xf32>
    %17 = vector.broadcast %16 : vector<1x1x8xf32> to vector<1x16x8xf32>
    %18 = arith.addf %14, %17 : vector<1x16x8xf32>
    %cst = arith.constant 0.000000e+00 : f32
    %19 = vector.broadcast %cst : f32 to vector<1x16x8xf32>
    %20 = arith.maximumf %18, %19 : vector<1x16x8xf32>
    %cst_8 = arith.constant 0.000000e+00 : f32
    %21 = vector.broadcast %cst_8 : f32 to vector<1x16x8xf32>
    %22 = arith.select %9, %20, %21 : vector<1x16x8xf32>
    %c0_9 = arith.constant 0 : index
    %23 = arith.index_cast %1 : i32 to index
    %c0_10 = arith.constant 0 : index
    %c0_11 = arith.constant 0 : index
    %24 = vector.load %arg2[%c0_9, %23, %c0_10, %c0_11] : memref<1x16x16x8xbf16, #tpu.memory_space<vmem>>, vector<1x8x16x8xbf16>
    %25 = vector.shape_cast %24 : vector<1x8x16x8xbf16> to vector<8x16x8xbf16>
    %26 = arith.extf %25 : vector<8x16x8xbf16> to vector<8x16x8xf32>
    %c0_12 = arith.constant 0 : index
    %c0_13 = arith.constant 0 : index
    %27 = vector.load %arg3[%c0_12, %c0_13] : memref<1x8xf32, #tpu.memory_space<vmem>>, vector<1x8xf32>
    %28 = vector.shape_cast %27 : vector<1x8xf32> to vector<1x1x8xf32>
    %29 = vector.broadcast %28 : vector<1x1x8xf32> to vector<8x16x8xf32>
    %30 = arith.mulf %26, %29 : vector<8x16x8xf32>
    %c0_14 = arith.constant 0 : index
    %c0_15 = arith.constant 0 : index
    %31 = vector.load %arg4[%c0_14, %c0_15] : memref<1x8xf32, #tpu.memory_space<vmem>>, vector<1x8xf32>
    %32 = vector.shape_cast %31 : vector<1x8xf32> to vector<1x1x8xf32>
    %33 = vector.broadcast %32 : vector<1x1x8xf32> to vector<8x16x8xf32>
    %34 = arith.addf %30, %33 : vector<8x16x8xf32>
    %cst_16 = arith.constant 0.000000e+00 : f32
    %35 = vector.broadcast %cst_16 : f32 to vector<8x16x8xf32>
    %36 = arith.maximumf %34, %35 : vector<8x16x8xf32>
    %c8_i32_17 = arith.constant 8 : i32
    %37 = arith.addi %1, %c8_i32_17 : i32
    %c0_i32_18 = arith.constant 0 : i32
    %38 = arith.addi %37, %c0_i32_18 : i32
    %c0_i32_19 = arith.constant 0 : i32
    %c15_i32_20 = arith.constant 15 : i32
    %39 = arith.maxsi %c0_i32_19, %38 : i32
    %40 = arith.minsi %c15_i32_20, %39 : i32
    %c0_21 = arith.constant 0 : index
    %41 = arith.index_cast %40 : i32 to index
    %c0_22 = arith.constant 0 : index
    %c0_23 = arith.constant 0 : index
    %42 = vector.load %arg2[%c0_21, %41, %c0_22, %c0_23] : memref<1x16x16x8xbf16, #tpu.memory_space<vmem>>, vector<1x1x16x8xbf16>
    %43 = vector.shape_cast %42 : vector<1x1x16x8xbf16> to vector<1x16x8xbf16>
    %c16_i32 = arith.constant 16 : i32
    %44 = arith.cmpi slt, %38, %c16_i32 : i32
    %45 = arith.extf %43 : vector<1x16x8xbf16> to vector<1x16x8xf32>
    %c0_24 = arith.constant 0 : index
    %c0_25 = arith.constant 0 : index
    %46 = vector.load %arg3[%c0_24, %c0_25] : memref<1x8xf32, #tpu.memory_space<vmem>>, vector<1x8xf32>
    %47 = vector.shape_cast %46 : vector<1x8xf32> to vector<1x1x8xf32>
    %48 = vector.broadcast %47 : vector<1x1x8xf32> to vector<1x16x8xf32>
    %49 = arith.mulf %45, %48 : vector<1x16x8xf32>
    %c0_26 = arith.constant 0 : index
    %c0_27 = arith.constant 0 : index
    %50 = vector.load %arg4[%c0_26, %c0_27] : memref<1x8xf32, #tpu.memory_space<vmem>>, vector<1x8xf32>
    %51 = vector.shape_cast %50 : vector<1x8xf32> to vector<1x1x8xf32>
    %52 = vector.broadcast %51 : vector<1x1x8xf32> to vector<1x16x8xf32>
    %53 = arith.addf %49, %52 : vector<1x16x8xf32>
    %cst_28 = arith.constant 0.000000e+00 : f32
    %54 = vector.broadcast %cst_28 : f32 to vector<1x16x8xf32>
    %55 = arith.maximumf %53, %54 : vector<1x16x8xf32>
    %cst_29 = arith.constant 0.000000e+00 : f32
    %56 = vector.broadcast %cst_29 : f32 to vector<1x16x8xf32>
    %57 = arith.select %44, %55, %56 : vector<1x16x8xf32>
    %58 = tpu.concatenate %22, %36, %57 in 0 : vector<1x16x8xf32>, vector<8x16x8xf32>, vector<1x16x8xf32> -> vector<10x16x8xf32>
    %cst_30 = arith.constant 0.000000e+00 : f32
    %59 = vector.broadcast %cst_30 : f32 to vector<10x1x8xf32>
    %60 = tpu.concatenate %59, %58, %59 in 1 : vector<10x1x8xf32>, vector<10x16x8xf32>, vector<10x1x8xf32> -> vector<10x18x8xf32>
    %61 = arith.truncf %60 : vector<10x18x8xf32> to vector<10x18x8xbf16>
    %cst_31 = arith.constant 0.000000e+00 : f32
    %62 = vector.broadcast %cst_31 : f32 to vector<128x16xf32>
    %63 = vector.extract_strided_slice %61 {offsets = [0, 0, 0], sizes = [8, 16, 8], strides = [1, 1, 1]} : vector<10x18x8xbf16> to vector<8x16x8xbf16>
    %64 = vector.shape_cast %63 : vector<8x16x8xbf16> to vector<128x8xbf16>
    %c0_32 = arith.constant 0 : index
    %c0_33 = arith.constant 0 : index
    %c0_34 = arith.constant 0 : index
    %65 = vector.load %arg5[%c0_32, %c0_33, %c0_34] : memref<9x8x16xbf16, #tpu.memory_space<vmem>>, vector<1x8x16xbf16>
    %66 = vector.shape_cast %65 : vector<1x8x16xbf16> to vector<8x16xbf16>
    %cst_35 = arith.constant dense<0.000000e+00> : vector<128x16xf32>
    %67 = tpu.matmul %64, %66, %cst_35 {dimension_numbers = #tpu.dot_dimension_numbers<[1], [0], [0], [1], [0, 0, 1, 1], [], []>} : vector<128x8xbf16>, vector<8x16xbf16>, vector<128x16xf32> -> vector<128x16xf32>
    %68 = arith.addf %62, %67 : vector<128x16xf32>
    %69 = vector.extract_strided_slice %61 {offsets = [0, 1, 0], sizes = [8, 16, 8], strides = [1, 1, 1]} : vector<10x18x8xbf16> to vector<8x16x8xbf16>
    %70 = vector.shape_cast %69 : vector<8x16x8xbf16> to vector<128x8xbf16>
    %c1 = arith.constant 1 : index
    %c0_36 = arith.constant 0 : index
    %c0_37 = arith.constant 0 : index
    %71 = vector.load %arg5[%c1, %c0_36, %c0_37] : memref<9x8x16xbf16, #tpu.memory_space<vmem>>, vector<1x8x16xbf16>
    %72 = vector.shape_cast %71 : vector<1x8x16xbf16> to vector<8x16xbf16>
    %cst_38 = arith.constant dense<0.000000e+00> : vector<128x16xf32>
    %73 = tpu.matmul %70, %72, %cst_38 {dimension_numbers = #tpu.dot_dimension_numbers<[1], [0], [0], [1], [0, 0, 1, 1], [], []>} : vector<128x8xbf16>, vector<8x16xbf16>, vector<128x16xf32> -> vector<128x16xf32>
    %74 = arith.addf %68, %73 : vector<128x16xf32>
    %75 = vector.extract_strided_slice %61 {offsets = [0, 2, 0], sizes = [8, 16, 8], strides = [1, 1, 1]} : vector<10x18x8xbf16> to vector<8x16x8xbf16>
    %76 = vector.shape_cast %75 : vector<8x16x8xbf16> to vector<128x8xbf16>
    %c2 = arith.constant 2 : index
    %c0_39 = arith.constant 0 : index
    %c0_40 = arith.constant 0 : index
    %77 = vector.load %arg5[%c2, %c0_39, %c0_40] : memref<9x8x16xbf16, #tpu.memory_space<vmem>>, vector<1x8x16xbf16>
    %78 = vector.shape_cast %77 : vector<1x8x16xbf16> to vector<8x16xbf16>
    %cst_41 = arith.constant dense<0.000000e+00> : vector<128x16xf32>
    %79 = tpu.matmul %76, %78, %cst_41 {dimension_numbers = #tpu.dot_dimension_numbers<[1], [0], [0], [1], [0, 0, 1, 1], [], []>} : vector<128x8xbf16>, vector<8x16xbf16>, vector<128x16xf32> -> vector<128x16xf32>
    %80 = arith.addf %74, %79 : vector<128x16xf32>
    %81 = vector.extract_strided_slice %61 {offsets = [1, 0, 0], sizes = [8, 16, 8], strides = [1, 1, 1]} : vector<10x18x8xbf16> to vector<8x16x8xbf16>
    %82 = vector.shape_cast %81 : vector<8x16x8xbf16> to vector<128x8xbf16>
    %c3 = arith.constant 3 : index
    %c0_42 = arith.constant 0 : index
    %c0_43 = arith.constant 0 : index
    %83 = vector.load %arg5[%c3, %c0_42, %c0_43] : memref<9x8x16xbf16, #tpu.memory_space<vmem>>, vector<1x8x16xbf16>
    %84 = vector.shape_cast %83 : vector<1x8x16xbf16> to vector<8x16xbf16>
    %cst_44 = arith.constant dense<0.000000e+00> : vector<128x16xf32>
    %85 = tpu.matmul %82, %84, %cst_44 {dimension_numbers = #tpu.dot_dimension_numbers<[1], [0], [0], [1], [0, 0, 1, 1], [], []>} : vector<128x8xbf16>, vector<8x16xbf16>, vector<128x16xf32> -> vector<128x16xf32>
    %86 = arith.addf %80, %85 : vector<128x16xf32>
    %87 = vector.extract_strided_slice %61 {offsets = [1, 1, 0], sizes = [8, 16, 8], strides = [1, 1, 1]} : vector<10x18x8xbf16> to vector<8x16x8xbf16>
    %88 = vector.shape_cast %87 : vector<8x16x8xbf16> to vector<128x8xbf16>
    %c4 = arith.constant 4 : index
    %c0_45 = arith.constant 0 : index
    %c0_46 = arith.constant 0 : index
    %89 = vector.load %arg5[%c4, %c0_45, %c0_46] : memref<9x8x16xbf16, #tpu.memory_space<vmem>>, vector<1x8x16xbf16>
    %90 = vector.shape_cast %89 : vector<1x8x16xbf16> to vector<8x16xbf16>
    %cst_47 = arith.constant dense<0.000000e+00> : vector<128x16xf32>
    %91 = tpu.matmul %88, %90, %cst_47 {dimension_numbers = #tpu.dot_dimension_numbers<[1], [0], [0], [1], [0, 0, 1, 1], [], []>} : vector<128x8xbf16>, vector<8x16xbf16>, vector<128x16xf32> -> vector<128x16xf32>
    %92 = arith.addf %86, %91 : vector<128x16xf32>
    %93 = vector.extract_strided_slice %61 {offsets = [1, 2, 0], sizes = [8, 16, 8], strides = [1, 1, 1]} : vector<10x18x8xbf16> to vector<8x16x8xbf16>
    %94 = vector.shape_cast %93 : vector<8x16x8xbf16> to vector<128x8xbf16>
    %c5 = arith.constant 5 : index
    %c0_48 = arith.constant 0 : index
    %c0_49 = arith.constant 0 : index
    %95 = vector.load %arg5[%c5, %c0_48, %c0_49] : memref<9x8x16xbf16, #tpu.memory_space<vmem>>, vector<1x8x16xbf16>
    %96 = vector.shape_cast %95 : vector<1x8x16xbf16> to vector<8x16xbf16>
    %cst_50 = arith.constant dense<0.000000e+00> : vector<128x16xf32>
    %97 = tpu.matmul %94, %96, %cst_50 {dimension_numbers = #tpu.dot_dimension_numbers<[1], [0], [0], [1], [0, 0, 1, 1], [], []>} : vector<128x8xbf16>, vector<8x16xbf16>, vector<128x16xf32> -> vector<128x16xf32>
    %98 = arith.addf %92, %97 : vector<128x16xf32>
    %99 = vector.extract_strided_slice %61 {offsets = [2, 0, 0], sizes = [8, 16, 8], strides = [1, 1, 1]} : vector<10x18x8xbf16> to vector<8x16x8xbf16>
    %100 = vector.shape_cast %99 : vector<8x16x8xbf16> to vector<128x8xbf16>
    %c6 = arith.constant 6 : index
    %c0_51 = arith.constant 0 : index
    %c0_52 = arith.constant 0 : index
    %101 = vector.load %arg5[%c6, %c0_51, %c0_52] : memref<9x8x16xbf16, #tpu.memory_space<vmem>>, vector<1x8x16xbf16>
    %102 = vector.shape_cast %101 : vector<1x8x16xbf16> to vector<8x16xbf16>
    %cst_53 = arith.constant dense<0.000000e+00> : vector<128x16xf32>
    %103 = tpu.matmul %100, %102, %cst_53 {dimension_numbers = #tpu.dot_dimension_numbers<[1], [0], [0], [1], [0, 0, 1, 1], [], []>} : vector<128x8xbf16>, vector<8x16xbf16>, vector<128x16xf32> -> vector<128x16xf32>
    %104 = arith.addf %98, %103 : vector<128x16xf32>
    %105 = vector.extract_strided_slice %61 {offsets = [2, 1, 0], sizes = [8, 16, 8], strides = [1, 1, 1]} : vector<10x18x8xbf16> to vector<8x16x8xbf16>
    %106 = vector.shape_cast %105 : vector<8x16x8xbf16> to vector<128x8xbf16>
    %c7 = arith.constant 7 : index
    %c0_54 = arith.constant 0 : index
    %c0_55 = arith.constant 0 : index
    %107 = vector.load %arg5[%c7, %c0_54, %c0_55] : memref<9x8x16xbf16, #tpu.memory_space<vmem>>, vector<1x8x16xbf16>
    %108 = vector.shape_cast %107 : vector<1x8x16xbf16> to vector<8x16xbf16>
    %cst_56 = arith.constant dense<0.000000e+00> : vector<128x16xf32>
    %109 = tpu.matmul %106, %108, %cst_56 {dimension_numbers = #tpu.dot_dimension_numbers<[1], [0], [0], [1], [0, 0, 1, 1], [], []>} : vector<128x8xbf16>, vector<8x16xbf16>, vector<128x16xf32> -> vector<128x16xf32>
    %110 = arith.addf %104, %109 : vector<128x16xf32>
    %111 = vector.extract_strided_slice %61 {offsets = [2, 2, 0], sizes = [8, 16, 8], strides = [1, 1, 1]} : vector<10x18x8xbf16> to vector<8x16x8xbf16>
    %112 = vector.shape_cast %111 : vector<8x16x8xbf16> to vector<128x8xbf16>
    %c8 = arith.constant 8 : index
    %c0_57 = arith.constant 0 : index
    %c0_58 = arith.constant 0 : index
    %113 = vector.load %arg5[%c8, %c0_57, %c0_58] : memref<9x8x16xbf16, #tpu.memory_space<vmem>>, vector<1x8x16xbf16>
    %114 = vector.shape_cast %113 : vector<1x8x16xbf16> to vector<8x16xbf16>
    %cst_59 = arith.constant dense<0.000000e+00> : vector<128x16xf32>
    %115 = tpu.matmul %112, %114, %cst_59 {dimension_numbers = #tpu.dot_dimension_numbers<[1], [0], [0], [1], [0, 0, 1, 1], [], []>} : vector<128x8xbf16>, vector<8x16xbf16>, vector<128x16xf32> -> vector<128x16xf32>
    %116 = arith.addf %110, %115 : vector<128x16xf32>
    %117 = arith.truncf %116 : vector<128x16xf32> to vector<128x16xbf16>
    %118 = vector.shape_cast %117 : vector<128x16xbf16> to vector<1x8x16x16xbf16>
    %c0_60 = arith.constant 0 : index
    %c0_61 = arith.constant 0 : index
    %c0_62 = arith.constant 0 : index
    %c0_63 = arith.constant 0 : index
    %119 = vector.load %arg6[%c0_60, %c0_61, %c0_62, %c0_63] : memref<1x8x16x16xbf16, #tpu.memory_space<vmem>>, vector<1x8x16x16xbf16>
    tpu.vector_store %arg6[%c0_60, %c0_61, %c0_62, %c0_63], %118 {strides = array<i32>} : memref<1x8x16x16xbf16, #tpu.memory_space<vmem>>, vector<1x8x16x16xbf16>,
    %cst_64 = arith.constant dense<0.000000e+00> : vector<16xf32>
    %120 = vector.multi_reduction <add>, %116, %cst_64 [0] : vector<128x16xf32> to vector<16xf32>
    %121 = vector.shape_cast %120 : vector<16xf32> to vector<1x16xf32>
    %122 = vector.shape_cast %121 : vector<1x16xf32> to vector<1x1x16xf32>
    %c0_65 = arith.constant 0 : index
    %c0_66 = arith.constant 0 : index
    %c0_67 = arith.constant 0 : index
    %123 = vector.load %arg7[%c0_65, %c0_66, %c0_67] : memref<1x1x16xf32, #tpu.memory_space<vmem>>, vector<1x1x16xf32>
    tpu.vector_store %arg7[%c0_65, %c0_66, %c0_67], %122 {strides = array<i32>} : memref<1x1x16xf32, #tpu.memory_space<vmem>>, vector<1x1x16xf32>,
    %124 = arith.mulf %116, %116 : vector<128x16xf32>
    %cst_68 = arith.constant dense<0.000000e+00> : vector<16xf32>
    %125 = vector.multi_reduction <add>, %124, %cst_68 [0] : vector<128x16xf32> to vector<16xf32>
    %126 = vector.shape_cast %125 : vector<16xf32> to vector<1x16xf32>
    %127 = vector.shape_cast %126 : vector<1x16xf32> to vector<1x1x16xf32>
    %c0_69 = arith.constant 0 : index
    %c0_70 = arith.constant 0 : index
    %c0_71 = arith.constant 0 : index
    %128 = vector.load %arg8[%c0_69, %c0_70, %c0_71] : memref<1x1x16xf32, #tpu.memory_space<vmem>>, vector<1x1x16xf32>
    tpu.vector_store %arg8[%c0_69, %c0_70, %c0_71], %127 {strides = array<i32>} : memref<1x1x16xf32, #tpu.memory_space<vmem>>, vector<1x1x16xf32>,
    return
  }
  func.func @transform_0(%arg0: i32, %arg1: i32) -> (i32, i32, i32, i32) {
    %c0_i32 = arith.constant 0 : i32
    %c0_i32_0 = arith.constant 0 : i32
    %c0_i32_1 = arith.constant 0 : i32
    %c0_i32_2 = arith.constant 0 : i32
    return %arg0, %c0_i32, %c0_i32_0, %c0_i32_1 : i32, i32, i32, i32
  }
  func.func @transform_1(%arg0: i32, %arg1: i32) -> (i32, i32) {
    %c0_i32 = arith.constant 0 : i32
    %c0_i32_0 = arith.constant 0 : i32
    %c0_i32_1 = arith.constant 0 : i32
    return %c0_i32, %c0_i32_0 : i32, i32
  }
  func.func @transform_2(%arg0: i32, %arg1: i32) -> (i32, i32) {
    %c0_i32 = arith.constant 0 : i32
    %c0_i32_0 = arith.constant 0 : i32
    %c0_i32_1 = arith.constant 0 : i32
    return %c0_i32, %c0_i32_0 : i32, i32
  }
  func.func @transform_3(%arg0: i32, %arg1: i32) -> (i32, i32, i32) {
    %c0_i32 = arith.constant 0 : i32
    %c0_i32_0 = arith.constant 0 : i32
    %c0_i32_1 = arith.constant 0 : i32
    %c0_i32_2 = arith.constant 0 : i32
    return %c0_i32, %c0_i32_0, %c0_i32_1 : i32, i32, i32
  }
  func.func @transform_4(%arg0: i32, %arg1: i32) -> (i32, i32, i32, i32) {
    %c0_i32 = arith.constant 0 : i32
    %c0_i32_0 = arith.constant 0 : i32
    %c0_i32_1 = arith.constant 0 : i32
    return %arg0, %arg1, %c0_i32, %c0_i32_0 : i32, i32, i32, i32
  }
  func.func @transform_5(%arg0: i32, %arg1: i32) -> (i32, i32, i32) {
    %c2_i32 = arith.constant 2 : i32
    %0 = arith.muli %arg0, %c2_i32 : i32
    %1 = arith.addi %0, %arg1 : i32
    %c0_i32 = arith.constant 0 : i32
    %c0_i32_0 = arith.constant 0 : i32
    %c0_i32_1 = arith.constant 0 : i32
    return %1, %c0_i32, %c0_i32_0 : i32, i32, i32
  }
  func.func @transform_6(%arg0: i32, %arg1: i32) -> (i32, i32, i32) {
    %c2_i32 = arith.constant 2 : i32
    %0 = arith.muli %arg0, %c2_i32 : i32
    %1 = arith.addi %0, %arg1 : i32
    %c0_i32 = arith.constant 0 : i32
    %c0_i32_0 = arith.constant 0 : i32
    %c0_i32_1 = arith.constant 0 : i32
    return %1, %c0_i32, %c0_i32_0 : i32, i32, i32
  }
}

module attributes {stable_mosaic.version = 11 : i64} {
  func.func @_convk_kernel(%arg0: i32, %arg1: i32, %arg2: memref<1x16x16x4xbf16, #tpu.memory_space<vmem>>, %arg3: memref<1x4xf32, #tpu.memory_space<vmem>>, %arg4: memref<1x4xf32, #tpu.memory_space<vmem>>, %arg5: memref<25x4x8xbf16, #tpu.memory_space<vmem>>, %arg6: memref<1x8x16x8xbf16, #tpu.memory_space<vmem>>, %arg7: memref<1x1x8xf32, #tpu.memory_space<vmem>>, %arg8: memref<1x1x8xf32, #tpu.memory_space<vmem>>) attributes {dimension_semantics = [#tpu.dimension_semantics<parallel>, #tpu.dimension_semantics<parallel>], iteration_bounds = array<i64: 2, 2>, scalar_prefetch = 0 : i64, scratch_operands = 0 : i64, tpu.core_type = #tpu.core_type<tc>, window_params = [{transform_indices = @transform_0, window_bounds = array<i64: 1, 16, 16, 4>}, {pipeline_mode = #tpu.pipeline_mode<synchronous>, transform_indices = @transform_1, window_bounds = array<i64: 1, 4>}, {pipeline_mode = #tpu.pipeline_mode<synchronous>, transform_indices = @transform_2, window_bounds = array<i64: 1, 4>}, {pipeline_mode = #tpu.pipeline_mode<synchronous>, transform_indices = @transform_3, window_bounds = array<i64: 25, 4, 8>}, {transform_indices = @transform_4, window_bounds = array<i64: 1, 8, 16, 8>}, {transform_indices = @transform_5, window_bounds = array<i64: 1, 1, 8>}, {transform_indices = @transform_6, window_bounds = array<i64: 1, 1, 8>}]} {
    %c8_i32 = arith.constant 8 : i32
    %0 = arith.muli %arg1, %c8_i32 : i32
    %1 = tpu.assume_multiple %0, 8 : i32
    %c2_i32 = arith.constant 2 : i32
    %2 = arith.subi %1, %c2_i32 : i32
    %c0_i32 = arith.constant 0 : i32
    %3 = arith.addi %2, %c0_i32 : i32
    %c0_i32_0 = arith.constant 0 : i32
    %c15_i32 = arith.constant 15 : i32
    %4 = arith.maxsi %c0_i32_0, %3 : i32
    %5 = arith.minsi %c15_i32, %4 : i32
    %c0 = arith.constant 0 : index
    %6 = arith.index_cast %5 : i32 to index
    %c0_1 = arith.constant 0 : index
    %c0_2 = arith.constant 0 : index
    %7 = vector.load %arg2[%c0, %6, %c0_1, %c0_2] : memref<1x16x16x4xbf16, #tpu.memory_space<vmem>>, vector<1x1x16x4xbf16>
    %8 = vector.shape_cast %7 : vector<1x1x16x4xbf16> to vector<1x16x4xbf16>
    %c0_i32_3 = arith.constant 0 : i32
    %9 = arith.cmpi sge, %3, %c0_i32_3 : i32
    %10 = arith.extf %8 : vector<1x16x4xbf16> to vector<1x16x4xf32>
    %c0_4 = arith.constant 0 : index
    %c0_5 = arith.constant 0 : index
    %11 = vector.load %arg3[%c0_4, %c0_5] : memref<1x4xf32, #tpu.memory_space<vmem>>, vector<1x4xf32>
    %12 = vector.shape_cast %11 : vector<1x4xf32> to vector<1x1x4xf32>
    %13 = vector.broadcast %12 : vector<1x1x4xf32> to vector<1x16x4xf32>
    %14 = arith.mulf %10, %13 : vector<1x16x4xf32>
    %c0_6 = arith.constant 0 : index
    %c0_7 = arith.constant 0 : index
    %15 = vector.load %arg4[%c0_6, %c0_7] : memref<1x4xf32, #tpu.memory_space<vmem>>, vector<1x4xf32>
    %16 = vector.shape_cast %15 : vector<1x4xf32> to vector<1x1x4xf32>
    %17 = vector.broadcast %16 : vector<1x1x4xf32> to vector<1x16x4xf32>
    %18 = arith.addf %14, %17 : vector<1x16x4xf32>
    %cst = arith.constant 0.000000e+00 : f32
    %19 = vector.broadcast %cst : f32 to vector<1x16x4xf32>
    %20 = arith.maximumf %18, %19 : vector<1x16x4xf32>
    %cst_8 = arith.constant 0.000000e+00 : f32
    %21 = vector.broadcast %cst_8 : f32 to vector<1x16x4xf32>
    %22 = arith.select %9, %20, %21 : vector<1x16x4xf32>
    %c2_i32_9 = arith.constant 2 : i32
    %23 = arith.subi %1, %c2_i32_9 : i32
    %c1_i32 = arith.constant 1 : i32
    %24 = arith.addi %23, %c1_i32 : i32
    %c0_i32_10 = arith.constant 0 : i32
    %c15_i32_11 = arith.constant 15 : i32
    %25 = arith.maxsi %c0_i32_10, %24 : i32
    %26 = arith.minsi %c15_i32_11, %25 : i32
    %c0_12 = arith.constant 0 : index
    %27 = arith.index_cast %26 : i32 to index
    %c0_13 = arith.constant 0 : index
    %c0_14 = arith.constant 0 : index
    %28 = vector.load %arg2[%c0_12, %27, %c0_13, %c0_14] : memref<1x16x16x4xbf16, #tpu.memory_space<vmem>>, vector<1x1x16x4xbf16>
    %29 = vector.shape_cast %28 : vector<1x1x16x4xbf16> to vector<1x16x4xbf16>
    %c0_i32_15 = arith.constant 0 : i32
    %30 = arith.cmpi sge, %24, %c0_i32_15 : i32
    %31 = arith.extf %29 : vector<1x16x4xbf16> to vector<1x16x4xf32>
    %c0_16 = arith.constant 0 : index
    %c0_17 = arith.constant 0 : index
    %32 = vector.load %arg3[%c0_16, %c0_17] : memref<1x4xf32, #tpu.memory_space<vmem>>, vector<1x4xf32>
    %33 = vector.shape_cast %32 : vector<1x4xf32> to vector<1x1x4xf32>
    %34 = vector.broadcast %33 : vector<1x1x4xf32> to vector<1x16x4xf32>
    %35 = arith.mulf %31, %34 : vector<1x16x4xf32>
    %c0_18 = arith.constant 0 : index
    %c0_19 = arith.constant 0 : index
    %36 = vector.load %arg4[%c0_18, %c0_19] : memref<1x4xf32, #tpu.memory_space<vmem>>, vector<1x4xf32>
    %37 = vector.shape_cast %36 : vector<1x4xf32> to vector<1x1x4xf32>
    %38 = vector.broadcast %37 : vector<1x1x4xf32> to vector<1x16x4xf32>
    %39 = arith.addf %35, %38 : vector<1x16x4xf32>
    %cst_20 = arith.constant 0.000000e+00 : f32
    %40 = vector.broadcast %cst_20 : f32 to vector<1x16x4xf32>
    %41 = arith.maximumf %39, %40 : vector<1x16x4xf32>
    %cst_21 = arith.constant 0.000000e+00 : f32
    %42 = vector.broadcast %cst_21 : f32 to vector<1x16x4xf32>
    %43 = arith.select %30, %41, %42 : vector<1x16x4xf32>
    %c0_22 = arith.constant 0 : index
    %44 = arith.index_cast %1 : i32 to index
    %c0_23 = arith.constant 0 : index
    %c0_24 = arith.constant 0 : index
    %45 = vector.load %arg2[%c0_22, %44, %c0_23, %c0_24] : memref<1x16x16x4xbf16, #tpu.memory_space<vmem>>, vector<1x8x16x4xbf16>
    %46 = vector.shape_cast %45 : vector<1x8x16x4xbf16> to vector<8x16x4xbf16>
    %47 = arith.extf %46 : vector<8x16x4xbf16> to vector<8x16x4xf32>
    %c0_25 = arith.constant 0 : index
    %c0_26 = arith.constant 0 : index
    %48 = vector.load %arg3[%c0_25, %c0_26] : memref<1x4xf32, #tpu.memory_space<vmem>>, vector<1x4xf32>
    %49 = vector.shape_cast %48 : vector<1x4xf32> to vector<1x1x4xf32>
    %50 = vector.broadcast %49 : vector<1x1x4xf32> to vector<8x16x4xf32>
    %51 = arith.mulf %47, %50 : vector<8x16x4xf32>
    %c0_27 = arith.constant 0 : index
    %c0_28 = arith.constant 0 : index
    %52 = vector.load %arg4[%c0_27, %c0_28] : memref<1x4xf32, #tpu.memory_space<vmem>>, vector<1x4xf32>
    %53 = vector.shape_cast %52 : vector<1x4xf32> to vector<1x1x4xf32>
    %54 = vector.broadcast %53 : vector<1x1x4xf32> to vector<8x16x4xf32>
    %55 = arith.addf %51, %54 : vector<8x16x4xf32>
    %cst_29 = arith.constant 0.000000e+00 : f32
    %56 = vector.broadcast %cst_29 : f32 to vector<8x16x4xf32>
    %57 = arith.maximumf %55, %56 : vector<8x16x4xf32>
    %c8_i32_30 = arith.constant 8 : i32
    %58 = arith.addi %1, %c8_i32_30 : i32
    %c0_i32_31 = arith.constant 0 : i32
    %59 = arith.addi %58, %c0_i32_31 : i32
    %c0_i32_32 = arith.constant 0 : i32
    %c15_i32_33 = arith.constant 15 : i32
    %60 = arith.maxsi %c0_i32_32, %59 : i32
    %61 = arith.minsi %c15_i32_33, %60 : i32
    %c0_34 = arith.constant 0 : index
    %62 = arith.index_cast %61 : i32 to index
    %c0_35 = arith.constant 0 : index
    %c0_36 = arith.constant 0 : index
    %63 = vector.load %arg2[%c0_34, %62, %c0_35, %c0_36] : memref<1x16x16x4xbf16, #tpu.memory_space<vmem>>, vector<1x1x16x4xbf16>
    %64 = vector.shape_cast %63 : vector<1x1x16x4xbf16> to vector<1x16x4xbf16>
    %c16_i32 = arith.constant 16 : i32
    %65 = arith.cmpi slt, %59, %c16_i32 : i32
    %66 = arith.extf %64 : vector<1x16x4xbf16> to vector<1x16x4xf32>
    %c0_37 = arith.constant 0 : index
    %c0_38 = arith.constant 0 : index
    %67 = vector.load %arg3[%c0_37, %c0_38] : memref<1x4xf32, #tpu.memory_space<vmem>>, vector<1x4xf32>
    %68 = vector.shape_cast %67 : vector<1x4xf32> to vector<1x1x4xf32>
    %69 = vector.broadcast %68 : vector<1x1x4xf32> to vector<1x16x4xf32>
    %70 = arith.mulf %66, %69 : vector<1x16x4xf32>
    %c0_39 = arith.constant 0 : index
    %c0_40 = arith.constant 0 : index
    %71 = vector.load %arg4[%c0_39, %c0_40] : memref<1x4xf32, #tpu.memory_space<vmem>>, vector<1x4xf32>
    %72 = vector.shape_cast %71 : vector<1x4xf32> to vector<1x1x4xf32>
    %73 = vector.broadcast %72 : vector<1x1x4xf32> to vector<1x16x4xf32>
    %74 = arith.addf %70, %73 : vector<1x16x4xf32>
    %cst_41 = arith.constant 0.000000e+00 : f32
    %75 = vector.broadcast %cst_41 : f32 to vector<1x16x4xf32>
    %76 = arith.maximumf %74, %75 : vector<1x16x4xf32>
    %cst_42 = arith.constant 0.000000e+00 : f32
    %77 = vector.broadcast %cst_42 : f32 to vector<1x16x4xf32>
    %78 = arith.select %65, %76, %77 : vector<1x16x4xf32>
    %c8_i32_43 = arith.constant 8 : i32
    %79 = arith.addi %1, %c8_i32_43 : i32
    %c1_i32_44 = arith.constant 1 : i32
    %80 = arith.addi %79, %c1_i32_44 : i32
    %c0_i32_45 = arith.constant 0 : i32
    %c15_i32_46 = arith.constant 15 : i32
    %81 = arith.maxsi %c0_i32_45, %80 : i32
    %82 = arith.minsi %c15_i32_46, %81 : i32
    %c0_47 = arith.constant 0 : index
    %83 = arith.index_cast %82 : i32 to index
    %c0_48 = arith.constant 0 : index
    %c0_49 = arith.constant 0 : index
    %84 = vector.load %arg2[%c0_47, %83, %c0_48, %c0_49] : memref<1x16x16x4xbf16, #tpu.memory_space<vmem>>, vector<1x1x16x4xbf16>
    %85 = vector.shape_cast %84 : vector<1x1x16x4xbf16> to vector<1x16x4xbf16>
    %c16_i32_50 = arith.constant 16 : i32
    %86 = arith.cmpi slt, %80, %c16_i32_50 : i32
    %87 = arith.extf %85 : vector<1x16x4xbf16> to vector<1x16x4xf32>
    %c0_51 = arith.constant 0 : index
    %c0_52 = arith.constant 0 : index
    %88 = vector.load %arg3[%c0_51, %c0_52] : memref<1x4xf32, #tpu.memory_space<vmem>>, vector<1x4xf32>
    %89 = vector.shape_cast %88 : vector<1x4xf32> to vector<1x1x4xf32>
    %90 = vector.broadcast %89 : vector<1x1x4xf32> to vector<1x16x4xf32>
    %91 = arith.mulf %87, %90 : vector<1x16x4xf32>
    %c0_53 = arith.constant 0 : index
    %c0_54 = arith.constant 0 : index
    %92 = vector.load %arg4[%c0_53, %c0_54] : memref<1x4xf32, #tpu.memory_space<vmem>>, vector<1x4xf32>
    %93 = vector.shape_cast %92 : vector<1x4xf32> to vector<1x1x4xf32>
    %94 = vector.broadcast %93 : vector<1x1x4xf32> to vector<1x16x4xf32>
    %95 = arith.addf %91, %94 : vector<1x16x4xf32>
    %cst_55 = arith.constant 0.000000e+00 : f32
    %96 = vector.broadcast %cst_55 : f32 to vector<1x16x4xf32>
    %97 = arith.maximumf %95, %96 : vector<1x16x4xf32>
    %cst_56 = arith.constant 0.000000e+00 : f32
    %98 = vector.broadcast %cst_56 : f32 to vector<1x16x4xf32>
    %99 = arith.select %86, %97, %98 : vector<1x16x4xf32>
    %100 = tpu.concatenate %22, %43, %57, %78, %99 in 0 : vector<1x16x4xf32>, vector<1x16x4xf32>, vector<8x16x4xf32>, vector<1x16x4xf32>, vector<1x16x4xf32> -> vector<12x16x4xf32>
    %cst_57 = arith.constant 0.000000e+00 : f32
    %101 = vector.broadcast %cst_57 : f32 to vector<12x2x4xf32>
    %102 = tpu.concatenate %101, %100, %101 in 1 : vector<12x2x4xf32>, vector<12x16x4xf32>, vector<12x2x4xf32> -> vector<12x20x4xf32>
    %103 = arith.truncf %102 : vector<12x20x4xf32> to vector<12x20x4xbf16>
    %cst_58 = arith.constant 0.000000e+00 : f32
    %104 = vector.broadcast %cst_58 : f32 to vector<128x8xf32>
    %105 = vector.extract_strided_slice %103 {offsets = [0, 0, 0], sizes = [8, 16, 4], strides = [1, 1, 1]} : vector<12x20x4xbf16> to vector<8x16x4xbf16>
    %106 = vector.shape_cast %105 : vector<8x16x4xbf16> to vector<128x4xbf16>
    %c0_59 = arith.constant 0 : index
    %c0_60 = arith.constant 0 : index
    %c0_61 = arith.constant 0 : index
    %107 = vector.load %arg5[%c0_59, %c0_60, %c0_61] : memref<25x4x8xbf16, #tpu.memory_space<vmem>>, vector<1x4x8xbf16>
    %108 = vector.shape_cast %107 : vector<1x4x8xbf16> to vector<4x8xbf16>
    %cst_62 = arith.constant dense<0.000000e+00> : vector<128x8xf32>
    %109 = tpu.matmul %106, %108, %cst_62 {dimension_numbers = #tpu.dot_dimension_numbers<[1], [0], [0], [1], [0, 0, 1, 1], [], []>} : vector<128x4xbf16>, vector<4x8xbf16>, vector<128x8xf32> -> vector<128x8xf32>
    %110 = arith.addf %104, %109 : vector<128x8xf32>
    %111 = vector.extract_strided_slice %103 {offsets = [0, 1, 0], sizes = [8, 16, 4], strides = [1, 1, 1]} : vector<12x20x4xbf16> to vector<8x16x4xbf16>
    %112 = vector.shape_cast %111 : vector<8x16x4xbf16> to vector<128x4xbf16>
    %c1 = arith.constant 1 : index
    %c0_63 = arith.constant 0 : index
    %c0_64 = arith.constant 0 : index
    %113 = vector.load %arg5[%c1, %c0_63, %c0_64] : memref<25x4x8xbf16, #tpu.memory_space<vmem>>, vector<1x4x8xbf16>
    %114 = vector.shape_cast %113 : vector<1x4x8xbf16> to vector<4x8xbf16>
    %cst_65 = arith.constant dense<0.000000e+00> : vector<128x8xf32>
    %115 = tpu.matmul %112, %114, %cst_65 {dimension_numbers = #tpu.dot_dimension_numbers<[1], [0], [0], [1], [0, 0, 1, 1], [], []>} : vector<128x4xbf16>, vector<4x8xbf16>, vector<128x8xf32> -> vector<128x8xf32>
    %116 = arith.addf %110, %115 : vector<128x8xf32>
    %117 = vector.extract_strided_slice %103 {offsets = [0, 2, 0], sizes = [8, 16, 4], strides = [1, 1, 1]} : vector<12x20x4xbf16> to vector<8x16x4xbf16>
    %118 = vector.shape_cast %117 : vector<8x16x4xbf16> to vector<128x4xbf16>
    %c2 = arith.constant 2 : index
    %c0_66 = arith.constant 0 : index
    %c0_67 = arith.constant 0 : index
    %119 = vector.load %arg5[%c2, %c0_66, %c0_67] : memref<25x4x8xbf16, #tpu.memory_space<vmem>>, vector<1x4x8xbf16>
    %120 = vector.shape_cast %119 : vector<1x4x8xbf16> to vector<4x8xbf16>
    %cst_68 = arith.constant dense<0.000000e+00> : vector<128x8xf32>
    %121 = tpu.matmul %118, %120, %cst_68 {dimension_numbers = #tpu.dot_dimension_numbers<[1], [0], [0], [1], [0, 0, 1, 1], [], []>} : vector<128x4xbf16>, vector<4x8xbf16>, vector<128x8xf32> -> vector<128x8xf32>
    %122 = arith.addf %116, %121 : vector<128x8xf32>
    %123 = vector.extract_strided_slice %103 {offsets = [0, 3, 0], sizes = [8, 16, 4], strides = [1, 1, 1]} : vector<12x20x4xbf16> to vector<8x16x4xbf16>
    %124 = vector.shape_cast %123 : vector<8x16x4xbf16> to vector<128x4xbf16>
    %c3 = arith.constant 3 : index
    %c0_69 = arith.constant 0 : index
    %c0_70 = arith.constant 0 : index
    %125 = vector.load %arg5[%c3, %c0_69, %c0_70] : memref<25x4x8xbf16, #tpu.memory_space<vmem>>, vector<1x4x8xbf16>
    %126 = vector.shape_cast %125 : vector<1x4x8xbf16> to vector<4x8xbf16>
    %cst_71 = arith.constant dense<0.000000e+00> : vector<128x8xf32>
    %127 = tpu.matmul %124, %126, %cst_71 {dimension_numbers = #tpu.dot_dimension_numbers<[1], [0], [0], [1], [0, 0, 1, 1], [], []>} : vector<128x4xbf16>, vector<4x8xbf16>, vector<128x8xf32> -> vector<128x8xf32>
    %128 = arith.addf %122, %127 : vector<128x8xf32>
    %129 = vector.extract_strided_slice %103 {offsets = [0, 4, 0], sizes = [8, 16, 4], strides = [1, 1, 1]} : vector<12x20x4xbf16> to vector<8x16x4xbf16>
    %130 = vector.shape_cast %129 : vector<8x16x4xbf16> to vector<128x4xbf16>
    %c4 = arith.constant 4 : index
    %c0_72 = arith.constant 0 : index
    %c0_73 = arith.constant 0 : index
    %131 = vector.load %arg5[%c4, %c0_72, %c0_73] : memref<25x4x8xbf16, #tpu.memory_space<vmem>>, vector<1x4x8xbf16>
    %132 = vector.shape_cast %131 : vector<1x4x8xbf16> to vector<4x8xbf16>
    %cst_74 = arith.constant dense<0.000000e+00> : vector<128x8xf32>
    %133 = tpu.matmul %130, %132, %cst_74 {dimension_numbers = #tpu.dot_dimension_numbers<[1], [0], [0], [1], [0, 0, 1, 1], [], []>} : vector<128x4xbf16>, vector<4x8xbf16>, vector<128x8xf32> -> vector<128x8xf32>
    %134 = arith.addf %128, %133 : vector<128x8xf32>
    %135 = vector.extract_strided_slice %103 {offsets = [1, 0, 0], sizes = [8, 16, 4], strides = [1, 1, 1]} : vector<12x20x4xbf16> to vector<8x16x4xbf16>
    %136 = vector.shape_cast %135 : vector<8x16x4xbf16> to vector<128x4xbf16>
    %c5 = arith.constant 5 : index
    %c0_75 = arith.constant 0 : index
    %c0_76 = arith.constant 0 : index
    %137 = vector.load %arg5[%c5, %c0_75, %c0_76] : memref<25x4x8xbf16, #tpu.memory_space<vmem>>, vector<1x4x8xbf16>
    %138 = vector.shape_cast %137 : vector<1x4x8xbf16> to vector<4x8xbf16>
    %cst_77 = arith.constant dense<0.000000e+00> : vector<128x8xf32>
    %139 = tpu.matmul %136, %138, %cst_77 {dimension_numbers = #tpu.dot_dimension_numbers<[1], [0], [0], [1], [0, 0, 1, 1], [], []>} : vector<128x4xbf16>, vector<4x8xbf16>, vector<128x8xf32> -> vector<128x8xf32>
    %140 = arith.addf %134, %139 : vector<128x8xf32>
    %141 = vector.extract_strided_slice %103 {offsets = [1, 1, 0], sizes = [8, 16, 4], strides = [1, 1, 1]} : vector<12x20x4xbf16> to vector<8x16x4xbf16>
    %142 = vector.shape_cast %141 : vector<8x16x4xbf16> to vector<128x4xbf16>
    %c6 = arith.constant 6 : index
    %c0_78 = arith.constant 0 : index
    %c0_79 = arith.constant 0 : index
    %143 = vector.load %arg5[%c6, %c0_78, %c0_79] : memref<25x4x8xbf16, #tpu.memory_space<vmem>>, vector<1x4x8xbf16>
    %144 = vector.shape_cast %143 : vector<1x4x8xbf16> to vector<4x8xbf16>
    %cst_80 = arith.constant dense<0.000000e+00> : vector<128x8xf32>
    %145 = tpu.matmul %142, %144, %cst_80 {dimension_numbers = #tpu.dot_dimension_numbers<[1], [0], [0], [1], [0, 0, 1, 1], [], []>} : vector<128x4xbf16>, vector<4x8xbf16>, vector<128x8xf32> -> vector<128x8xf32>
    %146 = arith.addf %140, %145 : vector<128x8xf32>
    %147 = vector.extract_strided_slice %103 {offsets = [1, 2, 0], sizes = [8, 16, 4], strides = [1, 1, 1]} : vector<12x20x4xbf16> to vector<8x16x4xbf16>
    %148 = vector.shape_cast %147 : vector<8x16x4xbf16> to vector<128x4xbf16>
    %c7 = arith.constant 7 : index
    %c0_81 = arith.constant 0 : index
    %c0_82 = arith.constant 0 : index
    %149 = vector.load %arg5[%c7, %c0_81, %c0_82] : memref<25x4x8xbf16, #tpu.memory_space<vmem>>, vector<1x4x8xbf16>
    %150 = vector.shape_cast %149 : vector<1x4x8xbf16> to vector<4x8xbf16>
    %cst_83 = arith.constant dense<0.000000e+00> : vector<128x8xf32>
    %151 = tpu.matmul %148, %150, %cst_83 {dimension_numbers = #tpu.dot_dimension_numbers<[1], [0], [0], [1], [0, 0, 1, 1], [], []>} : vector<128x4xbf16>, vector<4x8xbf16>, vector<128x8xf32> -> vector<128x8xf32>
    %152 = arith.addf %146, %151 : vector<128x8xf32>
    %153 = vector.extract_strided_slice %103 {offsets = [1, 3, 0], sizes = [8, 16, 4], strides = [1, 1, 1]} : vector<12x20x4xbf16> to vector<8x16x4xbf16>
    %154 = vector.shape_cast %153 : vector<8x16x4xbf16> to vector<128x4xbf16>
    %c8 = arith.constant 8 : index
    %c0_84 = arith.constant 0 : index
    %c0_85 = arith.constant 0 : index
    %155 = vector.load %arg5[%c8, %c0_84, %c0_85] : memref<25x4x8xbf16, #tpu.memory_space<vmem>>, vector<1x4x8xbf16>
    %156 = vector.shape_cast %155 : vector<1x4x8xbf16> to vector<4x8xbf16>
    %cst_86 = arith.constant dense<0.000000e+00> : vector<128x8xf32>
    %157 = tpu.matmul %154, %156, %cst_86 {dimension_numbers = #tpu.dot_dimension_numbers<[1], [0], [0], [1], [0, 0, 1, 1], [], []>} : vector<128x4xbf16>, vector<4x8xbf16>, vector<128x8xf32> -> vector<128x8xf32>
    %158 = arith.addf %152, %157 : vector<128x8xf32>
    %159 = vector.extract_strided_slice %103 {offsets = [1, 4, 0], sizes = [8, 16, 4], strides = [1, 1, 1]} : vector<12x20x4xbf16> to vector<8x16x4xbf16>
    %160 = vector.shape_cast %159 : vector<8x16x4xbf16> to vector<128x4xbf16>
    %c9 = arith.constant 9 : index
    %c0_87 = arith.constant 0 : index
    %c0_88 = arith.constant 0 : index
    %161 = vector.load %arg5[%c9, %c0_87, %c0_88] : memref<25x4x8xbf16, #tpu.memory_space<vmem>>, vector<1x4x8xbf16>
    %162 = vector.shape_cast %161 : vector<1x4x8xbf16> to vector<4x8xbf16>
    %cst_89 = arith.constant dense<0.000000e+00> : vector<128x8xf32>
    %163 = tpu.matmul %160, %162, %cst_89 {dimension_numbers = #tpu.dot_dimension_numbers<[1], [0], [0], [1], [0, 0, 1, 1], [], []>} : vector<128x4xbf16>, vector<4x8xbf16>, vector<128x8xf32> -> vector<128x8xf32>
    %164 = arith.addf %158, %163 : vector<128x8xf32>
    %165 = vector.extract_strided_slice %103 {offsets = [2, 0, 0], sizes = [8, 16, 4], strides = [1, 1, 1]} : vector<12x20x4xbf16> to vector<8x16x4xbf16>
    %166 = vector.shape_cast %165 : vector<8x16x4xbf16> to vector<128x4xbf16>
    %c10 = arith.constant 10 : index
    %c0_90 = arith.constant 0 : index
    %c0_91 = arith.constant 0 : index
    %167 = vector.load %arg5[%c10, %c0_90, %c0_91] : memref<25x4x8xbf16, #tpu.memory_space<vmem>>, vector<1x4x8xbf16>
    %168 = vector.shape_cast %167 : vector<1x4x8xbf16> to vector<4x8xbf16>
    %cst_92 = arith.constant dense<0.000000e+00> : vector<128x8xf32>
    %169 = tpu.matmul %166, %168, %cst_92 {dimension_numbers = #tpu.dot_dimension_numbers<[1], [0], [0], [1], [0, 0, 1, 1], [], []>} : vector<128x4xbf16>, vector<4x8xbf16>, vector<128x8xf32> -> vector<128x8xf32>
    %170 = arith.addf %164, %169 : vector<128x8xf32>
    %171 = vector.extract_strided_slice %103 {offsets = [2, 1, 0], sizes = [8, 16, 4], strides = [1, 1, 1]} : vector<12x20x4xbf16> to vector<8x16x4xbf16>
    %172 = vector.shape_cast %171 : vector<8x16x4xbf16> to vector<128x4xbf16>
    %c11 = arith.constant 11 : index
    %c0_93 = arith.constant 0 : index
    %c0_94 = arith.constant 0 : index
    %173 = vector.load %arg5[%c11, %c0_93, %c0_94] : memref<25x4x8xbf16, #tpu.memory_space<vmem>>, vector<1x4x8xbf16>
    %174 = vector.shape_cast %173 : vector<1x4x8xbf16> to vector<4x8xbf16>
    %cst_95 = arith.constant dense<0.000000e+00> : vector<128x8xf32>
    %175 = tpu.matmul %172, %174, %cst_95 {dimension_numbers = #tpu.dot_dimension_numbers<[1], [0], [0], [1], [0, 0, 1, 1], [], []>} : vector<128x4xbf16>, vector<4x8xbf16>, vector<128x8xf32> -> vector<128x8xf32>
    %176 = arith.addf %170, %175 : vector<128x8xf32>
    %177 = vector.extract_strided_slice %103 {offsets = [2, 2, 0], sizes = [8, 16, 4], strides = [1, 1, 1]} : vector<12x20x4xbf16> to vector<8x16x4xbf16>
    %178 = vector.shape_cast %177 : vector<8x16x4xbf16> to vector<128x4xbf16>
    %c12 = arith.constant 12 : index
    %c0_96 = arith.constant 0 : index
    %c0_97 = arith.constant 0 : index
    %179 = vector.load %arg5[%c12, %c0_96, %c0_97] : memref<25x4x8xbf16, #tpu.memory_space<vmem>>, vector<1x4x8xbf16>
    %180 = vector.shape_cast %179 : vector<1x4x8xbf16> to vector<4x8xbf16>
    %cst_98 = arith.constant dense<0.000000e+00> : vector<128x8xf32>
    %181 = tpu.matmul %178, %180, %cst_98 {dimension_numbers = #tpu.dot_dimension_numbers<[1], [0], [0], [1], [0, 0, 1, 1], [], []>} : vector<128x4xbf16>, vector<4x8xbf16>, vector<128x8xf32> -> vector<128x8xf32>
    %182 = arith.addf %176, %181 : vector<128x8xf32>
    %183 = vector.extract_strided_slice %103 {offsets = [2, 3, 0], sizes = [8, 16, 4], strides = [1, 1, 1]} : vector<12x20x4xbf16> to vector<8x16x4xbf16>
    %184 = vector.shape_cast %183 : vector<8x16x4xbf16> to vector<128x4xbf16>
    %c13 = arith.constant 13 : index
    %c0_99 = arith.constant 0 : index
    %c0_100 = arith.constant 0 : index
    %185 = vector.load %arg5[%c13, %c0_99, %c0_100] : memref<25x4x8xbf16, #tpu.memory_space<vmem>>, vector<1x4x8xbf16>
    %186 = vector.shape_cast %185 : vector<1x4x8xbf16> to vector<4x8xbf16>
    %cst_101 = arith.constant dense<0.000000e+00> : vector<128x8xf32>
    %187 = tpu.matmul %184, %186, %cst_101 {dimension_numbers = #tpu.dot_dimension_numbers<[1], [0], [0], [1], [0, 0, 1, 1], [], []>} : vector<128x4xbf16>, vector<4x8xbf16>, vector<128x8xf32> -> vector<128x8xf32>
    %188 = arith.addf %182, %187 : vector<128x8xf32>
    %189 = vector.extract_strided_slice %103 {offsets = [2, 4, 0], sizes = [8, 16, 4], strides = [1, 1, 1]} : vector<12x20x4xbf16> to vector<8x16x4xbf16>
    %190 = vector.shape_cast %189 : vector<8x16x4xbf16> to vector<128x4xbf16>
    %c14 = arith.constant 14 : index
    %c0_102 = arith.constant 0 : index
    %c0_103 = arith.constant 0 : index
    %191 = vector.load %arg5[%c14, %c0_102, %c0_103] : memref<25x4x8xbf16, #tpu.memory_space<vmem>>, vector<1x4x8xbf16>
    %192 = vector.shape_cast %191 : vector<1x4x8xbf16> to vector<4x8xbf16>
    %cst_104 = arith.constant dense<0.000000e+00> : vector<128x8xf32>
    %193 = tpu.matmul %190, %192, %cst_104 {dimension_numbers = #tpu.dot_dimension_numbers<[1], [0], [0], [1], [0, 0, 1, 1], [], []>} : vector<128x4xbf16>, vector<4x8xbf16>, vector<128x8xf32> -> vector<128x8xf32>
    %194 = arith.addf %188, %193 : vector<128x8xf32>
    %195 = vector.extract_strided_slice %103 {offsets = [3, 0, 0], sizes = [8, 16, 4], strides = [1, 1, 1]} : vector<12x20x4xbf16> to vector<8x16x4xbf16>
    %196 = vector.shape_cast %195 : vector<8x16x4xbf16> to vector<128x4xbf16>
    %c15 = arith.constant 15 : index
    %c0_105 = arith.constant 0 : index
    %c0_106 = arith.constant 0 : index
    %197 = vector.load %arg5[%c15, %c0_105, %c0_106] : memref<25x4x8xbf16, #tpu.memory_space<vmem>>, vector<1x4x8xbf16>
    %198 = vector.shape_cast %197 : vector<1x4x8xbf16> to vector<4x8xbf16>
    %cst_107 = arith.constant dense<0.000000e+00> : vector<128x8xf32>
    %199 = tpu.matmul %196, %198, %cst_107 {dimension_numbers = #tpu.dot_dimension_numbers<[1], [0], [0], [1], [0, 0, 1, 1], [], []>} : vector<128x4xbf16>, vector<4x8xbf16>, vector<128x8xf32> -> vector<128x8xf32>
    %200 = arith.addf %194, %199 : vector<128x8xf32>
    %201 = vector.extract_strided_slice %103 {offsets = [3, 1, 0], sizes = [8, 16, 4], strides = [1, 1, 1]} : vector<12x20x4xbf16> to vector<8x16x4xbf16>
    %202 = vector.shape_cast %201 : vector<8x16x4xbf16> to vector<128x4xbf16>
    %c16 = arith.constant 16 : index
    %c0_108 = arith.constant 0 : index
    %c0_109 = arith.constant 0 : index
    %203 = vector.load %arg5[%c16, %c0_108, %c0_109] : memref<25x4x8xbf16, #tpu.memory_space<vmem>>, vector<1x4x8xbf16>
    %204 = vector.shape_cast %203 : vector<1x4x8xbf16> to vector<4x8xbf16>
    %cst_110 = arith.constant dense<0.000000e+00> : vector<128x8xf32>
    %205 = tpu.matmul %202, %204, %cst_110 {dimension_numbers = #tpu.dot_dimension_numbers<[1], [0], [0], [1], [0, 0, 1, 1], [], []>} : vector<128x4xbf16>, vector<4x8xbf16>, vector<128x8xf32> -> vector<128x8xf32>
    %206 = arith.addf %200, %205 : vector<128x8xf32>
    %207 = vector.extract_strided_slice %103 {offsets = [3, 2, 0], sizes = [8, 16, 4], strides = [1, 1, 1]} : vector<12x20x4xbf16> to vector<8x16x4xbf16>
    %208 = vector.shape_cast %207 : vector<8x16x4xbf16> to vector<128x4xbf16>
    %c17 = arith.constant 17 : index
    %c0_111 = arith.constant 0 : index
    %c0_112 = arith.constant 0 : index
    %209 = vector.load %arg5[%c17, %c0_111, %c0_112] : memref<25x4x8xbf16, #tpu.memory_space<vmem>>, vector<1x4x8xbf16>
    %210 = vector.shape_cast %209 : vector<1x4x8xbf16> to vector<4x8xbf16>
    %cst_113 = arith.constant dense<0.000000e+00> : vector<128x8xf32>
    %211 = tpu.matmul %208, %210, %cst_113 {dimension_numbers = #tpu.dot_dimension_numbers<[1], [0], [0], [1], [0, 0, 1, 1], [], []>} : vector<128x4xbf16>, vector<4x8xbf16>, vector<128x8xf32> -> vector<128x8xf32>
    %212 = arith.addf %206, %211 : vector<128x8xf32>
    %213 = vector.extract_strided_slice %103 {offsets = [3, 3, 0], sizes = [8, 16, 4], strides = [1, 1, 1]} : vector<12x20x4xbf16> to vector<8x16x4xbf16>
    %214 = vector.shape_cast %213 : vector<8x16x4xbf16> to vector<128x4xbf16>
    %c18 = arith.constant 18 : index
    %c0_114 = arith.constant 0 : index
    %c0_115 = arith.constant 0 : index
    %215 = vector.load %arg5[%c18, %c0_114, %c0_115] : memref<25x4x8xbf16, #tpu.memory_space<vmem>>, vector<1x4x8xbf16>
    %216 = vector.shape_cast %215 : vector<1x4x8xbf16> to vector<4x8xbf16>
    %cst_116 = arith.constant dense<0.000000e+00> : vector<128x8xf32>
    %217 = tpu.matmul %214, %216, %cst_116 {dimension_numbers = #tpu.dot_dimension_numbers<[1], [0], [0], [1], [0, 0, 1, 1], [], []>} : vector<128x4xbf16>, vector<4x8xbf16>, vector<128x8xf32> -> vector<128x8xf32>
    %218 = arith.addf %212, %217 : vector<128x8xf32>
    %219 = vector.extract_strided_slice %103 {offsets = [3, 4, 0], sizes = [8, 16, 4], strides = [1, 1, 1]} : vector<12x20x4xbf16> to vector<8x16x4xbf16>
    %220 = vector.shape_cast %219 : vector<8x16x4xbf16> to vector<128x4xbf16>
    %c19 = arith.constant 19 : index
    %c0_117 = arith.constant 0 : index
    %c0_118 = arith.constant 0 : index
    %221 = vector.load %arg5[%c19, %c0_117, %c0_118] : memref<25x4x8xbf16, #tpu.memory_space<vmem>>, vector<1x4x8xbf16>
    %222 = vector.shape_cast %221 : vector<1x4x8xbf16> to vector<4x8xbf16>
    %cst_119 = arith.constant dense<0.000000e+00> : vector<128x8xf32>
    %223 = tpu.matmul %220, %222, %cst_119 {dimension_numbers = #tpu.dot_dimension_numbers<[1], [0], [0], [1], [0, 0, 1, 1], [], []>} : vector<128x4xbf16>, vector<4x8xbf16>, vector<128x8xf32> -> vector<128x8xf32>
    %224 = arith.addf %218, %223 : vector<128x8xf32>
    %225 = vector.extract_strided_slice %103 {offsets = [4, 0, 0], sizes = [8, 16, 4], strides = [1, 1, 1]} : vector<12x20x4xbf16> to vector<8x16x4xbf16>
    %226 = vector.shape_cast %225 : vector<8x16x4xbf16> to vector<128x4xbf16>
    %c20 = arith.constant 20 : index
    %c0_120 = arith.constant 0 : index
    %c0_121 = arith.constant 0 : index
    %227 = vector.load %arg5[%c20, %c0_120, %c0_121] : memref<25x4x8xbf16, #tpu.memory_space<vmem>>, vector<1x4x8xbf16>
    %228 = vector.shape_cast %227 : vector<1x4x8xbf16> to vector<4x8xbf16>
    %cst_122 = arith.constant dense<0.000000e+00> : vector<128x8xf32>
    %229 = tpu.matmul %226, %228, %cst_122 {dimension_numbers = #tpu.dot_dimension_numbers<[1], [0], [0], [1], [0, 0, 1, 1], [], []>} : vector<128x4xbf16>, vector<4x8xbf16>, vector<128x8xf32> -> vector<128x8xf32>
    %230 = arith.addf %224, %229 : vector<128x8xf32>
    %231 = vector.extract_strided_slice %103 {offsets = [4, 1, 0], sizes = [8, 16, 4], strides = [1, 1, 1]} : vector<12x20x4xbf16> to vector<8x16x4xbf16>
    %232 = vector.shape_cast %231 : vector<8x16x4xbf16> to vector<128x4xbf16>
    %c21 = arith.constant 21 : index
    %c0_123 = arith.constant 0 : index
    %c0_124 = arith.constant 0 : index
    %233 = vector.load %arg5[%c21, %c0_123, %c0_124] : memref<25x4x8xbf16, #tpu.memory_space<vmem>>, vector<1x4x8xbf16>
    %234 = vector.shape_cast %233 : vector<1x4x8xbf16> to vector<4x8xbf16>
    %cst_125 = arith.constant dense<0.000000e+00> : vector<128x8xf32>
    %235 = tpu.matmul %232, %234, %cst_125 {dimension_numbers = #tpu.dot_dimension_numbers<[1], [0], [0], [1], [0, 0, 1, 1], [], []>} : vector<128x4xbf16>, vector<4x8xbf16>, vector<128x8xf32> -> vector<128x8xf32>
    %236 = arith.addf %230, %235 : vector<128x8xf32>
    %237 = vector.extract_strided_slice %103 {offsets = [4, 2, 0], sizes = [8, 16, 4], strides = [1, 1, 1]} : vector<12x20x4xbf16> to vector<8x16x4xbf16>
    %238 = vector.shape_cast %237 : vector<8x16x4xbf16> to vector<128x4xbf16>
    %c22 = arith.constant 22 : index
    %c0_126 = arith.constant 0 : index
    %c0_127 = arith.constant 0 : index
    %239 = vector.load %arg5[%c22, %c0_126, %c0_127] : memref<25x4x8xbf16, #tpu.memory_space<vmem>>, vector<1x4x8xbf16>
    %240 = vector.shape_cast %239 : vector<1x4x8xbf16> to vector<4x8xbf16>
    %cst_128 = arith.constant dense<0.000000e+00> : vector<128x8xf32>
    %241 = tpu.matmul %238, %240, %cst_128 {dimension_numbers = #tpu.dot_dimension_numbers<[1], [0], [0], [1], [0, 0, 1, 1], [], []>} : vector<128x4xbf16>, vector<4x8xbf16>, vector<128x8xf32> -> vector<128x8xf32>
    %242 = arith.addf %236, %241 : vector<128x8xf32>
    %243 = vector.extract_strided_slice %103 {offsets = [4, 3, 0], sizes = [8, 16, 4], strides = [1, 1, 1]} : vector<12x20x4xbf16> to vector<8x16x4xbf16>
    %244 = vector.shape_cast %243 : vector<8x16x4xbf16> to vector<128x4xbf16>
    %c23 = arith.constant 23 : index
    %c0_129 = arith.constant 0 : index
    %c0_130 = arith.constant 0 : index
    %245 = vector.load %arg5[%c23, %c0_129, %c0_130] : memref<25x4x8xbf16, #tpu.memory_space<vmem>>, vector<1x4x8xbf16>
    %246 = vector.shape_cast %245 : vector<1x4x8xbf16> to vector<4x8xbf16>
    %cst_131 = arith.constant dense<0.000000e+00> : vector<128x8xf32>
    %247 = tpu.matmul %244, %246, %cst_131 {dimension_numbers = #tpu.dot_dimension_numbers<[1], [0], [0], [1], [0, 0, 1, 1], [], []>} : vector<128x4xbf16>, vector<4x8xbf16>, vector<128x8xf32> -> vector<128x8xf32>
    %248 = arith.addf %242, %247 : vector<128x8xf32>
    %249 = vector.extract_strided_slice %103 {offsets = [4, 4, 0], sizes = [8, 16, 4], strides = [1, 1, 1]} : vector<12x20x4xbf16> to vector<8x16x4xbf16>
    %250 = vector.shape_cast %249 : vector<8x16x4xbf16> to vector<128x4xbf16>
    %c24 = arith.constant 24 : index
    %c0_132 = arith.constant 0 : index
    %c0_133 = arith.constant 0 : index
    %251 = vector.load %arg5[%c24, %c0_132, %c0_133] : memref<25x4x8xbf16, #tpu.memory_space<vmem>>, vector<1x4x8xbf16>
    %252 = vector.shape_cast %251 : vector<1x4x8xbf16> to vector<4x8xbf16>
    %cst_134 = arith.constant dense<0.000000e+00> : vector<128x8xf32>
    %253 = tpu.matmul %250, %252, %cst_134 {dimension_numbers = #tpu.dot_dimension_numbers<[1], [0], [0], [1], [0, 0, 1, 1], [], []>} : vector<128x4xbf16>, vector<4x8xbf16>, vector<128x8xf32> -> vector<128x8xf32>
    %254 = arith.addf %248, %253 : vector<128x8xf32>
    %255 = arith.truncf %254 : vector<128x8xf32> to vector<128x8xbf16>
    %256 = vector.shape_cast %255 : vector<128x8xbf16> to vector<1x8x16x8xbf16>
    %c0_135 = arith.constant 0 : index
    %c0_136 = arith.constant 0 : index
    %c0_137 = arith.constant 0 : index
    %c0_138 = arith.constant 0 : index
    %257 = vector.load %arg6[%c0_135, %c0_136, %c0_137, %c0_138] : memref<1x8x16x8xbf16, #tpu.memory_space<vmem>>, vector<1x8x16x8xbf16>
    tpu.vector_store %arg6[%c0_135, %c0_136, %c0_137, %c0_138], %256 {strides = array<i32>} : memref<1x8x16x8xbf16, #tpu.memory_space<vmem>>, vector<1x8x16x8xbf16>,
    %cst_139 = arith.constant dense<0.000000e+00> : vector<8xf32>
    %258 = vector.multi_reduction <add>, %254, %cst_139 [0] : vector<128x8xf32> to vector<8xf32>
    %259 = vector.shape_cast %258 : vector<8xf32> to vector<1x8xf32>
    %260 = vector.shape_cast %259 : vector<1x8xf32> to vector<1x1x8xf32>
    %c0_140 = arith.constant 0 : index
    %c0_141 = arith.constant 0 : index
    %c0_142 = arith.constant 0 : index
    %261 = vector.load %arg7[%c0_140, %c0_141, %c0_142] : memref<1x1x8xf32, #tpu.memory_space<vmem>>, vector<1x1x8xf32>
    tpu.vector_store %arg7[%c0_140, %c0_141, %c0_142], %260 {strides = array<i32>} : memref<1x1x8xf32, #tpu.memory_space<vmem>>, vector<1x1x8xf32>,
    %262 = arith.mulf %254, %254 : vector<128x8xf32>
    %cst_143 = arith.constant dense<0.000000e+00> : vector<8xf32>
    %263 = vector.multi_reduction <add>, %262, %cst_143 [0] : vector<128x8xf32> to vector<8xf32>
    %264 = vector.shape_cast %263 : vector<8xf32> to vector<1x8xf32>
    %265 = vector.shape_cast %264 : vector<1x8xf32> to vector<1x1x8xf32>
    %c0_144 = arith.constant 0 : index
    %c0_145 = arith.constant 0 : index
    %c0_146 = arith.constant 0 : index
    %266 = vector.load %arg8[%c0_144, %c0_145, %c0_146] : memref<1x1x8xf32, #tpu.memory_space<vmem>>, vector<1x1x8xf32>
    tpu.vector_store %arg8[%c0_144, %c0_145, %c0_146], %265 {strides = array<i32>} : memref<1x1x8xf32, #tpu.memory_space<vmem>>, vector<1x1x8xf32>,
    return
  }
  func.func @transform_0(%arg0: i32, %arg1: i32) -> (i32, i32, i32, i32) {
    %c0_i32 = arith.constant 0 : i32
    %c0_i32_0 = arith.constant 0 : i32
    %c0_i32_1 = arith.constant 0 : i32
    %c0_i32_2 = arith.constant 0 : i32
    return %arg0, %c0_i32, %c0_i32_0, %c0_i32_1 : i32, i32, i32, i32
  }
  func.func @transform_1(%arg0: i32, %arg1: i32) -> (i32, i32) {
    %c0_i32 = arith.constant 0 : i32
    %c0_i32_0 = arith.constant 0 : i32
    %c0_i32_1 = arith.constant 0 : i32
    return %c0_i32, %c0_i32_0 : i32, i32
  }
  func.func @transform_2(%arg0: i32, %arg1: i32) -> (i32, i32) {
    %c0_i32 = arith.constant 0 : i32
    %c0_i32_0 = arith.constant 0 : i32
    %c0_i32_1 = arith.constant 0 : i32
    return %c0_i32, %c0_i32_0 : i32, i32
  }
  func.func @transform_3(%arg0: i32, %arg1: i32) -> (i32, i32, i32) {
    %c0_i32 = arith.constant 0 : i32
    %c0_i32_0 = arith.constant 0 : i32
    %c0_i32_1 = arith.constant 0 : i32
    %c0_i32_2 = arith.constant 0 : i32
    return %c0_i32, %c0_i32_0, %c0_i32_1 : i32, i32, i32
  }
  func.func @transform_4(%arg0: i32, %arg1: i32) -> (i32, i32, i32, i32) {
    %c0_i32 = arith.constant 0 : i32
    %c0_i32_0 = arith.constant 0 : i32
    %c0_i32_1 = arith.constant 0 : i32
    return %arg0, %arg1, %c0_i32, %c0_i32_0 : i32, i32, i32, i32
  }
  func.func @transform_5(%arg0: i32, %arg1: i32) -> (i32, i32, i32) {
    %c2_i32 = arith.constant 2 : i32
    %0 = arith.muli %arg0, %c2_i32 : i32
    %1 = arith.addi %0, %arg1 : i32
    %c0_i32 = arith.constant 0 : i32
    %c0_i32_0 = arith.constant 0 : i32
    %c0_i32_1 = arith.constant 0 : i32
    return %1, %c0_i32, %c0_i32_0 : i32, i32, i32
  }
  func.func @transform_6(%arg0: i32, %arg1: i32) -> (i32, i32, i32) {
    %c2_i32 = arith.constant 2 : i32
    %0 = arith.muli %arg0, %c2_i32 : i32
    %1 = arith.addi %0, %arg1 : i32
    %c0_i32 = arith.constant 0 : i32
    %c0_i32_0 = arith.constant 0 : i32
    %c0_i32_1 = arith.constant 0 : i32
    return %1, %c0_i32, %c0_i32_0 : i32, i32, i32
  }
}

module attributes {stable_mosaic.version = 11 : i64} {
  func.func @_finalize_kernel(%arg0: i32, %arg1: i32, %arg2: memref<1x8x16x16xbf16, #tpu.memory_space<vmem>>, %arg3: memref<1x8x16x16xbf16, #tpu.memory_space<vmem>>, %arg4: memref<1x8x16x8xbf16, #tpu.memory_space<vmem>>, %arg5: memref<1x40xf32, #tpu.memory_space<vmem>>, %arg6: memref<1x40xf32, #tpu.memory_space<vmem>>, %arg7: memref<1x8x16x40xf32, #tpu.memory_space<vmem>>) attributes {dimension_semantics = [#tpu.dimension_semantics<parallel>, #tpu.dimension_semantics<parallel>], iteration_bounds = array<i64: 2, 2>, scalar_prefetch = 0 : i64, scratch_operands = 0 : i64, tpu.core_type = #tpu.core_type<tc>, window_params = [{transform_indices = @transform_0, window_bounds = array<i64: 1, 8, 16, 16>}, {transform_indices = @transform_1, window_bounds = array<i64: 1, 8, 16, 16>}, {transform_indices = @transform_2, window_bounds = array<i64: 1, 8, 16, 8>}, {pipeline_mode = #tpu.pipeline_mode<synchronous>, transform_indices = @transform_3, window_bounds = array<i64: 1, 40>}, {pipeline_mode = #tpu.pipeline_mode<synchronous>, transform_indices = @transform_4, window_bounds = array<i64: 1, 40>}, {transform_indices = @transform_5, window_bounds = array<i64: 1, 8, 16, 40>}]} {
    %c0 = arith.constant 0 : index
    %c0_0 = arith.constant 0 : index
    %c0_1 = arith.constant 0 : index
    %c0_2 = arith.constant 0 : index
    %0 = vector.load %arg2[%c0, %c0_0, %c0_1, %c0_2] : memref<1x8x16x16xbf16, #tpu.memory_space<vmem>>, vector<1x8x16x16xbf16>
    %1 = vector.shape_cast %0 : vector<1x8x16x16xbf16> to vector<8x16x16xbf16>
    %2 = arith.extf %1 : vector<8x16x16xbf16> to vector<8x16x16xf32>
    %c0_3 = arith.constant 0 : index
    %c0_4 = arith.constant 0 : index
    %c0_5 = arith.constant 0 : index
    %c0_6 = arith.constant 0 : index
    %3 = vector.load %arg3[%c0_3, %c0_4, %c0_5, %c0_6] : memref<1x8x16x16xbf16, #tpu.memory_space<vmem>>, vector<1x8x16x16xbf16>
    %4 = vector.shape_cast %3 : vector<1x8x16x16xbf16> to vector<8x16x16xbf16>
    %5 = arith.extf %4 : vector<8x16x16xbf16> to vector<8x16x16xf32>
    %c0_7 = arith.constant 0 : index
    %c0_8 = arith.constant 0 : index
    %c0_9 = arith.constant 0 : index
    %c0_10 = arith.constant 0 : index
    %6 = vector.load %arg4[%c0_7, %c0_8, %c0_9, %c0_10] : memref<1x8x16x8xbf16, #tpu.memory_space<vmem>>, vector<1x8x16x8xbf16>
    %7 = vector.shape_cast %6 : vector<1x8x16x8xbf16> to vector<8x16x8xbf16>
    %8 = arith.extf %7 : vector<8x16x8xbf16> to vector<8x16x8xf32>
    %9 = vector.extract_strided_slice %2 {offsets = [0, 0, 0], sizes = [8, 16, 8], strides = [1, 1, 1]} : vector<8x16x16xf32> to vector<8x16x8xf32>
    %10 = vector.extract_strided_slice %2 {offsets = [0, 0, 8], sizes = [8, 16, 8], strides = [1, 1, 1]} : vector<8x16x16xf32> to vector<8x16x8xf32>
    %11 = tpu.concatenate %9, %5, %8, %10 in 2 : vector<8x16x8xf32>, vector<8x16x16xf32>, vector<8x16x8xf32>, vector<8x16x8xf32> -> vector<8x16x40xf32>
    %c0_11 = arith.constant 0 : index
    %c0_12 = arith.constant 0 : index
    %12 = vector.load %arg5[%c0_11, %c0_12] : memref<1x40xf32, #tpu.memory_space<vmem>>, vector<1x40xf32>
    %13 = vector.shape_cast %12 : vector<1x40xf32> to vector<1x1x40xf32>
    %14 = vector.broadcast %13 : vector<1x1x40xf32> to vector<8x16x40xf32>
    %15 = arith.mulf %11, %14 : vector<8x16x40xf32>
    %c0_13 = arith.constant 0 : index
    %c0_14 = arith.constant 0 : index
    %16 = vector.load %arg6[%c0_13, %c0_14] : memref<1x40xf32, #tpu.memory_space<vmem>>, vector<1x40xf32>
    %17 = vector.shape_cast %16 : vector<1x40xf32> to vector<1x1x40xf32>
    %18 = vector.broadcast %17 : vector<1x1x40xf32> to vector<8x16x40xf32>
    %19 = arith.addf %15, %18 : vector<8x16x40xf32>
    %cst = arith.constant 0.000000e+00 : f32
    %20 = vector.broadcast %cst : f32 to vector<8x16x40xf32>
    %21 = arith.maximumf %19, %20 : vector<8x16x40xf32>
    %22 = vector.shape_cast %21 : vector<8x16x40xf32> to vector<1x8x16x40xf32>
    %c0_15 = arith.constant 0 : index
    %c0_16 = arith.constant 0 : index
    %c0_17 = arith.constant 0 : index
    %c0_18 = arith.constant 0 : index
    %23 = vector.load %arg7[%c0_15, %c0_16, %c0_17, %c0_18] : memref<1x8x16x40xf32, #tpu.memory_space<vmem>>, vector<1x8x16x40xf32>
    tpu.vector_store %arg7[%c0_15, %c0_16, %c0_17, %c0_18], %22 {strides = array<i32>} : memref<1x8x16x40xf32, #tpu.memory_space<vmem>>, vector<1x8x16x40xf32>,
    return
  }
  func.func @transform_0(%arg0: i32, %arg1: i32) -> (i32, i32, i32, i32) {
    %c0_i32 = arith.constant 0 : i32
    %c0_i32_0 = arith.constant 0 : i32
    %c0_i32_1 = arith.constant 0 : i32
    return %arg0, %arg1, %c0_i32, %c0_i32_0 : i32, i32, i32, i32
  }
  func.func @transform_1(%arg0: i32, %arg1: i32) -> (i32, i32, i32, i32) {
    %c0_i32 = arith.constant 0 : i32
    %c0_i32_0 = arith.constant 0 : i32
    %c0_i32_1 = arith.constant 0 : i32
    return %arg0, %arg1, %c0_i32, %c0_i32_0 : i32, i32, i32, i32
  }
  func.func @transform_2(%arg0: i32, %arg1: i32) -> (i32, i32, i32, i32) {
    %c0_i32 = arith.constant 0 : i32
    %c0_i32_0 = arith.constant 0 : i32
    %c0_i32_1 = arith.constant 0 : i32
    return %arg0, %arg1, %c0_i32, %c0_i32_0 : i32, i32, i32, i32
  }
  func.func @transform_3(%arg0: i32, %arg1: i32) -> (i32, i32) {
    %c0_i32 = arith.constant 0 : i32
    %c0_i32_0 = arith.constant 0 : i32
    %c0_i32_1 = arith.constant 0 : i32
    return %c0_i32, %c0_i32_0 : i32, i32
  }
  func.func @transform_4(%arg0: i32, %arg1: i32) -> (i32, i32) {
    %c0_i32 = arith.constant 0 : i32
    %c0_i32_0 = arith.constant 0 : i32
    %c0_i32_1 = arith.constant 0 : i32
    return %c0_i32, %c0_i32_0 : i32, i32
  }
  func.func @transform_5(%arg0: i32, %arg1: i32) -> (i32, i32, i32, i32) {
    %c0_i32 = arith.constant 0 : i32
    %c0_i32_0 = arith.constant 0 : i32
    %c0_i32_1 = arith.constant 0 : i32
    return %arg0, %arg1, %c0_i32, %c0_i32_0 : i32, i32, i32, i32
  }
}

</mosaic_0001>

<bundles_post_ra>
// kernel: inception_block.4
= control target key start
LH: loop header
LB: loop body
LE: loop exit
PB: predicated region body
PF: predicated region fallthrough
CT: control target
= control target key end

     0   :  { %s1922_s24 = smov 0   ;;  %s1924_s25 = smov 0   ;;  %s2708_s0 = inlined_call_operand.vmem [shape: f32[2,16,16,8], index: 0, kind: input, shape index: {}]   ;;  %s2709_s1 = inlined_call_operand.vmem [shape: bf16[8,20], index: 1, kind: input, shape index: {}]   ;;  %s2710_s2 = inlined_call_operand.vmem [shape: bf16[8,8], index: 2, kind: input, shape index: {}]   ;;  %s2711_s3 = inlined_call_operand.vmem [shape: bf16[2,16,16,8], index: 3, kind: output, shape index: {0}]   ;;  %s2712_s4 = inlined_call_operand.vmem [shape: bf16[2,16,16,4], index: 4, kind: output, shape index: {1}]   ;;  %s2713_s5 = inlined_call_operand.vmem [shape: bf16[2,16,16,16], index: 5, kind: output, shape index: {2}]   ;;  %s2714_s6 = inlined_call_operand.vmem [shape: f32[4,1,28], index: 6, kind: output, shape index: {3}]   ;;  %s2715_s7 = inlined_call_operand.vmem [shape: f32[4,1,28], index: 7, kind: output, shape index: {4}]  }
   0x1   :  { %s1926_s26 = smov 0   ;;  %s1928_s27 = smov 0  }
   0x2   :  { %s1930_s28 = smov 0  }
   0x3 LB: > { %s27_s29 = sadd.s32 1, %s1868_s26  ;;  %s30_s30 = sadd.s32 1, %s1872_s27  ;;  %s1876_s28 = sphi %s1930_s28, %s18_s28   ;;  %s1872_s27 = sphi %s1928_s27, %s2721_s27   ;;  %s1868_s26 = sphi %s1926_s26, %s2720_s26   ;;  %s1864_s25 = sphi %s1924_s25, %s2719_s25   ;;  %s1860_s24 = sphi %s1922_s24, %s2718_s24  }
   0x4   : > { %p28_p0 = scmp.ge.s32.totalorder %s27_s29, 2  ;;  %p1670_p1 = scmp.ge.s32.totalorder %s1876_s28, 1 }
   0x5   : > { %p272_p2 = scmp.lt.s32.totalorder %s1876_s28, 5 }
   0x6   : > { %s2723_s29 = smov (%p28_p0, %s27_s29), 0  ;;  %s2725_s30 = smov (!%p28_p0, %s30_s30), %s1872_s27 }
   0x7   : > { %p273_p3 = pnand %p1670_p1, %p272_p2  ;;  %p32_p4 = scmp.ge.s32.totalorder %s2725_s30, 2 }
   0x8   : > { %p339_p5 = scmp.lt.s32.totalorder (!%p273_p3), %s1864_s25, 1  ;;  %s1711_s10 = sshll.u32 (!%p273_p3), %s1860_s24, 7 }
   0x9   : > { %s2727_s30 = smov (%p32_p4, %s2725_s30), 0  ;;  %276 = sbr.rel (%p273_p3) target bundleno = 376 (0x178), region = 32 }
   0xa   : > { %s1965_s13 = sshll.u32 (!%p273_p3), %s1860_s24, 3  ;;  %s1878_s20 = smov (!%p273_p3), 120  }
   0xb   : > { %p347_p6 = scmp.lt.s32.totalorder (!%p273_p3), %s1965_s13, 15  ;;  %s1689_s15 = sadd.s32 (!%p273_p3), 4294967295, %s1965_s13 }
   0xc   : > { %p1978_p7 = scmp.gt.s32.totalorder (!%p273_p3), %s1689_s15, 0  ;;  %s418_s12 = sadd.s32 (!%p273_p3), 8, %s1965_s13 }
   0xd   : > { %p2185_p8 = scmp.lt.s32.totalorder (!%p273_p3), %s418_s12, 15 }
   0xe   : > { %v671_v0 = vld [vmem:[%s2709_s1] sm:$0xf]  ;;  %vm737_vm0 = vcmask 1043456   ;;  %s1968_s14 = scalar_select %p339_p5, %s1864_s25, 1  ;;  %vm712_vm1 = vcmask 64512   ;;  %vm445_vm2 = vcmask 1046528  }
   0xf   : > { %v739_v1 = vsel %vm737_vm0, %v671_v0, 0  ;;  %v790_v2 = vld [vmem:[%s2710_s2] sm:$0xf]  ;;  %s348_s23 = scalar_select %p347_p6, %s1965_s13, 15  ;;  %vm506_vm3 = vcmask 1040384   ;;  %vm923_vm4 = vcmask 60416  }
  0x10   : > { %748 = vmatpush.bf16.msra.mxu0 %v739_v1  ;;  %1712 = vmatpush.bf16.msra.mxu2 %v739_v1  ;;  %v856_v3 = vsel %vm737_vm0, %v790_v2, 0  ;;  %s1710_s16 = sshll.u32 %s1968_s14, 8  ;;  %s1675_s22 = sshll.u32 %s1968_s14, 5  ;;  %vm1198_vm5 = vcmask 162816   ;;  %vm1004_vm6 = vcmask 27648   ;;  %vm1181_vm7 = vcmask 125952  }
  0x11   : > { %865 = vmatpush.bf16.msra.mxu1 %v856_v3  ;;  %1713 = vmatpush.bf16.msra.mxu3 %v856_v3  ;;  %s1976_s19 = scalar_lea.vmem %s2708_s0, %s1710_s16  ;;  %s2729_s15 = smov (!%p1978_p7, %s1689_s15), 0  ;;  %vm1278_vm8 = vcmask 221184  }
  0x12   : > { %s1983_s21 = scalar_lea.vmem %s1976_s19, %s1711_s10  ;;  %s1674_s8 = sshll.u32 %s348_s23, 1 }
  0x13   : > { %v1987_v4 = vld [vmem:[%s1983_s21] sm:$0xff]  ;;  %v1990_v5 = vld [vmem:[%s1983_s21 + $0x8] sm:$0xff]  ;;  %v2007_v12 = vld [vmem:[%s1983_s21 + $0x10] sm:$0xff]  ;;  %s2019_s9 = sadd.s32 %s1675_s22, %s1674_s8  ;;  %s1690_s10 = sshll.u32 %s2729_s15, 4 }
  0x14   : > { %v1993_v6 = vld [vmem:[%s1983_s21 + $0x40] sm:$0xff]  ;;  %v639_v7 = vpack.c.bf16 %v1987_v4, %v1987_v4  ;;  %v640_v8 = vpack.c.bf16 %v1990_v5, %v1990_v5  ;;  %v2001_v9 = vld [vmem:[%s1983_s21 + $0x48] sm:$0xff]  ;;  %v2010_v13 = vld [vmem:[%s1983_s21 + $0x18] sm:$0xff]  ;;  %v449_v16 = vrot.slane %v1987_v4, 1  ;;  %v450_v17 = vrot.slane %v1990_v5, 1  ;;  %s415_s11 = scalar_lea.vmem %s1976_s19, %s1690_s10  ;;  %s2731_s12 = smov (!%p2185_p8, %s418_s12), 15 }
  0x15   : > { %v461_v10 = vrot.slane %v1993_v6, 1  ;;  %v647_v11 = vpack.c.bf16 %v1993_v6, %v1993_v6  ;;  %v462_v14 = vrot.slane %v2001_v9, 1  ;;  %v648_v15 = vpack.c.bf16 %v2001_v9, %v2001_v9  ;;  %v416_v27 = vld [vmem:[%s415_s11] sm:$0xff]  ;;  %v417_v28 = vld [vmem:[%s415_s11 + $0x8] sm:$0xff]  ;;  %v2042_v44 = vld [vmem:[%s1983_s21 + $0x30] sm:$0xff]  ;;  %s1691_s13 = sshll.u32 %s2731_s12, 4 }
  0x16   : > { %v688_v18 = vunpack.c.l.b16 %v639_v7  ;;  %v689_v19 = vunpack.c.l.b16 %v640_v8  ;;  %v452_v21 = vrot.slane %v2007_v12, 1  ;;  %v451_v23 = vsel %vm445_vm2, %v449_v16, %v450_v17  ;;  %v2049_v49 = vld [vmem:[%s1983_s21 + $0x38] sm:$0xff]  ;;  %v2055_v54 = vld [vmem:[%s1983_s21 + $0x50] sm:$0xff]  ;;  %s422_s15 = scalar_lea.vmem %s1976_s19, %s1691_s13  ;;  %s2250_s16 = sshll.u32 %s2019_s9, 2 }
  0x17   : > { %v696_v20 = vunpack.c.l.b16 %v647_v11  ;;  %v697_v22 = vunpack.c.l.b16 %v648_v15  ;;  %v453_v24 = vrot.slane %v2010_v13, 1  ;;  %v497_v25 = vsel %vm445_vm2, %v450_v17, %v1990_v5  ;;  %v2060_v58 = vld [vmem:[%s1983_s21 + $0x58] sm:$0xff]  ;;  %s2256_s19 = scalar_lea.vmem %s2711_s3, %s2250_s16  ;;  %s1880_s22 = smov 8  }
  0x18   : > { %v704_v26 = vpack.c.b16 %v689_v19, %v688_v18  ;;  %v510_v29 = vrot.slane %v1987_v4, 7  ;;  %v511_v30 = vrot.slane %v1990_v5, 7  ;;  %v513_v31 = vrot.slane %v2007_v12, 7  ;;  %s2580_s9 = scalar_lea.vmem %s2712_s4, %s2250_s16  ;;  %s1881_s10 = smov 20  }
  0x19   : > { %v708_v32 = vpack.c.b16 %v697_v22, %v696_v20  ;;  %v446_v33 = vrot.slane %v416_v27, 1  ;;  %v447_v34 = vrot.slane %v417_v28, 1  ;;  %v454_v35 = vsel %vm445_vm2, %v452_v21, %v453_v24  ;;  %s2603_s14 = scalar_lea.vmem %s2713_s5, %s2250_s16  ;;  %s1685_s13 = sshll.u32 %s1864_s25, 1 }
  0x1a   : > { %1692 = vmatmul.msk.bf16.vlgmr.msra.gmra.mxu0 %vm712_vm1, %v704_v26  ;;  %v498_v36 = vsel %vm445_vm2, %v453_v24, %v2010_v13  ;;  %v507_v37 = vrot.slane %v416_v27, 7  ;;  %v508_v38 = vrot.slane %v417_v28, 7  ;;  %v512_v39 = vsel %vm506_vm3, %v510_v29, %v511_v30 }
  0x1b   : > { %1696 = vmatmul.msk.bf16.vlgmr.msra.gmra.mxu2 %vm712_vm1, %v708_v32  ;;  %v448_v40 = vsel %vm445_vm2, %v446_v33, %v447_v34  ;;  %v496_v41 = vsel %vm445_vm2, %v447_v34, %v417_v28  ;;  %v514_v42 = vrot.slane %v2010_v13, 7  ;;  %v558_v43 = vsel %vm506_vm3, %v1987_v4, %v510_v29 }
  0x1c   : > { %v509_v45 = vsel %vm506_vm3, %v507_v37, %v508_v38  ;;  %v557_v46 = vsel %vm506_vm3, %v416_v27, %v507_v37  ;;  %v559_v47 = vsel %vm506_vm3, %v2007_v12, %v513_v31  ;;  %v567_v48 = vmax.f32 %v416_v27, %v448_v40 }
  0x1d   : > { %v515_v50 = vsel %vm506_vm3, %v513_v31, %v514_v42  ;;  %v568_v51 = vmax.f32 %v417_v28, %v496_v41  ;;  %v569_v52 = vmax.f32 %v1987_v4, %v451_v23  ;;  %v570_v53 = vmax.f32 %v1990_v5, %v497_v25 }
  0x1e   : > { %v571_v55 = vmax.f32 %v2007_v12, %v454_v35  ;;  %v572_v56 = vmax.f32 %v2010_v13, %v498_v36  ;;  %v587_v57 = vmax.f32 %v567_v48, %v557_v46  ;;  %v458_v59 = vrot.slane %v2042_v44, 1  ;;  %v2124_v46 = vld [vmem:[%s1983_s21 + $0x28] sm:$0xff] }
  0x1f   : > { %v588_v60 = vmax.f32 %v568_v51, %v509_v45  ;;  %v2063_v61 = vmax.f32 %v569_v52, %v558_v43  ;;  %v2065_v62 = vmax.f32 %v570_v53, %v512_v39  ;;  %v459_v63 = vrot.slane %v2049_v49, 1  ;;  %v2121_v45 = vld [vmem:[%s1983_s21 + $0x20] sm:$0xff] }
  0x20   : > { %v2068_v0 = vmax.f32 %v571_v55, %v559_v47  ;;  %v2070_v1 = vmax.f32 %v572_v56, %v515_v50  ;;  %v463_v2 = vsel %vm445_vm2, %v461_v10, %v462_v14  ;;  %v464_v3 = vrot.slane %v2055_v54, 1 }
  0x21   : > { %v607_v4 = vmax.f32 %v587_v57, %v2063_v61  ;;  %v608_v5 = vmax.f32 %v588_v60, %v2065_v62  ;;  %v460_v7 = vsel %vm445_vm2, %v458_v59, %v459_v63  ;;  %v465_v8 = vrot.slane %v2060_v58, 1 }
  0x22   : > { %v500_v11 = vsel %vm445_vm2, %v459_v63, %v2049_v49  ;;  %v501_v15 = vsel %vm445_vm2, %v462_v14, %v2001_v9  ;;  %v519_v10 = vrot.slane %v2042_v44, 7  ;;  %v520_v16 = vrot.slane %v2049_v49, 7 }
  0x23   : > { %v623_v17 = vmax.f32 %v607_v4, %v2068_v0  ;;  %v624_v18 = vmax.f32 %v608_v5, %v2070_v1  ;;  %v466_v19 = vsel %vm445_vm2, %v464_v3, %v465_v8  ;;  %v502_v20 = vsel %vm445_vm2, %v465_v8, %v2060_v58  ;;  %v407_v4 = vld [vmem:[%s1983_s21 + $0x60] sm:$0xff] }
  0x24   : > { %v521_v21 = vsel %vm506_vm3, %v519_v10, %v520_v16  ;;  %v522_v22 = vrot.slane %v1993_v6, 7  ;;  %v523_v23 = vrot.slane %v2001_v9, 7  ;;  %v525_v14 = vrot.slane %v2055_v54, 7 }
  0x25   : > { %v655_v24 = vpack.c.bf16 %v623_v17, %v623_v17  ;;  %v656_v25 = vpack.c.bf16 %v624_v18, %v624_v18  ;;  %v526_v26 = vrot.slane %v2060_v58, 7  ;;  %v561_v27 = vsel %vm506_vm3, %v2042_v44, %v519_v10  ;;  %v408_v18 = vld [vmem:[%s1983_s21 + $0x68] sm:$0xff] }
  0x26   : > { %v524_v28 = vsel %vm506_vm3, %v522_v22, %v523_v23  ;;  %v562_v29 = vsel %vm506_vm3, %v1993_v6, %v522_v22  ;;  %v563_v30 = vsel %vm506_vm3, %v2055_v54, %v525_v14  ;;  %v575_v31 = vmax.f32 %v2042_v44, %v460_v7 }
  0x27   : > { %v807_v32 = vunpack.c.l.b16 %v655_v24  ;;  %v808_v33 = vunpack.c.l.b16 %v656_v25  ;;  %v527_v34 = vsel %vm506_vm3, %v525_v14, %v526_v26  ;;  %v576_v35 = vmax.f32 %v2049_v49, %v500_v11 }
  0x28   : > { %v577_v36 = vmax.f32 %v1993_v6, %v463_v2  ;;  %v578_v37 = vmax.f32 %v2001_v9, %v501_v15  ;;  %v579_v38 = vmax.f32 %v2055_v54, %v466_v19  ;;  %v580_v39 = vmax.f32 %v2060_v58, %v502_v20 }
  0x29   : > { %v823_v40 = vpack.c.b16 %v808_v33, %v807_v32  ;;  %v2114_v41 = vmax.f32 %v575_v31, %v561_v27  ;;  %v2116_v42 = vmax.f32 %v576_v35, %v521_v21  ;;  %v641_v43 = vpack.c.bf16 %v2007_v12, %v2007_v12 }
  0x2a   : > { %v2126_v47 = vmax.f32 %v577_v36, %v562_v29  ;;  %v2128_v6 = vmax.f32 %v578_v37, %v524_v28  ;;  %v2130_v9 = vmax.f32 %v579_v38, %v563_v30  ;;  %v2132_v48 = vmax.f32 %v580_v39, %v527_v34 }
  0x2b   : > { %1700 = vmatmul.msk.bf16.vlgmr.msra.gmra.mxu1 %vm712_vm1, %v823_v40  ;;  %v642_v50 = vpack.c.bf16 %v2010_v13, %v2010_v13  ;;  %v690_v51 = vunpack.c.l.b16 %v641_v43  ;;  %v649_v12 = vpack.c.bf16 %v2055_v54, %v2055_v54  ;;  %v650_v52 = vpack.c.bf16 %v2060_v58, %v2060_v58 }
  0x2c   : > { %v615_v53 = vmax.f32 %v2114_v41, %v2126_v47  ;;  %v616_v55 = vmax.f32 %v2116_v42, %v2128_v6  ;;  %v455_v56 = vrot.slane %v2121_v45, 1  ;;  %v456_v57 = vrot.slane %v2124_v46, 1 }
  0x2d   : > { %v691_v59 = vunpack.c.l.b16 %v642_v50  ;;  %v698_v13 = vunpack.c.l.b16 %v649_v12  ;;  %v699_v60 = vunpack.c.l.b16 %v650_v52  ;;  %v516_v63 = vrot.slane %v2121_v45, 7 }
  0x2e   : > { %v631_v54 = vmax.f32 %v615_v53, %v2130_v9  ;;  %v632_v58 = vmax.f32 %v616_v55, %v2132_v48  ;;  %v457_v2 = vsel %vm445_vm2, %v455_v56, %v456_v57  ;;  %v499_v3 = vsel %vm445_vm2, %v456_v57, %v2124_v46  ;;  %v409_v56 = vld [vmem:[%s1983_s21 + $0x70] sm:$0xff] }
  0x2f   : > { %v705_v5 = vpack.c.b16 %v691_v59, %v690_v51  ;;  %v709_v7 = vpack.c.b16 %v699_v60, %v698_v13  ;;  %v517_v8 = vrot.slane %v2124_v46, 7  ;;  %v560_v11 = vsel %vm506_vm3, %v2121_v45, %v516_v63 }
  0x30   : > { %v663_v15 = vpack.c.bf16 %v631_v54, %v631_v54  ;;  %v664_v10 = vpack.c.bf16 %v632_v58, %v632_v58  ;;  %v573_v16 = vmax.f32 %v2121_v45, %v457_v2  ;;  %v574_v17 = vmax.f32 %v2124_v46, %v499_v3 }
  0x31   : > { %1693 = vmatmul.msk.bf16.gmra.mxu0 %vm712_vm1, %v705_v5  ;;  %1697 = vmatmul.msk.bf16.gmra.mxu2 %vm712_vm1, %v709_v7  ;;  %v518_v19 = vsel %vm506_vm3, %v516_v63, %v517_v8  ;;  %v609_v20 = vmax.f32 %v2063_v61, %v2068_v0  ;;  %v610_v21 = vmax.f32 %v2065_v62, %v2070_v1  ;;  %v467_v22 = vrot.slane %v407_v4, 1  ;;  %v410_v63 = vld [vmem:[%s1983_s21 + $0x78] sm:$0xff]  ;;  %s1879_s21 = smov 116  }
  0x32   : > { %v815_v23 = vunpack.c.l.b16 %v663_v15  ;;  %v816_v14 = vunpack.c.l.b16 %v664_v10  ;;  %v2167_v24 = vmax.f32 %v573_v16, %v560_v11  ;;  %v2169_v25 = vmax.f32 %v574_v17, %v518_v19 }
  0x33   : > { %v468_v26 = vrot.slane %v408_v18, 1  ;;  %v528_v27 = vrot.slane %v407_v4, 7  ;;  %v529_v28 = vrot.slane %v408_v18, 7  ;;  %v617_v29 = vmax.f32 %v2126_v47, %v2130_v9 }
  0x34   : > { %v827_v30 = vpack.c.b16 %v816_v14, %v815_v23  ;;  %v625_v61 = vmax.f32 %v609_v20, %v2167_v24  ;;  %v626_v62 = vmax.f32 %v610_v21, %v2169_v25  ;;  %v618_v31 = vmax.f32 %v2128_v6, %v2132_v48 }
  0x35   : > { %v469_v32 = vsel %vm445_vm2, %v467_v22, %v468_v26  ;;  %v503_v33 = vsel %vm445_vm2, %v468_v26, %v408_v18  ;;  %v530_v34 = vsel %vm506_vm3, %v528_v27, %v529_v28  ;;  %v564_v35 = vsel %vm506_vm3, %v407_v4, %v528_v27 }
  0x36   : > { %1704 = vmatmul.msk.bf16.vlgmr.msra.gmra.mxu3 %vm712_vm1, %v827_v30  ;;  %v657_v36 = vpack.c.bf16 %v625_v61, %v625_v61  ;;  %v658_v37 = vpack.c.bf16 %v626_v62, %v626_v62  ;;  %v581_v38 = vmax.f32 %v407_v4, %v469_v32  ;;  %v582_v39 = vmax.f32 %v408_v18, %v503_v33 }
  0x37   : > { %v643_v40 = vpack.c.bf16 %v2121_v45, %v2121_v45  ;;  %v644_v43 = vpack.c.bf16 %v2124_v46, %v2124_v46  ;;  %v651_v50 = vpack.c.bf16 %v407_v4, %v407_v4  ;;  %v652_v51 = vpack.c.bf16 %v408_v18, %v408_v18 }
  0x38   : > { %v809_v12 = vunpack.c.l.b16 %v657_v36  ;;  %v810_v52 = vunpack.c.l.b16 %v658_v37  ;;  %v2193_v53 = vmax.f32 %v581_v38, %v564_v35  ;;  %v2195_v55 = vmax.f32 %v582_v39, %v530_v34  ;;  %v423_v34 = vld [vmem:[%s422_s15] sm:$0xff]  ;;  %v424_v35 = vld [vmem:[%s422_s15 + $0x8] sm:$0xff]  ;;  %s378_s15 = sadd.s32 %s1860_s24, %s1685_s13 }
  0x39   : > { %v692_v57 = vunpack.c.l.b16 %v643_v40  ;;  %v693_v59 = vunpack.c.l.b16 %v644_v43  ;;  %v700_v13 = vunpack.c.l.b16 %v651_v50  ;;  %v701_v60 = vunpack.c.l.b16 %v652_v51  ;;  %p379_p9 = scmp.lt.s32.totalorder %s378_s15, 3 }
  0x3a   : > { %v824_v45 = vpack.c.b16 %v810_v52, %v809_v12  ;;  %v633_v54 = vmax.f32 %v617_v29, %v2193_v53  ;;  %v634_v46 = vmax.f32 %v618_v31, %v2195_v55  ;;  %v611_v58 = vmax.f32 %v2068_v0, %v2167_v24 }
  0x3b   : > { %v706_v2 = vpack.c.b16 %v693_v59, %v692_v57  ;;  %v612_v3 = vmax.f32 %v2070_v1, %v2169_v25  ;;  %v470_v4 = vrot.slane %v409_v56, 1  ;;  %v471_v11 = vrot.slane %v410_v63, 1  ;;  %s2733_s15 = smov (!%p379_p9, %s378_s15), 3 }
  0x3c   : > { %1701 = vmatmul.msk.bf16.gmra.mxu1 %vm712_vm1, %v824_v45  ;;  %v665_v5 = vpack.c.bf16 %v633_v54, %v633_v54  ;;  %v666_v7 = vpack.c.bf16 %v634_v46, %v634_v46  ;;  %v627_v8 = vmax.f32 %v611_v58, %v2114_v41  ;;  %v710_v15 = vpack.c.b16 %v701_v60, %v700_v13  ;;  %s381_s16 = scalar_lea.vmem %s2714_s6, %s2733_s15 }
  0x3d   : > { %v628_v0 = vmax.f32 %v612_v3, %v2116_v42  ;;  %v531_v10 = vrot.slane %v409_v56, 7  ;;  %v532_v16 = vrot.slane %v410_v63, 7  ;;  %v472_v20 = vsel %vm445_vm2, %v470_v4, %v471_v11 }
  0x3e   : > { %v817_v17 = vunpack.c.l.b16 %v665_v5  ;;  %v818_v18 = vunpack.c.l.b16 %v666_v7  ;;  %v659_v19 = vpack.c.bf16 %v627_v8, %v627_v8  ;;  %v504_v21 = vsel %vm445_vm2, %v471_v11, %v410_v63 }
  0x3f   : > { %v660_v1 = vpack.c.bf16 %v628_v0, %v628_v0  ;;  %v533_v22 = vsel %vm506_vm3, %v531_v10, %v532_v16  ;;  %v565_v23 = vsel %vm506_vm3, %v409_v56, %v531_v10  ;;  %v583_v14 = vmax.f32 %v409_v56, %v472_v20 }
  0x40   : > { %v584_v26 = vmax.f32 %v410_v63, %v504_v21  ;;  %v619_v27 = vmax.f32 %v2130_v9, %v2193_v53  ;;  %v620_v28 = vmax.f32 %v2132_v48, %v2195_v55  ;;  %v828_v29 = vpack.c.b16 %v818_v18, %v817_v17 }
  0x41   : > { %1694 = vmatmul.msk.bf16.gmra.mxu0 %vm712_vm1, %v706_v2  ;;  %1698 = vmatmul.msk.bf16.gmra.mxu2 %vm712_vm1, %v710_v15  ;;  %v603_v30 = vmax.f32 %v583_v14, %v565_v23  ;;  %v811_v62 = vunpack.c.l.b16 %v659_v19  ;;  %v812_v31 = vunpack.c.l.b16 %v660_v1  ;;  %v645_v32 = vpack.c.bf16 %v2042_v44, %v2042_v44 }
  0x42   : > { %v604_v61 = vmax.f32 %v584_v26, %v533_v22  ;;  %v646_v33 = vpack.c.bf16 %v2049_v49, %v2049_v49  ;;  %v653_v9 = vpack.c.bf16 %v409_v56, %v409_v56  ;;  %v654_v38 = vpack.c.bf16 %v410_v63, %v410_v63 }
  0x43   : > { %v635_v36 = vmax.f32 %v619_v27, %v603_v30  ;;  %v825_v48 = vpack.c.b16 %v812_v31, %v811_v62  ;;  %v473_v39 = vrot.slane %v423_v34, 1  ;;  %v474_v40 = vrot.slane %v424_v35, 1 }
  0x44   : > { %v636_v37 = vmax.f32 %v620_v28, %v604_v61  ;;  %v694_v43 = vunpack.c.l.b16 %v645_v32  ;;  %v695_v50 = vunpack.c.l.b16 %v646_v33  ;;  %v613_v51 = vmax.f32 %v2167_v24, %v2114_v41 }
  0x45   : > { %v614_v44 = vmax.f32 %v2169_v25, %v2116_v42  ;;  %v667_v49 = vpack.c.bf16 %v635_v36, %v635_v36  ;;  %v702_v52 = vunpack.c.l.b16 %v653_v9  ;;  %v703_v57 = vunpack.c.l.b16 %v654_v38 }
  0x46   : > { %1705 = vmatmul.msk.bf16.gmra.mxu3 %vm712_vm1, %v828_v29  ;;  %v668_v12 = vpack.c.bf16 %v636_v37, %v636_v37  ;;  %v475_v56 = vsel %vm445_vm2, %v473_v39, %v474_v40  ;;  %v505_v59 = vsel %vm445_vm2, %v474_v40, %v424_v35  ;;  %v534_v13 = vrot.slane %v423_v34, 7 }
  0x47   : > { %v535_v60 = vrot.slane %v424_v35, 7  ;;  %v629_v63 = vmax.f32 %v613_v51, %v2126_v47  ;;  %v630_v45 = vmax.f32 %v614_v44, %v2128_v6  ;;  %v819_v41 = vunpack.c.l.b16 %v667_v49 }
  0x48   : > { %v820_v24 = vunpack.c.l.b16 %v668_v12  ;;  %v707_v54 = vpack.c.b16 %v695_v50, %v694_v43  ;;  %v711_v42 = vpack.c.b16 %v703_v57, %v702_v52  ;;  %v585_v25 = vmax.f32 %v423_v34, %v475_v56 }
  0x49   : > { %v586_v46 = vmax.f32 %v424_v35, %v505_v59  ;;  %v536_v58 = vsel %vm506_vm3, %v534_v13, %v535_v60  ;;  %v566_v2 = vsel %vm506_vm3, %v423_v34, %v534_v13  ;;  %v661_v3 = vpack.c.bf16 %v629_v63, %v629_v63 }
  0x4a   : > { %v662_v4 = vpack.c.bf16 %v630_v45, %v630_v45  ;;  %v829_v5 = vpack.c.b16 %v820_v24, %v819_v41  ;;  %v605_v47 = vmax.f32 %v585_v25, %v566_v2  ;;  %v621_v6 = vmax.f32 %v2193_v53, %v603_v30 }
  0x4b   : > { %v606_v7 = vmax.f32 %v586_v46, %v536_v58  ;;  %v622_v8 = vmax.f32 %v2195_v55, %v604_v61  ;;  %v813_v11 = vunpack.c.l.b16 %v661_v3 }
  0x4c   : > { %1702 = vmatmul.msk.bf16.gmra.mxu1 %vm712_vm1, %v825_v48  ;;  %v814_v15 = vunpack.c.l.b16 %v662_v4  ;;  %v637_v0 = vmax.f32 %v621_v6, %v605_v47 }
  0x4d   : > { %v638_v10 = vmax.f32 %v622_v8, %v606_v7 }
  0x4e   : > { %v826_v16 = vpack.c.b16 %v814_v15, %v813_v11  ;;  %v669_v17 = vpack.c.bf16 %v637_v0, %v637_v0 }
  0x4f   : > { %v670_v18 = vpack.c.bf16 %v638_v10, %v638_v10 }
  0x50   : > { %v821_v19 = vunpack.c.l.b16 %v669_v17 }
  0x51   : > { %1695 = vmatmul.msk.bf16.gmra.mxu0 %vm712_vm1, %v707_v54  ;;  %1699 = vmatmul.msk.bf16.gmra.mxu2 %vm712_vm1, %v711_v42  ;;  %v822_v20 = vunpack.c.l.b16 %v670_v18 }
  0x53   : > { %v830_v1 = vpack.c.b16 %v822_v20, %v821_v19 }
  0x56   : > { %1706 = vmatmul.msk.bf16.gmra.mxu3 %vm712_vm1, %v829_v5 }
  0x5c   : > { %1703 = vmatmul.msk.bf16.gmra.mxu1 %vm712_vm1, %v826_v16 }
  0x66   : > { %1707 = vmatmul.msk.bf16.gmra.mxu3 %vm712_vm1, %v830_v1 }
  0x97   : > { %v750_v53 = vpop.f32.mrf.mxu0 }
  0x98   : > { %v907_v55 = vpack.c.bf16 %v750_v53, %v750_v53  ;;  %v1280_v21 = vmul.f32 %v750_v53, %v750_v53  ;;  %v1199_v22 = vsel %vm1198_vm5, %v750_v53, 0.0 }
  0x9a   : > { %956 = vrot.lane.b32.xlu0 %v907_v55, %s1878_s20  ;;  %924 = vst.msk [vmem:[%s2256_s19] sm:$0xf] %vm923_vm4, %v907_v55  ;;  %v1296_v14 = vsel %vm1198_vm5, %v1280_v21, 0.0 }
  0x9e   : > { %v2262_v23 = vpop.f32.mrf.mxu2 }
  0x9f   : > { %v752_v26 = vpop.f32.mrf.mxu0  ;;  %v915_v27 = vpack.c.bf16 %v2262_v23, %v2262_v23 }
  0xa0   : > { %v1200_v28 = vsel %vm1198_vm5, %v752_v26, 0.0  ;;  %v1281_v29 = vmul.f32 %v752_v26, %v752_v26  ;;  %v1758_v30 = vpack.i.bf16 %v752_v26, %v750_v53  ;;  %v908_v61 = vpack.c.bf16 %v752_v26, %v752_v26 }
  0xa1   : > { %v1201_v62 = vadd.f32 %v1200_v28, %v1199_v22  ;;  %972 = vrot.lane.b32.xlu2 %v915_v27, %s1878_s20  ;;  %932 = vst.msk [vmem:[%s2256_s19 + $0x20] sm:$0xf] %vm923_vm4, %v915_v27  ;;  %v1288_v26 = vmul.f32 %v2262_v23, %v2262_v23 }
  0xa2   : > { %v1297_v31 = vsel %vm1198_vm5, %v1281_v29, 0.0  ;;  %1759 = vrot.lane.b32.xlu1 %v1758_v30, %s1879_s21  ;;  %958 = vrot.lane.b32.xlu0 %v908_v61, %s1878_s20  ;;  %925 = vst.msk [vmem:[%s2256_s19 + $0x4] sm:$0xf] %vm923_vm4, %v908_v61  ;;  %v1214_v30 = vsel %vm1198_vm5, %v2262_v23, 0.0 }
  0xa3   : > { %v1298_v32 = vadd.f32 %v1297_v31, %v1296_v14 }
  0xa6   : > { %v2276_v33 = vpop.f32.mrf.mxu2 }
  0xa7   : > { %v1763_v34 = vpack.i.bf16 %v2276_v33, %v2262_v23  ;;  %v916_v35 = vpack.c.bf16 %v2276_v33, %v2276_v33  ;;  %v1289_v31 = vmul.f32 %v2276_v33, %v2276_v33 }
  0xa8   : > { %v2282_v36 = vpop.f32.mrf.mxu1 }
  0xa9   : > { %1764 = vrot.lane.b32.xlu2 %v1763_v34, %s1879_s21  ;;  %933 = vst.msk [vmem:[%s2256_s19 + $0x24] sm:$0xf] %vm923_vm4, %v916_v35  ;;  %v1333_v61 = vmul.f32 %v2282_v36, %v2282_v36 }
  0xaa   : > { %974 = vrot.lane.b32.xlu0 %v916_v35, %s1878_s20 }
  0xae   : > { %v755_v37 = vpop.f32.mrf.mxu0 }
  0xaf   : > { %v1202_v9 = vsel %vm1198_vm5, %v755_v37, 0.0  ;;  %v1282_v38 = vmul.f32 %v755_v37, %v755_v37  ;;  %v909_v48 = vpack.c.bf16 %v755_v37, %v755_v37 }
  0xb0   : > { %v1203_v39 = vadd.f32 %v1202_v9, %v1201_v62  ;;  %v2289_v40 = vpop.f32.mrf.mxu1 }
  0xb1   : > { %v1299_v43 = vsel %vm1198_vm5, %v1282_v38, 0.0  ;;  %960 = vrot.lane.b32.xlu1 %v909_v48, %s1878_s20  ;;  %926 = vst.msk [vmem:[%s2256_s19 + $0x8] sm:$0xf] %vm923_vm4, %v909_v48  ;;  %v1768_v50 = vpack.i.bf16 %v2289_v40, %v2282_v36  ;;  %v1334_v21 = vmul.f32 %v2289_v40, %v2289_v40 }
  0xb2   : > { %v1300_v51 = vadd.f32 %v1299_v43, %v1298_v32  ;;  %v1237_v32 = vsel %vm712_vm1, %v2289_v40, 0.0  ;;  %v1311_v40 = vsel %vm1198_vm5, %v1288_v26, 0.0  ;;  %v1236_v43 = vsel %vm712_vm1, %v2282_v36, 0.0 }
  0xb3   : > { %1769 = vrot.lane.b32.xlu0 %v1768_v50, %s1880_s22  ;;  %v1350_v34 = vsel %vm712_vm1, %v1334_v21, 0.0  ;;  %v1313_v36 = vsel %vm1198_vm5, %v1289_v31, 0.0 }
  0xb4   : > { %v2298_v44 = vpop.f32.mrf.mxu2 }
  0xb5   : > { %v917_v49 = vpack.c.bf16 %v2298_v44, %v2298_v44  ;;  %v1290_v9 = vmul.f32 %v2298_v44, %v2298_v44 }
  0xb6   : > { %v757_v12 = vpop.f32.mrf.mxu0 }
  0xb7   : > { %v1204_v52 = vsel %vm1198_vm5, %v757_v12, 0.0  ;;  %v1283_v57 = vmul.f32 %v757_v12, %v757_v12  ;;  %934 = vst.msk [vmem:[%s2256_s19 + $0x28] sm:$0xf] %vm923_vm4, %v917_v49  ;;  %v1773_v56 = vpack.i.bf16 %v757_v12, %v755_v37  ;;  %v910_v13 = vpack.c.bf16 %v757_v12, %v757_v12 }
  0xb8   : > { %v1205_v59 = vadd.f32 %v1204_v52, %v1203_v39  ;;  %v1216_v12 = vsel %vm1198_vm5, %v2276_v33, 0.0  ;;  %v1238_v52 = vadd.f32 %v1237_v32, %v1236_v43 }
  0xb9   : > { %v2305_v60 = vpop.f32.mrf.mxu3  ;;  %v1301_v63 = vsel %vm1198_vm5, %v1283_v57, 0.0  ;;  %976 = vrot.lane.b32.xlu1 %v917_v49, %s1878_s20  ;;  %1774 = vrot.lane.b32.xlu2 %v1773_v56, %s1879_s21  ;;  %v2310_v45 = vpop.f32.mrf.mxu1  ;;  %927 = vst.msk [vmem:[%s2256_s19 + $0xc] sm:$0xf] %vm923_vm4, %v910_v13  ;;  %v1349_v49 = vsel %vm712_vm1, %v1333_v61, 0.0 }
  0xba   : > { %v1302_v41 = vadd.f32 %v1301_v63, %v1300_v51  ;;  %v1335_v38 = vmul.f32 %v2310_v45, %v2310_v45  ;;  %v1239_v50 = vsel %vm712_vm1, %v2310_v45, 0.0  ;;  %v1341_v57 = vmul.f32 %v2305_v60, %v2305_v60 }
  0xbb   : > { %v2424_v63 = vsel %vm712_vm1, %v2305_v60, 0.0 }
  0xbc   : > { %v2314_v24 = vpop.f32.mrf.mxu2 }
  0xbd   : > { %v918_v54 = vpack.c.bf16 %v2314_v24, %v2314_v24  ;;  %v1783_v25 = vpack.i.bf16 %v2314_v24, %v2298_v44 }
  0xbe   : > { %v760_v42 = vpop.f32.mrf.mxu0 }
  0xbf   : > { %v1206_v46 = vsel %vm1198_vm5, %v760_v42, 0.0  ;;  %v1284_v58 = vmul.f32 %v760_v42, %v760_v42  ;;  %935 = vst.msk [vmem:[%s2256_s19 + $0x2c] sm:$0xf] %vm923_vm4, %v918_v54  ;;  %v911_v2 = vpack.c.bf16 %v760_v42, %v760_v42  ;;  %1784 = vrot.lane.b32.xlu0 %v1783_v25, %s1879_s21 }
  0xc0   : > { %v1207_v3 = vadd.f32 %v1206_v46, %v1205_v59  ;;  %v1351_v59 = vadd.f32 %v1350_v34, %v1349_v49 }
  0xc1   : > { %v2324_v4 = vpop.f32.mrf.mxu3  ;;  %v1303_v5 = vsel %vm1198_vm5, %v1284_v58, 0.0  ;;  %978 = vrot.lane.b32.xlu2 %v918_v54, %s1878_s20  ;;  %v2328_v47 = vpop.f32.mrf.mxu1  ;;  %928 = vst.msk [vmem:[%s2256_s19 + $0x10] sm:$0xf] %vm923_vm4, %v911_v2  ;;  %v1352_v54 = vsel %vm712_vm1, %v1335_v38, 0.0  ;;  %v2444_v58 = vsel %vm712_vm1, %v1341_v57, 0.0 }
  0xc2   : > { %v1778_v7 = vpack.i.bf16 %v2324_v4, %v2305_v60  ;;  %v1304_v6 = vadd.f32 %v1303_v5, %v1302_v41  ;;  %v1788_v48 = vpack.i.bf16 %v2328_v47, %v2310_v45  ;;  %v1315_v45 = vsel %vm1198_vm5, %v1290_v9, 0.0 }
  0xc3   : > { %v1240_v41 = vadd.f32 %v1239_v50, %v1238_v52  ;;  %v1336_v25 = vmul.f32 %v2328_v47, %v2328_v47 }
  0xc4   : > { %1779 = vrot.lane.b32.xlu1 %v1778_v7, %s1880_s22  ;;  %v2335_v8 = vpop.f32.mrf.mxu2  ;;  %v1353_v7 = vadd.f32 %v1352_v54, %v1351_v59 }
  0xc5   : > { %v919_v11 = vpack.c.bf16 %v2335_v8, %v2335_v8 }
  0xc6   : > { %v762_v15 = vpop.f32.mrf.mxu0 }
  0xc7   : > { %v1208_v0 = vsel %vm1198_vm5, %v762_v15, 0.0  ;;  %v1285_v10 = vmul.f32 %v762_v15, %v762_v15  ;;  %936 = vst.msk [vmem:[%s2256_s19 + $0x30] sm:$0xf] %vm923_vm4, %v919_v11  ;;  %980 = vrot.lane.b32.xlu0 %v919_v11, %s1878_s20  ;;  %v2343_v17 = vpack.c.bf16 %v762_v15, %v762_v15  ;;  %v1793_v55 = vpack.i.bf16 %v762_v15, %v760_v42 }
  0xc8   : > { %v1209_v16 = vadd.f32 %v1208_v0, %v1207_v3  ;;  %v1291_v3 = vmul.f32 %v2314_v24, %v2314_v24 }
  0xc9   : > { %v2345_v18 = vpop.f32.mrf.mxu3  ;;  %v1305_v19 = vsel %vm1198_vm5, %v1285_v10, 0.0  ;;  %964 = vrot.lane.b32.xlu2 %v911_v2, %s1878_s20  ;;  %v2349_v20 = vpop.f32.mrf.mxu1  ;;  %929 = vst.msk [vmem:[%s2256_s19 + $0x14] sm:$0xf] %vm923_vm4, %v2343_v17  ;;  %v1220_v2 = vsel %vm1198_vm5, %v2314_v24, 0.0  ;;  %v2465_v24 = vmul.f32 %v2324_v4, %v2324_v4 }
  0xca   : > { %v1306_v1 = vadd.f32 %v1305_v19, %v1304_v6  ;;  %v1241_v6 = vsel %vm712_vm1, %v2328_v47, 0.0  ;;  %v1337_v11 = vmul.f32 %v2349_v20, %v2349_v20  ;;  %v1243_v21 = vsel %vm712_vm1, %v2349_v20, 0.0 }
  0xcc   : > { %962 = vrot.lane.b32.xlu1 %v910_v13, %s1878_s20  ;;  %v2355_v53 = vpop.f32.mrf.mxu2  ;;  %v1218_v13 = vsel %vm1198_vm5, %v2298_v44, 0.0 }
  0xcd   : > { %v2363_v14 = vpack.c.bf16 %v2355_v53, %v2355_v53  ;;  %v1803_v47 = vpack.i.bf16 %v2355_v53, %v2335_v8  ;;  %v1224_v52 = vsel %vm1198_vm5, %v2355_v53, 0.0 }
  0xce   : > { %v2359_v22 = vpop.f32.mrf.mxu0 }
  0xcf   : > { %v1210_v27 = vsel %vm1198_vm5, %v2359_v22, 0.0  ;;  %v1286_v28 = vmul.f32 %v2359_v22, %v2359_v22  ;;  %v913_v29 = vpack.c.bf16 %v2359_v22, %v2359_v22  ;;  %1794 = vrot.lane.b32.xlu0 %v1793_v55, %s1879_s21  ;;  %937 = vst.msk [vmem:[%s2256_s19 + $0x34] sm:$0xf] %vm923_vm4, %v2363_v14  ;;  %v1292_v55 = vmul.f32 %v2335_v8, %v2335_v8 }
  0xd0   : > { %v1211_v62 = vadd.f32 %v1210_v27, %v1209_v16  ;;  %v1317_v27 = vsel %vm1198_vm5, %v1291_v3, 0.0 }
  0xd1   : > { %v2386_v35 = vpop.f32.mrf.mxu3  ;;  %v1307_v23 = vsel %vm1198_vm5, %v1286_v28, 0.0  ;;  %v2389_v37 = vpop.f32.mrf.mxu1  ;;  %930 = vst.msk [vmem:[%s2256_s19 + $0x18] sm:$0xf] %vm923_vm4, %v913_v29  ;;  %v1242_v28 = vadd.f32 %v1241_v6, %v1240_v41 }
  0xd2   : > { %v1798_v39 = vpack.i.bf16 %v2386_v35, %v2345_v18  ;;  %v1308_v51 = vadd.f32 %v1307_v23, %v1306_v1  ;;  %v1354_v1 = vsel %vm712_vm1, %v1336_v25, 0.0  ;;  %v1338_v26 = vmul.f32 %v2389_v37, %v2389_v37 }
  0xd3   : > { %v1245_v31 = vsel %vm712_vm1, %v2389_v37, 0.0  ;;  %v1355_v23 = vadd.f32 %v1354_v1, %v1353_v7  ;;  %v1244_v9 = vadd.f32 %v1243_v21, %v1242_v28  ;;  %v1808_v57 = vpack.i.bf16 %v2389_v37, %v2349_v20 }
  0xd4   : > { %1799 = vrot.lane.b32.xlu2 %v1798_v39, %s1880_s22  ;;  %1789 = vrot.lane.b32.xlu1 %v1788_v48, %s1880_s22  ;;  %v2413_v56 = vpop.f32.mrf.mxu2  ;;  %v1222_v48 = vsel %vm1198_vm5, %v2335_v8, 0.0  ;;  %v1319_v39 = vsel %vm1198_vm5, %v1292_v55, 0.0  ;;  %v1293_v8 = vmul.f32 %v2355_v53, %v2355_v53  ;;  %v1253_v1 = vsel %vm712_vm1, %v2324_v4, 0.0 }
  0xd5   : > { %v2420_v33 = vpack.c.bf16 %v2413_v56, %v2413_v56  ;;  %v1343_v55 = vmul.f32 %v2345_v18, %v2345_v18 }
  0xd6   : > { %v2428_v42 = vpop.f32.mrf.mxu0  ;;  %v1321_v7 = vsel %vm1198_vm5, %v1293_v8, 0.0 }
  0xd7   : > { %v2434_v44 = vpack.c.bf16 %v2428_v42, %v2428_v42  ;;  %v1212_v46 = vsel %vm1198_vm5, %v2428_v42, 0.0  ;;  %v1287_v60 = vmul.f32 %v2428_v42, %v2428_v42  ;;  %938 = vst.msk [vmem:[%s2256_s19 + $0x38] sm:$0xf] %vm923_vm4, %v2420_v33  ;;  %968 = vrot.lane.b32.xlu0 %v913_v29, %s1878_s20 }
  0xd8   : > { %v1213_v5 = vadd.f32 %v1212_v46, %v1211_v62  ;;  %v1356_v62 = vsel %vm712_vm1, %v1337_v11, 0.0 }
  0xd9   : > { %v2455_v15 = vpop.f32.mrf.mxu3  ;;  %931 = vst.msk [vmem:[%s2256_s19 + $0x1c] sm:$0xf] %vm923_vm4, %v2434_v44  ;;  %v1309_v0 = vsel %vm1198_vm5, %v1287_v60, 0.0  ;;  %v2461_v10 = vpop.f32.mrf.mxu1  ;;  %v1357_v50 = vadd.f32 %v1356_v62, %v1355_v23  ;;  %v1344_v62 = vmul.f32 %v2386_v35, %v2386_v35  ;;  %v1813_v23 = vpack.i.bf16 %v2428_v42, %v2359_v22 }
  0xda   : > { %v1215_v16 = vadd.f32 %v1214_v30, %v1213_v5  ;;  %v1310_v19 = vadd.f32 %v1309_v0, %v1308_v51  ;;  %v1339_v32 = vmul.f32 %v2461_v10, %v2461_v10  ;;  %v1247_v43 = vsel %vm712_vm1, %v2461_v10, 0.0 }
  0xdb   : > { %v1246_v51 = vadd.f32 %v1245_v31, %v1244_v9  ;;  %v1370_v22 = vsel %vm712_vm1, %v1344_v62, 0.0  ;;  %v1259_v42 = vsel %vm712_vm1, %v2455_v15, 0.0 }
  0xdc   : > { %v1217_v29 = vadd.f32 %v1216_v12, %v1215_v16  ;;  %v1312_v30 = vadd.f32 %v1311_v40, %v1310_v19  ;;  %966 = vrot.lane.b32.xlu2 %v2343_v17, %s1878_s20  ;;  %1804 = vrot.lane.b32.xlu1 %v1803_v47, %s1879_s21  ;;  %v2480_v61 = vpop.f32.mrf.mxu2  ;;  %v1358_v40 = vsel %vm712_vm1, %v1338_v26, 0.0 }
  0xdd   : > { %v2489_v34 = vpack.c.bf16 %v2480_v61, %v2480_v61  ;;  %v1359_v41 = vadd.f32 %v1358_v40, %v1357_v50  ;;  %v1248_v54 = vadd.f32 %v1247_v43, %v1246_v51  ;;  %v1295_v5 = vmul.f32 %v2480_v61, %v2480_v61 }
  0xde   : > { %v1219_v38 = vadd.f32 %v1218_v13, %v1217_v29  ;;  %v1314_v17 = vadd.f32 %v1313_v36, %v1312_v30  ;;  %v1360_v36 = vsel %vm712_vm1, %v1339_v32, 0.0  ;;  %v1255_v30 = vsel %vm712_vm1, %v2345_v18, 0.0 }
  0xdf   : > { %939 = vst.msk [vmem:[%s2256_s19 + $0x3c] sm:$0xf] %vm923_vm4, %v2489_v34  ;;  %v1361_v37 = vadd.f32 %v1360_v36, %v1359_v41  ;;  %v1345_v18 = vmul.f32 %v2455_v15, %v2455_v15  ;;  %s388_s19 = scalar_lea.vmem %s2715_s7, %s2733_s15 }
  0xe0   : > { %v1316_v49 = vadd.f32 %v1315_v45, %v1314_v17  ;;  %v1221_v12 = vadd.f32 %v1220_v2, %v1219_v38  ;;  %v1294_v45 = vmul.f32 %v2413_v56, %v2413_v56  ;;  %v1226_v2 = vsel %vm1198_vm5, %v2413_v56, 0.0 }
  0xe1   : > { %v899_v59 = vpop.f32.mrf.mxu3  ;;  %v2507_v13 = vpop.f32.mrf.mxu1  ;;  %v1368_v38 = vsel %vm712_vm1, %v1343_v55, 0.0  ;;  %v1372_v50 = vsel %vm712_vm1, %v1345_v18, 0.0 }
  0xe2   : > { %v1818_v25 = vpack.i.bf16 %v899_v59, %v2455_v15  ;;  %v1249_v46 = vsel %vm712_vm1, %v2507_v13, 0.0  ;;  %v1340_v53 = vmul.f32 %v2507_v13, %v2507_v13  ;;  %v1223_v60 = vadd.f32 %v1222_v48, %v1221_v12 }
  0xe3   : > { %v1318_v20 = vadd.f32 %v1317_v27, %v1316_v49  ;;  %v1250_v3 = vadd.f32 %v1249_v46, %v1248_v54  ;;  %v1323_v16 = vsel %vm1198_vm5, %v1294_v45, 0.0  ;;  %v1366_v27 = vsel %vm712_vm1, %v2465_v24, 0.0 }
  0xe4   : > { %1819 = vrot.lane.b32.xlu0 %v1818_v25, %s1880_s22  ;;  %982 = vrot.lane.b32.xlu1 %v2363_v14, %s1878_s20  ;;  %v1362_v6 = vsel %vm712_vm1, %v1340_v53, 0.0  ;;  %v1225_v11 = vadd.f32 %v1224_v52, %v1223_v60  ;;  %v1228_v14 = vsel %vm1198_vm5, %v2480_v61, 0.0  ;;  %v1346_v40 = vmul.f32 %v899_v59, %v899_v59 }
  0xe5   : > { %1809 = vrot.lane.b32.xlu2 %v1808_v57, %s1880_s22  ;;  %v1320_v0 = vadd.f32 %v1319_v39, %v1318_v20  ;;  %v1252_v19 = vadd.f32 %v2424_v63, %v1250_v3  ;;  %v1363_v47 = vadd.f32 %v1362_v6, %v1361_v37  ;;  %v1325_v63 = vsel %vm1198_vm5, %v1295_v5, 0.0 }
  0xe6   : > { %v1227_v21 = vadd.f32 %v1226_v2, %v1225_v11  ;;  %v1261_v51 = vsel %vm712_vm1, %v899_v59, 0.0  ;;  %v1374_v52 = vsel %vm712_vm1, %v1346_v40, 0.0  ;;  %v1828_v15 = vpack.i.bf16 %v2507_v13, %v2461_v10 }
  0xe7   : > { %v1322_v26 = vadd.f32 %v1321_v7, %v1320_v0  ;;  %v1254_v28 = vadd.f32 %v1253_v1, %v1252_v19  ;;  %v1365_v29 = vadd.f32 %v2444_v58, %v1363_v47  ;;  %v1257_v58 = vsel %vm712_vm1, %v2386_v35, 0.0 }
  0xe8   : > { %v2542_v31 = vadd.f32 %v1228_v14, %v1227_v21  ;;  %v1823_v54 = vpack.i.bf16 %v2480_v61, %v2413_v56 }
  0xe9   : > { %v902_v4 = vpop.f32.mrf.mxu3  ;;  %v1324_v32 = vadd.f32 %v1323_v16, %v1322_v26  ;;  %v1256_v9 = vadd.f32 %v1255_v30, %v1254_v28  ;;  %v1367_v24 = vadd.f32 %v1366_v27, %v1365_v29 }
  0xea   : > { %v1347_v49 = vmul.f32 %v902_v4, %v902_v4  ;;  %v1263_v8 = vsel %vm712_vm1, %v902_v4, 0.0 }
  0xeb   : > { %v2551_v17 = vadd.f32 %v1325_v63, %v1324_v32  ;;  %v1369_v48 = vadd.f32 %v1368_v38, %v1367_v24  ;;  %v1258_v39 = vadd.f32 %v1257_v58, %v1256_v9 }
  0xec   : > { %986 = vrot.lane.b32.xlu0 %v2489_v34, %s1878_s20  ;;  %1814 = vrot.lane.b32.xlu1 %v1813_v23, %s1879_s21  ;;  %v1376_v41 = vsel %vm712_vm1, %v1347_v49, 0.0 }
  0xed   : > { %984 = vrot.lane.b32.xlu2 %v2420_v33, %s1878_s20  ;;  %v1260_v35 = vadd.f32 %v1259_v42, %v1258_v39  ;;  %v1371_v43 = vadd.f32 %v1370_v22, %v1369_v48 }
  0xef   : > { %v1262_v12 = vadd.f32 %v1261_v51, %v1260_v35  ;;  %v1373_v34 = vadd.f32 %v1372_v50, %v1371_v43 }
  0xf1   : > { %v904_v57 = vpop.f32.mrf.mxu3  ;;  %v1264_v36 = vadd.f32 %v1263_v8, %v1262_v12  ;;  %v1375_v33 = vadd.f32 %v1374_v52, %v1373_v34 }
  0xf2   : > { %v1265_v59 = vsel %vm712_vm1, %v904_v57, 0.0  ;;  %v1348_v25 = vmul.f32 %v904_v57, %v904_v57  ;;  %v1833_v56 = vpack.i.bf16 %v904_v57, %v902_v4 }
  0xf3   : > { %v1377_v45 = vadd.f32 %v1376_v41, %v1375_v33  ;;  %v1266_v46 = vadd.f32 %v1265_v59, %v1264_v36 }
  0xf4   : > { %970 = vrot.lane.b32.xlu1 %v2434_v44, %s1878_s20  ;;  %1829 = vrot.lane.b32.xlu0 %v1828_v15, %s1880_s22  ;;  %v1378_v10 = vsel %vm712_vm1, %v1348_v25, 0.0 }
  0xf5   : > { %1824 = vrot.lane.b32.xlu2 %v1823_v54, %s1879_s21  ;;  %v1267_v13 = vrot.slane %v1266_v46, 4  ;;  %v1379_v53 = vadd.f32 %v1378_v10, %v1377_v45 }
  0xf7   : > { %v1268_v60 = vadd.f32 %v1267_v13, %v1266_v46  ;;  %v1380_v20 = vrot.slane %v1379_v53, 4 }
  0xf9   : > { %v1269_v61 = vrot.slane %v1268_v60, 2  ;;  %v1381_v44 = vadd.f32 %v1380_v20, %v1379_v53 }
  0xfb   : > { %v973_v37 = vpop.permute.xlu2 %972  ;;  %v1270_v2 = vadd.f32 %v1269_v61, %v1268_v60  ;;  %v1382_v3 = vrot.slane %v1381_v44, 2  ;;  %v1230_v60 = vrot.slane %v2542_v31, 4 }
  0xfc   : > { %1834 = vrot.lane.b32.xlu1 %v1833_v56, %s1880_s22  ;;  %1013 = vst.msk [vmem:[%s2580_s9 + $0x20] sm:$0xf] %vm1004_vm6, %v973_v37 }
  0xfd   : > { %v1271_v5 = vrot.slane %v1270_v2, 1  ;;  %v1383_v7 = vadd.f32 %v1382_v3, %v1381_v44 }
  0xff   : > { %v1272_v6 = vadd.f32 %v1271_v5, %v1270_v2  ;;  %v1384_v11 = vrot.slane %v1383_v7, 1 }
 0x101   : > { %1274 = vrot.lane.b32.xlu2 %v1272_v6, %s1881_s10  ;;  %v1385_v0 = vadd.f32 %v1384_v11, %v1383_v7  ;;  %v1231_v11 = vadd.f32 %v1230_v60, %v2542_v31 }
 0x103   : > { %1387 = vrot.lane.b32.xlu0 %v1385_v0, %s1881_s10  ;;  %v1765_v16 = vpop.permute.xlu2 %1764 }
 0x104   : > { %v1767_v49 = vunpack.i.h.bf16 %v1765_v16  ;;  %v1766_v12 = vunpack.i.l.bf16 %v1765_v16 }
 0x10c   : > { %v957_v19 = vpop.permute.xlu0 %956 }
 0x10d   : > { %1005 = vst.msk [vmem:[%s2580_s9] sm:$0xf] %vm1004_vm6, %v957_v19 }
 0x113   : > { %v2587_v47 = vpop.permute.xlu2 %1774 }
 0x114   : > { %v959_v14 = vpop.permute.xlu0 %958  ;;  %v1760_v1 = vpop.permute.xlu1 %1759  ;;  %v1777_v44 = vunpack.i.h.bf16 %v2587_v47  ;;  %v1776_v37 = vunpack.i.l.bf16 %v2587_v47  ;;  %v1232_v47 = vrot.slane %v1231_v11, 2 }
 0x115   : > { %1006 = vst.msk [vmem:[%s2580_s9 + $0x4] sm:$0xf] %vm1004_vm6, %v959_v14  ;;  %v1762_v29 = vunpack.i.h.bf16 %v1760_v1  ;;  %v1761_v63 = vunpack.i.l.bf16 %v1760_v1 }
 0x116   : > { %v1233_v1 = vadd.f32 %v1232_v47, %v1231_v11 }
 0x11b   : > { %v979_v55 = vpop.permute.xlu2 %978 }
 0x11c   : > { %1016 = vst.msk [vmem:[%s2580_s9 + $0x2c] sm:$0xf] %vm1004_vm6, %v979_v55  ;;  %v975_v21 = vpop.permute.xlu0 %974 }
 0x11d   : > { %1014 = vst.msk [vmem:[%s2580_s9 + $0x24] sm:$0xf] %vm1004_vm6, %v975_v21 }
 0x123   : > { %v961_v26 = vpop.permute.xlu1 %960  ;;  %v965_v27 = vpop.permute.xlu2 %964 }
 0x124   : > { %1007 = vst.msk [vmem:[%s2580_s9 + $0x8] sm:$0xf] %vm1004_vm6, %v961_v26  ;;  %v1234_v26 = vrot.slane %v1233_v1, 1 }
 0x125   : > { %1009 = vst.msk [vmem:[%s2580_s9 + $0x10] sm:$0xf] %vm1004_vm6, %v965_v27  ;;  %v1770_v28 = vpop.permute.xlu0 %1769 }
 0x126   : > { %v1772_v30 = vunpack.i.h.bf16 %v1770_v28  ;;  %v1771_v62 = vunpack.i.l.bf16 %v1770_v28 }
 0x128   : > { %v1150_v4 = vsel %vm712_vm1, %v1762_v29, %v1772_v30  ;;  %v1149_v32 = vsel %vm712_vm1, %v1761_v63, %v1771_v62 }
 0x129   : > { %v1166_v23 = vpack.c.bf16 %v1150_v4, %v1150_v4  ;;  %v1165_v9 = vpack.c.bf16 %v1149_v32, %v1149_v32 }
 0x12b   : > { %v977_v24 = vpop.permute.xlu1 %976  ;;  %1183 = vst.msk [vmem:[%s2603_s14 + $0x4] sm:$0xf] %vm1181_vm7, %v1166_v23  ;;  %v1235_v23 = vadd.f32 %v1234_v26, %v1233_v1 }
 0x12c   : > { %1015 = vst.msk [vmem:[%s2580_s9 + $0x28] sm:$0xf] %vm1004_vm6, %v977_v24 }
 0x12d   : > { %1182 = vst.msk [vmem:[%s2603_s14] sm:$0xf] %vm1181_vm7, %v1165_v9 }
 0x12e   : > { %v1800_v38 = vpop.permute.xlu2 %1799 }
 0x12f   : > { %v1802_v18 = vunpack.i.h.bf16 %v1800_v38  ;;  %v1801_v48 = vunpack.i.l.bf16 %v1800_v38 }
 0x131   : > { %v1785_v58 = vpop.permute.xlu0 %1784 }
 0x132   : > { %v1787_v39 = vunpack.i.h.bf16 %v1785_v58  ;;  %v1786_v22 = vunpack.i.l.bf16 %v1785_v58 }
 0x134   : > { %v1160_v42 = vsel %vm712_vm1, %v1787_v39, %v1802_v18  ;;  %v1159_v40 = vsel %vm712_vm1, %v1786_v22, %v1801_v48  ;;  %v1327_v18 = vrot.slane %v2551_v17, 4 }
 0x135   : > { %v1176_v50 = vpack.c.bf16 %v1160_v42, %v1160_v42  ;;  %v1175_v51 = vpack.c.bf16 %v1159_v40, %v1159_v40 }
 0x136   : > { %v1780_v35 = vpop.permute.xlu1 %1779  ;;  %v967_v43 = vpop.permute.xlu2 %966  ;;  %v1328_v48 = vadd.f32 %v1327_v18, %v2551_v17 }
 0x137   : > { %v1782_v34 = vunpack.i.h.bf16 %v1780_v35  ;;  %v1781_v52 = vunpack.i.l.bf16 %v1780_v35  ;;  %1010 = vst.msk [vmem:[%s2580_s9 + $0x14] sm:$0xf] %vm1004_vm6, %v967_v43 }
 0x138   : > { %1193 = vst.msk [vmem:[%s2603_s14 + $0x2c] sm:$0xf] %vm1181_vm7, %v1176_v50 }
 0x139   : > { %v1158_v8 = vsel %vm712_vm1, %v1767_v49, %v1782_v34  ;;  %v1157_v57 = vsel %vm712_vm1, %v1766_v12, %v1781_v52  ;;  %1192 = vst.msk [vmem:[%s2603_s14 + $0x28] sm:$0xf] %vm1181_vm7, %v1175_v51  ;;  %v981_v33 = vpop.permute.xlu0 %980  ;;  %v1329_v49 = vrot.slane %v1328_v48, 2 }
 0x13a   : > { %v1174_v15 = vpack.c.bf16 %v1158_v8, %v1158_v8  ;;  %v1173_v36 = vpack.c.bf16 %v1157_v57, %v1157_v57  ;;  %1017 = vst.msk [vmem:[%s2580_s9 + $0x30] sm:$0xf] %vm1004_vm6, %v981_v33 }
 0x13b   : > { %v1330_v17 = vadd.f32 %v1329_v49, %v1328_v48 }
 0x13c   : > { %1191 = vst.msk [vmem:[%s2603_s14 + $0x24] sm:$0xf] %vm1181_vm7, %v1174_v15 }
 0x13d   : > { %1190 = vst.msk [vmem:[%s2603_s14 + $0x20] sm:$0xf] %vm1181_vm7, %v1173_v36 }
 0x13e   : > { %v963_v41 = vpop.permute.xlu1 %962 }
 0x13f   : > { %1008 = vst.msk [vmem:[%s2580_s9 + $0xc] sm:$0xf] %vm1004_vm6, %v963_v41  ;;  %v1810_v54 = vpop.permute.xlu2 %1809 }
 0x140   : > { %v1812_v25 = vunpack.i.h.bf16 %v1810_v54  ;;  %v1811_v45 = vunpack.i.l.bf16 %v1810_v54  ;;  %v1331_v54 = vrot.slane %v1330_v17, 1 }
 0x141   : > { %v1795_v59 = vpop.permute.xlu0 %1794 }
 0x142   : > { %v1797_v46 = vunpack.i.h.bf16 %v1795_v59  ;;  %v1796_v10 = vunpack.i.l.bf16 %v1795_v59 }
 0x144   : > { %v1153_v13 = vsel %vm712_vm1, %v1796_v10, %v1811_v45  ;;  %v1154_v53 = vsel %vm712_vm1, %v1797_v46, %v1812_v25  ;;  %v1332_v45 = vadd.f32 %v1331_v54, %v1330_v17 }
 0x145   : > { %v1169_v20 = vpack.c.bf16 %v1153_v13, %v1153_v13  ;;  %v1170_v56 = vpack.c.bf16 %v1154_v53, %v1154_v53 }
 0x146   : > { %v1790_v61 = vpop.permute.xlu1 %1789 }
 0x147   : > { %v1792_v2 = vunpack.i.h.bf16 %v1790_v61  ;;  %v1791_v3 = vunpack.i.l.bf16 %v1790_v61  ;;  %1186 = vst.msk [vmem:[%s2603_s14 + $0x10] sm:$0xf] %vm1181_vm7, %v1169_v20  ;;  %v985_v6 = vpop.permute.xlu2 %984 }
 0x148   : > { %1187 = vst.msk [vmem:[%s2603_s14 + $0x14] sm:$0xf] %vm1181_vm7, %v1170_v56 }
 0x149   : > { %v1152_v5 = vsel %vm712_vm1, %v1777_v44, %v1792_v2  ;;  %v1151_v7 = vsel %vm712_vm1, %v1776_v37, %v1791_v3  ;;  %1019 = vst.msk [vmem:[%s2580_s9 + $0x38] sm:$0xf] %vm1004_vm6, %v985_v6  ;;  %v969_v19 = vpop.permute.xlu0 %968 }
 0x14a   : > { %v1168_v0 = vpack.c.bf16 %v1152_v5, %v1152_v5  ;;  %v1167_v16 = vpack.c.bf16 %v1151_v7, %v1151_v7  ;;  %1011 = vst.msk [vmem:[%s2580_s9 + $0x18] sm:$0xf] %vm1004_vm6, %v969_v19 }
 0x14c   : > { %1185 = vst.msk [vmem:[%s2603_s14 + $0xc] sm:$0xf] %vm1181_vm7, %v1168_v0 }
 0x14d   : > { %1184 = vst.msk [vmem:[%s2603_s14 + $0x8] sm:$0xf] %vm1181_vm7, %v1167_v16 }
 0x14e   : > { %v1805_v14 = vpop.permute.xlu1 %1804 }
 0x14f   : > { %v1825_v55 = vpop.permute.xlu2 %1824  ;;  %v1807_v27 = vunpack.i.h.bf16 %v1805_v14  ;;  %v1806_v28 = vunpack.i.l.bf16 %v1805_v14 }
 0x150   : > { %v1827_v8 = vunpack.i.h.bf16 %v1825_v55  ;;  %v1826_v57 = vunpack.i.l.bf16 %v1825_v55 }
 0x156   : > { %v1820_v31 = vpop.permute.xlu0 %1819  ;;  %v983_v21 = vpop.permute.xlu1 %982 }
 0x157   : > { %v1822_v29 = vunpack.i.h.bf16 %v1820_v31  ;;  %v1821_v63 = vunpack.i.l.bf16 %v1820_v31  ;;  %1018 = vst.msk [vmem:[%s2580_s9 + $0x34] sm:$0xf] %vm1004_vm6, %v983_v21 }
 0x159   : > { %v1161_v30 = vsel %vm712_vm1, %v1806_v28, %v1821_v63  ;;  %v1162_v62 = vsel %vm712_vm1, %v1807_v27, %v1822_v29 }
 0x15a   : > { %v1177_v4 = vpack.c.bf16 %v1161_v30, %v1161_v30  ;;  %v1178_v32 = vpack.c.bf16 %v1162_v62, %v1162_v62 }
 0x15b   : > { %v1275_v9 = vpop.permute.xlu2 %1274 }
 0x15c   : > { %1194 = vst.msk [vmem:[%s2603_s14 + $0x30] sm:$0xf] %vm1181_vm7, %v1177_v4  ;;  %v1277_v24 = vsel %vm1198_vm5, %v1235_v23, %v1275_v9 }
 0x15d   : > { %1195 = vst.msk [vmem:[%s2603_s14 + $0x34] sm:$0xf] %vm1181_vm7, %v1178_v32 }
 0x15e   : > { %v987_v38 = vpop.permute.xlu0 %986  ;;  %v1815_v58 = vpop.permute.xlu1 %1814  ;;  %1279 = vst.msk [vmem:[%s381_s16] sm:$0x1] %vm1278_vm8, %v1277_v24 }
 0x15f   : > { %1020 = vst.msk [vmem:[%s2580_s9 + $0x3c] sm:$0xf] %vm1004_vm6, %v987_v38  ;;  %v1817_v42 = vunpack.i.h.bf16 %v1815_v58  ;;  %v1816_v40 = vunpack.i.l.bf16 %v1815_v58 }
 0x166   : > { %v971_v39 = vpop.permute.xlu1 %970  ;;  %v1830_v22 = vpop.permute.xlu0 %1829 }
 0x167   : > { %1012 = vst.msk [vmem:[%s2580_s9 + $0x1c] sm:$0xf] %vm1004_vm6, %v971_v39  ;;  %v1832_v35 = vunpack.i.h.bf16 %v1830_v22  ;;  %v1831_v43 = vunpack.i.l.bf16 %v1830_v22 }
 0x169   : > { %v1156_v50 = vsel %vm712_vm1, %v1817_v42, %v1832_v35  ;;  %v1155_v51 = vsel %vm712_vm1, %v1816_v40, %v1831_v43 }
 0x16a   : > { %v1172_v12 = vpack.c.bf16 %v1156_v50, %v1156_v50  ;;  %v1171_v34 = vpack.c.bf16 %v1155_v51, %v1155_v51 }
 0x16c   : > { %1189 = vst.msk [vmem:[%s2603_s14 + $0x1c] sm:$0xf] %vm1181_vm7, %v1172_v12 }
 0x16d   : > { %1188 = vst.msk [vmem:[%s2603_s14 + $0x18] sm:$0xf] %vm1181_vm7, %v1171_v34 }
 0x16e   : > { %v1835_v52 = vpop.permute.xlu1 %1834 }
 0x16f   : > { %v1837_v15 = vunpack.i.h.bf16 %v1835_v52  ;;  %v1836_v36 = vunpack.i.l.bf16 %v1835_v52 }
 0x171   : > { %v1163_v33 = vsel %vm712_vm1, %v1826_v57, %v1836_v36  ;;  %v1164_v41 = vsel %vm712_vm1, %v1827_v8, %v1837_v15 }
 0x172   : > { %v1179_v59 = vpack.c.bf16 %v1163_v33, %v1163_v33  ;;  %v1180_v25 = vpack.c.bf16 %v1164_v41, %v1164_v41 }
 0x174   : > { %1196 = vst.msk [vmem:[%s2603_s14 + $0x38] sm:$0xf] %vm1181_vm7, %v1179_v59 }
 0x175   : > { %1197 = vst.msk [vmem:[%s2603_s14 + $0x3c] sm:$0xf] %vm1181_vm7, %v1180_v25  ;;  %v1388_v46 = vpop.permute.xlu0 %1387 }
 0x176   : > { %v1390_v10 = vsel %vm1198_vm5, %v1332_v45, %v1388_v46 }
 0x177   : > { %1391 = vst.msk [vmem:[%s388_s19] sm:$0x1] %vm1278_vm8, %v1390_v10 }
 0x178 PF: > { %s18_s28 = sadd.s32 1, %s1876_s28   ;;  %s2718_s24 = smov %s1868_s26 }
 0x179   : > { %p15_p10 = scmp.ge.s32.totalorder %s18_s28, 6   ;;  %s2719_s25 = smov %s1872_s27 }
 0x17a   : > { %s2720_s26 = smov %s2723_s29  ;;  %s2721_s27 = smov %s2727_s30 }
 0x17b   :  { %17 = sbr.rel (!%p15_p10) target bundleno = 3 (0x3), region = 113 }

// kernel: inception_block.7
= control target key start
LH: loop header
LB: loop body
LE: loop exit
PB: predicated region body
PF: predicated region fallthrough
CT: control target
= control target key end

     0   :  { %10 = vsyncpa [#allocation3], 0  ;;  %s1820_s0 = inlined_call_operand.vmem [shape: bf16[2,16,16,16], index: 0, kind: input, shape index: {}]   ;;  %s1821_s1 = inlined_call_operand.vmem [shape: bf16[2,16,16,16], index: 1, kind: input, shape index: {}]   ;;  %s1822_s2 = inlined_call_operand.vmem [shape: bf16[2,16,16,8], index: 2, kind: input, shape index: {}]   ;;  %s1823_s3 = inlined_call_operand.vmem [shape: f32[1,40], index: 3, kind: input, shape index: {}]   ;;  %s1824_s4 = inlined_call_operand.vmem [shape: f32[1,40], index: 4, kind: input, shape index: {}]   ;;  %s1825_s5 = inlined_call_operand.hbm [shape: f32[2,16,16,40], index: 5, kind: output, shape index: {}]  }
   0x1   :  { %12 = vsyncpa [#allocation3 + $0x1], 0  ;;  %s1361_s18 = smov 0   ;;  %s1363_s19 = smov 0  }
   0x2   :  { %s1365_s20 = smov 0   ;;  %s1367_s21 = smov 0  }
   0x3   :  { %s1369_s22 = smov 0   ;;  %s1371_s23 = smov 0  }
   0x4   :  { %s1373_s24 = smov 0   ;;  %s1375_s25 = smov 0  }
   0x5 LB: > { %s893_s26 = sadd.s32 4294967295, %s1326_s25   ;;  %s894_s27 = sadd.s32 4294967294, %s1326_s25   ;;  %s1326_s25 = sphi %s1375_s25, %s18_s25   ;;  %s1322_s24 = sphi %s1373_s24, %s1834_s24   ;;  %s1318_s23 = sphi %s1371_s23, %s1833_s23   ;;  %s1314_s22 = sphi %s1369_s22, %s1832_s22   ;;  %s1310_s21 = sphi %s1367_s21, %s1831_s21   ;;  %s1306_s20 = sphi %s1365_s20, %s1830_s20   ;;  %s1302_s19 = sphi %s1363_s19, %s1829_s19   ;;  %s1298_s18 = sphi %s1361_s18, %s1828_s18  }
   0x6   : > { %s27_s28 = sadd.s32 1, %s1318_s23  ;;  %s30_s29 = sadd.s32 1, %s1322_s24 }
   0x7   : > { %p28_p0 = scmp.ge.s32.totalorder %s27_s28, 2  ;;  %p175_p1 = scmp.ne.s32.totalorder %s1306_s20, %s1302_s19 }
   0x8   : > { %p176_p2 = scmp.eq.s32.totalorder %s893_s26, 3  ;;  %p181_p5 = scmp.ne.s32.totalorder %s1302_s19, %s1298_s18 }
   0x9   : > { %s1836_s28 = smov (%p28_p0, %s27_s28), 0  ;;  %s1838_s29 = smov (!%p28_p0, %s30_s29), %s1322_s24 }
   0xa   : > { %s161_s30 = ssub.s32 %s1318_s23, %s1836_s28  ;;  %p1412_p3 = por %p176_p2, %p175_p1 }
   0xb   : > { %p32_p4 = scmp.ge.s32.totalorder %s1838_s29, 2  ;;  %p182_p6 = scmp.eq.s32.totalorder %s894_s27, 3 }
   0xc   : > { %p897_p7 = scmp.ge.s32.totalorder %s1326_s25, 1  ;;  %p248_p9 = scmp.lt.s32.totalorder %s1326_s25, 5 }
   0xd   : > { %s1840_s29 = smov (%p32_p4, %s1838_s29), 0  ;;  %p1421_p8 = por %p182_p6, %p181_p5 }
   0xe   : > { %s160_s8 = ssub.s32 %s1322_s24, %s1840_s29  ;;  %s165_s9 = sadd.s32 1, %s1306_s20 }
   0xf   : > { %s162_s10 = sor.u32 %s161_s30, %s160_s8  ;;  %p249_p10 = pnand %p897_p7, %p248_p9 }
  0x10   : > { %p163_p11 = scmp.eq.s32.totalorder %s162_s10, 0  ;;  %s899_s12 = sshll.u32 (!%p249_p10), %s1310_s21, 3 }
  0x11   : > { %252 = sbr.rel (%p249_p10) target bundleno = 220 (0xdc), region = 40  ;;  %p302_p12 = scmp.lt.s32.totalorder (!%p249_p10), %s1314_s22, 1 }
  0x12   : > { %s1430_s11 = scalar_select %p163_p11, %s1306_s20, %s165_s9  }
  0x13   : > { %p304_p13 = scmp.lt.s32.totalorder (!%p249_p10), %s899_s12, 15  ;;  %s1328_s8 = smov (!%p249_p10), 8  }
  0x14   : > { %s298_s27 = sand.u32 (!%p249_p10), 1, %s1302_s19  }
  0x15   : > { %s898_s10 = sshll.u32 (!%p249_p10), %s298_s27, 7  ;;  %s748_s9 = scalar_lea.sflag (!%p249_p10), [#allocation3], %s298_s27 }
  0x16   : > { %s303_s13 = scalar_select %p302_p12, %s1314_s22, 1  ;;  %vm623_vm0 = vcmask 64512   ;;  %vm657_vm1 = vcmask 261120   ;;  %vm640_vm2 = vcmask 195584   ;;  %vm730_vm3 = vcmask 326656  }
  0x17   : > { %s1842_s12 = smov (!%p304_p13, %s899_s12), 15 }
  0x18   : > { %s901_s14 = sshll.u32 %s303_s13, 5  ;;  %s900_s15 = sshll.u32 %s1842_s12, 1 }
  0x19   : > { %s308_s16 = sadd.s32 %s901_s14, %s900_s15  ;;  %s1329_s13 = smov 24  }
  0x1a   : > { %s1435_s17 = sshll.u32 %s308_s16, 2  ;;  %s914_s14 = sshll.u32 %s1314_s22, 5 }
  0x1b   : > { %s1441_s30 = scalar_lea.vmem %s1821_s1, %s1435_s17  ;;  %s1456_s12 = scalar_lea.vmem %s1822_s2, %s1435_s17 }
  0x1c   : > { %v1023_v0 = vld [vmem:[%s1441_s30 + $0x10] sm:$0xff]   ;;  %v952_v1 = vld [vmem:[%s1441_s30] sm:$0xff]   ;;  %v1024_v6 = vld [vmem:[%s1441_s30 + $0x18] sm:$0xff]   ;;  %s1480_s16 = scalar_lea.vmem %s1820_s0, %s1435_s17 }
  0x1d   : > { %v961_v2 = vunpack.c.l.bf16 %v1023_v0  ;;  %v962_v3 = vunpack.c.h.bf16 %v1023_v0  ;;  %v953_v4 = vunpack.c.l.bf16 %v952_v1  ;;  %v954_v5 = vunpack.c.h.bf16 %v952_v1  ;;  %v1025_v7 = vld [vmem:[%s1441_s30 + $0x20] sm:$0xff]   ;;  %v1022_v8 = vld [vmem:[%s1441_s30 + $0x8] sm:$0xff]   ;;  %v1028_v23 = vld [vmem:[%s1441_s30 + $0x38] sm:$0xff]  }
  0x1e   : > { %v969_v11 = vunpack.c.l.bf16 %v1025_v7  ;;  %v970_v12 = vunpack.c.h.bf16 %v1025_v7  ;;  %v965_v13 = vunpack.c.l.bf16 %v1024_v6  ;;  %v1026_v14 = vld [vmem:[%s1441_s30 + $0x28] sm:$0xff]   ;;  %v966_v15 = vunpack.c.h.bf16 %v1024_v6  ;;  %v1027_v24 = vld [vmem:[%s1441_s30 + $0x30] sm:$0xff]   ;;  %v984_v26 = vld [vmem:[%s1456_s12] sm:$0xff]  }
  0x1f   : > { %v1120_v9 = vpack.i.bf16 %v962_v3, %v961_v2  ;;  %v1110_v10 = vpack.i.bf16 %v954_v5, %v953_v4  ;;  %v957_v16 = vunpack.c.l.bf16 %v1022_v8  ;;  %v958_v17 = vunpack.c.h.bf16 %v1022_v8  ;;  %v1030_v35 = vld [vmem:[%s1456_s12 + $0x10] sm:$0xff]   ;;  %v1029_v36 = vld [vmem:[%s1456_s12 + $0x8] sm:$0xff]   ;;  %v1031_v38 = vld [vmem:[%s1456_s12 + $0x18] sm:$0xff]  }
  0x20   : > { %v1130_v18 = vpack.i.bf16 %v970_v12, %v969_v11  ;;  %v973_v19 = vunpack.c.l.bf16 %v1026_v14  ;;  %v974_v20 = vunpack.c.h.bf16 %v1026_v14  ;;  %v1125_v21 = vpack.i.bf16 %v966_v15, %v965_v13  ;;  %v1033_v47 = vld [vmem:[%s1456_s12 + $0x28] sm:$0xff]   ;;  %v1032_v48 = vld [vmem:[%s1456_s12 + $0x20] sm:$0xff]   ;;  %v1034_v50 = vld [vmem:[%s1456_s12 + $0x30] sm:$0xff]  }
  0x21   : > { %1121 = vrot.lane.b32.xlu1 %v1120_v9, %s1328_s8  ;;  %1111 = vrot.lane.b32.xlu0 %v1110_v10, %s1328_s8  ;;  %v1115_v22 = vpack.i.bf16 %v958_v17, %v957_v16  ;;  %v981_v27 = vunpack.c.l.bf16 %v1028_v23  ;;  %v982_v28 = vunpack.c.h.bf16 %v1028_v23  ;;  %v977_v29 = vunpack.c.l.bf16 %v1027_v24  ;;  %v1035_v59 = vld [vmem:[%s1456_s12 + $0x38] sm:$0xff]   ;;  %v1484_v60 = vld [vmem:[%s1480_s16] sm:$0xff]   ;;  %s1630_s12 = scalar_lea.vmem [#allocation2], %s898_s10 }
  0x22   : > { %1131 = vrot.lane.b32.xlu2 %v1130_v18, %s1328_s8  ;;  %v1135_v25 = vpack.i.bf16 %v974_v20, %v973_v19  ;;  %v978_v30 = vunpack.c.h.bf16 %v1027_v24  ;;  %v985_v31 = vunpack.c.l.bf16 %v984_v26  ;;  %v986_v32 = vunpack.c.h.bf16 %v984_v26  ;;  %v1487_v62 = vld [vmem:[%s1480_s16 + $0x8] sm:$0xff]   ;;  %v1501_v7 = vld [vmem:[%s1480_s16 + $0x10] sm:$0xff]   ;;  %v1504_v8 = vld [vmem:[%s1480_s16 + $0x18] sm:$0xff]   ;;  %s763_s26 = sshll.u32 %s1630_s12, 4  ;;  %s764_s26 = int_to_ptr.vmem [resolvable:$true] %s763_s26 }
  0x23   : > { %v1145_v33 = vpack.i.bf16 %v982_v28, %v981_v27  ;;  %v993_v39 = vunpack.c.l.bf16 %v1030_v35  ;;  %v994_v40 = vunpack.c.h.bf16 %v1030_v35  ;;  %v989_v41 = vunpack.c.l.bf16 %v1029_v36  ;;  %v1511_v10 = vld [vmem:[%s1480_s16 + $0x20] sm:$0xff]   ;;  %v1531_v19 = vld [vmem:[%s1480_s16 + $0x28] sm:$0xff]   ;;  %v1534_v20 = vld [vmem:[%s1480_s16 + $0x30] sm:$0xff]  }
  0x24   : > { %v1140_v34 = vpack.i.bf16 %v978_v30, %v977_v29  ;;  %v1150_v37 = vpack.i.bf16 %v986_v32, %v985_v31  ;;  %v990_v42 = vunpack.c.h.bf16 %v1029_v36  ;;  %v997_v43 = vunpack.c.l.bf16 %v1031_v38 }
  0x25   : > { %v998_v44 = vunpack.c.h.bf16 %v1031_v38  ;;  %v1160_v45 = vpack.i.bf16 %v994_v40, %v993_v39  ;;  %v1005_v51 = vunpack.c.l.bf16 %v1033_v47  ;;  %v1006_v52 = vunpack.c.h.bf16 %v1033_v47 }
  0x26   : > { %v1155_v46 = vpack.i.bf16 %v990_v42, %v989_v41  ;;  %v1001_v53 = vunpack.c.l.bf16 %v1032_v48  ;;  %v1002_v54 = vunpack.c.h.bf16 %v1032_v48  ;;  %v1009_v55 = vunpack.c.l.bf16 %v1034_v50 }
  0x27   : > { %v1165_v49 = vpack.i.bf16 %v998_v44, %v997_v43  ;;  %v1010_v56 = vunpack.c.h.bf16 %v1034_v50  ;;  %v1175_v57 = vpack.i.bf16 %v1006_v52, %v1005_v51  ;;  %v1013_v63 = vunpack.c.l.bf16 %v1035_v59  ;;  %v1588_v52 = vld [vmem:[%s1823_s3] ss:$0 sm:$0xff] }
  0x28   : > { %v1170_v58 = vpack.i.bf16 %v1002_v54, %v1001_v53  ;;  %v1014_v0 = vunpack.c.h.bf16 %v1035_v59  ;;  %v921_v1 = vunpack.c.l.bf16 %v1484_v60  ;;  %v922_v2 = vunpack.c.h.bf16 %v1484_v60 }
  0x29   : > { %1126 = vrot.lane.b32.xlu1 %v1125_v21, %s1328_s8  ;;  %1116 = vrot.lane.b32.xlu0 %v1115_v22, %s1328_s8  ;;  %v1180_v61 = vpack.i.bf16 %v1010_v56, %v1009_v55  ;;  %v925_v3 = vunpack.c.l.bf16 %v1487_v62  ;;  %v926_v4 = vunpack.c.h.bf16 %v1487_v62  ;;  %v929_v11 = vunpack.c.l.bf16 %v1501_v7  ;;  %v1541_v22 = vld [vmem:[%s1480_s16 + $0x38] sm:$0xff]  }
  0x2a   : > { %1136 = vrot.lane.b32.xlu2 %v1135_v25, %s1328_s8  ;;  %v1185_v5 = vpack.i.bf16 %v1014_v0, %v1013_v63  ;;  %v1190_v6 = vpack.i.bf16 %v922_v2, %v921_v1  ;;  %v930_v12 = vunpack.c.h.bf16 %v1501_v7  ;;  %v933_v13 = vunpack.c.l.bf16 %v1504_v8 }
  0x2b   : > { %v1195_v9 = vpack.i.bf16 %v926_v4, %v925_v3  ;;  %v934_v14 = vunpack.c.h.bf16 %v1504_v8  ;;  %v937_v15 = vunpack.c.l.bf16 %v1511_v10  ;;  %v938_v16 = vunpack.c.h.bf16 %v1511_v10 }
  0x2c   : > { %v1200_v17 = vpack.i.bf16 %v930_v12, %v929_v11  ;;  %v941_v23 = vunpack.c.l.bf16 %v1531_v19  ;;  %v942_v24 = vunpack.c.h.bf16 %v1531_v19  ;;  %v945_v25 = vunpack.c.l.bf16 %v1534_v20 }
  0x2d   : > { %v1205_v18 = vpack.i.bf16 %v934_v14, %v933_v13  ;;  %v1210_v21 = vpack.i.bf16 %v938_v16, %v937_v15  ;;  %v946_v26 = vunpack.c.h.bf16 %v1534_v20  ;;  %v949_v27 = vunpack.c.l.bf16 %v1541_v22 }
  0x2e   : > { %v950_v28 = vunpack.c.h.bf16 %v1541_v22  ;;  %v1215_v29 = vpack.i.bf16 %v942_v24, %v941_v23 }
  0x2f   : > { %v1220_v30 = vpack.i.bf16 %v946_v26, %v945_v25 }
  0x30   : > { %v1225_v31 = vpack.i.bf16 %v950_v28, %v949_v27 }
  0x31   : > { %1146 = vrot.lane.b32.xlu1 %v1145_v33, %s1328_s8  ;;  %1141 = vrot.lane.b32.xlu0 %v1140_v34, %s1328_s8 }
  0x32   : > { %1151 = vrot.lane.b32.xlu2 %v1150_v37, %s1329_s13 }
  0x39   : > { %1161 = vrot.lane.b32.xlu1 %v1160_v45, %s1329_s13  ;;  %1156 = vrot.lane.b32.xlu0 %v1155_v46, %s1329_s13 }
  0x3a   : > { %1166 = vrot.lane.b32.xlu2 %v1165_v49, %s1329_s13 }
  0x41   : > { %1176 = vrot.lane.b32.xlu1 %v1175_v57, %s1329_s13  ;;  %1171 = vrot.lane.b32.xlu0 %v1170_v58, %s1329_s13  ;;  %v1602_v57 = vld [vmem:[%s1824_s4] ss:$0 sm:$0xff] }
  0x42   : > { %1181 = vrot.lane.b32.xlu2 %v1180_v61, %s1329_s13 }
  0x49   : > { %1186 = vrot.lane.b32.xlu0 %v1185_v5, %s1329_s13  ;;  %1191 = vrot.lane.b32.xlu1 %v1190_v6, %s1329_s13 }
  0x4a   : > { %1196 = vrot.lane.b32.xlu2 %v1195_v9, %s1329_s13 }
  0x51   : > { %1201 = vrot.lane.b32.xlu0 %v1200_v17, %s1329_s13  ;;  %1206 = vrot.lane.b32.xlu1 %v1205_v18, %s1329_s13 }
  0x52   : > { %1211 = vrot.lane.b32.xlu2 %v1210_v21, %s1329_s13 }
  0x59   : > { %1216 = vrot.lane.b32.xlu0 %v1215_v29, %s1329_s13  ;;  %1221 = vrot.lane.b32.xlu1 %v1220_v30, %s1329_s13 }
  0x5a   : > { %1226 = vrot.lane.b32.xlu2 %v1225_v31, %s1329_s13  ;;  %s918_s13 = sshll.u32 %s1310_s21, 4 }
  0x5b   : > { %s1734_s21 = sadd.s32 %s918_s13, %s914_s14 }
  0x5c   : > { %s915_s22 = sshll.u32 %s1734_s21, 3 }
  0x5d   : > { %s762_s17 = scalar_lea.hbm %s1825_s5, %s915_s22  ;;  %s1252_s22 = scalar_lea.hbm %s1825_s5, 512 }
  0x5e   : > { %s765_s30 = sshll.u32 %s762_s17, 4  ;;  %s766_s30 = int_to_ptr.hbm [resolvable:$true] %s765_s30 }
  0x5f   : > { %s1246_s10 = sshra.s32 %s766_s30, 4  ;;  %s1247_s10 = int_to_ptr.hbm [resolvable:$true] %s1246_s10 }
  0x60   : > { %s1248_s13 = scalar_lea.hbm %s1247_s10, 128  ;;  %p1253_p4 = scmp.lt.s32.totalorder %s1247_s10, %s1825_s5 }
  0x61   : > { %p1249_p0 = scmp.ne.s32.totalorder %s1247_s10, %s1248_s13  ;;  %p1254_p5 = scmp.lt.s32.totalorder %s1252_s22, %s1248_s13 }
  0x63   : > { %p1250_p1 = pnand %p1249_p0, %p1412_p3  ;;  %p1255_p6 = por %p1254_p5, %p1253_p4 }
  0x65   : > { %p1251_p2 = pneg %p1250_p1 }
  0x67   : > { %p1256_p7 = pnand %p1255_p6, %p1251_p2 }
  0x7c   : > { %v1132_v32 = vpop.permute.xlu2 %1131 }
  0x7d   : > { %v1133_v5 = vunpack.i.l.bf16 %v1132_v32 }
  0x84   : > { %v1567_v33 = vpop.permute.xlu2 %1136 }
  0x8c   : > { %v1569_v34 = vpop.permute.xlu2 %1151 }
  0x8d   : > { %v1154_v17 = vunpack.i.h.bf16 %v1569_v34  ;;  %v1153_v18 = vunpack.i.l.bf16 %v1569_v34  ;;  %v632_v34 = vsel %vm623_vm0, %v937_v15, %v1133_v5 }
  0x93   : > { %v1571_v35 = vpop.permute.xlu1 %1121  ;;  %v1112_v36 = vpop.permute.xlu0 %1111 }
  0x94   : > { %v1573_v37 = vpop.permute.xlu2 %1166  ;;  %v1114_v0 = vunpack.i.h.bf16 %v1112_v36  ;;  %v1124_v60 = vunpack.i.h.bf16 %v1571_v35 }
  0x9b   : > { %v1575_v38 = vpop.permute.xlu1 %1126  ;;  %v1117_v39 = vpop.permute.xlu0 %1116 }
  0x9c   : > { %v1577_v40 = vpop.permute.xlu2 %1181  ;;  %v1119_v44 = vunpack.i.h.bf16 %v1117_v39  ;;  %v1118_v45 = vunpack.i.l.bf16 %v1117_v39 }
  0x9d   : > { %v1183_v19 = vunpack.i.l.bf16 %v1577_v40 }
  0x9e   : > { %v626_v53 = vsel %vm623_vm0, %v925_v3, %v1118_v45  ;;  %v627_v54 = vsel %vm623_vm0, %v926_v4, %v1119_v44  ;;  %v1113_v3 = vunpack.i.l.bf16 %v1112_v36  ;;  %v1134_v4 = vunpack.i.h.bf16 %v1132_v32 }
  0x9f   : > { %v625_v36 = vsel %vm623_vm0, %v922_v2, %v1114_v0 }
  0xa0   : > { %v624_v32 = vsel %vm623_vm0, %v921_v1, %v1113_v3  ;;  %v1123_v1 = vunpack.i.l.bf16 %v1571_v35 }
  0xa1   : > { %v641_v15 = vsel %vm640_vm2, %v624_v32, %v1153_v18 }
  0xa2   : > { %v628_v8 = vsel %vm623_vm0, %v929_v11, %v1123_v1 }
  0xa3   : > { %v1579_v41 = vpop.permute.xlu1 %1146  ;;  %v1581_v42 = vpop.permute.xlu0 %1141 }
  0xa4   : > { %v1197_v43 = vpop.permute.xlu2 %1196 }
  0xa5   : > { %v1199_v48 = vunpack.i.h.bf16 %v1197_v43  ;;  %v1198_v49 = vunpack.i.l.bf16 %v1197_v43 }
  0xab   : > { %v1583_v46 = vpop.permute.xlu1 %1161  ;;  %v1157_v47 = vpop.permute.xlu0 %1156 }
  0xac   : > { %v1159_v50 = vunpack.i.h.bf16 %v1157_v47  ;;  %v1158_v51 = vunpack.i.l.bf16 %v1157_v47  ;;  %v1212_v58 = vpop.permute.xlu2 %1211  ;;  %v633_v47 = vsel %vm623_vm0, %v938_v16, %v1134_v4  ;;  %v642_v16 = vsel %vm640_vm2, %v625_v36, %v1154_v17 }
  0xad   : > { %v1214_v39 = vunpack.i.h.bf16 %v1212_v58  ;;  %v1213_v43 = vunpack.i.l.bf16 %v1212_v58  ;;  %v1129_v58 = vunpack.i.h.bf16 %v1575_v38 }
  0xae   : > { %v643_v55 = vsel %vm640_vm2, %v626_v53, %v1158_v51  ;;  %v644_v56 = vsel %vm640_vm2, %v627_v54, %v1159_v50  ;;  %v1149_v54 = vunpack.i.h.bf16 %v1579_v41 }
  0xaf   : > { %v661_v59 = vsel %vm657_vm1, %v644_v56, %v1199_v48  ;;  %v660_v61 = vsel %vm657_vm1, %v643_v55, %v1198_v49  ;;  %v1139_v48 = vunpack.i.h.bf16 %v1567_v33  ;;  %v1138_v49 = vunpack.i.l.bf16 %v1567_v33 }
  0xb0   : > { %v681_v63 = vmul.f32 %v1588_v52, %v661_v59  ;;  %v680_v62 = vmul.f32 %v1588_v52, %v660_v61  ;;  %v1148_v55 = vunpack.i.l.bf16 %v1579_v41  ;;  %v1128_v59 = vunpack.i.l.bf16 %v1575_v38 }
  0xb1   : > { %v1169_v61 = vunpack.i.h.bf16 %v1573_v37  ;;  %v1184_v33 = vunpack.i.h.bf16 %v1577_v40 }
  0xb2   : > { %v701_v6 = vadd.f32 %v1602_v57, %v681_v63  ;;  %v700_v9 = vadd.f32 %v1602_v57, %v680_v62  ;;  %v1168_v63 = vunpack.i.l.bf16 %v1573_v37  ;;  %v638_v38 = vsel %vm623_vm0, %v949_v27, %v1148_v55 }
  0xb3   : > { %v1614_v21 = vpop.permute.xlu1 %1176  ;;  %v1172_v29 = vpop.permute.xlu0 %1171  ;;  %v639_v37 = vsel %vm623_vm0, %v950_v28, %v1149_v54 }
  0xb4   : > { %v717_v30 = vmax.f32 %v701_v6, 0.0  ;;  %v716_v31 = vmax.f32 %v700_v9, 0.0  ;;  %v1174_v44 = vunpack.i.h.bf16 %v1172_v29  ;;  %v1173_v45 = vunpack.i.l.bf16 %v1172_v29  ;;  %v1227_v53 = vpop.permute.xlu2 %1226 }
  0xb5   : > { %v1229_v41 = vunpack.i.h.bf16 %v1227_v53  ;;  %v1228_v5 = vunpack.i.l.bf16 %v1227_v53 }
  0xb6   : > { %733 = vst.msk [vmem:[%s1630_s12 + $0x10] sm:$0xff] %vm730_vm3, %v716_v31  ;;  %v649_v2 = vsel %vm640_vm2, %v632_v34, %v1173_v45  ;;  %v650_v10 = vsel %vm640_vm2, %v633_v47, %v1174_v44  ;;  %v630_v44 = vsel %vm623_vm0, %v933_v13, %v1128_v59  ;;  %v631_v45 = vsel %vm623_vm0, %v934_v14, %v1129_v58 }
  0xb7   : > { %734 = vst.msk [vmem:[%s1630_s12 + $0x18] sm:$0xff] %vm730_vm3, %v717_v30  ;;  %v667_v50 = vsel %vm657_vm1, %v650_v10, %v1214_v39  ;;  %v666_v51 = vsel %vm657_vm1, %v649_v2, %v1213_v43  ;;  %v1164_v2 = vunpack.i.h.bf16 %v1583_v46  ;;  %v1163_v10 = vunpack.i.l.bf16 %v1583_v46 }
  0xb8   : > { %v687_v35 = vmul.f32 %v1588_v52, %v667_v50  ;;  %v686_v56 = vmul.f32 %v1588_v52, %v666_v51  ;;  %v629_v13 = vsel %vm623_vm0, %v930_v12, %v1124_v60  ;;  %v647_v51 = vsel %vm640_vm2, %v630_v44, %v1168_v63 }
  0xb9   : > { %v648_v46 = vsel %vm640_vm2, %v631_v45, %v1169_v61  ;;  %v645_v12 = vsel %vm640_vm2, %v628_v8, %v1163_v10  ;;  %v646_v60 = vsel %vm640_vm2, %v629_v13, %v1164_v2  ;;  %v1144_v61 = vunpack.i.h.bf16 %v1581_v42 }
  0xba   : > { %v707_v62 = vadd.f32 %v1602_v57, %v687_v35  ;;  %v706_v0 = vadd.f32 %v1602_v57, %v686_v56  ;;  %v1143_v63 = vunpack.i.l.bf16 %v1581_v42  ;;  %v634_v42 = vsel %vm623_vm0, %v941_v23, %v1138_v49 }
  0xbb   : > { %v1187_v3 = vpop.permute.xlu0 %1186  ;;  %v1192_v4 = vpop.permute.xlu1 %1191  ;;  %v637_v49 = vsel %vm623_vm0, %v946_v26, %v1144_v61 }
  0xbc   : > { %v1189_v6 = vunpack.i.h.bf16 %v1187_v3  ;;  %v1188_v9 = vunpack.i.l.bf16 %v1187_v3  ;;  %v1194_v17 = vunpack.i.h.bf16 %v1192_v4  ;;  %v1193_v18 = vunpack.i.l.bf16 %v1192_v4 }
  0xbd   : > { %v723_v29 = vmax.f32 %v707_v62, 0.0  ;;  %v722_v30 = vmax.f32 %v706_v0, 0.0 }
  0xbe   : > { %v655_v31 = vsel %vm640_vm2, %v638_v38, %v1188_v9  ;;  %v656_v39 = vsel %vm640_vm2, %v639_v37, %v1189_v6  ;;  %v659_v43 = vsel %vm657_vm1, %v642_v16, %v1194_v17  ;;  %v658_v32 = vsel %vm657_vm1, %v641_v15, %v1193_v18 }
  0xbf   : > { %739 = vst.msk [vmem:[%s1630_s12 + $0x40] sm:$0xff] %vm730_vm3, %v722_v30  ;;  %v679_v36 = vmul.f32 %v1588_v52, %v659_v43  ;;  %v678_v27 = vmul.f32 %v1588_v52, %v658_v32  ;;  %v673_v22 = vsel %vm657_vm1, %v656_v39, %v1229_v41  ;;  %v672_v28 = vsel %vm657_vm1, %v655_v31, %v1228_v5 }
  0xc0   : > { %740 = vst.msk [vmem:[%s1630_s12 + $0x48] sm:$0xff] %vm730_vm3, %v723_v29  ;;  %v693_v34 = vmul.f32 %v1588_v52, %v673_v22  ;;  %v692_v47 = vmul.f32 %v1588_v52, %v672_v28  ;;  %v635_v6 = vsel %vm623_vm0, %v942_v24, %v1139_v48  ;;  %v1179_v18 = vunpack.i.h.bf16 %v1614_v21 }
  0xc1   : > { %v699_v15 = vadd.f32 %v1602_v57, %v679_v36  ;;  %v698_v16 = vadd.f32 %v1602_v57, %v678_v27  ;;  %v1178_v38 = vunpack.i.l.bf16 %v1614_v21  ;;  %v636_v21 = vsel %vm623_vm0, %v945_v25, %v1143_v63 }
  0xc2   : > { %v713_v14 = vadd.f32 %v1602_v57, %v693_v34  ;;  %v712_v50 = vadd.f32 %v1602_v57, %v692_v47  ;;  %v652_v22 = vsel %vm640_vm2, %v635_v6, %v1179_v18  ;;  %v653_v26 = vsel %vm640_vm2, %v636_v21, %v1183_v19 }
  0xc3   : > { %v715_v53 = vmax.f32 %v699_v15, 0.0  ;;  %v714_v54 = vmax.f32 %v698_v16, 0.0  ;;  %v1202_v55 = vpop.permute.xlu0 %1201  ;;  %v1207_v35 = vpop.permute.xlu1 %1206  ;;  %v651_v27 = vsel %vm640_vm2, %v634_v42, %v1178_v38  ;;  %v654_v28 = vsel %vm640_vm2, %v637_v49, %v1184_v33 }
  0xc4   : > { %v729_v11 = vmax.f32 %v713_v14, 0.0  ;;  %v728_v1 = vmax.f32 %v712_v50, 0.0  ;;  %v1204_v7 = vunpack.i.h.bf16 %v1202_v55  ;;  %v1203_v56 = vunpack.i.l.bf16 %v1202_v55 }
  0xc5   : > { %731 = vst.msk [vmem:[%s1630_s12] sm:$0xff] %vm730_vm3, %v714_v54  ;;  %v1209_v58 = vunpack.i.h.bf16 %v1207_v35  ;;  %v1208_v59 = vunpack.i.l.bf16 %v1207_v35 }
  0xc6   : > { %732 = vst.msk [vmem:[%s1630_s12 + $0x8] sm:$0xff] %vm730_vm3, %v715_v53  ;;  %v663_v62 = vsel %vm657_vm1, %v646_v60, %v1204_v7  ;;  %v662_v0 = vsel %vm657_vm1, %v645_v12, %v1203_v56 }
  0xc7   : > { %745 = vst.msk [vmem:[%s1630_s12 + $0x70] sm:$0xff] %vm730_vm3, %v728_v1  ;;  %v683_v3 = vmul.f32 %v1588_v52, %v663_v62  ;;  %v682_v4 = vmul.f32 %v1588_v52, %v662_v0  ;;  %v665_v41 = vsel %vm657_vm1, %v648_v46, %v1209_v58  ;;  %v664_v5 = vsel %vm657_vm1, %v647_v51, %v1208_v59 }
  0xc8   : > { %746 = vst.msk [vmem:[%s1630_s12 + $0x78] sm:$0xff] %vm730_vm3, %v729_v11  ;;  %v685_v9 = vmul.f32 %v1588_v52, %v665_v41  ;;  %v684_v17 = vmul.f32 %v1588_v52, %v664_v5 }
  0xc9   : > { %v703_v37 = vadd.f32 %v1602_v57, %v683_v3  ;;  %v702_v23 = vadd.f32 %v1602_v57, %v682_v4 }
  0xca   : > { %v705_v24 = vadd.f32 %v1602_v57, %v685_v9  ;;  %v704_v48 = vadd.f32 %v1602_v57, %v684_v17 }
  0xcb   : > { %v719_v29 = vmax.f32 %v703_v37, 0.0  ;;  %v718_v30 = vmax.f32 %v702_v23, 0.0  ;;  %v1217_v40 = vpop.permute.xlu0 %1216  ;;  %v1222_v31 = vpop.permute.xlu1 %1221 }
  0xcc   : > { %v721_v39 = vmax.f32 %v705_v24, 0.0  ;;  %v720_v43 = vmax.f32 %v704_v48, 0.0  ;;  %v1219_v32 = vunpack.i.h.bf16 %v1217_v40  ;;  %v1218_v36 = vunpack.i.l.bf16 %v1217_v40 }
  0xcd   : > { %735 = vst.msk [vmem:[%s1630_s12 + $0x20] sm:$0xff] %vm730_vm3, %v718_v30  ;;  %v1224_v20 = vunpack.i.h.bf16 %v1222_v31  ;;  %v1223_v25 = vunpack.i.l.bf16 %v1222_v31 }
  0xce   : > { %736 = vst.msk [vmem:[%s1630_s12 + $0x28] sm:$0xff] %vm730_vm3, %v719_v29  ;;  %v669_v44 = vsel %vm657_vm1, %v652_v22, %v1219_v32  ;;  %v668_v45 = vsel %vm657_vm1, %v651_v27, %v1218_v36 }
  0xcf   : > { %737 = vst.msk [vmem:[%s1630_s12 + $0x30] sm:$0xff] %vm730_vm3, %v720_v43  ;;  %v689_v34 = vmul.f32 %v1588_v52, %v669_v44  ;;  %v688_v47 = vmul.f32 %v1588_v52, %v668_v45  ;;  %v671_v2 = vsel %vm657_vm1, %v654_v28, %v1224_v20  ;;  %v670_v10 = vsel %vm657_vm1, %v653_v26, %v1223_v25 }
  0xd0   : > { %738 = vst.msk [vmem:[%s1630_s12 + $0x38] sm:$0xff] %vm730_vm3, %v721_v39  ;;  %v691_v15 = vmul.f32 %v1588_v52, %v671_v2  ;;  %v690_v16 = vmul.f32 %v1588_v52, %v670_v10 }
  0xd1   : > { %v709_v8 = vadd.f32 %v1602_v57, %v689_v34  ;;  %v708_v13 = vadd.f32 %v1602_v57, %v688_v47 }
  0xd2   : > { %v711_v14 = vadd.f32 %v1602_v57, %v691_v15  ;;  %v710_v50 = vadd.f32 %v1602_v57, %v690_v16 }
  0xd3   : > { %v725_v51 = vmax.f32 %v709_v8, 0.0  ;;  %v724_v46 = vmax.f32 %v708_v13, 0.0 }
  0xd4   : > { %v727_v52 = vmax.f32 %v711_v14, 0.0  ;;  %v726_v53 = vmax.f32 %v710_v50, 0.0 }
  0xd5   : > { %741 = vst.msk [vmem:[%s1630_s12 + $0x50] sm:$0xff] %vm730_vm3, %v724_v46 }
  0xd6   : > { %742 = vst.msk [vmem:[%s1630_s12 + $0x58] sm:$0xff] %vm730_vm3, %v725_v51 }
  0xd7   : > { %743 = vst.msk [vmem:[%s1630_s12 + $0x60] sm:$0xff] %vm730_vm3, %v726_v53 }
  0xd8   : > { %744 = vst.msk [vmem:[%s1630_s12 + $0x68] sm:$0xff] %vm730_vm3, %v727_v52 }
  0xd9   : > { %1259 = shalt.err (!%p1256_p7)
}
  0xda   : > { %s1330_s27 = smov 128  }
  0xdb   : > { %1036 = dma.vmem_to_hbm [thread:$0]  (%p1412_p3), %s764_s26, 2048, %s766_s30, %s748_s9, %s1330_s27, %s1330_s27, %s1328_s8  }
  0xdc PF: > { %p1042_p9 = scmp.ge.s32.totalorder %s1326_s25, 2  ;;  %s780_s12 = sand.u32 1, %s1298_s18  }
  0xdd   : > { %s781_s17 = scalar_lea.sflag [#allocation3], %s780_s12 }
  0xde   : > { %p1039_p10 = pnand %p1042_p9, %p1421_p8 }
  0xe0   : > { %p1040_p11 = pneg %p1039_p10 }
  0xe2   : > { %1293 = dma.done.wait (%p1040_p11), %s781_s17, 2048  }
  0xe3   : > { %1295 = vsyncadd (%p1040_p11), %s781_s17, 4294965248  ;;  %s18_s25 = sadd.s32 1, %s1326_s25   ;;  %s1828_s18 = smov %s1302_s19 }
  0xe4   : > { %p15_p12 = scmp.ge.s32.totalorder %s18_s25, 6   ;;  %s1829_s19 = smov %s1306_s20 }
  0xe5   : > { %s1830_s20 = smov %s1430_s11  ;;  %s1831_s21 = smov %s1318_s23 }
  0xe6   : > { %s1832_s22 = smov %s1322_s24  ;;  %s1833_s23 = smov %s1836_s28 }
  0xe7   : > { %s1834_s24 = smov %s1840_s29  ;;  %17 = sbr.rel (!%p15_p12) target bundleno = 5 (0x5), region = 81 }
  0xec   :  { %787 = vsyncpa [#allocation3], 1 }
  0xed   :  { %789 = vsyncpa [#allocation3 + $0x1], 1 }

// kernel: inception_block.5
= control target key start
LH: loop header
LB: loop body
LE: loop exit
PB: predicated region body
PF: predicated region fallthrough
CT: control target
= control target key end

     0   :  { %s2301_s21 = smov 0   ;;  %s2303_s22 = smov 0   ;;  %s3104_s0 = inlined_call_operand.vmem [shape: bf16[2,16,16,8], index: 0, kind: input, shape index: {}]   ;;  %s3105_s1 = inlined_call_operand.vmem [shape: f32[1,8], index: 1, kind: input, shape index: {}]   ;;  %s3106_s2 = inlined_call_operand.vmem [shape: f32[1,8], index: 2, kind: input, shape index: {}]   ;;  %s3107_s3 = inlined_call_operand.vmem [shape: bf16[9,8,16], index: 3, kind: input, shape index: {}]   ;;  %s3108_s4 = inlined_call_operand.vmem [shape: bf16[2,16,16,16], index: 4, kind: output, shape index: {0}]   ;;  %s3109_s5 = inlined_call_operand.vmem [shape: f32[4,1,16], index: 5, kind: output, shape index: {1}]   ;;  %s3110_s6 = inlined_call_operand.vmem [shape: f32[4,1,16], index: 6, kind: output, shape index: {2}]  }
   0x1   :  { %s2305_s23 = smov 0   ;;  %s2307_s24 = smov 0  }
   0x2   :  { %s2309_s25 = smov 0  }
   0x3 LB: > { %s26_s26 = sadd.s32 1, %s2256_s23  ;;  %s29_s27 = sadd.s32 1, %s2260_s24  ;;  %s2264_s25 = sphi %s2309_s25, %s17_s25   ;;  %s2260_s24 = sphi %s2307_s24, %s3120_s24   ;;  %s2256_s23 = sphi %s2305_s23, %s3119_s23   ;;  %s2252_s22 = sphi %s2303_s22, %s3118_s22   ;;  %s2248_s21 = sphi %s2301_s21, %s3117_s21  }
   0x4   : > { %p27_p0 = scmp.ge.s32.totalorder %s26_s26, 2  ;;  %p2004_p1 = scmp.ge.s32.totalorder %s2264_s25, 1 }
   0x5   : > { %p239_p2 = scmp.lt.s32.totalorder %s2264_s25, 5 }
   0x6   : > { %s3122_s26 = smov (%p27_p0, %s26_s26), 0  ;;  %s3124_s27 = smov (!%p27_p0, %s29_s27), %s2260_s24 }
   0x7   : > { %p240_p3 = pnand %p2004_p1, %p239_p2  ;;  %p31_p4 = scmp.ge.s32.totalorder %s3124_s27, 2 }
   0x8   : > { %p284_p5 = scmp.lt.s32.totalorder (!%p240_p3), %s2252_s22, 1  ;;  %s2350_s11 = sshll.u32 (!%p240_p3), %s2248_s21, 3 }
   0x9   : > { %s3126_s27 = smov (%p31_p4, %s3124_s27), 0  ;;  %243 = sbr.rel (%p240_p3) target bundleno = 513 (0x201), region = 36 }
   0xa   : > { %s2128_s12 = sshll.u32 (!%p240_p3), %s2248_s21, 6  ;;  %s2014_s16 = sadd.s32 (!%p240_p3), 4294967295, %s2350_s11 }
   0xb   : > { %p317_p6 = scmp.gt.s32.totalorder (!%p240_p3), %s2014_s16, 0  ;;  %p2015_p7 = scmp.lt.s32.totalorder (!%p240_p3), %s2014_s16, 15 }
   0xc   : > { %p326_p8 = scmp.ge.s32.totalorder (!%p240_p3), %s2014_s16, 0  ;;  %p292_p12 = scmp.lt.s32.totalorder (!%p240_p3), %s2350_s11, 15 }
   0xe   : > { %v2031_v0 = vld [vmem:[%s3107_s3 + $0x4] sm:$0xf]  ;;  %vm833_vm0 = vcmask 1043456   ;;  %s2341_s30 = scalar_select %p284_p5, %s2252_s22, 1  ;;  %v2356_v2 = vld [vmem:[%s3105_s1] ss:$0 sm:$0xff] }
   0xf   : > { %v835_v1 = vsel %vm833_vm0, %v2031_v0, 0  ;;  %v2368_v6 = vld [vmem:[%s3106_s2] ss:$0 sm:$0xff]  ;;  %s318_s19 = scalar_select %p317_p6, %s2014_s16, 0  ;;  %vm475_vm1 = vcmask 1040384   ;;  %vm808_vm4 = vcmask 64512  }
  0x10   : > { %2179 = vmatpush.bf16.msra.mxu1 %v835_v1  ;;  %2180 = vmatpush.bf16.msra.mxu2 %v835_v1  ;;  %s2123_s7 = sshll.u32 %s2341_s30, 7  ;;  %v2056_v26 = vld [vmem:[%s3107_s3 + $0x8] sm:$0xf]  ;;  %v2065_v27 = vld [vmem:[%s3107_s3 + $0xc] sm:$0xf]  ;;  %vm1010_vm7 = vcmask 1042432  }
  0x11   : > { %2181 = vmatpush.bf16.msra.mxu3 %v835_v1  ;;  %844 = vmatpush.bf16.msra.mxu0 %v835_v1  ;;  %s2347_s10 = scalar_lea.vmem %s3104_s0, %s2123_s7  ;;  %s3128_s19 = smov (!%p2015_p7, %s318_s19), 15  ;;  %vm587_vm2 = vsmask.f32 3328  ;;  %vm588_vm3 = vsmask.f32 7440  ;;  %v1120_v36 = vsel %vm833_vm0, %v2056_v26, 0 }
  0x12   : > { %s2359_s15 = scalar_lea.vmem %s2347_s10, %s2128_s12  ;;  %s2126_s9 = sshll.u32 %s3128_s19, 3  ;;  %v1198_v37 = vsel %vm833_vm0, %v2065_v27, 0  ;;  %vm2434_vm5 = vmor %vm587_vm2, %vm588_vm3  ;;  %vm1011_vm8 = vcmask 1046532   ;;  %vm1727_vm11 = vcmask 125952   ;;  %vm1744_vm12 = vcmask 130048  }
  0x13   : > { %v2172_v3 = vld [vmem:[%s2359_s15 + $0x8] sm:$0xff]   ;;  %v2174_v4 = vld [vmem:[%s2359_s15 + $0x18] sm:$0xff]   ;;  %s2376_s20 = scalar_select %p326_p8, 1, 0  ;;  %v2379_v19 = vld [vmem:[%s2359_s15 + $0x10] sm:$0xff]   ;;  %vm1782_vm13 = vcmask 122880  }
  0x14   : > { %v2176_v5 = vld [vmem:[%s2359_s15 + $0x28] sm:$0xff]   ;;  %v2142_v7 = vunpack.c.l.bf16 %v2172_v3  ;;  %v2143_v8 = vunpack.c.h.bf16 %v2172_v3  ;;  %v2150_v9 = vunpack.c.l.bf16 %v2174_v4  ;;  %v2151_v10 = vunpack.c.h.bf16 %v2174_v4  ;;  %s323_s12 = scalar_lea.vmem %s2347_s10, %s2126_s9  ;;  %1129 = vmatpush.bf16.msrb.mxu2 %v1120_v36  ;;  %vm2604_vm9 = vmor %vm1010_vm7, %vm1011_vm8  ;;  %s2009_s28 = sshll.u32 %s2341_s30, 5 }
  0x15   : > { %v2158_v11 = vunpack.c.l.bf16 %v2176_v5  ;;  %v2159_v12 = vunpack.c.h.bf16 %v2176_v5  ;;  %v344_v28 = vstv %s2376_s20  ;;  %v2146_v29 = vunpack.c.l.bf16 %v2379_v19  ;;  %1207 = vmatpush.bf16.msrb.mxu3 %v1198_v37  ;;  %v2399_v42 = vld [vmem:[%s323_s12] sm:$0xff]   ;;  %s2011_s30 = sshll.u32 %s2252_s22, 1 }
  0x16   : > { %v385_v13 = vmul.f32 %v2356_v2, %v2142_v7  ;;  %v386_v14 = vmul.f32 %v2356_v2, %v2143_v8  ;;  %v389_v15 = vmul.f32 %v2356_v2, %v2150_v9  ;;  %v390_v16 = vmul.f32 %v2356_v2, %v2151_v10 }
  0x17   : > { %v393_v17 = vmul.f32 %v2356_v2, %v2158_v11  ;;  %v394_v18 = vmul.f32 %v2356_v2, %v2159_v12  ;;  %v2134_v45 = vunpack.c.l.bf16 %v2399_v42  ;;  %v2135_v46 = vunpack.c.h.bf16 %v2399_v42 }
  0x18   : > { %v401_v20 = vadd.f32 %v2368_v6, %v385_v13  ;;  %v402_v21 = vadd.f32 %v2368_v6, %v386_v14  ;;  %v405_v22 = vadd.f32 %v2368_v6, %v389_v15  ;;  %v406_v23 = vadd.f32 %v2368_v6, %v390_v16 }
  0x19   : > { %v409_v24 = vadd.f32 %v2368_v6, %v393_v17  ;;  %v410_v25 = vadd.f32 %v2368_v6, %v394_v18  ;;  %v333_v36 = vmul.f32 %v2356_v2, %v2134_v45  ;;  %vm2477_vm6 = vcmp.eq.s32.totalorder %v344_v28, 1 }
  0x1a   : > { %v417_v30 = vmax.f32 %v401_v20, 0.0  ;;  %v418_v31 = vmax.f32 %v402_v21, 0.0  ;;  %v421_v32 = vmax.f32 %v405_v22, 0.0  ;;  %v422_v33 = vmax.f32 %v406_v23, 0.0 }
  0x1b   : > { %v425_v34 = vmax.f32 %v409_v24, 0.0  ;;  %v426_v35 = vmax.f32 %v410_v25, 0.0  ;;  %v387_v28 = vmul.f32 %v2356_v2, %v2146_v29 }
  0x1c   : > { %v482_v38 = vrot.slane %v417_v30, 7  ;;  %v483_v39 = vrot.slane %v418_v31, 7  ;;  %v488_v40 = vrot.slane %v421_v32, 7  ;;  %v489_v41 = vrot.slane %v422_v33, 7 }
  0x1d   : > { %v494_v43 = vrot.slane %v425_v34, 7  ;;  %v495_v44 = vrot.slane %v426_v35, 7 }
  0x1e   : > { %v484_v47 = vsel %vm475_vm1, %v482_v38, %v483_v39  ;;  %v538_v48 = vsel %vm475_vm1, 0.0, %v482_v38  ;;  %v548_v49 = vsel %vm475_vm1, %v483_v39, 0.0  ;;  %v490_v50 = vsel %vm475_vm1, %v488_v40, %v489_v41 }
  0x1f   : > { %v2407_v51 = vpack.c.bf16 %v538_v48, %v538_v48  ;;  %v2409_v52 = vpack.c.bf16 %v484_v47, %v484_v47  ;;  %v2411_v53 = vpack.c.bf16 %v548_v49, %v548_v49  ;;  %v540_v54 = vsel %vm475_vm1, 0.0, %v488_v40 }
  0x20   : > { %v550_v55 = vsel %vm475_vm1, %v489_v41, 0.0  ;;  %v2415_v56 = vpack.c.bf16 %v540_v54, %v540_v54  ;;  %v2417_v57 = vpack.c.bf16 %v490_v50, %v490_v50  ;;  %v496_v58 = vsel %vm475_vm1, %v494_v43, %v495_v44  ;;  %v586_v54 = vld [vmem:[%s3107_s3] sm:$0xf] }
  0x21   : > { %v639_v59 = vshrl.u32 %v2407_v51, 16  ;;  %v642_v60 = vshll.u32 %v2407_v51, 16  ;;  %v648_v61 = vshll.u32 %v2409_v52, 16  ;;  %v652_v62 = vshrl.u32 %v2409_v52, 16 }
  0x22   : > { %v658_v63 = vshll.u32 %v2411_v53, 16  ;;  %v2425_v0 = vpack.c.bf16 %v550_v55, %v550_v55  ;;  %v687_v1 = vshrl.u32 %v2415_v56, 16  ;;  %v690_v3 = vshll.u32 %v2415_v56, 16 }
  0x23   : > { %v641_v4 = vrot.slane %v639_v59, 4  ;;  %v644_v5 = vrot.slane %v642_v60, 5  ;;  %v650_v7 = vrot.slane %v648_v61, 5  ;;  %v654_v8 = vrot.slane %v652_v62, 4  ;;  %v2074_v61 = vld [vmem:[%s3107_s3 + $0x10] sm:$0xf] }
  0x24   : > { %v660_v9 = vrot.slane %v658_v63, 5  ;;  %v689_v10 = vrot.slane %v687_v1, 4  ;;  %v692_v11 = vrot.slane %v690_v3, 5  ;;  %v696_v12 = vshll.u32 %v2417_v57, 16 }
  0x25   : > { %v645_v13 = vor.u32 %v644_v5, %v641_v4  ;;  %v655_v14 = vor.u32 %v654_v8, %v650_v7  ;;  %v700_v15 = vshrl.u32 %v2417_v57, 16  ;;  %v706_v16 = vshll.u32 %v2425_v0, 16 }
  0x26   : > { %v693_v18 = vor.u32 %v692_v11, %v689_v10  ;;  %v698_v20 = vrot.slane %v696_v12, 5  ;;  %v542_v21 = vsel %vm475_vm1, 0.0, %v494_v43  ;;  %v552_v22 = vsel %vm475_vm1, %v495_v44, 0.0 }
  0x27   : > { %v646_v23 = vrot.slane %v645_v13, 4  ;;  %v656_v24 = vrot.slane %v655_v14, 4  ;;  %v702_v25 = vrot.slane %v700_v15, 4  ;;  %v708_v26 = vrot.slane %v706_v16, 5 }
  0x28   : > { %v694_v27 = vrot.slane %v693_v18, 4  ;;  %v2440_v30 = vpack.c.bf16 %v542_v21, %v542_v21  ;;  %v2442_v31 = vpack.c.bf16 %v496_v58, %v496_v58  ;;  %v2444_v32 = vpack.c.bf16 %v552_v22, %v552_v22 }
  0x29   : > { %v651_v33 = vsel %vm2434_vm5, %v646_v23, %v650_v7  ;;  %v661_v34 = vsel %vm2434_vm5, %v656_v24, %v660_v9  ;;  %v703_v35 = vor.u32 %v702_v25, %v698_v20  ;;  %v334_v60 = vmul.f32 %v2356_v2, %v2135_v46  ;;  %v2175_v7 = vld [vmem:[%s2359_s15 + $0x20] sm:$0xff]  }
  0x2a   : > { %v788_v37 = vunpack.c.l.b16 %v651_v33  ;;  %v789_v38 = vunpack.c.l.b16 %v661_v34  ;;  %v699_v39 = vsel %vm2434_vm5, %v694_v27, %v698_v20  ;;  %v735_v40 = vshrl.u32 %v2440_v30, 16 }
  0x2b   : > { %v704_v41 = vrot.slane %v703_v35, 4  ;;  %v792_v43 = vunpack.c.l.b16 %v699_v39  ;;  %v738_v44 = vshll.u32 %v2440_v30, 16  ;;  %v744_v47 = vshll.u32 %v2442_v31, 16 }
  0x2c   : > { %v2456_v48 = vpack.c.b16 %v789_v38, %v788_v37  ;;  %v737_v49 = vrot.slane %v735_v40, 4  ;;  %v748_v50 = vshrl.u32 %v2442_v31, 16  ;;  %v754_v45 = vshll.u32 %v2444_v32, 16 }
  0x2d   : > { %v709_v55 = vsel %vm2434_vm5, %v704_v41, %v708_v26  ;;  %v740_v58 = vrot.slane %v738_v44, 5  ;;  %v746_v59 = vrot.slane %v744_v47, 5  ;;  %v339_v3 = vadd.f32 %v2368_v6, %v333_v36 }
  0x2e   : > { %2034 = vmatmul.msk.bf16.vlgmr.msra.gmra.mxu1 %vm808_vm4, %v2456_v48  ;;  %v793_v62 = vunpack.c.l.b16 %v709_v55  ;;  %v750_v63 = vrot.slane %v748_v50, 4  ;;  %v756_v1 = vrot.slane %v754_v45, 5  ;;  %v340_v5 = vadd.f32 %v2368_v6, %v334_v60 }
  0x2f   : > { %v741_v4 = vor.u32 %v740_v58, %v737_v49  ;;  %v951_v46 = vsel %vm833_vm0, %v586_v54, 0  ;;  %v341_v10 = vmax.f32 %v339_v3, 0.0  ;;  %v1298_v11 = vsel %vm833_vm0, %v2074_v61, 0 }
  0x30   : > { %v2483_v8 = vpack.c.b16 %v793_v62, %v792_v43  ;;  %v751_v9 = vor.u32 %v750_v63, %v746_v59  ;;  %960 = vmatpush.bf16.msrb.mxu1 %v951_v46  ;;  %v342_v13 = vmax.f32 %v340_v5, 0.0  ;;  %1307 = vmatpush.bf16.msrb.mxu0 %v1298_v11  ;;  %v2147_v14 = vunpack.c.h.bf16 %v2379_v19 }
  0x31   : > { %v742_v12 = vrot.slane %v741_v4, 4  ;;  %v346_v16 = vsel %vm2477_vm6, %v341_v10, 0.0  ;;  %v2154_v18 = vunpack.c.l.bf16 %v2175_v7  ;;  %v2155_v20 = vunpack.c.h.bf16 %v2175_v7 }
  0x32   : > { %2036 = vmatmul.msk.bf16.vlgmr.msra.gmra.mxu2 %vm808_vm4, %v2483_v8  ;;  %v752_v15 = vrot.slane %v751_v9, 4  ;;  %v347_v22 = vsel %vm2477_vm6, %v342_v13, 0.0  ;;  %v476_v23 = vrot.slane %v346_v16, 7  ;;  %v388_v19 = vmul.f32 %v2356_v2, %v2147_v14 }
  0x33   : > { %v747_v21 = vsel %vm2434_vm5, %v742_v12, %v746_v59  ;;  %v477_v25 = vrot.slane %v347_v22, 7  ;;  %v403_v26 = vadd.f32 %v2368_v6, %v387_v28  ;;  %v391_v35 = vmul.f32 %v2356_v2, %v2154_v18 }
  0x34   : > { %v757_v29 = vsel %vm2434_vm5, %v752_v15, %v756_v1  ;;  %v796_v24 = vunpack.c.l.b16 %v747_v21  ;;  %v536_v33 = vsel %vm475_vm1, 0.0, %v476_v23  ;;  %v404_v34 = vadd.f32 %v2368_v6, %v388_v19 }
  0x35   : > { %v797_v27 = vunpack.c.l.b16 %v757_v29  ;;  %v478_v36 = vsel %vm475_vm1, %v476_v23, %v477_v25  ;;  %v546_v37 = vsel %vm475_vm1, %v477_v25, 0.0  ;;  %v2507_v38 = vpack.c.bf16 %v536_v33, %v536_v33  ;;  %v2177_v25 = vld [vmem:[%s2359_s15 + $0x30] sm:$0xff]  }
  0x36   : > { %v419_v39 = vmax.f32 %v403_v26, 0.0  ;;  %v2511_v41 = vpack.c.bf16 %v478_v36, %v478_v36  ;;  %v2513_v43 = vpack.c.bf16 %v546_v37, %v546_v37  ;;  %v420_v44 = vmax.f32 %v404_v34, 0.0  ;;  %v2137_v26 = vld [vmem:[%s2359_s15] sm:$0xff]  }
  0x37   : > { %v2509_v40 = vpack.c.b16 %v797_v27, %v796_v24  ;;  %v591_v47 = vshrl.u32 %v2507_v38, 16  ;;  %v594_v49 = vshll.u32 %v2507_v38, 16  ;;  %v392_v45 = vmul.f32 %v2356_v2, %v2155_v20 }
  0x38   : > { %v485_v50 = vrot.slane %v419_v39, 7  ;;  %v600_v54 = vshll.u32 %v2511_v41, 16  ;;  %v604_v55 = vshrl.u32 %v2511_v41, 16  ;;  %v610_v58 = vshll.u32 %v2513_v43, 16 }
  0x39   : > { %2038 = vmatmul.msk.bf16.vlgmr.msra.gmra.mxu3 %vm808_vm4, %v2509_v40  ;;  %v486_v59 = vrot.slane %v420_v44, 7  ;;  %v593_v60 = vrot.slane %v591_v47, 4  ;;  %v596_v61 = vrot.slane %v594_v49, 5  ;;  %v407_v63 = vadd.f32 %v2368_v6, %v391_v35 }
  0x3a   : > { %v539_v62 = vsel %vm475_vm1, 0.0, %v485_v50  ;;  %v602_v1 = vrot.slane %v600_v54, 5  ;;  %v606_v3 = vrot.slane %v604_v55, 4  ;;  %v612_v4 = vrot.slane %v610_v58, 5 }
  0x3b   : > { %v487_v5 = vsel %vm475_vm1, %v485_v50, %v486_v59  ;;  %v597_v42 = vor.u32 %v596_v61, %v593_v60  ;;  %v549_v46 = vsel %vm475_vm1, %v486_v59, 0.0  ;;  %v2527_v7 = vpack.c.bf16 %v539_v62, %v539_v62 }
  0x3c   : > { %v2529_v9 = vpack.c.bf16 %v487_v5, %v487_v5  ;;  %v607_v10 = vor.u32 %v606_v3, %v602_v1  ;;  %v2531_v11 = vpack.c.bf16 %v549_v46, %v549_v46  ;;  %v408_v12 = vadd.f32 %v2368_v6, %v392_v45 }
  0x3d   : > { %v423_v13 = vmax.f32 %v407_v63, 0.0  ;;  %v598_v14 = vrot.slane %v597_v42, 4  ;;  %v663_v28 = vshrl.u32 %v2527_v7, 16  ;;  %v666_v15 = vshll.u32 %v2527_v7, 16 }
  0x3e   : > { %v672_v16 = vshll.u32 %v2529_v9, 16  ;;  %v608_v18 = vrot.slane %v607_v10, 4  ;;  %v676_v20 = vshrl.u32 %v2529_v9, 16  ;;  %v682_v21 = vshll.u32 %v2531_v11, 16 }
  0x3f   : > { %v424_v22 = vmax.f32 %v408_v12, 0.0  ;;  %v603_v23 = vsel %vm2434_vm5, %v598_v14, %v602_v1  ;;  %v665_v19 = vrot.slane %v663_v28, 4  ;;  %v668_v29 = vrot.slane %v666_v15, 5 }
  0x40   : > { %v674_v24 = vrot.slane %v672_v16, 5  ;;  %v613_v27 = vsel %vm2434_vm5, %v608_v18, %v612_v4  ;;  %v784_v33 = vunpack.c.l.b16 %v603_v23  ;;  %v678_v34 = vrot.slane %v676_v20, 4 }
  0x41   : > { %v684_v35 = vrot.slane %v682_v21, 5  ;;  %v785_v36 = vunpack.c.l.b16 %v613_v27  ;;  %v669_v37 = vor.u32 %v668_v29, %v665_v19  ;;  %v491_v39 = vrot.slane %v423_v13, 7 }
  0x42   : > { %v492_v44 = vrot.slane %v424_v22, 7  ;;  %v679_v47 = vor.u32 %v678_v34, %v674_v24  ;;  %v2162_v49 = vunpack.c.l.bf16 %v2177_v25  ;;  %v2163_v50 = vunpack.c.h.bf16 %v2177_v25 }
  0x43   : > { %v2138_v45 = vunpack.c.l.bf16 %v2137_v26  ;;  %v800_v54 = vpack.c.b16 %v785_v36, %v784_v33  ;;  %v670_v55 = vrot.slane %v669_v37, 4  ;;  %v541_v59 = vsel %vm475_vm1, 0.0, %v491_v39 }
  0x44   : > { %v493_v58 = vsel %vm475_vm1, %v491_v39, %v492_v44  ;;  %v680_v60 = vrot.slane %v679_v47, 4  ;;  %v551_v61 = vsel %vm475_vm1, %v492_v44, 0.0  ;;  %v2548_v62 = vpack.c.bf16 %v541_v59, %v541_v59 }
  0x45   : > { %v2550_v63 = vpack.c.bf16 %v493_v58, %v493_v58  ;;  %2032 = vmatmul.msk.bf16.vlgmr.msra.gmra.mxu0 %vm808_vm4, %v800_v54  ;;  %v675_v1 = vsel %vm2434_vm5, %v670_v55, %v674_v24  ;;  %v2555_v3 = vpack.c.bf16 %v551_v61, %v551_v61  ;;  %v395_v4 = vmul.f32 %v2356_v2, %v2162_v49 }
  0x46   : > { %v396_v5 = vmul.f32 %v2356_v2, %v2163_v50  ;;  %v685_v42 = vsel %vm2434_vm5, %v680_v60, %v684_v35  ;;  %v790_v46 = vunpack.c.l.b16 %v675_v1  ;;  %v711_v10 = vshrl.u32 %v2548_v62, 16 }
  0x47   : > { %v714_v12 = vshll.u32 %v2548_v62, 16  ;;  %v791_v13 = vunpack.c.l.b16 %v685_v42  ;;  %v720_v14 = vshll.u32 %v2550_v63, 16  ;;  %v724_v28 = vshrl.u32 %v2550_v63, 16 }
  0x48   : > { %v730_v15 = vshll.u32 %v2555_v3, 16  ;;  %v713_v16 = vrot.slane %v711_v10, 4  ;;  %v411_v20 = vadd.f32 %v2368_v6, %v395_v4  ;;  %v412_v21 = vadd.f32 %v2368_v6, %v396_v5 }
  0x49   : > { %v716_v18 = vrot.slane %v714_v12, 5  ;;  %v2568_v22 = vpack.c.b16 %v791_v13, %v790_v46  ;;  %v722_v23 = vrot.slane %v720_v14, 5  ;;  %v726_v19 = vrot.slane %v724_v28, 4 }
  0x4a   : > { %v732_v29 = vrot.slane %v730_v15, 5  ;;  %v427_v25 = vmax.f32 %v411_v20, 0.0  ;;  %v428_v27 = vmax.f32 %v412_v21, 0.0  ;;  %v2139_v33 = vunpack.c.h.bf16 %v2137_v26 }
  0x4b   : > { %v717_v24 = vor.u32 %v716_v18, %v713_v16  ;;  %2035 = vmatmul.msk.bf16.gmra.mxu1 %vm808_vm4, %v2568_v22  ;;  %v727_v34 = vor.u32 %v726_v19, %v722_v23  ;;  %v383_v35 = vmul.f32 %v2356_v2, %v2138_v45  ;;  %v902_v36 = vunpack.c.l.b16 %v2507_v38 }
  0x4c   : > { %v903_v37 = vunpack.c.l.b16 %v2511_v41  ;;  %v497_v44 = vrot.slane %v427_v25, 7  ;;  %v498_v47 = vrot.slane %v428_v27, 7  ;;  %v384_v49 = vmul.f32 %v2356_v2, %v2139_v33 }
  0x4d   : > { %v718_v39 = vrot.slane %v717_v24, 4  ;;  %v728_v50 = vrot.slane %v727_v34, 4  ;;  %v399_v54 = vadd.f32 %v2368_v6, %v383_v35 }
  0x4e   : > { %v918_v55 = vpack.c.b16 %v903_v37, %v902_v36  ;;  %v499_v58 = vsel %vm475_vm1, %v497_v44, %v498_v47  ;;  %v543_v45 = vsel %vm475_vm1, 0.0, %v497_v44  ;;  %v553_v59 = vsel %vm475_vm1, %v498_v47, 0.0 }
  0x4f   : > { %v723_v26 = vsel %vm2434_vm5, %v718_v39, %v722_v23  ;;  %v733_v60 = vsel %vm2434_vm5, %v728_v50, %v732_v29  ;;  %v2584_v1 = vpack.c.bf16 %v543_v45, %v543_v45  ;;  %v2586_v4 = vpack.c.bf16 %v499_v58, %v499_v58 }
  0x50   : > { %v794_v61 = vunpack.c.l.b16 %v723_v26  ;;  %v795_v5 = vunpack.c.l.b16 %v733_v60  ;;  %v2588_v42 = vpack.c.bf16 %v553_v59, %v553_v59  ;;  %v400_v46 = vadd.f32 %v2368_v6, %v384_v49 }
  0x51   : > { %v415_v10 = vmax.f32 %v399_v54, 0.0  ;;  %v759_v12 = vshrl.u32 %v2584_v1, 16  ;;  %v762_v13 = vshll.u32 %v2584_v1, 16  ;;  %v768_v14 = vshll.u32 %v2586_v4, 16 }
  0x52   : > { %v772_v28 = vshrl.u32 %v2586_v4, 16  ;;  %v2595_v15 = vpack.c.b16 %v795_v5, %v794_v61  ;;  %v778_v16 = vshll.u32 %v2588_v42, 16  ;;  %v416_v18 = vmax.f32 %v400_v46, 0.0 }
  0x53   : > { %v479_v20 = vrot.slane %v415_v10, 7  ;;  %v761_v21 = vrot.slane %v759_v12, 4  ;;  %v764_v23 = vrot.slane %v762_v13, 5  ;;  %v770_v19 = vrot.slane %v768_v14, 5  ;;  %v2093_v14 = vld [vmem:[%s3107_s3 + $0x18] sm:$0xf] }
  0x54   : > { %v774_v29 = vrot.slane %v772_v28, 4  ;;  %2037 = vmatmul.msk.bf16.gmra.mxu2 %vm808_vm4, %v2595_v15  ;;  %v780_v24 = vrot.slane %v778_v16, 5  ;;  %v480_v25 = vrot.slane %v416_v18, 7  ;;  %v2048_v37 = vrot.slane %v2507_v38, 9 }
  0x55   : > { %v537_v27 = vsel %vm475_vm1, 0.0, %v479_v20  ;;  %v765_v33 = vor.u32 %v764_v23, %v761_v21  ;;  %v1015_v47 = vrot.slane %v2511_v41, 5  ;;  %v1018_v49 = vrot.slane %v2513_v43, 5  ;;  %v2102_v21 = vld [vmem:[%s3107_s3 + $0x1c] sm:$0xf] }
  0x56   : > { %v775_v34 = vor.u32 %v774_v29, %v770_v19  ;;  %v2601_v35 = vpack.c.bf16 %v537_v27, %v537_v27  ;;  %v481_v39 = vsel %vm475_vm1, %v479_v20, %v480_v25  ;;  %v547_v44 = vsel %vm475_vm1, %v480_v25, 0.0  ;;  %v2084_v25 = vld [vmem:[%s3107_s3 + $0x14] sm:$0xf] }
  0x57   : > { %v766_v50 = vrot.slane %v765_v33, 4  ;;  %v560_v26 = vpack.c.bf16 %v481_v39, %v481_v39  ;;  %v561_v58 = vpack.c.bf16 %v547_v44, %v547_v44  ;;  %v1016_v60 = vsel %vm2604_vm9, %v2048_v37, %v1015_v47 }
  0x58   : > { %v776_v54 = vrot.slane %v775_v34, 4  ;;  %v615_v45 = vshrl.u32 %v2601_v35, 16  ;;  %v618_v59 = vshll.u32 %v2601_v35, 16  ;;  %v1017_v38 = vrot.slane %v1015_v47, 4 }
  0x59   : > { %v771_v61 = vsel %vm2434_vm5, %v766_v50, %v770_v19  ;;  %v624_v5 = vshll.u32 %v560_v26, 16  ;;  %v628_v43 = vshrl.u32 %v560_v26, 16  ;;  %v634_v18 = vshll.u32 %v561_v58, 16 }
  0x5a   : > { %v781_v41 = vsel %vm2434_vm5, %v776_v54, %v780_v24  ;;  %v798_v46 = vunpack.c.l.b16 %v771_v61  ;;  %v617_v12 = vrot.slane %v615_v45, 4  ;;  %v620_v13 = vrot.slane %v618_v59, 5 }
  0x5b   : > { %v799_v10 = vunpack.c.l.b16 %v781_v41  ;;  %v626_v28 = vrot.slane %v624_v5, 5  ;;  %v630_v16 = vrot.slane %v628_v43, 4  ;;  %2040 = vmatmul.msk.bf16.vlgmr.msrb.gmra.mxu1 %vm808_vm4, %v918_v55  ;;  %v1019_v20 = vsel %vm2604_vm9, %v1017_v38, %v1018_v49  ;;  %v2112_v55 = vld [vmem:[%s3107_s3 + $0x20] sm:$0xf] }
  0x5c   : > { %v621_v19 = vor.u32 %v620_v13, %v617_v12  ;;  %v1071_v29 = vunpack.c.l.b16 %v1016_v60  ;;  %v1072_v24 = vunpack.c.l.b16 %v1019_v20  ;;  %v636_v33 = vrot.slane %v634_v18, 5 }
  0x5d   : > { %v2630_v23 = vpack.c.b16 %v799_v10, %v798_v46  ;;  %v631_v27 = vor.u32 %v630_v16, %v626_v28  ;;  %v1460_v37 = vsel %vm833_vm0, %v2093_v14, 0  ;;  %v1560_v39 = vsel %vm833_vm0, %v2102_v21, 0 }
  0x5e   : > { %v622_v34 = vrot.slane %v621_v19, 4  ;;  %1469 = vmatpush.bf16.msra.mxu2 %v1460_v37  ;;  %1569 = vmatpush.bf16.msra.mxu3 %v1560_v39  ;;  %v1382_v47 = vsel %vm833_vm0, %v2084_v25, 0  ;;  %v1644_v49 = vsel %vm833_vm0, %v2112_v55, 0  ;;  %v1087_v54 = vpack.c.b16 %v1072_v24, %v1071_v29 }
  0x5f   : > { %2039 = vmatmul.msk.bf16.gmra.mxu3 %vm808_vm4, %v2630_v23  ;;  %v632_v44 = vrot.slane %v631_v27, 4  ;;  %1391 = vmatpush.bf16.msra.mxu1 %v1382_v47  ;;  %v1022_v60 = vrot.slane %v560_v26, 5  ;;  %v904_v41 = vunpack.c.l.b16 %v2601_v35  ;;  %v905_v5 = vunpack.c.l.b16 %v560_v26 }
  0x60   : > { %v627_v50 = vsel %vm2434_vm5, %v622_v34, %v626_v28  ;;  %1653 = vmatpush.bf16.msra.mxu0 %v1644_v49  ;;  %v2049_v43 = vrot.slane %v2601_v35, 9  ;;  %v1025_v10 = vrot.slane %v561_v58, 5  ;;  %v908_v12 = vunpack.c.l.b16 %v2527_v7 }
  0x61   : > { %v637_v45 = vsel %vm2434_vm5, %v632_v44, %v636_v33  ;;  %v786_v59 = vunpack.c.l.b16 %v627_v50  ;;  %v1024_v46 = vrot.slane %v1022_v60, 4  ;;  %v909_v13 = vunpack.c.l.b16 %v2529_v9 }
  0x62   : > { %v787_v38 = vunpack.c.l.b16 %v637_v45  ;;  %v919_v14 = vpack.c.b16 %v905_v5, %v904_v41  ;;  %v1023_v28 = vsel %vm2604_vm9, %v2049_v43, %v1022_v60  ;;  %v1029_v20 = vrot.slane %v2409_v52, 5 }
  0x63   : > { %v1026_v16 = vsel %vm2604_vm9, %v1024_v46, %v1025_v10  ;;  %v2658_v18 = vpack.c.b16 %v909_v13, %v908_v12  ;;  %v1073_v35 = vunpack.c.l.b16 %v1023_v28  ;;  %v906_v21 = vunpack.c.l.b16 %v2407_v51 }
  0x64   : > { %v801_v61 = vpack.c.b16 %v787_v38, %v786_v59  ;;  %2057 = vmatmul.msk.bf16.vlgmr.msrb.gmra.mxu2 %vm808_vm4, %v1087_v54  ;;  %v1074_v26 = vunpack.c.l.b16 %v1026_v16  ;;  %v907_v19 = vunpack.c.l.b16 %v2409_v52  ;;  %v2050_v29 = vrot.slane %v2407_v51, 9 }
  0x65   : > { %v1031_v24 = vrot.slane %v1029_v20, 4  ;;  %v1032_v25 = vrot.slane %v2411_v53, 5  ;;  %v2051_v55 = vrot.slane %v2527_v7, 9  ;;  %v1036_v27 = vrot.slane %v2529_v9, 5 }
  0x66   : > { %2033 = vmatmul.msk.bf16.gmra.mxu0 %vm808_vm4, %v801_v61  ;;  %v2662_v58 = vpack.c.b16 %v1074_v26, %v1073_v35  ;;  %v1039_v33 = vrot.slane %v2531_v11, 5  ;;  %v2677_v39 = vpack.c.b16 %v907_v19, %v906_v21  ;;  %v1030_v51 = vsel %vm2604_vm9, %v2050_v29, %v1029_v20 }
  0x67   : > { %v1037_v34 = vsel %vm2604_vm9, %v2051_v55, %v1036_v27  ;;  %v1038_v37 = vrot.slane %v1036_v27, 4  ;;  %v1033_v52 = vsel %vm2604_vm9, %v1031_v24, %v1032_v25  ;;  %v1075_v11 = vunpack.c.l.b16 %v1030_v51 }
  0x68   : > { %v1077_v53 = vunpack.c.l.b16 %v1037_v34  ;;  %v1076_v44 = vunpack.c.l.b16 %v1033_v52  ;;  %v1043_v50 = vrot.slane %v2417_v57, 5  ;;  %v910_v54 = vunpack.c.l.b16 %v2415_v56 }
  0x69   : > { %v1040_v7 = vsel %vm2604_vm9, %v1038_v37, %v1039_v33  ;;  %v911_v45 = vunpack.c.l.b16 %v2417_v57  ;;  %v2052_v59 = vrot.slane %v2415_v56, 9  ;;  %v1046_v38 = vrot.slane %v2425_v0, 5 }
  0x6a   : > { %v1078_v9 = vunpack.c.l.b16 %v1040_v7  ;;  %v2691_v49 = vpack.c.b16 %v1076_v44, %v1075_v11  ;;  %v1045_v60 = vrot.slane %v1043_v50, 4  ;;  %v1050_v0 = vrot.slane %v2550_v63, 5 }
  0x6b   : > { %2041 = vmatmul.msk.bf16.gmra.mxu1 %vm808_vm4, %v919_v14  ;;  %v1044_v41 = vsel %vm2604_vm9, %v2052_v59, %v1043_v50  ;;  %v912_v46 = vunpack.c.l.b16 %v2548_v62  ;;  %v913_v10 = vunpack.c.l.b16 %v2550_v63  ;;  %v2053_v12 = vrot.slane %v2548_v62, 9  ;;  %v2178_v62 = vld [vmem:[%s2359_s15 + $0x38] sm:$0xff]   ;;  %s2882_s15 = sadd.s32 8, %s2350_s11  ;;  %s3132_s11 = smov (!%p292_p12, %s2350_s11), 15 }
  0x6c   : > { %v2687_v47 = vpack.c.b16 %v1078_v9, %v1077_v53  ;;  %v1047_v5 = vsel %vm2604_vm9, %v1045_v60, %v1046_v38  ;;  %v1079_v57 = vunpack.c.l.b16 %v1044_v41  ;;  %v1052_v13 = vrot.slane %v1050_v0, 4  ;;  %p432_p9 = scmp.gt.s32.totalorder %s2882_s15, 0  ;;  %p2024_p10 = scmp.lt.s32.totalorder %s2882_s15, 15 }
  0x6d   : > { %v1080_v43 = vunpack.c.l.b16 %v1047_v5  ;;  %v2731_v28 = vpack.c.b16 %v913_v10, %v912_v46  ;;  %v1051_v16 = vsel %vm2604_vm9, %v2053_v12, %v1050_v0  ;;  %v2167_v20 = vunpack.c.h.bf16 %v2178_v62  ;;  %p441_p11 = scmp.lt.s32.totalorder %s2882_s15, 16  ;;  %s2008_s20 = sshll.u32 %s3132_s11, 1 }
  0x6e   : > { %v1081_v63 = vunpack.c.l.b16 %v1051_v16  ;;  %v1057_v19 = vrot.slane %v2442_v31, 5  ;;  %v914_v25 = vunpack.c.l.b16 %v2440_v30  ;;  %v915_v27 = vunpack.c.l.b16 %v2442_v31  ;;  %s433_s12 = scalar_select %p432_p9, %s2882_s15, 0 }
  0x6f   : > { %2066 = vmatmul.msk.bf16.vlgmr.msrb.gmra.mxu3 %vm808_vm4, %v919_v14  ;;  %v2720_v56 = vpack.c.b16 %v1080_v43, %v1079_v57  ;;  %v1053_v14 = vrot.slane %v2555_v3, 5  ;;  %v2166_v3 = vunpack.c.l.bf16 %v2178_v62  ;;  %v398_v24 = vmul.f32 %v2356_v2, %v2167_v20  ;;  %s450_s17 = scalar_select %p441_p11, 1, 0 }
  0x70   : > { %v2054_v33 = vrot.slane %v2440_v30, 9  ;;  %v1059_v34 = vrot.slane %v1057_v19, 4  ;;  %v1060_v37 = vrot.slane %v2444_v32, 5  ;;  %v2759_v52 = vpack.c.b16 %v915_v27, %v914_v25  ;;  %s3130_s12 = smov (!%p2024_p10, %s433_s12), 15  ;;  %s296_s29 = sadd.s32 %s2009_s28, %s2008_s20 }
  0x71   : > { %v1054_v35 = vsel %vm2604_vm9, %v1052_v13, %v1053_v14  ;;  %v397_v29 = vmul.f32 %v2356_v2, %v2166_v3  ;;  %v414_v2 = vadd.f32 %v2368_v6, %v398_v24  ;;  %v916_v60 = vunpack.c.l.b16 %v2584_v1  ;;  %s2131_s13 = sshll.u32 %s3130_s12, 3  ;;  %s2010_s7 = sshll.u32 %s296_s29, 2 }
  0x72   : > { %v1082_v26 = vunpack.c.l.b16 %v1054_v35  ;;  %v1058_v53 = vsel %vm2604_vm9, %v2054_v33, %v1057_v19  ;;  %v1061_v31 = vsel %vm2604_vm9, %v1059_v34, %v1060_v37  ;;  %v917_v41 = vunpack.c.l.b16 %v2586_v4  ;;  %s438_s14 = scalar_lea.vmem %s2347_s10, %s2131_s13  ;;  %s3001_s11 = scalar_lea.vmem %s3108_s4, %s2010_s7 }
  0x73   : > { %v413_v51 = vadd.f32 %v2368_v6, %v397_v29  ;;  %v430_v32 = vmax.f32 %v414_v2, 0.0  ;;  %v1083_v7 = vunpack.c.l.b16 %v1058_v53  ;;  %v1084_v9 = vunpack.c.l.b16 %v1061_v31  ;;  %s301_s15 = sadd.s32 %s2248_s21, %s2011_s30 }
  0x74   : > { %2058 = vmatmul.msk.bf16.gmra.mxu2 %vm808_vm4, %v2662_v58  ;;  %v2742_v21 = vpack.c.b16 %v1082_v26, %v1081_v63  ;;  %v2055_v5 = vrot.slane %v2584_v1, 9  ;;  %v1067_v43 = vrot.slane %v2588_v42, 5  ;;  %v2792_v12 = vpack.c.b16 %v917_v41, %v916_v60  ;;  %p302_p13 = scmp.lt.s32.totalorder %s301_s15, 3 }
  0x75   : > { %v429_v30 = vmax.f32 %v413_v51, 0.0  ;;  %v501_v44 = vrot.slane %v430_v32, 7  ;;  %v2771_v50 = vpack.c.b16 %v1084_v9, %v1083_v7 }
  0x76   : > { %2075 = vmatmul.msk.bf16.vlgmr.msrb.gmra.mxu0 %vm808_vm4, %v801_v61  ;;  %v2710_v61 = vpack.c.b16 %v911_v45, %v910_v54  ;;  %v1064_v54 = vrot.slane %v2586_v4, 5  ;;  %s3134_s15 = smov (!%p302_p13, %s301_s15), 3 }
  0x77   : > { %v500_v6 = vrot.slane %v429_v30, 7  ;;  %v554_v42 = vsel %vm475_vm1, %v501_v44, 0.0  ;;  %s304_s21 = scalar_lea.vmem %s3109_s5, %s3134_s15  ;;  %s311_s16 = scalar_lea.vmem %s3110_s6, %s3134_s15 }
  0x78   : > { %v1066_v57 = vrot.slane %v1064_v54, 4  ;;  %v1065_v13 = vsel %vm2604_vm9, %v2055_v5, %v1064_v54  ;;  %v2811_v20 = vpack.c.bf16 %v554_v42, %v554_v42 }
  0x79   : > { %v502_v59 = vsel %vm475_vm1, %v500_v6, %v501_v44  ;;  %v544_v38 = vsel %vm475_vm1, 0.0, %v500_v6  ;;  %v1085_v63 = vunpack.c.l.b16 %v1065_v13 }
  0x7a   : > { %v2786_v0 = vpack.c.bf16 %v502_v59, %v502_v59  ;;  %v2788_v46 = vpack.c.bf16 %v544_v38, %v544_v38  ;;  %v1068_v1 = vsel %vm2604_vm9, %v1066_v57, %v1067_v43  ;;  %v1285_v2 = vshll.u32 %v2811_v20, 16 }
  0x7b   : > { %2042 = vmatmul.msk.bf16.gmra.mxu1 %vm808_vm4, %v2677_v39  ;;  %v1086_v26 = vunpack.c.l.b16 %v1068_v1 }
  0x7c   : > { %v1275_v4 = vshll.u32 %v2786_v0, 16  ;;  %v1266_v14 = vshrl.u32 %v2788_v46, 16  ;;  %v1269_v16 = vshll.u32 %v2788_v46, 16  ;;  %v1279_v35 = vshrl.u32 %v2786_v0, 16 }
  0x7d   : > { %v2813_v33 = vpack.c.b16 %v1086_v26, %v1085_v63  ;;  %v1191_v53 = vunpack.c.l.b16 %v2788_v46  ;;  %v1192_v31 = vunpack.c.l.b16 %v2786_v0  ;;  %v1287_v6 = vrot.slane %v1285_v2, 5 }
  0x7e   : > { %v1268_v29 = vrot.slane %v1266_v14, 4  ;;  %v1271_v24 = vrot.slane %v1269_v16, 5  ;;  %v1277_v25 = vrot.slane %v1275_v4, 5  ;;  %v1281_v27 = vrot.slane %v1279_v35, 4 }
  0x7f   : > { %2067 = vmatmul.msk.bf16.gmra.mxu3 %vm808_vm4, %v2677_v39  ;;  %v2828_v60 = vpack.c.b16 %v1192_v31, %v1191_v53 }
  0x80   : > { %v1272_v37 = vor.u32 %v1271_v24, %v1268_v29  ;;  %v1282_v51 = vor.u32 %v1281_v27, %v1277_v25 }
  0x82   : > { %v1273_v7 = vrot.slane %v1272_v37, 4  ;;  %v1283_v9 = vrot.slane %v1282_v51, 4 }
  0x84   : > { %2059 = vmatmul.msk.bf16.gmra.mxu2 %vm808_vm4, %v2691_v49  ;;  %v1278_v38 = vsel %vm2434_vm5, %v1273_v7, %v1277_v25  ;;  %v1288_v41 = vsel %vm2434_vm5, %v1283_v9, %v1287_v6 }
  0x85   : > { %v1291_v5 = vunpack.c.l.b16 %v1278_v38  ;;  %v1292_v57 = vunpack.c.l.b16 %v1288_v41 }
  0x86   : > { %2076 = vmatmul.msk.bf16.gmra.mxu0 %vm808_vm4, %v2456_v48 }
  0x87   : > { %v2842_v42 = vpack.c.b16 %v1292_v57, %v1291_v5 }
  0x8b   : > { %2043 = vmatmul.msk.bf16.gmra.mxu1 %vm808_vm4, %v2658_v18 }
  0x8f   : > { %2068 = vmatmul.msk.bf16.gmra.mxu3 %vm808_vm4, %v2658_v18 }
  0x94   : > { %2060 = vmatmul.msk.bf16.gmra.mxu2 %vm808_vm4, %v2687_v47 }
  0x96   : > { %2077 = vmatmul.msk.bf16.gmra.mxu0 %vm808_vm4, %v2568_v22 }
  0x9b   : > { %2044 = vmatmul.msk.bf16.gmra.mxu1 %vm808_vm4, %v2710_v61 }
  0x9f   : > { %2069 = vmatmul.msk.bf16.gmra.mxu3 %vm808_vm4, %v2710_v61 }
  0xa4   : > { %2061 = vmatmul.msk.bf16.gmra.mxu2 %vm808_vm4, %v2720_v56 }
  0xa6   : > { %2078 = vmatmul.msk.bf16.gmra.mxu0 %vm808_vm4, %v2483_v8 }
  0xab   : > { %2045 = vmatmul.msk.bf16.gmra.mxu1 %vm808_vm4, %v2731_v28  ;;  %v2750_v55 = vpop.f32.mrf.mxu1 }
  0xaf   : > { %2070 = vmatmul.msk.bf16.gmra.mxu3 %vm808_vm4, %v2731_v28 }
  0xb3   : > { %v2769_v11 = vpop.f32.mrf.mxu1 }
  0xb4   : > { %2062 = vmatmul.msk.bf16.gmra.mxu2 %vm808_vm4, %v2742_v21 }
  0xb5   : > { %v2774_v45 = vpop.f32.mrf.mxu2 }
  0xb6   : > { %2079 = vmatmul.msk.bf16.gmra.mxu0 %vm808_vm4, %v2595_v15 }
  0xbb   : > { %2046 = vmatmul.msk.bf16.gmra.mxu1 %vm808_vm4, %v2759_v52 }
  0xbc   : > { %v2805_v62 = vpop.f32.mrf.mxu3 }
  0xbd   : > { %v2807_v3 = vpop.f32.mrf.mxu2 }
  0xbf   : > { %2071 = vmatmul.msk.bf16.gmra.mxu3 %vm808_vm4, %v2759_v52 }
  0xc2   : > { %v846_v19 = vpop.f32.mrf.mxu0 }
  0xc4   : > { %2063 = vmatmul.msk.bf16.gmra.mxu2 %vm808_vm4, %v2771_v50  ;;  %v2824_v30 = vpop.f32.mrf.mxu3 }
  0xc6   : > { %2080 = vmatmul.msk.bf16.gmra.mxu0 %vm808_vm4, %v2509_v40 }
  0xc8   : > { %v2790_v10 = vpop.f32.mrf.mxu1 }
  0xca   : > { %v848_v54 = vpop.f32.mrf.mxu0 }
  0xcb   : > { %2047 = vmatmul.msk.bf16.gmra.mxu1 %vm808_vm4, %v2792_v12 }
  0xcf   : > { %2072 = vmatmul.msk.bf16.gmra.mxu3 %vm808_vm4, %v2792_v12 }
  0xd0   : > { %v2815_v34 = vpop.f32.mrf.mxu1 }
  0xd4   : > { %2064 = vmatmul.msk.bf16.gmra.mxu2 %vm808_vm4, %v2813_v33 }
  0xd6   : > { %2081 = vmatmul.msk.bf16.gmra.mxu0 %vm808_vm4, %v2630_v23 }
  0xd7   : > { %v2826_v32 = vpop.f32.mrf.mxu2 }
  0xd8   : > { %v962_v44 = vpop.f32.mrf.mxu1 }
  0xd9   : > { %v963_v59 = vadd.f32 %v962_v44, %v846_v19 }
  0xdb   : > { %2085 = vmatmul.msk.bf16.vlgmr.msra.gmra.mxu1 %vm808_vm4, %v2662_v58 }
  0xdf   : > { %2073 = vmatmul.msk.bf16.gmra.mxu3 %vm808_vm4, %v2828_v60  ;;  %v2838_v43 = vpop.f32.mrf.mxu2 }
  0xe0   : > { %v964_v13 = vpop.f32.mrf.mxu1 }
  0xe1   : > { %v965_v4 = vadd.f32 %v964_v13, %v848_v54 }
  0xe2   : > { %v2840_v1 = vpop.f32.mrf.mxu3 }
  0xe3   : > { %v851_v14 = vpop.f32.mrf.mxu0 }
  0xe4   : > { %2094 = vmatmul.msk.bf16.vlgmr.msra.gmra.mxu2 %vm808_vm4, %v2677_v39 }
  0xe6   : > { %2082 = vmatmul.msk.bf16.gmra.mxu0 %vm808_vm4, %v2842_v42 }
  0xe7   : > { %v1131_v58 = vpop.f32.mrf.mxu2 }
  0xe8   : > { %v1171_v16 = vadd.f32 %v1131_v58, %v963_v59  ;;  %v967_v35 = vpop.f32.mrf.mxu1 }
  0xe9   : > { %v968_v26 = vadd.f32 %v967_v35, %v851_v14 }
  0xea   : > { %v2848_v63 = vpop.f32.mrf.mxu3 }
  0xeb   : > { %v853_v19 = vpop.f32.mrf.mxu0  ;;  %2086 = vmatmul.msk.bf16.gmra.mxu1 %vm808_vm4, %v2691_v49 }
  0xef   : > { %2103 = vmatmul.msk.bf16.vlgmr.msra.gmra.mxu3 %vm808_vm4, %v2456_v48  ;;  %v1133_v29 = vpop.f32.mrf.mxu2 }
  0xf0   : > { %v1172_v24 = vadd.f32 %v1133_v29, %v965_v4  ;;  %v969_v25 = vpop.f32.mrf.mxu1 }
  0xf1   : > { %v970_v27 = vadd.f32 %v969_v25, %v853_v19 }
  0xf2   : > { %v1209_v39 = vpop.f32.mrf.mxu3 }
  0xf3   : > { %v1249_v37 = vadd.f32 %v1209_v39, %v1171_v16  ;;  %v1309_v51 = vpop.f32.mrf.mxu0 }
  0xf4   : > { %2095 = vmatmul.msk.bf16.gmra.mxu2 %vm808_vm4, %v2658_v18 }
  0xf5   : > { %v2856_v2 = vadd.f32 %v1309_v51, %v1249_v37 }
  0xf6   : > { %2113 = vmatmul.msk.bf16.vlgmr.msra.gmra.mxu0 %vm808_vm4, %v2691_v49 }
  0xf7   : > { %v1136_v53 = vpop.f32.mrf.mxu2 }
  0xf8   : > { %v1173_v31 = vadd.f32 %v1136_v53, %v968_v26  ;;  %v972_v7 = vpop.f32.mrf.mxu1 }
  0xf9   : > { %v973_v13 = vadd.f32 %v972_v7, %v2750_v55 }
  0xfa   : > { %v1211_v9 = vpop.f32.mrf.mxu3 }
  0xfb   : > { %v1250_v48 = vadd.f32 %v1211_v9, %v1172_v24  ;;  %v1311_v6 = vpop.f32.mrf.mxu0  ;;  %2087 = vmatmul.msk.bf16.gmra.mxu1 %vm808_vm4, %v2687_v47 }
  0xfd   : > { %v2862_v44 = vadd.f32 %v1311_v6, %v1250_v48 }
  0xff   : > { %2104 = vmatmul.msk.bf16.gmra.mxu3 %vm808_vm4, %v2568_v22  ;;  %v1138_v18 = vpop.f32.mrf.mxu2 }
 0x100   : > { %v1174_v54 = vadd.f32 %v1138_v18, %v970_v27  ;;  %v974_v59 = vpop.f32.mrf.mxu1 }
 0x101   : > { %v975_v49 = vadd.f32 %v974_v59, %v2769_v11 }
 0x102   : > { %v1214_v38 = vpop.f32.mrf.mxu3 }
 0x103   : > { %v1251_v41 = vadd.f32 %v1214_v38, %v1173_v31  ;;  %v1314_v5 = vpop.f32.mrf.mxu0 }
 0x104   : > { %2096 = vmatmul.msk.bf16.gmra.mxu2 %vm808_vm4, %v2710_v61 }
 0x105   : > { %v2869_v57 = vadd.f32 %v1314_v5, %v1251_v41 }
 0x106   : > { %2114 = vmatmul.msk.bf16.gmra.mxu0 %vm808_vm4, %v2687_v47 }
 0x107   : > { %v1141_v22 = vpop.f32.mrf.mxu2 }
 0x108   : > { %v1175_v4 = vadd.f32 %v1141_v22, %v973_v13  ;;  %v977_v14 = vpop.f32.mrf.mxu1  ;;  %v2224_v13 = vld [vmem:[%s3105_s1] ss:$0 sm:$0xff] }
 0x109   : > { %v978_v16 = vadd.f32 %v977_v14, %v2790_v10 }
 0x10a   : > { %v1216_v58 = vpop.f32.mrf.mxu3 }
 0x10b   : > { %v1252_v11 = vadd.f32 %v1216_v58, %v1174_v54  ;;  %v1316_v35 = vpop.f32.mrf.mxu0  ;;  %2088 = vmatmul.msk.bf16.gmra.mxu1 %vm808_vm4, %v2720_v56  ;;  %v2169_v54 = vld [vmem:[%s438_s14] sm:$0xff]  }
 0x10c   : > { %v2170_v59 = vunpack.c.l.bf16 %v2169_v54  ;;  %v2171_v38 = vunpack.c.h.bf16 %v2169_v54 }
 0x10d   : > { %v2877_v61 = vadd.f32 %v1316_v35, %v1252_v11  ;;  %v451_v35 = vstv %s450_s17 }
 0x10e   : > { %v445_v22 = vmul.f32 %v2224_v13, %v2171_v38  ;;  %vm452_vm10 = vcmp.eq.s32.totalorder %v451_v35, 1 }
 0x10f   : > { %2105 = vmatmul.msk.bf16.gmra.mxu3 %vm808_vm4, %v2483_v8  ;;  %v1143_v26 = vpop.f32.mrf.mxu2 }
 0x110   : > { %v1176_v47 = vadd.f32 %v1143_v26, %v975_v49  ;;  %v979_v19 = vpop.f32.mrf.mxu1 }
 0x111   : > { %v980_v10 = vadd.f32 %v979_v19, %v2815_v34 }
 0x112   : > { %v1219_v55 = vpop.f32.mrf.mxu3 }
 0x113   : > { %v1253_v29 = vadd.f32 %v1219_v55, %v1175_v4  ;;  %v1319_v24 = vpop.f32.mrf.mxu0 }
 0x114   : > { %2097 = vmatmul.msk.bf16.gmra.mxu2 %vm808_vm4, %v2731_v28 }
 0x115   : > { %v2888_v25 = vadd.f32 %v1319_v24, %v1253_v29 }
 0x116   : > { %2115 = vmatmul.msk.bf16.gmra.mxu0 %vm808_vm4, %v2720_v56 }
 0x117   : > { %v1146_v8 = vpop.f32.mrf.mxu2 }
 0x118   : > { %v1177_v39 = vadd.f32 %v1146_v8, %v978_v16  ;;  %v982_v27 = vpop.f32.mrf.mxu1 }
 0x119   : > { %v983_v18 = vadd.f32 %v982_v27, %v2774_v45 }
 0x11a   : > { %v1221_v37 = vpop.f32.mrf.mxu3 }
 0x11b   : > { %v1254_v51 = vadd.f32 %v1221_v37, %v1176_v47  ;;  %v1321_v34 = vpop.f32.mrf.mxu0  ;;  %2089 = vmatmul.msk.bf16.gmra.mxu1 %vm808_vm4, %v2742_v21 }
 0x11d   : > { %v2896_v28 = vadd.f32 %v1321_v34, %v1254_v51 }
 0x11f   : > { %2106 = vmatmul.msk.bf16.gmra.mxu3 %vm808_vm4, %v2595_v15  ;;  %v1148_v56 = vpop.f32.mrf.mxu2 }
 0x120   : > { %v1178_v53 = vadd.f32 %v1148_v56, %v980_v10  ;;  %v984_v31 = vpop.f32.mrf.mxu1 }
 0x121   : > { %v985_v11 = vadd.f32 %v984_v31, %v2807_v3 }
 0x122   : > { %v1224_v7 = vpop.f32.mrf.mxu3 }
 0x123   : > { %v1255_v9 = vadd.f32 %v1224_v7, %v1177_v39  ;;  %v1324_v48 = vpop.f32.mrf.mxu0 }
 0x124   : > { %2098 = vmatmul.msk.bf16.gmra.mxu2 %vm808_vm4, %v2759_v52  ;;  %v444_v52 = vmul.f32 %v2224_v13, %v2170_v59 }
 0x125   : > { %v2903_v6 = vadd.f32 %v1324_v48, %v1255_v9  ;;  %v1368_v9 = vrot.slane %v2786_v0, 5  ;;  %v1371_v0 = vrot.slane %v2811_v20, 5 }
 0x126   : > { %2116 = vmatmul.msk.bf16.gmra.mxu0 %vm808_vm4, %v2742_v21  ;;  %v2225_v21 = vld [vmem:[%s3106_s2] ss:$0 sm:$0xff] }
 0x127   : > { %v1151_v15 = vpop.f32.mrf.mxu2  ;;  %v446_v45 = vadd.f32 %v2225_v21, %v444_v52  ;;  %v447_v16 = vadd.f32 %v2225_v21, %v445_v22 }
 0x128   : > { %v1179_v49 = vadd.f32 %v1151_v15, %v983_v18  ;;  %v987_v41 = vpop.f32.mrf.mxu1  ;;  %v1370_v15 = vrot.slane %v1368_v9, 4 }
 0x129   : > { %v448_v55 = vmax.f32 %v446_v45, 0.0  ;;  %v449_v29 = vmax.f32 %v447_v16, 0.0 }
 0x12a   : > { %v1226_v5 = vpop.f32.mrf.mxu3 }
 0x12b   : > { %v1256_v4 = vadd.f32 %v1226_v5, %v1178_v53  ;;  %v1326_v14 = vpop.f32.mrf.mxu0  ;;  %2090 = vmatmul.msk.bf16.gmra.mxu1 %vm808_vm4, %v2771_v50  ;;  %v453_v39 = vsel %vm452_vm10, %v448_v55, 0.0  ;;  %v454_v37 = vsel %vm452_vm10, %v449_v29, 0.0 }
 0x12c   : > { %v503_v51 = vrot.slane %v453_v39, 7  ;;  %v504_v53 = vrot.slane %v454_v37, 7 }
 0x12d   : > { %v2917_v58 = vadd.f32 %v1326_v14, %v1256_v4 }
 0x12e   : > { %v505_v18 = vsel %vm475_vm1, %v503_v51, %v504_v53  ;;  %v555_v20 = vsel %vm475_vm1, %v504_v53, 0.0 }
 0x12f   : > { %2107 = vmatmul.msk.bf16.gmra.mxu3 %vm808_vm4, %v2509_v40  ;;  %v1153_v26 = vpop.f32.mrf.mxu2  ;;  %v988_v40 = vadd.f32 %v987_v41, %v2826_v32  ;;  %v2083_v32 = vrot.slane %v2788_v46, 9 }
 0x130   : > { %v1180_v47 = vadd.f32 %v1153_v26, %v985_v11  ;;  %v989_v19 = vpop.f32.mrf.mxu1  ;;  %v585_v26 = vpack.c.bf16 %v555_v20, %v555_v20 }
 0x131   : > { %v990_v54 = vadd.f32 %v989_v19, %v2838_v43  ;;  %v1369_v46 = vsel %vm2604_vm9, %v2083_v32, %v1368_v9 }
 0x132   : > { %v1229_v10 = vpop.f32.mrf.mxu3  ;;  %v1375_v16 = vunpack.c.l.b16 %v1369_v46 }
 0x133   : > { %v1257_v24 = vadd.f32 %v1229_v10, %v1179_v49  ;;  %v1329_v8 = vpop.f32.mrf.mxu0  ;;  %v2943_v49 = vpack.c.bf16 %v505_v18, %v505_v18 }
 0x134   : > { %2099 = vmatmul.msk.bf16.gmra.mxu2 %vm808_vm4, %v2792_v12  ;;  %v545_v12 = vsel %vm475_vm1, 0.0, %v503_v51 }
 0x135   : > { %v2924_v27 = vadd.f32 %v1329_v8, %v1257_v24  ;;  %v2941_v59 = vpack.c.bf16 %v545_v12, %v545_v12  ;;  %v1537_v14 = vshll.u32 %v2943_v49, 16  ;;  %v1541_v21 = vshrl.u32 %v2943_v49, 16 }
 0x136   : > { %2117 = vmatmul.msk.bf16.gmra.mxu0 %vm808_vm4, %v2771_v50 }
 0x137   : > { %v1156_v3 = vpop.f32.mrf.mxu2  ;;  %v1528_v43 = vshrl.u32 %v2941_v59, 16  ;;  %v1531_v4 = vshll.u32 %v2941_v59, 16  ;;  %v1539_v10 = vrot.slane %v1537_v14, 5  ;;  %v1543_v29 = vrot.slane %v1541_v21, 4 }
 0x138   : > { %v1181_v34 = vadd.f32 %v1156_v3, %v988_v40  ;;  %v992_v56 = vpop.f32.mrf.mxu1 }
 0x139   : > { %v993_v35 = vadd.f32 %v992_v56, %v2805_v62  ;;  %v1530_v19 = vrot.slane %v1528_v43, 4  ;;  %v1533_v55 = vrot.slane %v1531_v4, 5  ;;  %v1544_v51 = vor.u32 %v1543_v29, %v1539_v10 }
 0x13a   : > { %v1231_v31 = vpop.f32.mrf.mxu3  ;;  %v1454_v62 = vunpack.c.l.b16 %v2943_v49 }
 0x13b   : > { %v1258_v7 = vadd.f32 %v1231_v31, %v1180_v47  ;;  %v1331_v48 = vpop.f32.mrf.mxu0  ;;  %2091 = vmatmul.msk.bf16.gmra.mxu1 %vm808_vm4, %v2813_v33  ;;  %v1534_v3 = vor.u32 %v1533_v55, %v1530_v19  ;;  %v1545_v9 = vrot.slane %v1544_v51, 4 }
 0x13d   : > { %v2934_v50 = vadd.f32 %v1331_v48, %v1258_v7  ;;  %v1535_v7 = vrot.slane %v1534_v3, 4 }
 0x13f   : > { %2108 = vmatmul.msk.bf16.gmra.mxu3 %vm808_vm4, %v2630_v23  ;;  %v1158_v38 = vpop.f32.mrf.mxu2  ;;  %v1372_v23 = vsel %vm2604_vm9, %v1370_v15, %v1371_v0 }
 0x140   : > { %v1182_v41 = vadd.f32 %v1158_v38, %v990_v54  ;;  %v994_v5 = vpop.f32.mrf.mxu1  ;;  %v1376_v11 = vunpack.c.l.b16 %v1372_v23  ;;  %v1540_v38 = vsel %vm2434_vm5, %v1535_v7, %v1539_v10  ;;  %v2111_v23 = vrot.slane %v2941_v59, 9 }
 0x141   : > { %v995_v53 = vadd.f32 %v994_v5, %v2824_v30 }
 0x142   : > { %v1234_v13 = vpop.f32.mrf.mxu3  ;;  %v1377_v37 = vpack.c.b16 %v1376_v11, %v1375_v16 }
 0x143   : > { %v1259_v52 = vadd.f32 %v1234_v13, %v1181_v34  ;;  %v1334_v22 = vpop.f32.mrf.mxu0  ;;  %v1547_v34 = vshll.u32 %v585_v26, 16  ;;  %v1553_v13 = vunpack.c.l.b16 %v1540_v38 }
 0x144   : > { %2100 = vmatmul.msk.bf16.gmra.mxu2 %vm808_vm4, %v2828_v60 }
 0x145   : > { %v2956_v45 = vadd.f32 %v1334_v22, %v1259_v52  ;;  %v1549_v48 = vrot.slane %v1547_v34, 5  ;;  %v1633_v22 = vrot.slane %v585_v26, 5 }
 0x146   : > { %2118 = vmatmul.msk.bf16.gmra.mxu0 %vm808_vm4, %v2813_v33  ;;  %v1453_v33 = vunpack.c.l.b16 %v2941_v59 }
 0x147   : > { %v1161_v47 = vpop.f32.mrf.mxu2 }
 0x148   : > { %v1183_v24 = vadd.f32 %v1161_v47, %v993_v35  ;;  %v997_v8 = vpop.f32.mrf.mxu1  ;;  %v1455_v18 = vpack.c.b16 %v1454_v62, %v1453_v33 }
 0x149   : > { %v998_v5 = vadd.f32 %v997_v8, %v2840_v1 }
 0x14a   : > { %v1236_v39 = vpop.f32.mrf.mxu3 }
 0x14b   : > { %v1260_v60 = vadd.f32 %v1236_v39, %v1182_v41  ;;  %v1336_v40 = vpop.f32.mrf.mxu0  ;;  %2092 = vmatmul.msk.bf16.gmra.mxu1 %vm808_vm4, %v1377_v37  ;;  %v1550_v41 = vsel %vm2434_vm5, %v1545_v9, %v1549_v48 }
 0x14c   : > { %v1554_v52 = vunpack.c.l.b16 %v1550_v41 }
 0x14d   : > { %v2964_v56 = vadd.f32 %v1336_v40, %v1260_v60 }
 0x14f   : > { %2109 = vmatmul.msk.bf16.gmra.mxu3 %vm808_vm4, %v2842_v42  ;;  %v1163_v31 = vpop.f32.mrf.mxu2  ;;  %v1630_v42 = vrot.slane %v2943_v49, 5  ;;  %v1555_v49 = vpack.c.b16 %v1554_v52, %v1553_v13 }
 0x150   : > { %v1184_v12 = vadd.f32 %v1163_v31, %v995_v53  ;;  %v999_v32 = vpop.f32.mrf.mxu1 }
 0x151   : > { %v1632_v43 = vrot.slane %v1630_v42, 4  ;;  %v1631_v16 = vsel %vm2604_vm9, %v2111_v23, %v1630_v42  ;;  %v1000_v26 = vadd.f32 %v999_v32, %v2848_v63 }
 0x152   : > { %v1239_v54 = vpop.f32.mrf.mxu3  ;;  %v1637_v59 = vunpack.c.l.b16 %v1631_v16 }
 0x153   : > { %v1261_v15 = vadd.f32 %v1239_v54, %v1183_v24  ;;  %v1339_v0 = vpop.f32.mrf.mxu0  ;;  %v1634_v1 = vsel %vm2604_vm9, %v1632_v43, %v1633_v22 }
 0x154   : > { %2101 = vmatmul.msk.bf16.gmra.mxu2 %vm808_vm4, %v1455_v18  ;;  %v1638_v35 = vunpack.c.l.b16 %v1634_v1 }
 0x155   : > { %v2975_v30 = vadd.f32 %v1339_v0, %v1261_v15 }
 0x156   : > { %2119 = vmatmul.msk.bf16.gmra.mxu0 %vm808_vm4, %v1377_v37  ;;  %v1639_v24 = vpack.c.b16 %v1638_v35, %v1637_v59 }
 0x157   : > { %v1166_v46 = vpop.f32.mrf.mxu2 }
 0x158   : > { %v1185_v20 = vadd.f32 %v1166_v46, %v998_v5  ;;  %v1393_v17 = vpop.f32.mrf.mxu1 }
 0x159   : > { %v1433_v63 = vadd.f32 %v1393_v17, %v2856_v2 }
 0x15a   : > { %v1241_v4 = vpop.f32.mrf.mxu3 }
 0x15b   : > { %v1262_v14 = vadd.f32 %v1241_v4, %v1184_v12  ;;  %v1341_v21 = vpop.f32.mrf.mxu0 }
 0x15d   : > { %v2984_v11 = vadd.f32 %v1341_v21, %v1262_v14 }
 0x15f   : > { %2110 = vmatmul.msk.bf16.gmra.mxu3 %vm808_vm4, %v1555_v49  ;;  %v1168_v47 = vpop.f32.mrf.mxu2 }
 0x160   : > { %v1186_v19 = vadd.f32 %v1168_v47, %v1000_v26  ;;  %v1395_v55 = vpop.f32.mrf.mxu1 }
 0x161   : > { %v1434_v48 = vadd.f32 %v1395_v55, %v2862_v44 }
 0x162   : > { %v1244_v10 = vpop.f32.mrf.mxu3 }
 0x163   : > { %v1263_v29 = vadd.f32 %v1244_v10, %v1185_v20  ;;  %v1344_v8 = vpop.f32.mrf.mxu0 }
 0x165   : > { %v2989_v36 = vadd.f32 %v1344_v8, %v1263_v29 }
 0x166   : > { %2120 = vmatmul.msk.bf16.gmra.mxu0 %vm808_vm4, %v1639_v24 }
 0x167   : > { %v1471_v39 = vpop.f32.mrf.mxu2 }
 0x168   : > { %v1398_v37 = vpop.f32.mrf.mxu1  ;;  %v1511_v34 = vadd.f32 %v1471_v39, %v1433_v63 }
 0x169   : > { %v1435_v41 = vadd.f32 %v1398_v37, %v2869_v57 }
 0x16a   : > { %v1246_v60 = vpop.f32.mrf.mxu3 }
 0x16b   : > { %v1264_v40 = vadd.f32 %v1246_v60, %v1186_v19  ;;  %v1346_v3 = vpop.f32.mrf.mxu0 }
 0x16d   : > { %v2995_v51 = vadd.f32 %v1346_v3, %v1264_v40 }
 0x16f   : > { %v1473_v33 = vpop.f32.mrf.mxu2 }
 0x170   : > { %v1400_v62 = vpop.f32.mrf.mxu1  ;;  %v1512_v12 = vadd.f32 %v1473_v33, %v1434_v48 }
 0x171   : > { %v1436_v16 = vadd.f32 %v1400_v62, %v2877_v61 }
 0x172   : > { %v1571_v53 = vpop.f32.mrf.mxu3 }
 0x173   : > { %v1611_v31 = vadd.f32 %v1571_v53, %v1511_v34  ;;  %v1655_v7 = vpop.f32.mrf.mxu0 }
 0x175   : > { %v1695_v9 = vadd.f32 %v1655_v7, %v1611_v31 }
 0x177   : > { %v1711_v2 = vpack.c.bf16 %v1695_v9, %v1695_v9  ;;  %v1476_v18 = vpop.f32.mrf.mxu2  ;;  %v1784_v38 = vmul.f32 %v1695_v9, %v1695_v9  ;;  %v1745_v42 = vsel %vm1744_vm12, %v1695_v9, 0.0 }
 0x178   : > { %v1403_v32 = vpop.f32.mrf.mxu1  ;;  %v1513_v46 = vadd.f32 %v1476_v18, %v1435_v41 }
 0x179   : > { %1728 = vst.msk [vmem:[%s3001_s11] sm:$0xf] %vm1727_vm11, %v1711_v2  ;;  %v1800_v22 = vsel %vm1744_vm12, %v1784_v38, 0.0  ;;  %v1437_v61 = vadd.f32 %v1403_v32, %v2888_v25 }
 0x17a   : > { %v1573_v54 = vpop.f32.mrf.mxu3 }
 0x17b   : > { %v1612_v15 = vadd.f32 %v1573_v54, %v1512_v12  ;;  %v1657_v0 = vpop.f32.mrf.mxu0 }
 0x17d   : > { %v1696_v44 = vadd.f32 %v1657_v0, %v1612_v15 }
 0x17f   : > { %v1712_v5 = vpack.c.bf16 %v1696_v44, %v1696_v44  ;;  %v1746_v13 = vsel %vm1744_vm12, %v1696_v44, 0.0  ;;  %v1785_v52 = vmul.f32 %v1696_v44, %v1696_v44  ;;  %v1478_v43 = vpop.f32.mrf.mxu2 }
 0x180   : > { %v1747_v23 = vadd.f32 %v1746_v13, %v1745_v42  ;;  %v1405_v17 = vpop.f32.mrf.mxu1  ;;  %v1514_v26 = vadd.f32 %v1478_v43, %v1436_v16 }
 0x181   : > { %1729 = vst.msk [vmem:[%s3001_s11 + $0x4] sm:$0xf] %vm1727_vm11, %v1712_v5  ;;  %v1801_v20 = vsel %vm1744_vm12, %v1785_v52, 0.0  ;;  %v1438_v25 = vadd.f32 %v1405_v17, %v2896_v28 }
 0x182   : > { %v1802_v4 = vadd.f32 %v1801_v20, %v1800_v22  ;;  %v1576_v14 = vpop.f32.mrf.mxu3 }
 0x183   : > { %v1613_v57 = vadd.f32 %v1576_v14, %v1513_v46  ;;  %v1660_v49 = vpop.f32.mrf.mxu0 }
 0x185   : > { %v1697_v21 = vadd.f32 %v1660_v49, %v1613_v57 }
 0x187   : > { %v1713_v1 = vpack.c.bf16 %v1697_v21, %v1697_v21  ;;  %v1748_v59 = vsel %vm1744_vm12, %v1697_v21, 0.0  ;;  %v1786_v35 = vmul.f32 %v1697_v21, %v1697_v21  ;;  %v1481_v19 = vpop.f32.mrf.mxu2 }
 0x188   : > { %v1749_v47 = vadd.f32 %v1748_v59, %v1747_v23  ;;  %v1408_v10 = vpop.f32.mrf.mxu1  ;;  %v1515_v63 = vadd.f32 %v1481_v19, %v1437_v61 }
 0x189   : > { %1730 = vst.msk [vmem:[%s3001_s11 + $0x8] sm:$0xf] %vm1727_vm11, %v1713_v1  ;;  %v1803_v55 = vsel %vm1744_vm12, %v1786_v35, 0.0  ;;  %v1439_v28 = vadd.f32 %v1408_v10, %v2903_v6 }
 0x18a   : > { %v1804_v29 = vadd.f32 %v1803_v55, %v1802_v4  ;;  %v1578_v24 = vpop.f32.mrf.mxu3 }
 0x18b   : > { %v1614_v8 = vadd.f32 %v1578_v24, %v1514_v26  ;;  %v1662_v39 = vpop.f32.mrf.mxu0 }
 0x18d   : > { %v1698_v37 = vadd.f32 %v1662_v39, %v1614_v8 }
 0x18f   : > { %v1714_v60 = vpack.c.bf16 %v1698_v37, %v1698_v37  ;;  %v1750_v40 = vsel %vm1744_vm12, %v1698_v37, 0.0  ;;  %v1787_v3 = vmul.f32 %v1698_v37, %v1698_v37  ;;  %v1483_v33 = vpop.f32.mrf.mxu2 }
 0x190   : > { %v1751_v34 = vadd.f32 %v1750_v40, %v1749_v47  ;;  %v1410_v7 = vpop.f32.mrf.mxu1  ;;  %v1516_v54 = vadd.f32 %v1483_v33, %v1438_v25 }
 0x191   : > { %1731 = vst.msk [vmem:[%s3001_s11 + $0xc] sm:$0xf] %vm1727_vm11, %v1714_v60  ;;  %v1805_v62 = vsel %vm1744_vm12, %v1787_v3, 0.0  ;;  %v1440_v1 = vadd.f32 %v1410_v7, %v2917_v58 }
 0x192   : > { %v1806_v53 = vadd.f32 %v1805_v62, %v1804_v29  ;;  %v1581_v31 = vpop.f32.mrf.mxu3 }
 0x193   : > { %v1615_v9 = vadd.f32 %v1581_v31, %v1515_v63  ;;  %v1665_v48 = vpop.f32.mrf.mxu0 }
 0x195   : > { %v1699_v2 = vadd.f32 %v1665_v48, %v1615_v9 }
 0x197   : > { %v1715_v12 = vpack.c.bf16 %v1699_v2, %v1699_v2  ;;  %v1752_v18 = vsel %vm1744_vm12, %v1699_v2, 0.0  ;;  %v1788_v32 = vmul.f32 %v1699_v2, %v1699_v2  ;;  %v1486_v0 = vpop.f32.mrf.mxu2 }
 0x198   : > { %v1753_v15 = vadd.f32 %v1752_v18, %v1751_v34  ;;  %v1413_v13 = vpop.f32.mrf.mxu1  ;;  %v1517_v22 = vadd.f32 %v1486_v0, %v1439_v28 }
 0x199   : > { %1732 = vst.msk [vmem:[%s3001_s11 + $0x10] sm:$0xf] %vm1727_vm11, %v1715_v12  ;;  %v1807_v38 = vsel %vm1744_vm12, %v1788_v32, 0.0  ;;  %v1441_v58 = vadd.f32 %v1413_v13, %v2924_v27 }
 0x19a   : > { %v1808_v44 = vadd.f32 %v1807_v38, %v1806_v53  ;;  %v1583_v41 = vpop.f32.mrf.mxu3 }
 0x19b   : > { %v1616_v42 = vadd.f32 %v1583_v41, %v1516_v54  ;;  %v1667_v5 = vpop.f32.mrf.mxu0 }
 0x19d   : > { %v1700_v52 = vadd.f32 %v1667_v5, %v1616_v42 }
 0x19f   : > { %v1716_v46 = vpack.c.bf16 %v1700_v52, %v1700_v52  ;;  %v1754_v23 = vsel %vm1744_vm12, %v1700_v52, 0.0  ;;  %v1789_v43 = vmul.f32 %v1700_v52, %v1700_v52  ;;  %v1488_v17 = vpop.f32.mrf.mxu2 }
 0x1a0   : > { %v1755_v20 = vadd.f32 %v1754_v23, %v1753_v15  ;;  %v1415_v6 = vpop.f32.mrf.mxu1  ;;  %v1518_v47 = vadd.f32 %v1488_v17, %v1440_v1 }
 0x1a1   : > { %1733 = vst.msk [vmem:[%s3001_s11 + $0x14] sm:$0xf] %vm1727_vm11, %v1716_v46  ;;  %v1809_v4 = vsel %vm1744_vm12, %v1789_v43, 0.0  ;;  %v1442_v27 = vadd.f32 %v1415_v6, %v2934_v50 }
 0x1a2   : > { %v1810_v14 = vadd.f32 %v1809_v4, %v1808_v44  ;;  %v1586_v57 = vpop.f32.mrf.mxu3 }
 0x1a3   : > { %v1617_v49 = vadd.f32 %v1586_v57, %v1517_v22  ;;  %v1670_v21 = vpop.f32.mrf.mxu0 }
 0x1a5   : > { %v1701_v16 = vadd.f32 %v1670_v21, %v1617_v49 }
 0x1a7   : > { %v1717_v59 = vpack.c.bf16 %v1701_v16, %v1701_v16  ;;  %v1756_v35 = vsel %vm1744_vm12, %v1701_v16, 0.0  ;;  %v1790_v26 = vmul.f32 %v1701_v16, %v1701_v16  ;;  %v1491_v55 = vpop.f32.mrf.mxu2 }
 0x1a8   : > { %v1757_v19 = vadd.f32 %v1756_v35, %v1755_v20  ;;  %v1519_v3 = vadd.f32 %v1491_v55, %v1441_v58  ;;  %v1418_v33 = vpop.f32.mrf.mxu1 }
 0x1a9   : > { %1734 = vst.msk [vmem:[%s3001_s11 + $0x18] sm:$0xf] %vm1727_vm11, %v1717_v59  ;;  %v1811_v10 = vsel %vm1744_vm12, %v1790_v26, 0.0  ;;  %v1443_v50 = vadd.f32 %v1418_v33, %v2956_v45 }
 0x1aa   : > { %v1812_v29 = vadd.f32 %v1811_v10, %v1810_v14  ;;  %v1588_v24 = vpop.f32.mrf.mxu3 }
 0x1ab   : > { %v1618_v8 = vadd.f32 %v1588_v24, %v1518_v47  ;;  %v1672_v39 = vpop.f32.mrf.mxu0 }
 0x1ad   : > { %v1702_v37 = vadd.f32 %v1672_v39, %v1618_v8 }
 0x1af   : > { %v1718_v61 = vpack.c.bf16 %v1702_v37, %v1702_v37  ;;  %v1758_v60 = vsel %vm1744_vm12, %v1702_v37, 0.0  ;;  %v1791_v40 = vmul.f32 %v1702_v37, %v1702_v37  ;;  %v1493_v34 = vpop.f32.mrf.mxu2 }
 0x1b0   : > { %v1759_v63 = vadd.f32 %v1758_v60, %v1757_v19  ;;  %v1520_v18 = vadd.f32 %v1493_v34, %v1442_v27  ;;  %v1420_v44 = vpop.f32.mrf.mxu1 }
 0x1b1   : > { %1735 = vst.msk [vmem:[%s3001_s11 + $0x1c] sm:$0xf] %vm1727_vm11, %v1718_v61  ;;  %v1813_v62 = vsel %vm1744_vm12, %v1791_v40, 0.0  ;;  %v1444_v45 = vadd.f32 %v1420_v44, %v2964_v56 }
 0x1b2   : > { %v1814_v53 = vadd.f32 %v1813_v62, %v1812_v29  ;;  %v1591_v31 = vpop.f32.mrf.mxu3 }
 0x1b3   : > { %v1619_v7 = vadd.f32 %v1591_v31, %v1519_v3  ;;  %v1675_v9 = vpop.f32.mrf.mxu0 }
 0x1b5   : > { %v1703_v48 = vadd.f32 %v1675_v9, %v1619_v7 }
 0x1b7   : > { %v1719_v2 = vpack.c.bf16 %v1703_v48, %v1703_v48  ;;  %v1760_v25 = vsel %vm1744_vm12, %v1703_v48, 0.0  ;;  %v1792_v12 = vmul.f32 %v1703_v48, %v1703_v48  ;;  %v1496_v54 = vpop.f32.mrf.mxu2 }
 0x1b8   : > { %v1761_v32 = vadd.f32 %v1760_v25, %v1759_v63  ;;  %v1521_v46 = vadd.f32 %v1496_v54, %v1443_v50  ;;  %v1423_v57 = vpop.f32.mrf.mxu1 }
 0x1b9   : > { %1736 = vst.msk [vmem:[%s3001_s11 + $0x20] sm:$0xf] %vm1727_vm11, %v1719_v2  ;;  %v1815_v15 = vsel %vm1744_vm12, %v1792_v12, 0.0  ;;  %v1445_v24 = vadd.f32 %v1423_v57, %v2975_v30 }
 0x1ba   : > { %v1816_v0 = vadd.f32 %v1815_v15, %v1814_v53  ;;  %v1593_v38 = vpop.f32.mrf.mxu3 }
 0x1bb   : > { %v1620_v41 = vadd.f32 %v1593_v38, %v1520_v18  ;;  %v1677_v42 = vpop.f32.mrf.mxu0 }
 0x1bd   : > { %v1704_v5 = vadd.f32 %v1677_v42, %v1620_v41 }
 0x1bf   : > { %v1720_v13 = vpack.c.bf16 %v1704_v5, %v1704_v5  ;;  %v1762_v52 = vsel %vm1744_vm12, %v1704_v5, 0.0  ;;  %v1793_v28 = vmul.f32 %v1704_v5, %v1704_v5  ;;  %v1498_v43 = vpop.f32.mrf.mxu2 }
 0x1c0   : > { %v1763_v23 = vadd.f32 %v1762_v52, %v1761_v32  ;;  %v1522_v6 = vadd.f32 %v1498_v43, %v1444_v45  ;;  %v1425_v56 = vpop.f32.mrf.mxu1 }
 0x1c1   : > { %1737 = vst.msk [vmem:[%s3001_s11 + $0x24] sm:$0xf] %vm1727_vm11, %v1720_v13  ;;  %v1817_v22 = vsel %vm1744_vm12, %v1793_v28, 0.0  ;;  %v1446_v30 = vadd.f32 %v1425_v56, %v2984_v11 }
 0x1c2   : > { %v1818_v20 = vadd.f32 %v1817_v22, %v1816_v0  ;;  %v1596_v17 = vpop.f32.mrf.mxu3 }
 0x1c3   : > { %v1621_v4 = vadd.f32 %v1596_v17, %v1521_v46  ;;  %v1680_v14 = vpop.f32.mrf.mxu0 }
 0x1c5   : > { %v1705_v49 = vadd.f32 %v1680_v14, %v1621_v4 }
 0x1c7   : > { %v1721_v21 = vpack.c.bf16 %v1705_v49, %v1705_v49  ;;  %v1764_v16 = vsel %vm1744_vm12, %v1705_v49, 0.0  ;;  %v1794_v1 = vmul.f32 %v1705_v49, %v1705_v49  ;;  %v1501_v35 = vpop.f32.mrf.mxu2 }
 0x1c8   : > { %v1765_v59 = vadd.f32 %v1764_v16, %v1763_v23  ;;  %v1523_v58 = vadd.f32 %v1501_v35, %v1445_v24  ;;  %v1428_v27 = vpop.f32.mrf.mxu1 }
 0x1c9   : > { %1738 = vst.msk [vmem:[%s3001_s11 + $0x28] sm:$0xf] %vm1727_vm11, %v1721_v21  ;;  %v1819_v26 = vsel %vm1744_vm12, %v1794_v1, 0.0  ;;  %v1447_v11 = vadd.f32 %v1428_v27, %v2989_v36 }
 0x1ca   : > { %v1820_v47 = vadd.f32 %v1819_v26, %v1818_v20  ;;  %v1598_v19 = vpop.f32.mrf.mxu3 }
 0x1cb   : > { %v1622_v55 = vadd.f32 %v1598_v19, %v1522_v6  ;;  %v1682_v10 = vpop.f32.mrf.mxu0 }
 0x1cd   : > { %v1706_v29 = vadd.f32 %v1682_v10, %v1622_v55 }
 0x1cf   : > { %v1722_v8 = vpack.c.bf16 %v1706_v29, %v1706_v29  ;;  %v1766_v39 = vsel %vm1744_vm12, %v1706_v29, 0.0  ;;  %v1795_v37 = vmul.f32 %v1706_v29, %v1706_v29  ;;  %v1503_v60 = vpop.f32.mrf.mxu2 }
 0x1d0   : > { %v1767_v61 = vadd.f32 %v1766_v39, %v1765_v59  ;;  %v1524_v9 = vadd.f32 %v1503_v60, %v1446_v30  ;;  %v1430_v52 = vpop.f32.mrf.mxu1 }
 0x1d1   : > { %1739 = vst.msk [vmem:[%s3001_s11 + $0x2c] sm:$0xf] %vm1727_vm11, %v1722_v8  ;;  %v1821_v40 = vsel %vm1744_vm12, %v1795_v37, 0.0  ;;  %v1448_v36 = vadd.f32 %v1430_v52, %v2995_v51 }
 0x1d2   : > { %v1822_v3 = vadd.f32 %v1821_v40, %v1820_v47  ;;  %v1601_v63 = vpop.f32.mrf.mxu3 }
 0x1d3   : > { %v1623_v34 = vadd.f32 %v1601_v63, %v1523_v58  ;;  %v1685_v33 = vpop.f32.mrf.mxu0 }
 0x1d5   : > { %v1707_v62 = vadd.f32 %v1685_v33, %v1623_v34 }
 0x1d7   : > { %v1723_v53 = vpack.c.bf16 %v1707_v62, %v1707_v62  ;;  %v1768_v31 = vsel %vm1744_vm12, %v1707_v62, 0.0  ;;  %v1796_v7 = vmul.f32 %v1707_v62, %v1707_v62  ;;  %v1506_v18 = vpop.f32.mrf.mxu2 }
 0x1d8   : > { %v1769_v48 = vadd.f32 %v1768_v31, %v1767_v61  ;;  %v1525_v41 = vadd.f32 %v1506_v18, %v1447_v11 }
 0x1d9   : > { %1740 = vst.msk [vmem:[%s3001_s11 + $0x30] sm:$0xf] %vm1727_vm11, %v1723_v53  ;;  %v1823_v2 = vsel %vm1744_vm12, %v1796_v7, 0.0 }
 0x1da   : > { %v1824_v25 = vadd.f32 %v1823_v2, %v1822_v3  ;;  %v1603_v12 = vpop.f32.mrf.mxu3 }
 0x1db   : > { %v1624_v32 = vadd.f32 %v1603_v12, %v1524_v9  ;;  %v1687_v54 = vpop.f32.mrf.mxu0 }
 0x1dd   : > { %v1708_v15 = vadd.f32 %v1687_v54, %v1624_v32 }
 0x1df   : > { %v1724_v0 = vpack.c.bf16 %v1708_v15, %v1708_v15  ;;  %v1770_v38 = vsel %vm1744_vm12, %v1708_v15, 0.0  ;;  %v1797_v44 = vmul.f32 %v1708_v15, %v1708_v15  ;;  %v1508_v23 = vpop.f32.mrf.mxu2 }
 0x1e0   : > { %v1771_v42 = vadd.f32 %v1770_v38, %v1769_v48  ;;  %v1526_v4 = vadd.f32 %v1508_v23, %v1448_v36 }
 0x1e1   : > { %1741 = vst.msk [vmem:[%s3001_s11 + $0x34] sm:$0xf] %vm1727_vm11, %v1724_v0  ;;  %v1825_v5 = vsel %vm1744_vm12, %v1797_v44, 0.0 }
 0x1e2   : > { %v1826_v50 = vadd.f32 %v1825_v5, %v1824_v25  ;;  %v1606_v13 = vpop.f32.mrf.mxu3 }
 0x1e3   : > { %v1625_v28 = vadd.f32 %v1606_v13, %v1525_v41  ;;  %v1690_v46 = vpop.f32.mrf.mxu0 }
 0x1e5   : > { %v1709_v43 = vadd.f32 %v1690_v46, %v1625_v28 }
 0x1e7   : > { %v1725_v22 = vpack.c.bf16 %v1709_v43, %v1709_v43  ;;  %v1772_v20 = vsel %vm1744_vm12, %v1709_v43, 0.0  ;;  %v1798_v17 = vmul.f32 %v1709_v43, %v1709_v43 }
 0x1e8   : > { %v1773_v14 = vadd.f32 %v1772_v20, %v1771_v42 }
 0x1e9   : > { %1742 = vst.msk [vmem:[%s3001_s11 + $0x38] sm:$0xf] %vm1727_vm11, %v1725_v22  ;;  %v1827_v57 = vsel %vm1744_vm12, %v1798_v17, 0.0 }
 0x1ea   : > { %v1828_v49 = vadd.f32 %v1827_v57, %v1826_v50  ;;  %v1608_v45 = vpop.f32.mrf.mxu3 }
 0x1eb   : > { %v1626_v21 = vadd.f32 %v1608_v45, %v1526_v4  ;;  %v1692_v16 = vpop.f32.mrf.mxu0 }
 0x1ed   : > { %v1710_v1 = vadd.f32 %v1692_v16, %v1626_v21 }
 0x1ef   : > { %v1726_v6 = vpack.c.bf16 %v1710_v1, %v1710_v1  ;;  %v1774_v51 = vsel %vm1744_vm12, %v1710_v1, 0.0  ;;  %v1799_v59 = vmul.f32 %v1710_v1, %v1710_v1 }
 0x1f0   : > { %v1775_v35 = vadd.f32 %v1774_v51, %v1773_v14 }
 0x1f1   : > { %1743 = vst.msk [vmem:[%s3001_s11 + $0x3c] sm:$0xf] %vm1727_vm11, %v1726_v6  ;;  %v1829_v26 = vsel %vm1744_vm12, %v1799_v59, 0.0 }
 0x1f2   : > { %v1776_v47 = vrot.slane %v1775_v35, 4  ;;  %v1830_v19 = vadd.f32 %v1829_v26, %v1828_v49 }
 0x1f4   : > { %v1777_v55 = vadd.f32 %v1776_v47, %v1775_v35  ;;  %v1831_v10 = vrot.slane %v1830_v19, 4 }
 0x1f6   : > { %v1778_v29 = vrot.slane %v1777_v55, 2  ;;  %v1832_v24 = vadd.f32 %v1831_v10, %v1830_v19 }
 0x1f8   : > { %v1779_v56 = vadd.f32 %v1778_v29, %v1777_v55  ;;  %v1833_v8 = vrot.slane %v1832_v24, 2 }
 0x1fa   : > { %v1780_v39 = vrot.slane %v1779_v56, 1  ;;  %v1834_v37 = vadd.f32 %v1833_v8, %v1832_v24 }
 0x1fc   : > { %v1781_v58 = vadd.f32 %v1780_v39, %v1779_v56  ;;  %v1835_v61 = vrot.slane %v1834_v37, 1 }
 0x1fe   : > { %1783 = vst.msk [vmem:[%s304_s21] sm:$0x1] %vm1782_vm13, %v1781_v58  ;;  %v1836_v60 = vadd.f32 %v1835_v61, %v1834_v37 }
 0x200   : > { %1837 = vst.msk [vmem:[%s311_s16] sm:$0x1] %vm1782_vm13, %v1836_v60 }
 0x201 PF: > { %s17_s25 = sadd.s32 1, %s2264_s25   ;;  %s3117_s21 = smov %s2256_s23 }
 0x202   : > { %p14_p0 = scmp.ge.s32.totalorder %s17_s25, 6   ;;  %s3118_s22 = smov %s2260_s24 }
 0x203   : > { %s3119_s23 = smov %s3122_s26  ;;  %s3120_s24 = smov %s3126_s27 }
 0x204   :  { %16 = sbr.rel (!%p14_p0) target bundleno = 3 (0x3), region = 101 }

// kernel: inception_block.6
= control target key start
LH: loop header
LB: loop body
LE: loop exit
PB: predicated region body
PF: predicated region fallthrough
CT: control target
= control target key end

     0   :  { %s4204_s21 = smov 0   ;;  %s4206_s22 = smov 0   ;;  %s6060_s0 = inlined_call_operand.vmem [shape: bf16[2,16,16,4], index: 0, kind: input, shape index: {}]   ;;  %s6061_s1 = inlined_call_operand.vmem [shape: f32[1,4], index: 1, kind: input, shape index: {}]   ;;  %s6062_s2 = inlined_call_operand.vmem [shape: f32[1,4], index: 2, kind: input, shape index: {}]   ;;  %s6063_s3 = inlined_call_operand.vmem [shape: bf16[25,4,8], index: 3, kind: input, shape index: {}]   ;;  %s6064_s4 = inlined_call_operand.vmem [shape: bf16[2,16,16,8], index: 4, kind: output, shape index: {0}]   ;;  %s6065_s5 = inlined_call_operand.vmem [shape: f32[4,1,8], index: 5, kind: output, shape index: {1}]   ;;  %s6066_s6 = inlined_call_operand.vmem [shape: f32[4,1,8], index: 6, kind: output, shape index: {2}]  }
   0x1   :  { %s4208_s23 = smov 0   ;;  %s4210_s24 = smov 0  }
   0x2   :  { %s4212_s25 = smov 0  }
   0x3 LB: > { %s26_s26 = sadd.s32 1, %s4159_s23  ;;  %s29_s27 = sadd.s32 1, %s4163_s24  ;;  %s4167_s25 = sphi %s4212_s25, %s17_s25   ;;  %s4163_s24 = sphi %s4210_s24, %s6294_s24   ;;  %s4159_s23 = sphi %s4208_s23, %s6293_s23   ;;  %s4155_s22 = sphi %s4206_s22, %s6292_s22   ;;  %s4151_s21 = sphi %s4204_s21, %s6291_s21  }
   0x4   : > { %p27_p0 = scmp.ge.s32.totalorder %s26_s26, 2  ;;  %p3719_p1 = scmp.ge.s32.totalorder %s4167_s25, 1 }
   0x5   : > { %p239_p2 = scmp.lt.s32.totalorder %s4167_s25, 5 }
   0x6   : > { %s6296_s26 = smov (%p27_p0, %s26_s26), 0  ;;  %s6298_s27 = smov (!%p27_p0, %s29_s27), %s4163_s24 }
   0x7   : > { %p240_p3 = pnand %p3719_p1, %p239_p2  ;;  %p31_p4 = scmp.ge.s32.totalorder %s6298_s27, 2 }
   0x9   : > { %s6300_s27 = smov (%p31_p4, %s6298_s27), 0  ;;  %243 = sbr.rel (%p240_p3) target bundleno = 1028 (0x404), region = 36 }
   0xe   : > { %vm527_vm0 = vcmask 1041408   ;;  %v3760_v0 = vld [vmem:[%s6063_s3 + $0x2] sm:$0x3]  ;;  %p284_p5 = scmp.lt.s32.totalorder %s4155_s22, 1  ;;  %s4253_s11 = sshll.u32 %s4151_s21, 3  ;;  %vm882_vm3 = vcmask 31744  }
   0xf   : > { %v908_v1 = vsel %vm527_vm0, %v3760_v0, 0  ;;  %s4018_s12 = sshll.u32 %s4151_s21, 6  ;;  %v4259_v2 = vld [vmem:[%s6061_s1] ss:$0 sm:$0xff]  ;;  %s3729_s16 = sadd.s32 4294967294, %s4253_s11  ;;  %vm1083_vm7 = vcmask 1042432  }
  0x10   : > { %4080 = vmatpush.bf16.msra.mxu1 %v908_v1  ;;  %4081 = vmatpush.bf16.msra.mxu2 %v908_v1  ;;  %s4244_s30 = scalar_select %p284_p5, %s4155_s22, 1  ;;  %v4271_v6 = vld [vmem:[%s6062_s2] ss:$0 sm:$0xff]  ;;  %v3785_v26 = vld [vmem:[%s6063_s3 + $0x4] sm:$0x3]  ;;  %vm1084_vm8 = vcmask 1046532  }
  0x11   : > { %4082 = vmatpush.bf16.msra.mxu3 %v908_v1  ;;  %917 = vmatpush.bf16.msra.mxu0 %v908_v1  ;;  %p317_p6 = scmp.gt.s32.totalorder %s3729_s16, 0  ;;  %p3730_p7 = scmp.lt.s32.totalorder %s3729_s16, 15  ;;  %v3794_v27 = vld [vmem:[%s6063_s3 + $0x6] sm:$0x3]  ;;  %vm661_vm1 = vsmask.f32 3328  ;;  %vm4612_vm9 = vmor %vm1083_vm7, %vm1084_vm8 }
  0x12   : > { %s4010_s7 = sshll.u32 %s4244_s30, 7  ;;  %p326_p8 = scmp.ge.s32.totalorder %s3729_s16, 0  ;;  %vm662_vm2 = vsmask.f32 7440  ;;  %v1193_v36 = vsel %vm527_vm0, %v3785_v26, 0  ;;  %v1434_v37 = vsel %vm527_vm0, %v3794_v27, 0 }
  0x13   : > { %s4250_s10 = scalar_lea.vmem %s6060_s0, %s4010_s7  ;;  %vm4351_vm4 = vmor %vm661_vm1, %vm662_vm2  ;;  %vm1260_vm10 = vsmask.f32 2304  ;;  %vm1261_vm11 = vsmask.f32 6416  ;;  %vm1502_vm13 = vcmask 1045508   ;;  %s5694_s18 = sadd.s32 9, %s4253_s11 }
  0x14   : > { %s4262_s15 = scalar_lea.vmem %s4250_s10, %s4018_s12  ;;  %1202 = vmatpush.bf16.msrb.mxu2 %v1193_v36  ;;  %vm4663_vm12 = vmor %vm1260_vm10, %vm1261_vm11  ;;  %p480_p1 = scmp.gt.s32.totalorder %s5694_s18, 0  ;;  %vm3455_vm2 = vcmask 64512  }
  0x15   : > { %v4034_v3 = vld [vmem:[%s4262_s15] sm:$0xff]   ;;  %v4074_v4 = vld [vmem:[%s4262_s15 + $0x10] sm:$0xff]   ;;  %s318_s19 = scalar_select %p317_p6, %s3729_s16, 0  ;;  %v4282_v19 = vld [vmem:[%s4262_s15 + $0x8] sm:$0xff]   ;;  %1443 = vmatpush.bf16.msrb.mxu3 %v1434_v37 }
  0x16   : > { %v4076_v5 = vld [vmem:[%s4262_s15 + $0x20] sm:$0xff]   ;;  %v4035_v7 = vunpack.c.l.bf16 %v4034_v3  ;;  %v4036_v8 = vunpack.c.h.bf16 %v4034_v3  ;;  %v4043_v9 = vunpack.c.l.bf16 %v4074_v4  ;;  %v4044_v10 = vunpack.c.h.bf16 %v4074_v4  ;;  %s4279_s20 = scalar_select %p326_p8, 1, 0  ;;  %vm4690_vm14 = vmor %vm527_vm0, %vm1502_vm13 }
  0x17   : > { %v4051_v11 = vunpack.c.l.bf16 %v4076_v5  ;;  %v4052_v12 = vunpack.c.h.bf16 %v4076_v5  ;;  %s6302_s19 = smov (!%p3730_p7, %s318_s19), 15  ;;  %v4039_v29 = vunpack.c.l.bf16 %v4282_v19  ;;  %s4389_s16 = sadd.s32 4294967295, %s4253_s11 }
  0x18   : > { %v407_v13 = vmul.f32 %v4259_v2, %v4035_v7  ;;  %v408_v14 = vmul.f32 %v4259_v2, %v4036_v8  ;;  %v411_v15 = vmul.f32 %v4259_v2, %v4043_v9  ;;  %v412_v16 = vmul.f32 %v4259_v2, %v4044_v10  ;;  %s4013_s9 = sshll.u32 %s6302_s19, 3  ;;  %p349_p9 = scmp.gt.s32.totalorder %s4389_s16, 0 }
  0x19   : > { %v415_v17 = vmul.f32 %v4259_v2, %v4051_v11  ;;  %v416_v18 = vmul.f32 %v4259_v2, %v4052_v12  ;;  %v344_v28 = vstv %s4279_s20  ;;  %s323_s12 = scalar_lea.vmem %s4250_s10, %s4013_s9  ;;  %p3737_p10 = scmp.lt.s32.totalorder %s4389_s16, 15 }
  0x1a   : > { %v423_v20 = vadd.f32 %v4271_v6, %v407_v13  ;;  %v424_v21 = vadd.f32 %v4271_v6, %v408_v14  ;;  %v427_v22 = vadd.f32 %v4271_v6, %v411_v15  ;;  %v428_v23 = vadd.f32 %v4271_v6, %v412_v16  ;;  %v4302_v42 = vld [vmem:[%s323_s12] sm:$0xff]   ;;  %s350_s19 = scalar_select %p349_p9, %s4389_s16, 0 }
  0x1b   : > { %v431_v24 = vadd.f32 %v4271_v6, %v415_v17  ;;  %v432_v25 = vadd.f32 %v4271_v6, %v416_v18  ;;  %v4027_v45 = vunpack.c.l.bf16 %v4302_v42  ;;  %v4028_v46 = vunpack.c.h.bf16 %v4302_v42  ;;  %p358_p11 = scmp.ge.s32.totalorder %s4389_s16, 0  ;;  %p3753_p2 = scmp.lt.s32.totalorder %s5694_s18, 15 }
  0x1c   : > { %v439_v30 = vmax.f32 %v423_v20, 0.0  ;;  %v440_v31 = vmax.f32 %v424_v21, 0.0  ;;  %v443_v32 = vmax.f32 %v427_v22, 0.0  ;;  %v444_v33 = vmax.f32 %v428_v23, 0.0  ;;  %s6304_s19 = smov (!%p3737_p10, %s350_s19), 15  ;;  %p489_p3 = scmp.lt.s32.totalorder %s5694_s18, 16 }
  0x1d   : > { %v447_v34 = vmax.f32 %v431_v24, 0.0  ;;  %v448_v35 = vmax.f32 %v432_v25, 0.0  ;;  %v6168_v17 = vmov 0  ;;  %v333_v36 = vmul.f32 %v4259_v2, %v4027_v45  ;;  %s4016_s20 = sshll.u32 %s6304_s19, 3  ;;  %s5478_s19 = sadd.s32 8, %s4253_s11 }
  0x1e   : > { %v534_v38 = vrot.slane %v439_v30, 6  ;;  %v535_v39 = vrot.slane %v440_v31, 6  ;;  %v540_v40 = vrot.slane %v443_v32, 6  ;;  %v541_v41 = vrot.slane %v444_v33, 6  ;;  %s355_s28 = scalar_lea.vmem %s4250_s10, %s4016_s20  ;;  %p456_p12 = scmp.gt.s32.totalorder %s5478_s19, 0 }
  0x1f   : > { %v546_v43 = vrot.slane %v447_v34, 6  ;;  %v547_v44 = vrot.slane %v448_v35, 6  ;;  %v6169_v17 = vsel %vm4351_vm4, 4294967295, %v6168_v17  ;;  %vm4413_vm5 = vcmp.eq.s32.totalorder %v344_v28, 1  ;;  %s367_s29 = scalar_select %p358_p11, 1, 0 }
  0x20   : > { %v536_v47 = vsel %vm527_vm0, %v534_v38, %v535_v39  ;;  %v602_v48 = vsel %vm527_vm0, 0.0, %v534_v38  ;;  %v614_v49 = vsel %vm527_vm0, %v535_v39, 0.0  ;;  %v542_v50 = vsel %vm527_vm0, %v540_v40, %v541_v41  ;;  %6170 = vst [vmem:[#allocation2_spill] sm:$0xff] %v6169_v17  ;;  %s457_s20 = scalar_select %p456_p12, %s5478_s19, 0 }
  0x21   : > { %v4310_v51 = vpack.c.bf16 %v602_v48, %v602_v48  ;;  %v4312_v52 = vpack.c.bf16 %v536_v47, %v536_v47  ;;  %v4314_v53 = vpack.c.bf16 %v614_v49, %v614_v49  ;;  %v604_v54 = vsel %vm527_vm0, 0.0, %v540_v40  ;;  %p3746_p13 = scmp.lt.s32.totalorder %s5478_s19, 15  ;;  %p465_p0 = scmp.lt.s32.totalorder %s5478_s19, 16 }
  0x22   : > { %v616_v55 = vsel %vm527_vm0, %v541_v41, 0.0  ;;  %v4318_v56 = vpack.c.bf16 %v604_v54, %v604_v54  ;;  %v4320_v57 = vpack.c.bf16 %v542_v50, %v542_v50  ;;  %v548_v58 = vsel %vm527_vm0, %v546_v43, %v547_v44  ;;  %v660_v54 = vld [vmem:[%s6063_s3] sm:$0x3]  ;;  %s481_s19 = scalar_select %p480_p1, %s5694_s18, 0 }
  0x23   : > { %v713_v59 = vshrl.u32 %v4310_v51, 16  ;;  %v716_v60 = vshll.u32 %v4310_v51, 16  ;;  %v6093_v61 = vshll.u32 %v4312_v52, 16  ;;  %v726_v62 = vshrl.u32 %v4312_v52, 16  ;;  %s6306_s20 = smov (!%p3746_p13, %s457_s20), 15  ;;  %p292_p4 = scmp.lt.s32.totalorder %s4253_s11, 15 }
  0x24   : > { %v6092_v63 = vshll.u32 %v4314_v53, 16  ;;  %v4328_v0 = vpack.c.bf16 %v616_v55, %v616_v55  ;;  %v6086_v1 = vshrl.u32 %v4318_v56, 16  ;;  %v6085_v3 = vshll.u32 %v4318_v56, 16  ;;  %s474_s7 = scalar_select %p465_p0, 1, 0 }
  0x25   : > { %v715_v4 = vrot.slane %v713_v59, 4  ;;  %v718_v5 = vrot.slane %v716_v60, 5  ;;  %v724_v7 = vrot.slane %v6093_v61, 5  ;;  %v728_v8 = vrot.slane %v726_v62, 4  ;;  %s6308_s19 = smov (!%p3753_p2, %s481_s19), 15  ;;  %s6310_s11 = smov (!%p292_p4, %s4253_s11), 15 }
  0x26   : > { %v734_v9 = vrot.slane %v6092_v63, 5  ;;  %v763_v10 = vrot.slane %v6086_v1, 4  ;;  %v766_v11 = vrot.slane %v6085_v3, 5  ;;  %v6073_v12 = vshll.u32 %v4320_v57, 16  ;;  %s3723_s9 = sshll.u32 %s6310_s11, 1  ;;  %s3724_s12 = sshll.u32 %s4244_s30, 5 }
  0x27   : > { %v719_v13 = vor.u32 %v718_v5, %v715_v4  ;;  %v729_v14 = vor.u32 %v728_v8, %v724_v7  ;;  %v6084_v15 = vshrl.u32 %v4320_v57, 16  ;;  %v6072_v16 = vshll.u32 %v4328_v0, 16  ;;  %s296_s13 = sadd.s32 %s3724_s12, %s3723_s9  ;;  %s3726_s30 = sshll.u32 %s4155_s22, 1 }
  0x28   : > { %v767_v18 = vor.u32 %v766_v11, %v763_v10  ;;  %v772_v20 = vrot.slane %v6073_v12, 5  ;;  %v606_v21 = vsel %vm527_vm0, 0.0, %v546_v43  ;;  %v618_v22 = vsel %vm527_vm0, %v547_v44, 0.0  ;;  %s3725_s14 = sshll.u32 %s296_s13, 2  ;;  %s301_s18 = sadd.s32 %s4151_s21, %s3726_s30 }
  0x29   : > { %v720_v23 = vrot.slane %v719_v13, 4  ;;  %v730_v24 = vrot.slane %v729_v14, 4  ;;  %v776_v25 = vrot.slane %v6084_v15, 4  ;;  %v782_v26 = vrot.slane %v6072_v16, 5  ;;  %s5957_s11 = scalar_lea.vmem %s6064_s4, %s3725_s14  ;;  %p302_p5 = scmp.lt.s32.totalorder %s301_s18, 3 }
  0x2a   : > { %v768_v27 = vrot.slane %v767_v18, 4  ;;  %v4363_v30 = vpack.c.bf16 %v606_v21, %v606_v21  ;;  %v4365_v31 = vpack.c.bf16 %v548_v58, %v548_v58  ;;  %v4367_v32 = vpack.c.bf16 %v618_v22, %v618_v22  ;;  %v4075_v18 = vld [vmem:[%s4262_s15 + $0x18] sm:$0xff]  }
  0x2b   : > { %v725_v33 = vsel %vm4351_vm4, %v720_v23, %v724_v7  ;;  %v735_v34 = vsel %vm4351_vm4, %v730_v24, %v734_v9  ;;  %v777_v35 = vor.u32 %v776_v25, %v772_v20  ;;  %v334_v5 = vmul.f32 %v4259_v2, %v4028_v46  ;;  %v3811_v7 = vld [vmem:[%s6063_s3 + $0x8] sm:$0x3]  ;;  %s6312_s18 = smov (!%p302_p5, %s301_s18), 3 }
  0x2c   : > { %v862_v37 = vunpack.c.l.b16 %v725_v33  ;;  %v863_v38 = vunpack.c.l.b16 %v735_v34  ;;  %v773_v39 = vsel %vm4351_vm4, %v768_v27, %v772_v20  ;;  %v6071_v40 = vshrl.u32 %v4363_v30, 16  ;;  %s304_s21 = scalar_lea.vmem %s6065_s5, %s6312_s18 }
  0x2d   : > { %v778_v41 = vrot.slane %v777_v35, 4  ;;  %v866_v43 = vunpack.c.l.b16 %v773_v39  ;;  %v6070_v44 = vshll.u32 %v4363_v30, 16  ;;  %v6068_v47 = vshll.u32 %v4365_v31, 16 }
  0x2e   : > { %v4379_v48 = vpack.c.b16 %v863_v38, %v862_v37  ;;  %v811_v49 = vrot.slane %v6071_v40, 4  ;;  %v6069_v45 = vshrl.u32 %v4365_v31, 16  ;;  %v6067_v50 = vshll.u32 %v4367_v32, 16 }
  0x2f   : > { %v783_v55 = vsel %vm4351_vm4, %v778_v41, %v782_v26  ;;  %v814_v58 = vrot.slane %v6070_v44, 5  ;;  %v820_v4 = vrot.slane %v6068_v47, 5  ;;  %v339_v11 = vadd.f32 %v4271_v6, %v333_v36 }
  0x30   : > { %3763 = vmatmul.msk.bf16.vlgmr.msra.gmra.mxu1 %vm882_vm3, %v4379_v48  ;;  %v867_v8 = vunpack.c.l.b16 %v783_v55  ;;  %v824_v9 = vrot.slane %v6069_v45, 4  ;;  %v830_v10 = vrot.slane %v6067_v50, 5  ;;  %v340_v42 = vadd.f32 %v4271_v6, %v334_v5 }
  0x31   : > { %v815_v13 = vor.u32 %v814_v58, %v811_v49  ;;  %v1024_v14 = vsel %vm527_vm0, %v660_v54, 0  ;;  %v341_v22 = vmax.f32 %v339_v11, 0.0  ;;  %v1611_v23 = vsel %vm527_vm0, %v3811_v7, 0 }
  0x32   : > { %v4420_v20 = vpack.c.b16 %v867_v8, %v866_v43  ;;  %v825_v21 = vor.u32 %v824_v9, %v820_v4  ;;  %1033 = vmatpush.bf16.msrb.mxu1 %v1024_v14  ;;  %v342_v25 = vmax.f32 %v340_v42, 0.0  ;;  %1620 = vmatpush.bf16.msrb.mxu0 %v1611_v23  ;;  %v4040_v28 = vunpack.c.h.bf16 %v4282_v19 }
  0x33   : > { %v816_v24 = vrot.slane %v815_v13, 4  ;;  %v409_v26 = vmul.f32 %v4259_v2, %v4039_v29  ;;  %v346_v33 = vsel %vm4413_vm5, %v341_v22, 0.0  ;;  %v4047_v34 = vunpack.c.l.bf16 %v4075_v18 }
  0x34   : > { %6173 = vst [vmem:[#allocation3_spill] sm:$0xff] %v4420_v20  ;;  %3765 = vmatmul.msk.bf16.vlgmr.msra.gmra.mxu2 %vm882_vm3, %v4420_v20  ;;  %v826_v27 = vrot.slane %v825_v21, 4  ;;  %v4048_v35 = vunpack.c.h.bf16 %v4075_v18  ;;  %v347_v37 = vsel %vm4413_vm5, %v342_v25, 0.0  ;;  %v528_v38 = vrot.slane %v346_v33, 6 }
  0x35   : > { %v821_v36 = vsel %vm4351_vm4, %v816_v24, %v820_v4  ;;  %v410_v19 = vmul.f32 %v4259_v2, %v4040_v28  ;;  %v529_v41 = vrot.slane %v347_v37, 6  ;;  %v425_v43 = vadd.f32 %v4271_v6, %v409_v26  ;;  %v4077_v37 = vld [vmem:[%s4262_s15 + $0x28] sm:$0xff]  }
  0x36   : > { %v831_v29 = vsel %vm4351_vm4, %v826_v27, %v830_v10  ;;  %v870_v39 = vunpack.c.l.b16 %v821_v36  ;;  %v600_v54 = vsel %vm527_vm0, 0.0, %v528_v38  ;;  %v413_v58 = vmul.f32 %v4259_v2, %v4047_v34 }
  0x37   : > { %v871_v49 = vunpack.c.l.b16 %v831_v29  ;;  %v426_v55 = vadd.f32 %v4271_v6, %v410_v19  ;;  %v530_v4 = vsel %vm527_vm0, %v528_v38, %v529_v41  ;;  %v612_v5 = vsel %vm527_vm0, %v529_v41, 0.0 }
  0x38   : > { %v4448_v7 = vpack.c.bf16 %v600_v54, %v600_v54  ;;  %v441_v8 = vmax.f32 %v425_v43, 0.0  ;;  %v4452_v10 = vpack.c.bf16 %v530_v4, %v530_v4  ;;  %v4454_v11 = vpack.c.bf16 %v612_v5, %v612_v5 }
  0x39   : > { %v4450_v9 = vpack.c.b16 %v871_v49, %v870_v39  ;;  %v442_v13 = vmax.f32 %v426_v55, 0.0  ;;  %v414_v18 = vmul.f32 %v4259_v2, %v4048_v35  ;;  %v429_v27 = vadd.f32 %v4271_v6, %v413_v58 }
  0x3a   : > { %v665_v42 = vshrl.u32 %v4448_v7, 16  ;;  %v668_v46 = vshll.u32 %v4448_v7, 16  ;;  %v537_v14 = vrot.slane %v441_v8, 6  ;;  %v674_v21 = vshll.u32 %v4452_v10, 16 }
  0x3b   : > { %6174 = vst [vmem:[#allocation4_spill] sm:$0xff] %v4450_v9  ;;  %3767 = vmatmul.msk.bf16.vlgmr.msra.gmra.mxu3 %vm882_vm3, %v4450_v9  ;;  %v678_v22 = vshrl.u32 %v4452_v10, 16  ;;  %v684_v23 = vshll.u32 %v4454_v11, 16  ;;  %v538_v24 = vrot.slane %v442_v13, 6  ;;  %v430_v58 = vadd.f32 %v4271_v6, %v414_v18 }
  0x3c   : > { %v667_v25 = vrot.slane %v665_v42, 4  ;;  %v670_v28 = vrot.slane %v668_v46, 5  ;;  %v603_v26 = vsel %vm527_vm0, 0.0, %v537_v14  ;;  %v676_v33 = vrot.slane %v674_v21, 5 }
  0x3d   : > { %v680_v34 = vrot.slane %v678_v22, 4  ;;  %v686_v35 = vrot.slane %v684_v23, 5  ;;  %v4476_v36 = vrot.slane %v674_v21, 6  ;;  %v4480_v19 = vrot.slane %v684_v23, 6 }
  0x3e   : > { %v671_v38 = vor.u32 %v670_v28, %v667_v25  ;;  %v539_v29 = vsel %vm527_vm0, %v537_v14, %v538_v24  ;;  %v615_v39 = vsel %vm527_vm0, %v538_v24, 0.0  ;;  %v4484_v43 = vpack.c.bf16 %v603_v26, %v603_v26 }
  0x3f   : > { %v681_v41 = vor.u32 %v680_v34, %v676_v33  ;;  %v4486_v49 = vpack.c.bf16 %v539_v29, %v539_v29  ;;  %v4488_v54 = vpack.c.bf16 %v615_v39, %v615_v39  ;;  %v445_v4 = vmax.f32 %v429_v27, 0.0 }
  0x40   : > { %v672_v55 = vrot.slane %v671_v38, 4  ;;  %v4055_v5 = vunpack.c.l.bf16 %v4077_v37  ;;  %v6091_v13 = vshrl.u32 %v4484_v43, 16  ;;  %v6090_v14 = vshll.u32 %v4484_v43, 16  ;;  %v4030_v38 = vld [vmem:[%s355_s28] sm:$0xff]   ;;  %s4021_s28 = sshll.u32 %s6306_s20, 3  ;;  %s4024_s20 = sshll.u32 %s6308_s19, 3 }
  0x41   : > { %v682_v8 = vrot.slane %v681_v41, 4  ;;  %v6088_v21 = vshll.u32 %v4486_v49, 16  ;;  %v6089_v24 = vshrl.u32 %v4486_v49, 16  ;;  %v6087_v25 = vshll.u32 %v4488_v54, 16 }
  0x42   : > { %v677_v23 = vsel %vm4351_vm4, %v672_v55, %v676_v33  ;;  %v446_v28 = vmax.f32 %v430_v58, 0.0  ;;  %v739_v27 = vrot.slane %v6091_v13, 4  ;;  %v742_v34 = vrot.slane %v6090_v14, 5 }
  0x43   : > { %v687_v18 = vsel %vm4351_vm4, %v682_v8, %v686_v35  ;;  %v858_v26 = vunpack.c.l.b16 %v677_v23  ;;  %v748_v33 = vrot.slane %v6088_v21, 5  ;;  %v752_v39 = vrot.slane %v6089_v24, 4  ;;  %v3829_v24 = vld [vmem:[%s6063_s3 + $0xc] sm:$0x3] }
  0x44   : > { %v859_v29 = vunpack.c.l.b16 %v687_v18  ;;  %v758_v41 = vrot.slane %v6087_v25, 5  ;;  %v743_v35 = vor.u32 %v742_v34, %v739_v27  ;;  %v543_v55 = vrot.slane %v445_v4, 6 }
  0x45   : > { %v544_v58 = vrot.slane %v446_v28, 6  ;;  %v4056_v8 = vunpack.c.h.bf16 %v4077_v37  ;;  %v753_v50 = vor.u32 %v752_v39, %v748_v33  ;;  %v417_v47 = vmul.f32 %v4259_v2, %v4055_v5 }
  0x46   : > { %v874_v23 = vpack.c.b16 %v859_v29, %v858_v26  ;;  %v4031_v45 = vunpack.c.l.bf16 %v4030_v38  ;;  %v744_v18 = vrot.slane %v743_v35, 4  ;;  %v605_v40 = vsel %vm527_vm0, 0.0, %v543_v55 }
  0x47   : > { %v545_v44 = vsel %vm527_vm0, %v543_v55, %v544_v58  ;;  %v617_v16 = vsel %vm527_vm0, %v544_v58, 0.0  ;;  %v754_v12 = vrot.slane %v753_v50, 4  ;;  %v4517_v4 = vpack.c.bf16 %v605_v40, %v605_v40 }
  0x48   : > { %3761 = vmatmul.msk.bf16.vlgmr.msra.gmra.mxu0 %vm882_vm3, %v874_v23  ;;  %v4519_v37 = vpack.c.bf16 %v545_v44, %v545_v44  ;;  %v4521_v28 = vpack.c.bf16 %v617_v16, %v617_v16  ;;  %v749_v5 = vsel %vm4351_vm4, %v744_v18, %v748_v33  ;;  %v418_v26 = vmul.f32 %v4259_v2, %v4056_v8 }
  0x49   : > { %v433_v27 = vadd.f32 %v4271_v6, %v417_v47  ;;  %v4032_v34 = vunpack.c.h.bf16 %v4030_v38  ;;  %v759_v29 = vsel %vm4351_vm4, %v754_v12, %v758_v41  ;;  %v864_v39 = vunpack.c.l.b16 %v749_v5 }
  0x4a   : > { %v6074_v50 = vshrl.u32 %v4517_v4, 16  ;;  %v6076_v40 = vshll.u32 %v4517_v4, 16  ;;  %v865_v44 = vunpack.c.l.b16 %v759_v29  ;;  %v6075_v16 = vshll.u32 %v4519_v37, 16 }
  0x4b   : > { %v6077_v35 = vshrl.u32 %v4519_v37, 16  ;;  %v6078_v33 = vshll.u32 %v4521_v28, 16  ;;  %v434_v38 = vadd.f32 %v4271_v6, %v418_v26  ;;  %v449_v41 = vmax.f32 %v433_v27, 0.0 }
  0x4c   : > { %v787_v47 = vrot.slane %v6074_v50, 4  ;;  %v790_v12 = vrot.slane %v6076_v40, 5  ;;  %v4541_v55 = vpack.c.b16 %v865_v44, %v864_v39  ;;  %v796_v58 = vrot.slane %v6075_v16, 5 }
  0x4d   : > { %v800_v8 = vrot.slane %v6077_v35, 4  ;;  %v806_v23 = vrot.slane %v6078_v33, 5  ;;  %v450_v5 = vmax.f32 %v434_v38, 0.0  ;;  %v549_v29 = vrot.slane %v449_v41, 6 }
  0x4e   : > { %v791_v18 = vor.u32 %v790_v12, %v787_v47  ;;  %v361_v50 = vmul.f32 %v4259_v2, %v4031_v45  ;;  %3764 = vmatmul.msk.bf16.gmra.mxu1 %vm882_vm3, %v4541_v55  ;;  %v362_v27 = vmul.f32 %v4259_v2, %v4032_v34  ;;  %v368_v39 = vstv %s367_s29  ;;  %s462_s29 = scalar_lea.vmem %s4250_s10, %s4021_s28  ;;  %s486_s28 = scalar_lea.vmem %s4250_s10, %s4024_s20 }
  0x4f   : > { %v801_v26 = vor.u32 %v800_v8, %v796_v58  ;;  %v975_v44 = vunpack.c.l.b16 %v4448_v7  ;;  %v550_v40 = vrot.slane %v450_v5, 6  ;;  %v607_v35 = vsel %vm527_vm0, 0.0, %v549_v29  ;;  %s311_s10 = scalar_lea.vmem %s6066_s6, %s6312_s18 }
  0x50   : > { %v792_v16 = vrot.slane %v791_v18, 4  ;;  %v363_v33 = vadd.f32 %v4271_v6, %v361_v50  ;;  %v4556_v12 = vpack.c.bf16 %v607_v35, %v607_v35  ;;  %v364_v45 = vadd.f32 %v4271_v6, %v362_v27 }
  0x51   : > { %v802_v47 = vrot.slane %v801_v26, 4  ;;  %vm4559_vm6 = vcmp.eq.s32.totalorder %v368_v39, 1  ;;  %v551_v34 = vsel %vm527_vm0, %v549_v29, %v550_v40  ;;  %v619_v41 = vsel %vm527_vm0, %v550_v40, 0.0 }
  0x52   : > { %v797_v2 = vsel %vm4351_vm4, %v792_v16, %v796_v58  ;;  %v365_v8 = vmax.f32 %v363_v33, 0.0  ;;  %v4569_v35 = vpack.c.bf16 %v551_v34, %v551_v34  ;;  %v4571_v5 = vpack.c.bf16 %v619_v41, %v619_v41 }
  0x53   : > { %v807_v50 = vsel %vm4351_vm4, %v802_v47, %v806_v23  ;;  %v868_v18 = vunpack.c.l.b16 %v797_v2  ;;  %v6083_v26 = vshrl.u32 %v4556_v12, 16  ;;  %v6080_v27 = vshll.u32 %v4556_v12, 16 }
  0x54   : > { %v869_v6 = vunpack.c.l.b16 %v807_v50  ;;  %v366_v39 = vmax.f32 %v364_v45, 0.0  ;;  %v6079_v16 = vshll.u32 %v4569_v35, 16  ;;  %v6081_v58 = vshrl.u32 %v4569_v35, 16 }
  0x55   : > { %v6082_v40 = vshll.u32 %v4571_v5, 16  ;;  %v370_v33 = vsel %vm4559_vm6, %v365_v8, 0.0  ;;  %v835_v29 = vrot.slane %v6083_v26, 4  ;;  %v838_v47 = vrot.slane %v6080_v27, 5 }
  0x56   : > { %v4580_v23 = vpack.c.b16 %v869_v6, %v868_v18  ;;  %v371_v45 = vsel %vm4559_vm6, %v366_v39, 0.0  ;;  %v844_v2 = vrot.slane %v6079_v16, 5  ;;  %v848_v34 = vrot.slane %v6081_v58, 4 }
  0x57   : > { %v854_v41 = vrot.slane %v6082_v40, 5  ;;  %v531_v8 = vrot.slane %v370_v33, 6  ;;  %v839_v50 = vor.u32 %v838_v47, %v835_v29  ;;  %v532_v18 = vrot.slane %v371_v45, 6 }
  0x58   : > { %6177 = vst [vmem:[#allocation5_spill] sm:$0xff] %v4580_v23  ;;  %3766 = vmatmul.msk.bf16.gmra.mxu2 %vm882_vm3, %v4580_v23  ;;  %v976_v6 = vunpack.c.l.b16 %v4452_v10  ;;  %v849_v38 = vor.u32 %v848_v34, %v844_v2  ;;  %v3777_v16 = vrot.slane %v4448_v7, 9  ;;  %v1091_v21 = vrot.slane %v4454_v11, 5 }
  0x59   : > { %v601_v39 = vsel %vm527_vm0, 0.0, %v531_v8  ;;  %v840_v27 = vrot.slane %v839_v50, 4  ;;  %v533_v58 = vsel %vm527_vm0, %v531_v8, %v532_v18  ;;  %v613_v40 = vsel %vm527_vm0, %v532_v18, 0.0 }
  0x5a   : > { %v4601_v33 = vpack.c.bf16 %v601_v39, %v601_v39  ;;  %v850_v26 = vrot.slane %v849_v38, 4  ;;  %v4603_v15 = vpack.c.bf16 %v533_v58, %v533_v58  ;;  %v4605_v29 = vpack.c.bf16 %v613_v40, %v613_v40 }
  0x5b   : > { %v991_v47 = vpack.c.b16 %v976_v6, %v975_v44  ;;  %v845_v45 = vsel %vm4351_vm4, %v840_v27, %v844_v2  ;;  %v1088_v50 = vrot.slane %v4452_v10, 5  ;;  %v1789_v61 = vsel %vm527_vm0, %v3829_v24, 0  ;;  %v3820_v24 = vld [vmem:[%s6063_s3 + $0xa] sm:$0x3] }
  0x5c   : > { %v689_v34 = vshrl.u32 %v4601_v33, 16  ;;  %v692_v3 = vshll.u32 %v4601_v33, 16  ;;  %v855_v58 = vsel %vm4351_vm4, %v850_v26, %v854_v41  ;;  %v872_v40 = vunpack.c.l.b16 %v845_v45  ;;  %1798 = vmatpush.bf16.msra.mxu2 %v1789_v61 }
  0x5d   : > { %v698_v44 = vshll.u32 %v4603_v15, 16  ;;  %v702_v18 = vshrl.u32 %v4603_v15, 16  ;;  %v873_v27 = vunpack.c.l.b16 %v855_v58  ;;  %v708_v38 = vshll.u32 %v4605_v29, 16 }
  0x5e   : > { %v691_v2 = vrot.slane %v689_v34, 4  ;;  %v694_v6 = vrot.slane %v692_v3, 5  ;;  %3769 = vmatmul.msk.bf16.vlgmr.msrb.gmra.mxu1 %vm882_vm3, %v991_v47  ;;  %v1089_v41 = vsel %vm4612_vm9, %v3777_v16, %v1088_v50  ;;  %v1090_v45 = vrot.slane %v1088_v50, 4  ;;  %v3839_v16 = vld [vmem:[%s6063_s3 + $0xe] sm:$0x3] }
  0x5f   : > { %v700_v39 = vrot.slane %v698_v44, 5  ;;  %v704_v26 = vrot.slane %v702_v18, 4  ;;  %v4633_v58 = vpack.c.b16 %v873_v27, %v872_v40  ;;  %v710_v25 = vrot.slane %v708_v38, 5 }
  0x60   : > { %v695_v1 = vor.u32 %v694_v6, %v691_v2  ;;  %v1144_v13 = vunpack.c.l.b16 %v1089_v41  ;;  %v1092_v50 = vsel %vm4612_vm9, %v1090_v45, %v1091_v21  ;;  %v1263_v40 = vrot.slane %v665_v42, 5 }
  0x61   : > { %6180 = vst [vmem:[#allocation6_spill] sm:$0xff] %v4633_v58  ;;  %v705_v14 = vor.u32 %v704_v26, %v700_v39  ;;  %3768 = vmatmul.msk.bf16.gmra.mxu3 %vm882_vm3, %v4633_v58  ;;  %v1264_v27 = vrot.slane %v668_v46, 6  ;;  %v1145_v6 = vunpack.c.l.b16 %v1092_v50  ;;  %v1267_v26 = vrot.slane %v678_v22, 5 }
  0x62   : > { %v696_v47 = vrot.slane %v695_v1, 4  ;;  %v1272_v41 = vshrl.u32 %v4454_v11, 16  ;;  %v1873_v21 = vsel %vm527_vm0, %v3839_v16, 0 }
  0x63   : > { %v706_v2 = vrot.slane %v705_v14, 4  ;;  %v1265_v1 = vor.u32 %v1264_v27, %v1263_v40  ;;  %v1160_v46 = vpack.c.b16 %v1145_v6, %v1144_v13  ;;  %v6181_v14 = vmov 0  ;;  %1882 = vmatpush.bf16.msra.mxu3 %v1873_v21 }
  0x64   : > { %v701_v63 = vsel %vm4351_vm4, %v696_v47, %v700_v39  ;;  %v6182_v14 = vsel %vm4663_vm12, 4294967295, %v6181_v14  ;;  %v1269_v22 = vor.u32 %v4476_v36, %v1267_v26  ;;  %v1274_v47 = vrot.slane %v1272_v41, 5 }
  0x65   : > { %v711_v42 = vsel %vm4351_vm4, %v706_v2, %v710_v25  ;;  %v860_v45 = vunpack.c.l.b16 %v701_v63  ;;  %6183 = vst [vmem:[#allocation7_spill] sm:$0xff] %v6182_v14  ;;  %v1266_v16 = vrot.slane %v1265_v1, 4  ;;  %v3848_v63 = vld [vmem:[%s6063_s3 + $0x10] sm:$0x3]  ;;  %v1506_v25 = vrot.slane %v4452_v10, 6 }
  0x66   : > { %v861_v39 = vunpack.c.l.b16 %v711_v42  ;;  %v1271_v13 = vrot.slane %v1269_v22, 4  ;;  %v1276_v36 = vor.u32 %v4480_v19, %v1274_v47  ;;  %v1689_v40 = vsel %vm527_vm0, %v3820_v24, 0 }
  0x67   : > { %v1270_v61 = vsel %vm4663_vm12, %v1266_v16, %v1269_v22  ;;  %v3803_v2 = vrot.slane %v4448_v7, 10  ;;  %v1509_v6 = vrot.slane %v4454_v11, 6  ;;  %1698 = vmatpush.bf16.msra.mxu1 %v1689_v40  ;;  %v1964_v26 = vsel %vm527_vm0, %v3848_v63, 0 }
  0x68   : > { %v4675_v50 = vpack.c.b16 %v861_v39, %v860_v45  ;;  %3786 = vmatmul.msk.bf16.vlgmr.msrb.gmra.mxu2 %vm882_vm3, %v1160_v46  ;;  %v1385_v27 = vunpack.c.l.b16 %v1270_v61  ;;  %v1277_v10 = vsel %vm4663_vm12, %v1271_v13, %v1276_v36  ;;  %v6184_v41 = vmov 0  ;;  %1973 = vmatpush.bf16.msra.mxu0 %v1964_v26 }
  0x69   : > { %v6185_v41 = vsel %vm4690_vm14, 4294967295, %v6184_v41  ;;  %v1508_v19 = vrot.slane %v1506_v25, 4  ;;  %v977_v1 = vunpack.c.l.b16 %v4601_v33  ;;  %v978_v7 = vunpack.c.l.b16 %v4603_v15 }
  0x6a   : > { %3762 = vmatmul.msk.bf16.gmra.mxu0 %vm882_vm3, %v4675_v50  ;;  %6186 = vst [vmem:[#allocation8_spill] sm:$0xff] %v6185_v41  ;;  %v1386_v11 = vunpack.c.l.b16 %v1277_v10  ;;  %v3778_v21 = vrot.slane %v4601_v33, 9  ;;  %v1095_v42 = vrot.slane %v4603_v15, 5  ;;  %v1098_v46 = vrot.slane %v4605_v29, 5 }
  0x6b   : > { %v4698_v45 = vpack.c.b16 %v978_v7, %v977_v1  ;;  %v1278_v22 = vrot.slane %v689_v34, 5  ;;  %v1507_v24 = vsel %vm4690_vm14, %v3803_v2, %v1506_v25  ;;  %v1279_v47 = vrot.slane %v692_v3, 6 }
  0x6c   : > { %v1096_v39 = vsel %vm4612_vm9, %v3778_v21, %v1095_v42  ;;  %v1097_v16 = vrot.slane %v1095_v42, 4  ;;  %v1401_v63 = vpack.c.b16 %v1386_v11, %v1385_v27  ;;  %v1510_v13 = vsel %vm4690_vm14, %v1508_v19, %v1509_v6 }
  0x6d   : > { %v1282_v61 = vrot.slane %v702_v18, 5  ;;  %v1283_v34 = vrot.slane %v698_v44, 6  ;;  %v1280_v36 = vor.u32 %v1279_v47, %v1278_v22  ;;  %v1287_v40 = vshrl.u32 %v4605_v29, 16 }
  0x6e   : > { %3770 = vmatmul.msk.bf16.gmra.mxu1 %vm882_vm3, %v4698_v45  ;;  %v1099_v25 = vsel %vm4612_vm9, %v1097_v16, %v1098_v46  ;;  %v1290_v3 = vrot.slane %v708_v38, 6  ;;  %v1146_v27 = vunpack.c.l.b16 %v1096_v39  ;;  %v1562_v18 = vunpack.c.l.b16 %v1507_v24 }
  0x6f   : > { %v1147_v2 = vunpack.c.l.b16 %v1099_v25  ;;  %v1284_v6 = vor.u32 %v1283_v34, %v1282_v61  ;;  %v1289_v26 = vrot.slane %v1287_v40, 5  ;;  %v1563_v44 = vunpack.c.l.b16 %v1510_v13 }
  0x70   : > { %v1281_v10 = vrot.slane %v1280_v36, 4  ;;  %v1513_v11 = vrot.slane %v4603_v15, 6  ;;  %v1102_v21 = vrot.slane %v4312_v52, 5  ;;  %v979_v22 = vunpack.c.l.b16 %v4310_v51 }
  0x71   : > { %3795 = vmatmul.msk.bf16.vlgmr.msrb.gmra.mxu3 %vm882_vm3, %v1401_v63  ;;  %v1286_v19 = vrot.slane %v1284_v6, 4  ;;  %v1291_v1 = vor.u32 %v1290_v3, %v1289_v26  ;;  %v4723_v7 = vpack.c.b16 %v1147_v2, %v1146_v27  ;;  %v1578_v42 = vpack.c.b16 %v1563_v44, %v1562_v18 }
  0x72   : > { %v1285_v38 = vsel %vm4663_vm12, %v1281_v10, %v1284_v6  ;;  %v980_v24 = vunpack.c.l.b16 %v4312_v52  ;;  %v3804_v39 = vrot.slane %v4601_v33, 10  ;;  %v1516_v15 = vrot.slane %v4605_v29, 6 }
  0x73   : > { %v1292_v46 = vsel %vm4663_vm12, %v1286_v19, %v1291_v1  ;;  %v1515_v16 = vrot.slane %v1513_v11, 4  ;;  %v3779_v47 = vrot.slane %v4310_v51, 9  ;;  %v1104_v63 = vrot.slane %v1102_v21, 4 }
  0x74   : > { %v1105_v13 = vrot.slane %v4314_v53, 5  ;;  %v1387_v61 = vunpack.c.l.b16 %v1285_v38  ;;  %v1388_v34 = vunpack.c.l.b16 %v1292_v46  ;;  %v1293_v25 = vrot.slane %v713_v59, 5 }
  0x75   : > { %v1294_v36 = vrot.slane %v716_v60, 6  ;;  %v4744_v40 = vpack.c.b16 %v980_v24, %v979_v22  ;;  %v1297_v33 = vrot.slane %v726_v62, 5  ;;  %v6187_v29 = vshll.u32 %v4312_v52, 16 }
  0x76   : > { %v1302_v27 = vshrl.u32 %v4314_v53, 16  ;;  %v1103_v2 = vsel %vm4612_vm9, %v3779_v47, %v1102_v21  ;;  %v1106_v6 = vsel %vm4612_vm9, %v1104_v63, %v1105_v13  ;;  %v4755_v59 = vpack.c.b16 %v1388_v34, %v1387_v61 }
  0x77   : > { %v1298_v3 = vrot.slane %v6187_v29, 6  ;;  %v1514_v60 = vsel %vm4690_vm14, %v3804_v39, %v1513_v11  ;;  %v1517_v26 = vsel %vm4690_vm14, %v1515_v16, %v1516_v15  ;;  %v1295_v62 = vor.u32 %v1294_v36, %v1293_v25 }
  0x78   : > { %3787 = vmatmul.msk.bf16.gmra.mxu2 %vm882_vm3, %v4723_v7  ;;  %v1304_v44 = vrot.slane %v1302_v27, 5  ;;  %v6188_v10 = vshll.u32 %v4314_v53, 16  ;;  %v6189_v1 = vshrl.u32 %v4484_v43, 16  ;;  %v1149_v38 = vunpack.c.l.b16 %v1106_v6 }
  0x79   : > { %v1299_v18 = vor.u32 %v1298_v3, %v1297_v33  ;;  %v6190_v46 = vshll.u32 %v4484_v43, 16  ;;  %v6191_v22 = vshrl.u32 %v4486_v49, 16  ;;  %v1564_v39 = vunpack.c.l.b16 %v1514_v60 }
  0x7a   : > { %3812 = vmatmul.msk.bf16.vlgmr.msrb.gmra.mxu0 %vm882_vm3, %v1578_v42  ;;  %v1305_v19 = vrot.slane %v6188_v10, 6  ;;  %v1308_v21 = vrot.slane %v6189_v1, 5  ;;  %v1148_v42 = vunpack.c.l.b16 %v1103_v2  ;;  %v1565_v15 = vunpack.c.l.b16 %v1517_v26 }
  0x7b   : > { %v1309_v11 = vrot.slane %v6190_v46, 6  ;;  %v1312_v24 = vrot.slane %v6191_v22, 5  ;;  %v6192_v16 = vshll.u32 %v4486_v49, 16  ;;  %v1317_v13 = vshrl.u32 %v4488_v54, 16 }
  0x7c   : > { %v6193_v61 = vshll.u32 %v4488_v54, 16  ;;  %v1296_v25 = vrot.slane %v1295_v62, 4  ;;  %v1301_v36 = vrot.slane %v1299_v18, 4  ;;  %v1306_v33 = vor.u32 %v1305_v19, %v1304_v44 }
  0x7d   : > { %v1313_v47 = vrot.slane %v6192_v16, 6  ;;  %v1310_v63 = vor.u32 %v1309_v11, %v1308_v21  ;;  %v4778_v3 = vpack.c.b16 %v1149_v38, %v1148_v42  ;;  %v1319_v2 = vrot.slane %v1317_v13, 5 }
  0x7e   : > { %3771 = vmatmul.msk.bf16.gmra.mxu1 %vm882_vm3, %v4744_v40  ;;  %v1320_v34 = vrot.slane %v6193_v61, 6  ;;  %v4780_v6 = vpack.c.b16 %v1565_v15, %v1564_v39  ;;  %v1109_v60 = vrot.slane %v4486_v49, 5  ;;  %v1520_v10 = vrot.slane %v4312_v52, 6 }
  0x7f   : > { %v1314_v29 = vor.u32 %v1313_v47, %v1312_v24  ;;  %v1311_v27 = vrot.slane %v1310_v63, 4  ;;  %v981_v1 = vunpack.c.l.b16 %v4484_v43  ;;  %v1300_v44 = vsel %vm4663_vm12, %v1296_v25, %v1299_v18 }
  0x80   : > { %v1321_v62 = vor.u32 %v1320_v34, %v1319_v2  ;;  %v1307_v19 = vsel %vm4663_vm12, %v1301_v36, %v1306_v33  ;;  %v982_v42 = vunpack.c.l.b16 %v4486_v49  ;;  %v3780_v46 = vrot.slane %v4484_v43, 9 }
  0x81   : > { %3796 = vmatmul.msk.bf16.gmra.mxu3 %vm882_vm3, %v4755_v59  ;;  %v1316_v26 = vrot.slane %v1314_v29, 4  ;;  %v1315_v21 = vsel %vm4663_vm12, %v1311_v27, %v1314_v29  ;;  %v1111_v11 = vrot.slane %v1109_v60, 4  ;;  %v1112_v22 = vrot.slane %v4488_v54, 5 }
  0x82   : > { %v1391_v38 = vunpack.c.l.b16 %v1315_v21  ;;  %v1389_v18 = vunpack.c.l.b16 %v1300_v44  ;;  %v1390_v39 = vunpack.c.l.b16 %v1307_v19  ;;  %v3805_v15 = vrot.slane %v4310_v51, 10 }
  0x83   : > { %v1322_v52 = vsel %vm4663_vm12, %v1316_v26, %v1321_v62  ;;  %v1522_v16 = vrot.slane %v1520_v10, 4  ;;  %v1523_v47 = vrot.slane %v4314_v53, 6  ;;  %v4802_v63 = vpack.c.b16 %v982_v42, %v981_v1 }
  0x84   : > { %v1392_v24 = vunpack.c.l.b16 %v1322_v52  ;;  %v1110_v61 = vsel %vm4612_vm9, %v3780_v46, %v1109_v60  ;;  %v1113_v34 = vsel %vm4612_vm9, %v1111_v11, %v1112_v22  ;;  %v4810_v25 = vpack.c.b16 %v1390_v39, %v1389_v18 }
  0x85   : > { %v1521_v36 = vsel %vm4690_vm14, %v3805_v15, %v1520_v10  ;;  %v1524_v51 = vsel %vm4690_vm14, %v1522_v16, %v1523_v47  ;;  %v1150_v53 = vunpack.c.l.b16 %v1110_v61  ;;  %v1151_v33 = vunpack.c.l.b16 %v1113_v34 }
  0x86   : > { %v4804_v13 = vpack.c.b16 %v1392_v24, %v1391_v38  ;;  %6195 = vst [vmem:[#allocation10_spill] sm:$0xff] %v4810_v25  ;;  %v1566_v29 = vunpack.c.l.b16 %v1521_v36  ;;  %v1567_v27 = vunpack.c.l.b16 %v1524_v51  ;;  %v1116_v60 = vrot.slane %v4320_v57, 5 }
  0x87   : > { %v4820_v2 = vpack.c.b16 %v1151_v33, %v1150_v53  ;;  %v1527_v10 = vrot.slane %v4486_v49, 6  ;;  %v983_v1 = vunpack.c.l.b16 %v4318_v56  ;;  %v984_v21 = vunpack.c.l.b16 %v4320_v57 }
  0x88   : > { %3788 = vmatmul.msk.bf16.gmra.mxu2 %vm882_vm3, %v4778_v3  ;;  %6194 = vst [vmem:[#allocation9_spill] sm:$0xff] %v4804_v13  ;;  %v4823_v26 = vpack.c.b16 %v1567_v27, %v1566_v29  ;;  %v3806_v62 = vrot.slane %v4484_v43, 10  ;;  %v3781_v44 = vrot.slane %v4318_v56, 9  ;;  %v1118_v19 = vrot.slane %v1116_v60, 4 }
  0x89   : > { %6196 = vst [vmem:[#allocation11_spill] sm:$0xff] %v4820_v2  ;;  %v1119_v42 = vrot.slane %v4328_v0, 5  ;;  %v1529_v38 = vrot.slane %v1527_v10, 4  ;;  %v1530_v49 = vrot.slane %v4488_v54, 6  ;;  %v4836_v52 = vpack.c.b16 %v984_v21, %v983_v1 }
  0x8a   : > { %3813 = vmatmul.msk.bf16.gmra.mxu0 %vm882_vm3, %v4780_v6  ;;  %v6197_v46 = vshrl.u32 %v4318_v56, 16  ;;  %v6198_v22 = vshll.u32 %v4318_v56, 16  ;;  %v6199_v43 = vshrl.u32 %v4320_v57, 16  ;;  %v6200_v39 = vshll.u32 %v4320_v57, 16 }
  0x8b   : > { %v1332_v16 = vshrl.u32 %v4328_v0, 16  ;;  %v1117_v47 = vsel %vm4612_vm9, %v3781_v44, %v1116_v60  ;;  %v1120_v54 = vsel %vm4612_vm9, %v1118_v19, %v1119_v42  ;;  %v1528_v61 = vsel %vm4690_vm14, %v3806_v62, %v1527_v10 }
  0x8c   : > { %v1323_v11 = vrot.slane %v6197_v46, 5  ;;  %v1324_v24 = vrot.slane %v6198_v22, 6  ;;  %v1327_v18 = vrot.slane %v6199_v43, 5  ;;  %v1328_v15 = vrot.slane %v6200_v39, 6 }
  0x8d   : > { %v1531_v34 = vsel %vm4690_vm14, %v1529_v38, %v1530_v49  ;;  %v1334_v53 = vrot.slane %v1332_v16, 5  ;;  %v6201_v33 = vshll.u32 %v4328_v0, 16  ;;  %v1152_v27 = vunpack.c.l.b16 %v1117_v47 }
  0x8e   : > { %3772 = vmatmul.msk.bf16.gmra.mxu1 %vm882_vm3, %v4802_v63  ;;  %v1325_v36 = vor.u32 %v1324_v24, %v1323_v11  ;;  %v1329_v51 = vor.u32 %v1328_v15, %v1327_v18  ;;  %v1153_v60 = vunpack.c.l.b16 %v1120_v54  ;;  %v1568_v1 = vunpack.c.l.b16 %v1528_v61 }
  0x8f   : > { %v1335_v29 = vrot.slane %v6201_v33, 6  ;;  %v1569_v21 = vunpack.c.l.b16 %v1531_v34  ;;  %v1123_v42 = vrot.slane %v4519_v37, 5  ;;  %v1534_v49 = vrot.slane %v4320_v57, 6 }
  0x90   : > { %v1326_v10 = vrot.slane %v1325_v36, 4  ;;  %v1331_v62 = vrot.slane %v1329_v51, 4  ;;  %v4861_v19 = vpack.c.b16 %v1153_v60, %v1152_v27  ;;  %v985_v22 = vunpack.c.l.b16 %v4517_v4 }
  0x91   : > { %3797 = vmatmul.msk.bf16.gmra.mxu3 %vm882_vm3, %v4810_v25  ;;  %v1336_v44 = vor.u32 %v1335_v29, %v1334_v53  ;;  %v4864_v38 = vpack.c.b16 %v1569_v21, %v1568_v1  ;;  %v986_v24 = vunpack.c.l.b16 %v4519_v37  ;;  %v3807_v43 = vrot.slane %v4318_v56, 10 }
  0x92   : > { %6202 = vst [vmem:[#allocation12_spill] sm:$0xff] %v4861_v19  ;;  %v1330_v46 = vsel %vm4663_vm12, %v1326_v10, %v1329_v51  ;;  %v3782_v18 = vrot.slane %v4517_v4, 9  ;;  %v1125_v39 = vrot.slane %v1123_v42, 4  ;;  %v1126_v57 = vrot.slane %v4521_v28, 5 }
  0x93   : > { %v1337_v11 = vsel %vm4663_vm12, %v1331_v62, %v1336_v44  ;;  %v6203_v15 = vshrl.u32 %v4517_v4, 16  ;;  %v6204_v47 = vshll.u32 %v4517_v4, 16  ;;  %v1393_v61 = vunpack.c.l.b16 %v1330_v46 }
  0x94   : > { %v1394_v34 = vunpack.c.l.b16 %v1337_v11  ;;  %v1536_v36 = vrot.slane %v1534_v49, 4  ;;  %v1537_v51 = vrot.slane %v4328_v0, 6  ;;  %v4885_v56 = vpack.c.b16 %v986_v24, %v985_v22 }
  0x95   : > { %v1338_v16 = vrot.slane %v6203_v15, 5  ;;  %v1339_v54 = vrot.slane %v6204_v47, 6  ;;  %v6205_v53 = vshrl.u32 %v4519_v37, 16  ;;  %v6206_v29 = vshll.u32 %v4519_v37, 16 }
  0x96   : > { %v1347_v60 = vshrl.u32 %v4521_v28, 16  ;;  %v1124_v1 = vsel %vm4612_vm9, %v3782_v18, %v1123_v42  ;;  %v1127_v21 = vsel %vm4612_vm9, %v1125_v39, %v1126_v57  ;;  %v4896_v62 = vpack.c.b16 %v1394_v34, %v1393_v61 }
  0x97   : > { %v1342_v33 = vrot.slane %v6205_v53, 5  ;;  %v1343_v27 = vrot.slane %v6206_v29, 6  ;;  %v1340_v10 = vor.u32 %v1339_v54, %v1338_v16  ;;  %v1535_v0 = vsel %vm4690_vm14, %v3807_v43, %v1534_v49 }
  0x98   : > { %3789 = vmatmul.msk.bf16.gmra.mxu2 %vm882_vm3, %v4820_v2  ;;  %6207 = vst [vmem:[#allocation13_spill] sm:$0xff] %v4896_v62  ;;  %v1538_v44 = vsel %vm4690_vm14, %v1536_v36, %v1537_v51  ;;  %v1349_v11 = vrot.slane %v1347_v60, 5  ;;  %v6208_v22 = vshll.u32 %v4521_v28, 16  ;;  %v1154_v24 = vunpack.c.l.b16 %v1124_v1 }
  0x99   : > { %v1344_v46 = vor.u32 %v1343_v27, %v1342_v33  ;;  %v1155_v18 = vunpack.c.l.b16 %v1127_v21  ;;  %v1341_v39 = vrot.slane %v1340_v10, 4  ;;  %v1570_v57 = vunpack.c.l.b16 %v1535_v0 }
  0x9a   : > { %3814 = vmatmul.msk.bf16.gmra.mxu0 %vm882_vm3, %v4823_v26  ;;  %v1350_v42 = vrot.slane %v6208_v22, 6  ;;  %v1571_v15 = vunpack.c.l.b16 %v1538_v44  ;;  %v1130_v54 = vrot.slane %v4365_v31, 5  ;;  %v1541_v34 = vrot.slane %v4519_v37, 6 }
  0x9b   : > { %v1346_v49 = vrot.slane %v1344_v46, 4  ;;  %v4908_v16 = vpack.c.b16 %v1155_v18, %v1154_v24  ;;  %v1345_v47 = vsel %vm4663_vm12, %v1341_v39, %v1344_v46  ;;  %v987_v51 = vunpack.c.l.b16 %v4363_v30 }
  0x9c   : > { %v1351_v43 = vor.u32 %v1350_v42, %v1349_v11  ;;  %v4913_v61 = vpack.c.b16 %v1571_v15, %v1570_v57  ;;  %v988_v53 = vunpack.c.l.b16 %v4365_v31  ;;  %v1395_v33 = vunpack.c.l.b16 %v1345_v47 }
  0x9d   : > { %6209 = vst [vmem:[#allocation14_spill] sm:$0xff] %v4908_v16  ;;  %v3783_v27 = vrot.slane %v4363_v30, 9  ;;  %v1132_v60 = vrot.slane %v1130_v54, 4  ;;  %v1133_v1 = vrot.slane %v4367_v32, 5  ;;  %v6211_v37 = vshrl.u32 %v4363_v30, 16 }
  0x9e   : > { %3773 = vmatmul.msk.bf16.gmra.mxu1 %vm882_vm3, %v4836_v52  ;;  %6210 = vst [vmem:[#allocation15_spill] sm:$0xff] %v4913_v61  ;;  %v1352_v36 = vsel %vm4663_vm12, %v1346_v49, %v1351_v43  ;;  %v6212_v10 = vshll.u32 %v4363_v30, 16  ;;  %v3808_v46 = vrot.slane %v4517_v4, 10  ;;  %v1543_v11 = vrot.slane %v1541_v34, 4 }
  0x9f   : > { %v1353_v21 = vrot.slane %v6211_v37, 5  ;;  %v1396_v44 = vunpack.c.l.b16 %v1352_v36  ;;  %v1544_v22 = vrot.slane %v4521_v28, 6  ;;  %v4934_v42 = vpack.c.b16 %v988_v53, %v987_v51 }
  0xa0   : > { %v1354_v0 = vrot.slane %v6212_v10, 6  ;;  %v6214_v24 = vshrl.u32 %v4365_v31, 16  ;;  %v6215_v39 = vshll.u32 %v4365_v31, 16  ;;  %v1362_v15 = vshrl.u32 %v4367_v32, 16 }
  0xa1   : > { %3798 = vmatmul.msk.bf16.gmra.mxu3 %vm882_vm3, %v4804_v13  ;;  %6213 = vst [vmem:[#allocation16_spill] sm:$0xff] %v4934_v42  ;;  %v1131_v49 = vsel %vm4612_vm9, %v3783_v27, %v1130_v54  ;;  %v1134_v43 = vsel %vm4612_vm9, %v1132_v60, %v1133_v1  ;;  %v4945_v47 = vpack.c.b16 %v1396_v44, %v1395_v33  ;;  %v6217_v37 = vshll.u32 %v4367_v32, 16 }
  0xa2   : > { %v1357_v18 = vrot.slane %v6214_v24, 5  ;;  %v1358_v57 = vrot.slane %v6215_v39, 6  ;;  %v1355_v4 = vor.u32 %v1354_v0, %v1353_v21  ;;  %v1542_v28 = vsel %vm4690_vm14, %v3808_v46, %v1541_v34 }
  0xa3   : > { %6216 = vst [vmem:[#allocation17_spill] sm:$0xff] %v4945_v47  ;;  %v1545_v36 = vsel %vm4690_vm14, %v1543_v11, %v1544_v22  ;;  %v1364_v53 = vrot.slane %v1362_v15, 5  ;;  %v1365_v54 = vrot.slane %v6217_v37, 6  ;;  %v1156_v27 = vunpack.c.l.b16 %v1131_v49 }
  0xa4   : > { %v1359_v51 = vor.u32 %v1358_v57, %v1357_v18  ;;  %v1157_v10 = vunpack.c.l.b16 %v1134_v43  ;;  %v1356_v60 = vrot.slane %v1355_v4, 4  ;;  %v1572_v33 = vunpack.c.l.b16 %v1542_v28 }
  0xa5   : > { %v1573_v1 = vunpack.c.l.b16 %v1545_v36  ;;  %v1366_v0 = vor.u32 %v1365_v54, %v1364_v53  ;;  %v1137_v11 = vrot.slane %v4569_v35, 5  ;;  %v1548_v24 = vrot.slane %v4365_v31, 6 }
  0xa6   : > { %v1361_v21 = vrot.slane %v1359_v51, 4  ;;  %v4959_v44 = vpack.c.b16 %v1157_v10, %v1156_v27  ;;  %v1360_v46 = vsel %vm4663_vm12, %v1356_v60, %v1359_v51  ;;  %v989_v57 = vunpack.c.l.b16 %v4556_v12 }
  0xa7   : > { %v4964_v22 = vpack.c.b16 %v1573_v1, %v1572_v33  ;;  %v990_v15 = vunpack.c.l.b16 %v4569_v35  ;;  %v1397_v49 = vunpack.c.l.b16 %v1360_v46  ;;  %v3809_v43 = vrot.slane %v4363_v30, 10 }
  0xa8   : > { %3790 = vmatmul.msk.bf16.gmra.mxu2 %vm882_vm3, %v4861_v19  ;;  %6218 = vst [vmem:[#allocation18_spill] sm:$0xff] %v4959_v44  ;;  %v1367_v18 = vsel %vm4663_vm12, %v1361_v21, %v1366_v0  ;;  %v1551_v4 = vrot.slane %v4367_v32, 6  ;;  %v3784_v28 = vrot.slane %v4556_v12, 9  ;;  %v1139_v31 = vrot.slane %v1137_v11, 4 }
  0xa9   : > { %6219 = vst [vmem:[#allocation19_spill] sm:$0xff] %v4964_v22  ;;  %v1140_v36 = vrot.slane %v4571_v5, 5  ;;  %v1398_v51 = vunpack.c.l.b16 %v1367_v18  ;;  %v1550_v53 = vrot.slane %v1548_v24, 4  ;;  %v6220_v37 = vshrl.u32 %v4556_v12, 16 }
  0xaa   : > { %3815 = vmatmul.msk.bf16.gmra.mxu0 %vm882_vm3, %v4864_v38  ;;  %v6221_v27 = vshll.u32 %v4556_v12, 16  ;;  %v4985_v60 = vpack.c.b16 %v990_v15, %v989_v57  ;;  %v6223_v30 = vshrl.u32 %v4569_v35, 16  ;;  %v6224_v33 = vshll.u32 %v4569_v35, 16 }
  0xab   : > { %v1368_v54 = vrot.slane %v6220_v37, 5  ;;  %v1377_v21 = vshrl.u32 %v4571_v5, 16  ;;  %v1138_v46 = vsel %vm4612_vm9, %v3784_v28, %v1137_v11  ;;  %v1141_v18 = vsel %vm4612_vm9, %v1139_v31, %v1140_v36 }
  0xac   : > { %v1369_v10 = vrot.slane %v6221_v27, 6  ;;  %6222 = vst [vmem:[#allocation20_spill] sm:$0xff] %v4985_v60  ;;  %v1372_v32 = vrot.slane %v6223_v30, 5  ;;  %v1373_v1 = vrot.slane %v6224_v33, 6  ;;  %v4998_v37 = vpack.c.b16 %v1398_v51, %v1397_v49 }
  0xad   : > { %v4922_v29 = vpop.f32.mrf.mxu1  ;;  %v1549_v57 = vsel %vm4690_vm14, %v3809_v43, %v1548_v24  ;;  %v1552_v15 = vsel %vm4690_vm14, %v1550_v53, %v1551_v4  ;;  %v1379_v33 = vrot.slane %v1377_v21, 5  ;;  %v1158_v28 = vunpack.c.l.b16 %v1138_v46  ;;  %v3867_v4 = vld [vmem:[%s6063_s3 + $0x14] sm:$0x3] }
  0xae   : > { %3774 = vmatmul.msk.bf16.gmra.mxu1 %vm882_vm3, %v4885_v56  ;;  %6225 = vst [vmem:[#allocation21_spill] sm:$0xff] %v4998_v37  ;;  %v1370_v27 = vor.u32 %v1369_v10, %v1368_v54  ;;  %v1374_v30 = vor.u32 %v1373_v1, %v1372_v32  ;;  %v1574_v24 = vunpack.c.l.b16 %v1549_v57  ;;  %v1575_v43 = vunpack.c.l.b16 %v1552_v15  ;;  %v3876_v57 = vld [vmem:[%s6063_s3 + $0x16] sm:$0x3] }
  0xb0   : > { %v1371_v51 = vrot.slane %v1370_v27, 4  ;;  %v1376_v53 = vrot.slane %v1374_v30, 4  ;;  %v5022_v1 = vpack.c.b16 %v1575_v43, %v1574_v24  ;;  %v1558_v24 = vrot.slane %v4571_v5, 6 }
  0xb1   : > { %3799 = vmatmul.msk.bf16.gmra.mxu3 %vm882_vm3, %v4896_v62 }
  0xb2   : > { %6228 = vst [vmem:[#allocation23_spill] sm:$0xff] %v5022_v1  ;;  %v1375_v21 = vsel %vm4663_vm12, %v1371_v51, %v1374_v30  ;;  %v3858_v30 = vld [vmem:[%s6063_s3 + $0x12] sm:$0x3] }
  0xb3   : > { %v1399_v15 = vunpack.c.l.b16 %v1375_v21  ;;  %v2047_v43 = vsel %vm527_vm0, %v3858_v30, 0 }
  0xb4   : > { %2056 = vmatpush.bf16.msrb.mxu1 %v2047_v43 }
  0xb5   : > { %v4957_v34 = vpop.f32.mrf.mxu1 }
  0xb7   : > { %v4969_v39 = vpop.f32.mrf.mxu2 }
  0xb8   : > { %3791 = vmatmul.msk.bf16.gmra.mxu2 %vm882_vm3, %v4908_v16 }
  0xba   : > { %3816 = vmatmul.msk.bf16.gmra.mxu0 %vm882_vm3, %v4913_v61  ;;  %v1159_v61 = vunpack.c.l.b16 %v1141_v18  ;;  %v1555_v18 = vrot.slane %v4569_v35, 6 }
  0xbc   : > { %v5018_v10 = vpack.c.b16 %v1159_v61, %v1158_v28  ;;  %v2225_v61 = vsel %vm527_vm0, %v3876_v57, 0  ;;  %v1557_v28 = vrot.slane %v1555_v18, 4 }
  0xbd   : > { %2234 = vmatpush.bf16.msrb.mxu3 %v2225_v61 }
  0xbe   : > { %3775 = vmatmul.msk.bf16.gmra.mxu1 %vm882_vm3, %v4934_v42  ;;  %v5008_v31 = vpop.f32.mrf.mxu3  ;;  %6227 = vst [vmem:[#allocation22_spill] sm:$0xff] %v5018_v10  ;;  %v1559_v21 = vsel %vm4690_vm14, %v1557_v28, %v1558_v24 }
  0xbf   : > { %v5010_v49 = vpop.f32.mrf.mxu2 }
  0xc1   : > { %3800 = vmatmul.msk.bf16.gmra.mxu3 %vm882_vm3, %v4945_v47 }
  0xc5   : > { %v919_v36 = vpop.f32.mrf.mxu0 }
  0xc6   : > { %v5040_v35 = vpop.f32.mrf.mxu3 }
  0xc8   : > { %3792 = vmatmul.msk.bf16.gmra.mxu2 %vm882_vm3, %v4959_v44 }
  0xca   : > { %3817 = vmatmul.msk.bf16.gmra.mxu0 %vm882_vm3, %v4964_v22  ;;  %v6226_v22 = vshll.u32 %v4571_v5, 16 }
  0xcb   : > { %v4992_v0 = vpop.f32.mrf.mxu1 }
  0xcc   : > { %v1380_v11 = vrot.slane %v6226_v22, 6  ;;  %v2125_v22 = vsel %vm527_vm0, %v3867_v4, 0 }
  0xcd   : > { %2134 = vmatpush.bf16.msrb.mxu2 %v2125_v22  ;;  %v921_v51 = vpop.f32.mrf.mxu0 }
  0xce   : > { %3776 = vmatmul.msk.bf16.gmra.mxu1 %vm882_vm3, %v4985_v60  ;;  %v1381_v54 = vor.u32 %v1380_v11, %v1379_v33  ;;  %v3810_v11 = vrot.slane %v4556_v12, 10  ;;  %v3886_v12 = vld [vmem:[%s6063_s3 + $0x18] sm:$0x3] }
  0xcf   : > { %v2309_v5 = vsel %vm527_vm0, %v3886_v12, 0 }
  0xd0   : > { %v1382_v46 = vsel %vm4663_vm12, %v1376_v53, %v1381_v54  ;;  %v1556_v22 = vsel %vm4690_vm14, %v3810_v11, %v1555_v18  ;;  %2318 = vmatpush.bf16.msrb.mxu0 %v2309_v5 }
  0xd1   : > { %3801 = vmatmul.msk.bf16.gmra.mxu3 %vm882_vm3, %v4998_v37  ;;  %v1400_v27 = vunpack.c.l.b16 %v1382_v46  ;;  %v1577_v46 = vunpack.c.l.b16 %v1559_v21 }
  0xd3   : > { %v5020_v32 = vpop.f32.mrf.mxu1  ;;  %v5047_v54 = vpack.c.b16 %v1400_v27, %v1399_v15 }
  0xd8   : > { %3793 = vmatmul.msk.bf16.gmra.mxu2 %vm882_vm3, %v5018_v10 }
  0xda   : > { %3818 = vmatmul.msk.bf16.gmra.mxu0 %vm882_vm3, %v5022_v1 }
  0xdb   : > { %v5042_v33 = vpop.f32.mrf.mxu2  ;;  %v1035_v4 = vpop.f32.mrf.mxu1 }
  0xdc   : > { %v1036_v53 = vadd.f32 %v1035_v4, %v919_v36  ;;  %v1576_v36 = vunpack.c.l.b16 %v1556_v22 }
  0xde   : > { %3821 = vmatmul.msk.bf16.vlgmr.msra.gmra.mxu1 %vm882_vm3, %v4698_v45  ;;  %v5065_v27 = vpack.c.b16 %v1577_v46, %v1576_v36 }
  0xe0   : > { %6229 = vst [vmem:[#allocation24_spill] sm:$0xff] %v5065_v27 }
  0xe1   : > { %3802 = vmatmul.msk.bf16.gmra.mxu3 %vm882_vm3, %v5047_v54 }
  0xe3   : > { %v5061_v57 = vpop.f32.mrf.mxu2  ;;  %v1037_v18 = vpop.f32.mrf.mxu1 }
  0xe4   : > { %v5063_v61 = vpop.f32.mrf.mxu3  ;;  %v1038_v15 = vadd.f32 %v1037_v18, %v921_v51 }
  0xe7   : > { %v924_v45 = vpop.f32.mrf.mxu0 }
  0xe8   : > { %3830 = vmatmul.msk.bf16.vlgmr.msra.gmra.mxu2 %vm882_vm3, %v4675_v50 }
  0xea   : > { %3819 = vmatmul.msk.bf16.gmra.mxu0 %vm882_vm3, %v5065_v27 }
  0xeb   : > { %v1204_v30 = vpop.f32.mrf.mxu2  ;;  %v1040_v28 = vpop.f32.mrf.mxu1 }
  0xec   : > { %v1244_v11 = vadd.f32 %v1204_v30, %v1036_v53  ;;  %v5071_v24 = vpop.f32.mrf.mxu3  ;;  %v1041_v43 = vadd.f32 %v1040_v28, %v924_v45 }
  0xee   : > { %3822 = vmatmul.msk.bf16.gmra.mxu1 %vm882_vm3, %v4744_v40 }
  0xef   : > { %v926_v4 = vpop.f32.mrf.mxu0 }
  0xf1   : > { %3840 = vmatmul.msk.bf16.vlgmr.msra.gmra.mxu3 %vm882_vm3, %v4723_v7 }
  0xf3   : > { %v1206_v51 = vpop.f32.mrf.mxu2  ;;  %v1042_v21 = vpop.f32.mrf.mxu1 }
  0xf4   : > { %v1245_v22 = vadd.f32 %v1206_v51, %v1038_v15  ;;  %v1445_v50 = vpop.f32.mrf.mxu3  ;;  %v1043_v12 = vadd.f32 %v1042_v21, %v926_v4 }
  0xf5   : > { %v1485_v5 = vadd.f32 %v1445_v50, %v1244_v11 }
  0xf7   : > { %v1622_v36 = vpop.f32.mrf.mxu0 }
  0xf8   : > { %3831 = vmatmul.msk.bf16.gmra.mxu2 %vm882_vm3, %v4379_v48  ;;  %v5079_v53 = vadd.f32 %v1622_v36, %v1485_v5 }
  0xfa   : > { %3849 = vmatmul.msk.bf16.vlgmr.msra.gmra.mxu0 %vm882_vm3, %v4755_v59 }
  0xfb   : > { %v1209_v46 = vpop.f32.mrf.mxu2  ;;  %v1045_v45 = vpop.f32.mrf.mxu1 }
  0xfc   : > { %v1246_v18 = vadd.f32 %v1209_v46, %v1041_v43  ;;  %v1447_v30 = vpop.f32.mrf.mxu3  ;;  %v1046_v5 = vadd.f32 %v1045_v45, %v4922_v29 }
  0xfd   : > { %v1486_v7 = vadd.f32 %v1447_v30, %v1245_v22 }
  0xfe   : > { %3823 = vmatmul.msk.bf16.gmra.mxu1 %vm882_vm3, %v4802_v63 }
  0xff   : > { %v1624_v28 = vpop.f32.mrf.mxu0 }
 0x100   : > { %v5085_v15 = vadd.f32 %v1624_v28, %v1486_v7 }
 0x101   : > { %3841 = vmatmul.msk.bf16.gmra.mxu3 %vm882_vm3, %v4778_v3 }
 0x103   : > { %v1211_v11 = vpop.f32.mrf.mxu2  ;;  %v1047_v51 = vpop.f32.mrf.mxu1 }
 0x104   : > { %v1247_v4 = vadd.f32 %v1211_v11, %v1043_v12  ;;  %v1450_v21 = vpop.f32.mrf.mxu3  ;;  %v1048_v59 = vadd.f32 %v1047_v51, %v4957_v34 }
 0x105   : > { %v1487_v50 = vadd.f32 %v1450_v21, %v1246_v18 }
 0x107   : > { %v1627_v43 = vpop.f32.mrf.mxu0 }
 0x108   : > { %3832 = vmatmul.msk.bf16.gmra.mxu2 %vm882_vm3, %v4541_v55  ;;  %v5092_v22 = vadd.f32 %v1627_v43, %v1487_v50 }
 0x10a   : > { %3850 = vmatmul.msk.bf16.gmra.mxu0 %vm882_vm3, %v4810_v25 }
 0x10b   : > { %v1214_v36 = vpop.f32.mrf.mxu2  ;;  %v1050_v30 = vpop.f32.mrf.mxu1 }
 0x10c   : > { %v1248_v46 = vadd.f32 %v1214_v36, %v1046_v5  ;;  %v1452_v12 = vpop.f32.mrf.mxu3  ;;  %v1051_v7 = vadd.f32 %v1050_v30, %v4992_v0 }
 0x10d   : > { %v1488_v28 = vadd.f32 %v1452_v12, %v1247_v4 }
 0x10e   : > { %3824 = vmatmul.msk.bf16.gmra.mxu1 %vm882_vm3, %v4836_v52 }
 0x10f   : > { %v1629_v34 = vpop.f32.mrf.mxu0 }
 0x110   : > { %v5100_v18 = vadd.f32 %v1629_v34, %v1488_v28 }
 0x111   : > { %3842 = vmatmul.msk.bf16.gmra.mxu3 %vm882_vm3, %v4820_v2 }
 0x113   : > { %v1216_v11 = vpop.f32.mrf.mxu2  ;;  %v1052_v21 = vpop.f32.mrf.mxu1 }
 0x114   : > { %v1249_v51 = vadd.f32 %v1216_v11, %v1048_v59  ;;  %v1455_v29 = vpop.f32.mrf.mxu3  ;;  %v1053_v45 = vadd.f32 %v1052_v21, %v5020_v32 }
 0x115   : > { %v1489_v50 = vadd.f32 %v1455_v29, %v1248_v46 }
 0x117   : > { %v1632_v43 = vpop.f32.mrf.mxu0 }
 0x118   : > { %3833 = vmatmul.msk.bf16.gmra.mxu2 %vm882_vm3, %v4420_v20  ;;  %v5107_v0 = vadd.f32 %v1632_v43, %v1489_v50  ;;  %v4078_v43 = vld [vmem:[%s4262_s15 + $0x30] sm:$0xff]  }
 0x11a   : > { %3851 = vmatmul.msk.bf16.gmra.mxu0 %vm882_vm3, %v4804_v13 }
 0x11b   : > { %v1219_v4 = vpop.f32.mrf.mxu2  ;;  %v1055_v36 = vpop.f32.mrf.mxu1 }
 0x11c   : > { %v1250_v5 = vadd.f32 %v1219_v4, %v1051_v7  ;;  %v1457_v30 = vpop.f32.mrf.mxu3 }
 0x11d   : > { %v1490_v12 = vadd.f32 %v1457_v30, %v1249_v51  ;;  %v1056_v51 = vadd.f32 %v1055_v36, %v4969_v39  ;;  %v5137_v39 = vld [vmem:[%s6062_s2] ss:$0 sm:$0xff] }
 0x11e   : > { %3825 = vmatmul.msk.bf16.gmra.mxu1 %vm882_vm3, %v4885_v56  ;;  %6231 = vst [vmem:[#allocation26_spill] sm:$0xff] %v5137_v39 }
 0x11f   : > { %v1634_v59 = vpop.f32.mrf.mxu0 }
 0x120   : > { %v5113_v32 = vadd.f32 %v1634_v59, %v1490_v12  ;;  %v4059_v12 = vunpack.c.l.bf16 %v4078_v43 }
 0x121   : > { %3843 = vmatmul.msk.bf16.gmra.mxu3 %vm882_vm3, %v4861_v19 }
 0x123   : > { %v1221_v46 = vpop.f32.mrf.mxu2  ;;  %v1057_v34 = vpop.f32.mrf.mxu1 }
 0x124   : > { %v1251_v28 = vadd.f32 %v1221_v46, %v1053_v45  ;;  %v1460_v11 = vpop.f32.mrf.mxu3  ;;  %v4060_v45 = vunpack.c.h.bf16 %v4078_v43 }
 0x125   : > { %v1491_v21 = vadd.f32 %v1460_v11, %v1250_v5  ;;  %v5128_v5 = vld [vmem:[%s6061_s1] ss:$0 sm:$0xff] }
 0x126   : > { %6230 = vst [vmem:[#allocation25_spill] sm:$0xff] %v5128_v5  ;;  %v419_v11 = vmul.f32 %v5128_v5, %v4059_v12 }
 0x127   : > { %v1637_v29 = vpop.f32.mrf.mxu0 }
 0x128   : > { %3834 = vmatmul.msk.bf16.gmra.mxu2 %vm882_vm3, %v4580_v23  ;;  %v5119_v7 = vadd.f32 %v1637_v29, %v1491_v21  ;;  %v420_v21 = vmul.f32 %v5128_v5, %v4060_v45  ;;  %v435_v36 = vadd.f32 %v5137_v39, %v419_v11 }
 0x12a   : > { %3852 = vmatmul.msk.bf16.gmra.mxu0 %vm882_vm3, %v4896_v62  ;;  %v451_v43 = vmax.f32 %v435_v36, 0.0 }
 0x12b   : > { %v1224_v50 = vpop.f32.mrf.mxu2  ;;  %v1060_v30 = vpop.f32.mrf.mxu1 }
 0x12c   : > { %v1252_v4 = vadd.f32 %v1224_v50, %v1056_v51  ;;  %v1462_v59 = vpop.f32.mrf.mxu3  ;;  %v1058_v50 = vadd.f32 %v1057_v34, %v5010_v49  ;;  %v552_v13 = vrot.slane %v451_v43, 6  ;;  %v1061_v36 = vadd.f32 %v1060_v30, %v5042_v33 }
 0x12d   : > { %v1492_v46 = vadd.f32 %v1462_v59, %v1251_v28  ;;  %v436_v28 = vadd.f32 %v5137_v39, %v420_v21 }
 0x12e   : > { %3826 = vmatmul.msk.bf16.gmra.mxu1 %vm882_vm3, %v4934_v42  ;;  %v608_v21 = vsel %vm527_vm0, 0.0, %v552_v13 }
 0x12f   : > { %v1639_v29 = vpop.f32.mrf.mxu0  ;;  %v452_v12 = vmax.f32 %v436_v28, 0.0 }
 0x130   : > { %v5141_v51 = vadd.f32 %v1639_v29, %v1492_v46  ;;  %v5150_v29 = vpack.c.bf16 %v608_v21, %v608_v21 }
 0x131   : > { %3844 = vmatmul.msk.bf16.gmra.mxu3 %vm882_vm3, %v4908_v16  ;;  %v553_v25 = vrot.slane %v452_v12, 6 }
 0x132   : > { %v1760_v12 = vshll.u32 %v5150_v29, 16  ;;  %v1682_v16 = vunpack.c.l.b16 %v5150_v29 }
 0x133   : > { %v1226_v45 = vpop.f32.mrf.mxu2  ;;  %v1062_v62 = vpop.f32.mrf.mxu1  ;;  %v554_v11 = vsel %vm527_vm0, %v552_v13, %v553_v25  ;;  %v1757_v13 = vshrl.u32 %v5150_v29, 16  ;;  %v620_v43 = vsel %vm527_vm0, %v553_v25, 0.0 }
 0x134   : > { %v1253_v59 = vadd.f32 %v1226_v45, %v1058_v50  ;;  %v1465_v41 = vpop.f32.mrf.mxu3  ;;  %v5154_v34 = vpack.c.bf16 %v554_v11, %v554_v11  ;;  %v5166_v33 = vpack.c.bf16 %v620_v43, %v620_v43  ;;  %v1063_v25 = vadd.f32 %v1062_v62, %v5061_v57 }
 0x135   : > { %v1493_v27 = vadd.f32 %v1465_v41, %v1252_v4  ;;  %v1759_v30 = vrot.slane %v1757_v13, 4 }
 0x136   : > { %v1770_v45 = vshrl.u32 %v5154_v34, 16  ;;  %v1776_v1 = vshll.u32 %v5166_v33, 16  ;;  %v1683_v42 = vunpack.c.l.b16 %v5154_v34 }
 0x137   : > { %v1642_v46 = vpop.f32.mrf.mxu0 }
 0x138   : > { %3835 = vmatmul.msk.bf16.gmra.mxu2 %vm882_vm3, %v4450_v9  ;;  %v5152_v49 = vadd.f32 %v1642_v46, %v1493_v27  ;;  %v1766_v27 = vshll.u32 %v5154_v34, 16  ;;  %v1762_v46 = vrot.slane %v1760_v12, 5 }
 0x13a   : > { %3853 = vmatmul.msk.bf16.gmra.mxu0 %vm882_vm3, %v4945_v47 }
 0x13b   : > { %v1229_v41 = vpop.f32.mrf.mxu2  ;;  %v1065_v28 = vpop.f32.mrf.mxu1 }
 0x13c   : > { %v1254_v4 = vadd.f32 %v1229_v41, %v1061_v36  ;;  %v1467_v50 = vpop.f32.mrf.mxu3  ;;  %v1768_v36 = vrot.slane %v1766_v27, 5  ;;  %v1772_v41 = vrot.slane %v1770_v45, 4 }
 0x13d   : > { %v1494_v11 = vadd.f32 %v1467_v50, %v1253_v59  ;;  %v1763_v59 = vor.u32 %v1762_v46, %v1759_v30  ;;  %v5183_v30 = vpack.c.b16 %v1683_v42, %v1682_v16  ;;  %v3838_v42 = vrot.slane %v5150_v29, 9 }
 0x13e   : > { %3827 = vmatmul.msk.bf16.gmra.mxu1 %vm882_vm3, %v4985_v60  ;;  %v1773_v50 = vor.u32 %v1772_v41, %v1768_v36 }
 0x13f   : > { %v1644_v21 = vpop.f32.mrf.mxu0  ;;  %6232 = vst [vmem:[#allocation27_spill] sm:$0xff] %v5183_v30 }
 0x140   : > { %v5174_v23 = vadd.f32 %v1644_v21, %v1494_v11  ;;  %v1774_v57 = vrot.slane %v1773_v50, 4 }
 0x141   : > { %3845 = vmatmul.msk.bf16.gmra.mxu3 %vm882_vm3, %v4959_v44 }
 0x143   : > { %v1231_v47 = vpop.f32.mrf.mxu2  ;;  %v1067_v9 = vpop.f32.mrf.mxu1 }
 0x144   : > { %v1255_v39 = vadd.f32 %v1231_v47, %v1063_v25  ;;  %v1470_v5 = vpop.f32.mrf.mxu3  ;;  %v1764_v47 = vrot.slane %v1763_v59, 4  ;;  %v1778_v25 = vrot.slane %v1776_v1, 5  ;;  %v1859_v59 = vrot.slane %v5154_v34, 5 }
 0x145   : > { %v1495_v60 = vadd.f32 %v1470_v5, %v1254_v4  ;;  %v1066_v5 = vadd.f32 %v1065_v28, %v5008_v31 }
 0x146   : > { %v1769_v21 = vsel %vm4351_vm4, %v1764_v47, %v1768_v36  ;;  %v1068_v36 = vadd.f32 %v1067_v9, %v5040_v35  ;;  %v1862_v47 = vrot.slane %v5166_v33, 5 }
 0x147   : > { %v1647_v43 = vpop.f32.mrf.mxu0  ;;  %v1782_v31 = vunpack.c.l.b16 %v1769_v21  ;;  %v1945_v21 = vrot.slane %v1766_v27, 6 }
 0x148   : > { %3836 = vmatmul.msk.bf16.gmra.mxu2 %vm882_vm3, %v4633_v58  ;;  %v5178_v62 = vadd.f32 %v1647_v43, %v1495_v60  ;;  %v1779_v60 = vsel %vm4351_vm4, %v1774_v57, %v1778_v25  ;;  %v1940_v57 = vrot.slane %v1757_v13, 5  ;;  %v3905_v25 = vld [vmem:[%s6063_s3 + $0x1c] sm:$0x3]  ;;  %v1860_v13 = vsel %vm4612_vm9, %v3838_v42, %v1859_v59 }
 0x149   : > { %v1783_v28 = vunpack.c.l.b16 %v1779_v60  ;;  %v1949_v60 = vshrl.u32 %v5166_v33, 16  ;;  %v1952_v58 = vrot.slane %v1776_v1, 6  ;;  %v1866_v42 = vunpack.c.l.b16 %v1860_v13  ;;  %v3895_v1 = vld [vmem:[%s6063_s3 + $0x1a] sm:$0x3] }
 0x14a   : > { %3854 = vmatmul.msk.bf16.gmra.mxu0 %vm882_vm3, %v4998_v37 }
 0x14b   : > { %v1234_v4 = vpop.f32.mrf.mxu2  ;;  %v1070_v41 = vpop.f32.mrf.mxu1  ;;  %v5204_v37 = vpack.c.b16 %v1783_v28, %v1782_v31  ;;  %v3914_v31 = vld [vmem:[%s6063_s3 + $0x1e] sm:$0x3] }
 0x14c   : > { %v1256_v46 = vadd.f32 %v1234_v4, %v1066_v5  ;;  %v1472_v11 = vpop.f32.mrf.mxu3  ;;  %v1861_v5 = vrot.slane %v1859_v59, 4  ;;  %v1071_v59 = vadd.f32 %v1070_v41, %v5063_v61 }
 0x14d   : > { %v1496_v50 = vadd.f32 %v1472_v11, %v1255_v39  ;;  %v1941_v39 = vrot.slane %v1760_v12, 6  ;;  %v1944_v11 = vrot.slane %v1770_v45, 5  ;;  %6233 = vst [vmem:[#allocation28_spill] sm:$0xff] %v5204_v37 }
 0x14e   : > { %3828 = vmatmul.msk.bf16.gmra.mxu1 %vm882_vm3, %v5183_v30  ;;  %v1863_v12 = vsel %vm4612_vm9, %v1861_v5, %v1862_v47  ;;  %v1951_v30 = vrot.slane %v1949_v60, 5 }
 0x14f   : > { %v1649_v43 = vpop.f32.mrf.mxu0  ;;  %v1942_v45 = vor.u32 %v1941_v39, %v1940_v57  ;;  %v1946_v27 = vor.u32 %v1945_v21, %v1944_v11  ;;  %v1867_v5 = vunpack.c.l.b16 %v1863_v12 }
 0x150   : > { %v5192_v16 = vadd.f32 %v1649_v43, %v1496_v50  ;;  %v2483_v50 = vsel %vm527_vm0, %v3905_v25, 0  ;;  %v1953_v39 = vor.u32 %v1952_v58, %v1951_v30  ;;  %v2400_v25 = vsel %vm527_vm0, %v3895_v1, 0  ;;  %v3923_v58 = vld [vmem:[%s6063_s3 + $0x20] sm:$0x3] }
 0x151   : > { %3846 = vmatmul.msk.bf16.gmra.mxu3 %vm882_vm3, %v5018_v10  ;;  %2492 = vmatpush.bf16.msra.mxu2 %v2483_v50  ;;  %v1943_v47 = vrot.slane %v1942_v45, 4  ;;  %v1948_v57 = vrot.slane %v1946_v27, 4  ;;  %v5226_v61 = vpack.c.b16 %v1867_v5, %v1866_v42  ;;  %v2661_v30 = vsel %vm527_vm0, %v3923_v58, 0 }
 0x152   : > { %2409 = vmatpush.bf16.msra.mxu1 %v2400_v25  ;;  %2670 = vmatpush.bf16.msra.mxu0 %v2661_v30 }
 0x153   : > { %v1236_v4 = vpop.f32.mrf.mxu2  ;;  %v1072_v17 = vpop.f32.mrf.mxu1  ;;  %v1947_v50 = vsel %vm4663_vm12, %v1943_v47, %v1946_v27 }
 0x154   : > { %v1257_v43 = vadd.f32 %v1236_v4, %v1068_v36  ;;  %v1475_v9 = vpop.f32.mrf.mxu3  ;;  %v1073_v13 = vadd.f32 %v1072_v17, %v5071_v24 }
 0x155   : > { %v1497_v35 = vadd.f32 %v1475_v9, %v1256_v46  ;;  %v2561_v46 = vsel %vm527_vm0, %v3914_v31, 0  ;;  %v1954_v9 = vsel %vm4663_vm12, %v1948_v57, %v1953_v39 }
 0x156   : > { %2570 = vmatpush.bf16.msra.mxu3 %v2561_v46 }
 0x157   : > { %v1652_v10 = vpop.f32.mrf.mxu0 }
 0x158   : > { %3837 = vmatmul.msk.bf16.gmra.mxu2 %vm882_vm3, %v5204_v37  ;;  %v5216_v28 = vadd.f32 %v1652_v10, %v1497_v35  ;;  %v1958_v35 = vunpack.c.l.b16 %v1954_v9 }
 0x15a   : > { %3855 = vmatmul.msk.bf16.gmra.mxu0 %vm882_vm3, %v5047_v54 }
 0x15b   : > { %v1239_v36 = vpop.f32.mrf.mxu2  ;;  %v1700_v4 = vpop.f32.mrf.mxu1 }
 0x15c   : > { %v1258_v10 = vadd.f32 %v1239_v36, %v1071_v59  ;;  %v1477_v11 = vpop.f32.mrf.mxu3  ;;  %v1740_v21 = vadd.f32 %v1700_v4, %v5079_v53 }
 0x15d   : > { %v1498_v60 = vadd.f32 %v1477_v11, %v1257_v43  ;;  %v1957_v43 = vunpack.c.l.b16 %v1947_v50 }
 0x15e   : > { %3859 = vmatmul.msk.bf16.vlgmr.msrb.gmra.mxu1 %vm882_vm3, %v4780_v6 }
 0x15f   : > { %v1654_v41 = vpop.f32.mrf.mxu0  ;;  %v5244_v59 = vpack.c.b16 %v1958_v35, %v1957_v43 }
 0x160   : > { %v5238_v53 = vadd.f32 %v1654_v41, %v1498_v60 }
 0x161   : > { %3847 = vmatmul.msk.bf16.gmra.mxu3 %vm882_vm3, %v5226_v61  ;;  %6234 = vst [vmem:[#allocation29_spill] sm:$0xff] %v5244_v59 }
 0x163   : > { %v1241_v12 = vpop.f32.mrf.mxu2  ;;  %v1702_v27 = vpop.f32.mrf.mxu1 }
 0x164   : > { %v1259_v45 = vadd.f32 %v1241_v12, %v1073_v13  ;;  %v1480_v6 = vpop.f32.mrf.mxu3  ;;  %v1741_v31 = vadd.f32 %v1702_v27, %v5085_v15 }
 0x165   : > { %v1499_v46 = vadd.f32 %v1480_v6, %v1258_v10 }
 0x167   : > { %v1657_v42 = vpop.f32.mrf.mxu0 }
 0x168   : > { %3868 = vmatmul.msk.bf16.vlgmr.msrb.gmra.mxu2 %vm882_vm3, %v4744_v40  ;;  %v5248_v5 = vadd.f32 %v1657_v42, %v1499_v46 }
 0x16a   : > { %3856 = vmatmul.msk.bf16.gmra.mxu0 %vm882_vm3, %v5244_v59 }
 0x16b   : > { %v1800_v1 = vpop.f32.mrf.mxu2  ;;  %v1705_v24 = vpop.f32.mrf.mxu1 }
 0x16c   : > { %v1840_v17 = vadd.f32 %v1800_v1, %v1740_v21  ;;  %v1482_v36 = vpop.f32.mrf.mxu3  ;;  %v1742_v47 = vadd.f32 %v1705_v24, %v5092_v22 }
 0x16d   : > { %v1500_v57 = vadd.f32 %v1482_v36, %v1259_v45 }
 0x16e   : > { %3860 = vmatmul.msk.bf16.gmra.mxu1 %vm882_vm3, %v4823_v26 }
 0x16f   : > { %v1659_v15 = vpop.f32.mrf.mxu0 }
 0x170   : > { %v5255_v39 = vadd.f32 %v1659_v15, %v1500_v57 }
 0x171   : > { %3877 = vmatmul.msk.bf16.vlgmr.msrb.gmra.mxu3 %vm882_vm3, %v4379_v48 }
 0x173   : > { %v1802_v40 = vpop.f32.mrf.mxu2  ;;  %v1707_v10 = vpop.f32.mrf.mxu1 }
 0x174   : > { %v1841_v25 = vadd.f32 %v1802_v40, %v1741_v31  ;;  %v1884_v4 = vpop.f32.mrf.mxu3  ;;  %v1743_v11 = vadd.f32 %v1707_v10, %v5100_v18 }
 0x175   : > { %v1924_v21 = vadd.f32 %v1884_v4, %v1840_v17 }
 0x177   : > { %v1975_v60 = vpop.f32.mrf.mxu0 }
 0x178   : > { %3869 = vmatmul.msk.bf16.gmra.mxu2 %vm882_vm3, %v4802_v63  ;;  %v5262_v22 = vadd.f32 %v1975_v60, %v1924_v21 }
 0x17a   : > { %3887 = vmatmul.msk.bf16.vlgmr.msrb.gmra.mxu0 %vm882_vm3, %v4778_v3 }
 0x17b   : > { %v1805_v41 = vpop.f32.mrf.mxu2  ;;  %v1710_v9 = vpop.f32.mrf.mxu1 }
 0x17c   : > { %v1842_v50 = vadd.f32 %v1805_v41, %v1742_v47  ;;  %v1886_v48 = vpop.f32.mrf.mxu3  ;;  %v1744_v58 = vadd.f32 %v1710_v9, %v5107_v0  ;;  %v6235_v47 = vld [vmem:[#allocation15_spill] sm:$0xff] }
 0x17d   : > { %v1925_v30 = vadd.f32 %v1886_v48, %v1841_v25 }
 0x17e   : > { %3861 = vmatmul.msk.bf16.gmra.mxu1 %vm882_vm3, %v4864_v38 }
 0x17f   : > { %v1977_v43 = vpop.f32.mrf.mxu0 }
 0x180   : > { %v5269_v18 = vadd.f32 %v1977_v43, %v1925_v30  ;;  %v6236_v30 = vld [vmem:[#allocation19_spill] sm:$0xff]  ;;  %v6237_v43 = vld [vmem:[#allocation5_spill] sm:$0xff] }
 0x181   : > { %3878 = vmatmul.msk.bf16.gmra.mxu3 %vm882_vm3, %v4541_v55 }
 0x183   : > { %v1807_v35 = vpop.f32.mrf.mxu2  ;;  %v1712_v12 = vpop.f32.mrf.mxu1 }
 0x184   : > { %v1843_v13 = vadd.f32 %v1807_v35, %v1743_v11  ;;  %v1889_v3 = vpop.f32.mrf.mxu3  ;;  %v1745_v45 = vadd.f32 %v1712_v12, %v5113_v32 }
 0x185   : > { %v1926_v27 = vadd.f32 %v1889_v3, %v1842_v50 }
 0x187   : > { %v1980_v6 = vpop.f32.mrf.mxu0 }
 0x188   : > { %3870 = vmatmul.msk.bf16.gmra.mxu2 %vm882_vm3, %v4836_v52  ;;  %v5276_v0 = vadd.f32 %v1980_v6, %v1926_v27 }
 0x18a   : > { %3888 = vmatmul.msk.bf16.gmra.mxu0 %vm882_vm3, %v4820_v2 }
 0x18b   : > { %v1810_v31 = vpop.f32.mrf.mxu2  ;;  %v1715_v42 = vpop.f32.mrf.mxu1 }
 0x18c   : > { %v1844_v46 = vadd.f32 %v1810_v31, %v1744_v58  ;;  %v1891_v1 = vpop.f32.mrf.mxu3  ;;  %v1746_v17 = vadd.f32 %v1715_v42, %v5119_v7 }
 0x18d   : > { %v1927_v24 = vadd.f32 %v1891_v1, %v1843_v13 }
 0x18e   : > { %3862 = vmatmul.msk.bf16.gmra.mxu1 %vm882_vm3, %v6235_v47 }
 0x18f   : > { %v1982_v36 = vpop.f32.mrf.mxu0 }
 0x190   : > { %v5283_v32 = vadd.f32 %v1982_v36, %v1927_v24  ;;  %v4079_v24 = vld [vmem:[%s4262_s15 + $0x38] sm:$0xff]  }
 0x191   : > { %3879 = vmatmul.msk.bf16.gmra.mxu3 %vm882_vm3, %v4420_v20 }
 0x193   : > { %v1812_v57 = vpop.f32.mrf.mxu2  ;;  %v1717_v40 = vpop.f32.mrf.mxu1 }
 0x194   : > { %v1845_v15 = vadd.f32 %v1812_v57, %v1745_v45  ;;  %v1894_v25 = vpop.f32.mrf.mxu3  ;;  %v1747_v10 = vadd.f32 %v1717_v40, %v5141_v51  ;;  %v4064_v40 = vunpack.c.h.bf16 %v4079_v24 }
 0x195   : > { %v1928_v4 = vadd.f32 %v1894_v25, %v1844_v46  ;;  %v6239_v46 = vld [vmem:[#allocation14_spill] sm:$0xff] }
 0x197   : > { %v1985_v11 = vpop.f32.mrf.mxu0 }
 0x198   : > { %3871 = vmatmul.msk.bf16.gmra.mxu2 %vm882_vm3, %v4885_v56  ;;  %v5290_v7 = vadd.f32 %v1985_v11, %v1928_v4  ;;  %v6241_v4 = vld [vmem:[#allocation25_spill] sm:$0xff] }
 0x19a   : > { %3889 = vmatmul.msk.bf16.gmra.mxu0 %vm882_vm3, %v4861_v19 }
 0x19b   : > { %v1815_v21 = vpop.f32.mrf.mxu2  ;;  %v1720_v41 = vpop.f32.mrf.mxu1 }
 0x19c   : > { %v1846_v60 = vadd.f32 %v1815_v21, %v1746_v17  ;;  %v1896_v50 = vpop.f32.mrf.mxu3  ;;  %v1748_v9 = vadd.f32 %v1720_v41, %v5152_v49  ;;  %v6238_v49 = vld [vmem:[#allocation16_spill] sm:$0xff]  ;;  %v422_v21 = vmul.f32 %v6241_v4, %v4064_v40 }
 0x19d   : > { %v1929_v48 = vadd.f32 %v1896_v50, %v1845_v15  ;;  %v4063_v15 = vunpack.c.l.bf16 %v4079_v24  ;;  %v6242_v41 = vld [vmem:[#allocation4_spill] sm:$0xff] }
 0x19e   : > { %3863 = vmatmul.msk.bf16.gmra.mxu1 %vm882_vm3, %v6236_v30 }
 0x19f   : > { %v1987_v58 = vpop.f32.mrf.mxu0  ;;  %v421_v11 = vmul.f32 %v6241_v4, %v4063_v15 }
 0x1a0   : > { %v5297_v51 = vadd.f32 %v1987_v58, %v1929_v48 }
 0x1a1   : > { %3880 = vmatmul.msk.bf16.gmra.mxu3 %vm882_vm3, %v6237_v43 }
 0x1a3   : > { %v1817_v35 = vpop.f32.mrf.mxu2  ;;  %v1722_v12 = vpop.f32.mrf.mxu1 }
 0x1a4   : > { %v1847_v13 = vadd.f32 %v1817_v35, %v1747_v10  ;;  %v1899_v3 = vpop.f32.mrf.mxu3  ;;  %v1749_v45 = vadd.f32 %v1722_v12, %v5174_v23  ;;  %v6240_v10 = vld [vmem:[#allocation23_spill] sm:$0xff] }
 0x1a5   : > { %v1930_v27 = vadd.f32 %v1899_v3, %v1846_v60 }
 0x1a7   : > { %v1990_v6 = vpop.f32.mrf.mxu0 }
 0x1a8   : > { %3872 = vmatmul.msk.bf16.gmra.mxu2 %vm882_vm3, %v6238_v49  ;;  %v5304_v31 = vadd.f32 %v1990_v6, %v1930_v27 }
 0x1aa   : > { %3890 = vmatmul.msk.bf16.gmra.mxu0 %vm882_vm3, %v6239_v46 }
 0x1ab   : > { %v1820_v42 = vpop.f32.mrf.mxu2  ;;  %v1725_v17 = vpop.f32.mrf.mxu1 }
 0x1ac   : > { %v1848_v1 = vadd.f32 %v1820_v42, %v1748_v9  ;;  %v1901_v36 = vpop.f32.mrf.mxu3  ;;  %v1750_v57 = vadd.f32 %v1725_v17, %v5178_v62  ;;  %v6243_v9 = vld [vmem:[#allocation26_spill] sm:$0xff]  ;;  %v6244_v17 = vld [vmem:[#allocation20_spill] sm:$0xff] }
 0x1ad   : > { %v1931_v23 = vadd.f32 %v1901_v36, %v1847_v13  ;;  %v437_v48 = vadd.f32 %v6243_v9, %v421_v11  ;;  %v438_v62 = vadd.f32 %v6243_v9, %v422_v21  ;;  %v2033_v11 = vrot.slane %v5154_v34, 6 }
 0x1ae   : > { %3864 = vmatmul.msk.bf16.gmra.mxu1 %vm882_vm3, %v6240_v10 }
 0x1af   : > { %v1992_v25 = vpop.f32.mrf.mxu0  ;;  %v453_v6 = vmax.f32 %v437_v48, 0.0  ;;  %v454_v42 = vmax.f32 %v438_v62, 0.0 }
 0x1b0   : > { %v5314_v60 = vadd.f32 %v1992_v25, %v1931_v23 }
 0x1b1   : > { %3881 = vmatmul.msk.bf16.gmra.mxu3 %vm882_vm3, %v6242_v41  ;;  %v555_v15 = vrot.slane %v453_v6, 6  ;;  %v556_v40 = vrot.slane %v454_v42, 6 }
 0x1b3   : > { %v1822_v50 = vpop.f32.mrf.mxu2  ;;  %v1727_v35 = vpop.f32.mrf.mxu1  ;;  %v557_v48 = vsel %vm527_vm0, %v555_v15, %v556_v40  ;;  %v609_v62 = vsel %vm527_vm0, 0.0, %v555_v15 }
 0x1b4   : > { %v1849_v58 = vadd.f32 %v1822_v50, %v1749_v45  ;;  %v1904_v13 = vpop.f32.mrf.mxu3  ;;  %v1751_v12 = vadd.f32 %v1727_v35, %v5192_v16  ;;  %v6245_v50 = vld [vmem:[#allocation24_spill] sm:$0xff]  ;;  %v3857_v35 = vrot.slane %v5150_v29, 10  ;;  %v5341_v34 = vpack.c.bf16 %v557_v48, %v557_v48 }
 0x1b5   : > { %v1932_v3 = vadd.f32 %v1904_v13, %v1848_v1  ;;  %v2035_v13 = vrot.slane %v2033_v11, 4 }
 0x1b6   : > { %v2034_v15 = vsel %vm4690_vm14, %v3857_v35, %v2033_v11  ;;  %v6141_v48 = vshll.u32 %v5341_v34, 16  ;;  %v6143_v11 = vshrl.u32 %v5341_v34, 16  ;;  %v6248_v35 = vld [vmem:[#allocation27_spill] sm:$0xff] }
 0x1b7   : > { %v1995_v27 = vpop.f32.mrf.mxu0 }
 0x1b8   : > { %3873 = vmatmul.msk.bf16.gmra.mxu2 %vm882_vm3, %v6244_v17  ;;  %v5323_v24 = vadd.f32 %v1995_v27, %v1932_v3  ;;  %v6246_v27 = vld [vmem:[#allocation6_spill] sm:$0xff] }
 0x1ba   : > { %3891 = vmatmul.msk.bf16.gmra.mxu0 %vm882_vm3, %v4959_v44  ;;  %v2040_v44 = vunpack.c.l.b16 %v2034_v15 }
 0x1bb   : > { %v1825_v36 = vpop.f32.mrf.mxu2  ;;  %v1730_v23 = vpop.f32.mrf.mxu1 }
 0x1bc   : > { %v1850_v45 = vadd.f32 %v1825_v36, %v1750_v57  ;;  %v1906_v25 = vpop.f32.mrf.mxu3  ;;  %v1752_v16 = vadd.f32 %v1730_v23, %v5216_v28  ;;  %v2036_v57 = vrot.slane %v5166_v33, 6  ;;  %v5339_v28 = vpack.c.bf16 %v609_v62, %v609_v62 }
 0x1bd   : > { %v1933_v1 = vadd.f32 %v1906_v25, %v1849_v58 }
 0x1be   : > { %3865 = vmatmul.msk.bf16.gmra.mxu1 %vm882_vm3, %v6245_v50  ;;  %v2037_v29 = vsel %vm4690_vm14, %v2035_v13, %v2036_v57 }
 0x1bf   : > { %v1997_v21 = vpop.f32.mrf.mxu0 }
 0x1c0   : > { %v5335_v3 = vadd.f32 %v1997_v21, %v1933_v1  ;;  %v6140_v1 = vshrl.u32 %v5339_v28, 16  ;;  %v6139_v21 = vshll.u32 %v5339_v28, 16 }
 0x1c1   : > { %3882 = vmatmul.msk.bf16.gmra.mxu3 %vm882_vm3, %v6246_v27 }
 0x1c2   : > { %v2195_v57 = vrot.slane %v6140_v1, 4  ;;  %v2118_v1 = vunpack.c.l.b16 %v5339_v28 }
 0x1c3   : > { %v1827_v58 = vpop.f32.mrf.mxu2  ;;  %v1732_v42 = vpop.f32.mrf.mxu1 }
 0x1c4   : > { %v1851_v6 = vadd.f32 %v1827_v58, %v1751_v12  ;;  %v1909_v23 = vpop.f32.mrf.mxu3  ;;  %v1753_v33 = vadd.f32 %v1732_v42, %v5238_v53  ;;  %v2041_v12 = vunpack.c.l.b16 %v2037_v29  ;;  %v621_v58 = vsel %vm527_vm0, %v556_v40, 0.0  ;;  %v6249_v53 = vld [vmem:[#allocation22_spill] sm:$0xff] }
 0x1c5   : > { %v1934_v25 = vadd.f32 %v1909_v23, %v1850_v45  ;;  %v5359_v45 = vpack.c.bf16 %v621_v58, %v621_v58  ;;  %v2198_v40 = vrot.slane %v6139_v21, 5  ;;  %v2204_v29 = vrot.slane %v6141_v48, 5 }
 0x1c6   : > { %v5363_v15 = vpack.c.b16 %v2041_v12, %v2040_v44  ;;  %v2208_v23 = vrot.slane %v6143_v11, 4  ;;  %v2119_v48 = vunpack.c.l.b16 %v5341_v34 }
 0x1c7   : > { %v2000_v62 = vpop.f32.mrf.mxu0  ;;  %v2199_v44 = vor.u32 %v2198_v40, %v2195_v57  ;;  %v6149_v21 = vshll.u32 %v5359_v45, 16 }
 0x1c8   : > { %3874 = vmatmul.msk.bf16.gmra.mxu2 %vm882_vm3, %v6248_v35  ;;  %v5355_v13 = vadd.f32 %v2000_v62, %v1934_v25  ;;  %6250 = vst [vmem:[#allocation15_spill] sm:$0xff] %v5363_v15  ;;  %v2209_v12 = vor.u32 %v2208_v23, %v2204_v29  ;;  %v5387_v23 = vpack.c.b16 %v2119_v48, %v2118_v1 }
 0x1c9   : > { %v2214_v57 = vrot.slane %v6149_v21, 5  ;;  %v6253_v21 = vld [vmem:[#allocation10_spill] sm:$0xff] }
 0x1ca   : > { %3892 = vmatmul.msk.bf16.gmra.mxu0 %vm882_vm3, %v6249_v53 }
 0x1cb   : > { %v1830_v42 = vpop.f32.mrf.mxu2  ;;  %v1735_v62 = vpop.f32.mrf.mxu1 }
 0x1cc   : > { %v1852_v25 = vadd.f32 %v1830_v42, %v1752_v16  ;;  %v1911_v53 = vpop.f32.mrf.mxu3  ;;  %v1754_v58 = vadd.f32 %v1735_v62, %v5248_v5  ;;  %v3942_v5 = vld [vmem:[%s6063_s3 + $0x24] sm:$0x3] }
 0x1cd   : > { %v1935_v46 = vadd.f32 %v1911_v53, %v1851_v6  ;;  %v2200_v6 = vrot.slane %v2199_v44, 4  ;;  %v2210_v53 = vrot.slane %v2209_v12, 4  ;;  %v2836_v42 = vsel %vm527_vm0, %v3942_v5, 0 }
 0x1ce   : > { %3866 = vmatmul.msk.bf16.gmra.mxu1 %vm882_vm3, %v5363_v15  ;;  %2845 = vmatpush.bf16.msrb.mxu2 %v2836_v42  ;;  %v2295_v12 = vrot.slane %v5341_v34, 5 }
 0x1cf   : > { %v2002_v19 = vpop.f32.mrf.mxu0  ;;  %v2205_v15 = vsel %vm4351_vm4, %v2200_v6, %v2204_v29  ;;  %v2215_v44 = vsel %vm4351_vm4, %v2210_v53, %v2214_v57  ;;  %v2298_v53 = vrot.slane %v5359_v45, 5 }
 0x1d0   : > { %v5377_v2 = vadd.f32 %v2002_v19, %v1935_v46  ;;  %v2218_v48 = vunpack.c.l.b16 %v2205_v15  ;;  %v2219_v29 = vunpack.c.l.b16 %v2215_v44  ;;  %v2297_v6 = vrot.slane %v2295_v12, 4 }
 0x1d1   : > { %3883 = vmatmul.msk.bf16.gmra.mxu3 %vm882_vm3, %v5204_v37 }
 0x1d3   : > { %v1832_v16 = vpop.f32.mrf.mxu2  ;;  %v1737_v19 = vpop.f32.mrf.mxu1 }
 0x1d4   : > { %v1853_v40 = vadd.f32 %v1832_v16, %v1753_v33  ;;  %v1914_v46 = vpop.f32.mrf.mxu3  ;;  %v1755_v62 = vadd.f32 %v1737_v19, %v5255_v39  ;;  %v3952_v33 = vld [vmem:[%s6063_s3 + $0x26] sm:$0x3]  ;;  %v3885_v16 = vrot.slane %v5339_v28, 9 }
 0x1d5   : > { %v1936_v11 = vadd.f32 %v1914_v46, %v1852_v25  ;;  %v2919_v1 = vsel %vm527_vm0, %v3952_v33, 0  ;;  %v3933_v25 = vld [vmem:[%s6063_s3 + $0x22] sm:$0x3]  ;;  %v5412_v46 = vpack.c.b16 %v2219_v29, %v2218_v48 }
 0x1d6   : > { %2928 = vmatpush.bf16.msrb.mxu3 %v2919_v1  ;;  %v2745_v57 = vsel %vm527_vm0, %v3933_v25, 0  ;;  %v2296_v33 = vsel %vm4612_vm9, %v3885_v16, %v2295_v12  ;;  %v2299_v1 = vsel %vm4612_vm9, %v2297_v6, %v2298_v53 }
 0x1d7   : > { %v2005_v36 = vpop.f32.mrf.mxu0  ;;  %2754 = vmatpush.bf16.msrb.mxu1 %v2745_v57  ;;  %6252 = vst [vmem:[#allocation19_spill] sm:$0xff] %v5412_v46  ;;  %v2303_v12 = vunpack.c.l.b16 %v2299_v1 }
 0x1d8   : > { %3875 = vmatmul.msk.bf16.gmra.mxu2 %vm882_vm3, %v5387_v23  ;;  %v5401_v39 = vadd.f32 %v2005_v36, %v1936_v11 }
 0x1da   : > { %3893 = vmatmul.msk.bf16.gmra.mxu0 %vm882_vm3, %v5226_v61 }
 0x1db   : > { %v1835_v5 = vpop.f32.mrf.mxu2  ;;  %v2058_v11 = vpop.f32.mrf.mxu1 }
 0x1dc   : > { %v1854_v36 = vadd.f32 %v1835_v5, %v1754_v58  ;;  %v1916_v42 = vpop.f32.mrf.mxu3  ;;  %v2098_v19 = vadd.f32 %v2058_v11, %v5262_v22  ;;  %v3961_v58 = vld [vmem:[%s6063_s3 + $0x28] sm:$0x3] }
 0x1dd   : > { %v1937_v15 = vadd.f32 %v1916_v42, %v1853_v40  ;;  %v2997_v25 = vsel %vm527_vm0, %v3961_v58, 0  ;;  %v2302_v40 = vunpack.c.l.b16 %v2296_v33 }
 0x1de   : > { %3896 = vmatmul.msk.bf16.vlgmr.msra.gmra.mxu1 %vm882_vm3, %v6253_v21  ;;  %3006 = vmatpush.bf16.msrb.mxu0 %v2997_v25 }
 0x1df   : > { %v2007_v44 = vpop.f32.mrf.mxu0  ;;  %v5429_v53 = vpack.c.b16 %v2303_v12, %v2302_v40 }
 0x1e0   : > { %v5424_v22 = vadd.f32 %v2007_v44, %v1937_v15 }
 0x1e1   : > { %3884 = vmatmul.msk.bf16.gmra.mxu3 %vm882_vm3, %v5412_v46  ;;  %6254 = vst [vmem:[#allocation16_spill] sm:$0xff] %v5429_v53 }
 0x1e3   : > { %v1837_v48 = vpop.f32.mrf.mxu2  ;;  %v2060_v5 = vpop.f32.mrf.mxu1 }
 0x1e4   : > { %v1855_v29 = vadd.f32 %v1837_v48, %v1755_v62  ;;  %v1919_v16 = vpop.f32.mrf.mxu3  ;;  %v2099_v21 = vadd.f32 %v2060_v5, %v5269_v18 }
 0x1e5   : > { %v1938_v6 = vadd.f32 %v1919_v16, %v1854_v36  ;;  %v6255_v36 = vld [vmem:[#allocation9_spill] sm:$0xff] }
 0x1e7   : > { %v2010_v57 = vpop.f32.mrf.mxu0 }
 0x1e8   : > { %3906 = vmatmul.msk.bf16.vlgmr.msra.gmra.mxu2 %vm882_vm3, %v4823_v26  ;;  %v5433_v11 = vadd.f32 %v2010_v57, %v1938_v6 }
 0x1ea   : > { %3894 = vmatmul.msk.bf16.gmra.mxu0 %vm882_vm3, %v5429_v53 }
 0x1eb   : > { %v2136_v42 = vpop.f32.mrf.mxu2  ;;  %v2063_v44 = vpop.f32.mrf.mxu1 }
 0x1ec   : > { %v2176_v15 = vadd.f32 %v2136_v42, %v2098_v19  ;;  %v1921_v62 = vpop.f32.mrf.mxu3  ;;  %v2100_v33 = vadd.f32 %v2063_v44, %v5276_v0  ;;  %v6256_v44 = vld [vmem:[#allocation13_spill] sm:$0xff] }
 0x1ed   : > { %v1939_v1 = vadd.f32 %v1921_v62, %v1855_v29 }
 0x1ee   : > { %3897 = vmatmul.msk.bf16.gmra.mxu1 %vm882_vm3, %v6255_v36 }
 0x1ef   : > { %v2012_v18 = vpop.f32.mrf.mxu0 }
 0x1f0   : > { %v5440_v58 = vadd.f32 %v2012_v18, %v1939_v1 }
 0x1f1   : > { %3915 = vmatmul.msk.bf16.vlgmr.msra.gmra.mxu3 %vm882_vm3, %v4802_v63 }
 0x1f3   : > { %v2138_v26 = vpop.f32.mrf.mxu2  ;;  %v2065_v40 = vpop.f32.mrf.mxu1 }
 0x1f4   : > { %v2177_v25 = vadd.f32 %v2138_v26, %v2099_v21  ;;  %v2236_v12 = vpop.f32.mrf.mxu3  ;;  %v2101_v19 = vadd.f32 %v2065_v40, %v5283_v32 }
 0x1f5   : > { %v2276_v48 = vadd.f32 %v2236_v12, %v2176_v15 }
 0x1f7   : > { %v2320_v5 = vpop.f32.mrf.mxu0 }
 0x1f8   : > { %3907 = vmatmul.msk.bf16.gmra.mxu2 %vm882_vm3, %v4864_v38  ;;  %v5447_v0 = vadd.f32 %v2320_v5, %v2276_v48 }
 0x1fa   : > { %3924 = vmatmul.msk.bf16.vlgmr.msra.gmra.mxu0 %vm882_vm3, %v4541_v55 }
 0x1fb   : > { %v2141_v29 = vpop.f32.mrf.mxu2  ;;  %v2068_v6 = vpop.f32.mrf.mxu1 }
 0x1fc   : > { %v2178_v16 = vadd.f32 %v2141_v29, %v2100_v33  ;;  %v2238_v63 = vpop.f32.mrf.mxu3  ;;  %v2102_v21 = vadd.f32 %v2068_v6, %v5290_v7 }
 0x1fd   : > { %v2277_v57 = vadd.f32 %v2238_v63, %v2177_v25 }
 0x1fe   : > { %3898 = vmatmul.msk.bf16.gmra.mxu1 %vm882_vm3, %v6256_v44 }
 0x1ff   : > { %v2322_v42 = vpop.f32.mrf.mxu0 }
 0x200   : > { %v5454_v32 = vadd.f32 %v2322_v42, %v2277_v57 }
 0x201   : > { %3916 = vmatmul.msk.bf16.gmra.mxu3 %vm882_vm3, %v4836_v52 }
 0x203   : > { %v2143_v15 = vpop.f32.mrf.mxu2  ;;  %v2070_v1 = vpop.f32.mrf.mxu1 }
 0x204   : > { %v2179_v62 = vadd.f32 %v2143_v15, %v2101_v19  ;;  %v2241_v55 = vpop.f32.mrf.mxu3  ;;  %v2103_v33 = vadd.f32 %v2070_v1, %v5297_v51  ;;  %v6257_v51 = vld [vmem:[#allocation17_spill] sm:$0xff] }
 0x205   : > { %v2278_v18 = vadd.f32 %v2241_v55, %v2178_v16 }
 0x207   : > { %v2325_v26 = vpop.f32.mrf.mxu0 }
 0x208   : > { %3908 = vmatmul.msk.bf16.gmra.mxu2 %vm882_vm3, %v6235_v47  ;;  %v5461_v7 = vadd.f32 %v2325_v26, %v2278_v18 }
 0x20a   : > { %3925 = vmatmul.msk.bf16.gmra.mxu0 %vm882_vm3, %v4420_v20 }
 0x20b   : > { %v2146_v25 = vpop.f32.mrf.mxu2  ;;  %v2073_v12 = vpop.f32.mrf.mxu1 }
 0x20c   : > { %v2180_v40 = vadd.f32 %v2146_v25, %v2102_v21  ;;  %v2243_v48 = vpop.f32.mrf.mxu3  ;;  %v2104_v19 = vadd.f32 %v2073_v12, %v5304_v31 }
 0x20d   : > { %v2279_v5 = vadd.f32 %v2243_v48, %v2179_v62 }
 0x20e   : > { %3899 = vmatmul.msk.bf16.gmra.mxu1 %vm882_vm3, %v6257_v51 }
 0x20f   : > { %v2327_v29 = vpop.f32.mrf.mxu0 }
 0x210   : > { %v5468_v16 = vadd.f32 %v2327_v29, %v2279_v5 }
 0x211   : > { %3917 = vmatmul.msk.bf16.gmra.mxu3 %vm882_vm3, %v4885_v56 }
 0x213   : > { %v2148_v6 = vpop.f32.mrf.mxu2  ;;  %v2075_v57 = vpop.f32.mrf.mxu1 }
 0x214   : > { %v2181_v63 = vadd.f32 %v2148_v6, %v2103_v33  ;;  %v2246_v42 = vpop.f32.mrf.mxu3  ;;  %v2105_v21 = vadd.f32 %v2075_v57, %v5314_v60 }
 0x215   : > { %v2280_v15 = vadd.f32 %v2246_v42, %v2180_v40  ;;  %v6258_v40 = vld [vmem:[#allocation21_spill] sm:$0xff] }
 0x217   : > { %v2330_v1 = vpop.f32.mrf.mxu0 }
 0x218   : > { %3909 = vmatmul.msk.bf16.gmra.mxu2 %vm882_vm3, %v6236_v30  ;;  %v5475_v31 = vadd.f32 %v2330_v1, %v2280_v15 }
 0x21a   : > { %3926 = vmatmul.msk.bf16.gmra.mxu0 %vm882_vm3, %v6237_v43 }
 0x21b   : > { %v2151_v62 = vpop.f32.mrf.mxu2  ;;  %v2078_v33 = vpop.f32.mrf.mxu1 }
 0x21c   : > { %v2182_v55 = vadd.f32 %v2151_v62, %v2104_v19  ;;  %v2248_v60 = vpop.f32.mrf.mxu3  ;;  %v2106_v18 = vadd.f32 %v2078_v33, %v5323_v24  ;;  %v4066_v33 = vld [vmem:[%s462_s29] sm:$0xff]  }
 0x21d   : > { %v2281_v26 = vadd.f32 %v2248_v60, %v2181_v63  ;;  %v4067_v60 = vunpack.c.l.bf16 %v4066_v33 }
 0x21e   : > { %3900 = vmatmul.msk.bf16.gmra.mxu1 %vm882_vm3, %v6258_v40 }
 0x21f   : > { %v2332_v25 = vpop.f32.mrf.mxu0 }
 0x220   : > { %v5487_v12 = vadd.f32 %v2332_v25, %v2281_v26  ;;  %v4068_v26 = vunpack.c.h.bf16 %v4066_v33 }
 0x221   : > { %3918 = vmatmul.msk.bf16.gmra.mxu3 %vm882_vm3, %v6238_v49 }
 0x223   : > { %v2153_v48 = vpop.f32.mrf.mxu2  ;;  %v2080_v5 = vpop.f32.mrf.mxu1 }
 0x224   : > { %v2183_v19 = vadd.f32 %v2153_v48, %v2105_v21  ;;  %v2251_v29 = vpop.f32.mrf.mxu3  ;;  %v2107_v6 = vadd.f32 %v2080_v5, %v5335_v3  ;;  %v468_v48 = vmul.f32 %v6241_v4, %v4067_v60  ;;  %v469_v5 = vmul.f32 %v6241_v4, %v4068_v26 }
 0x225   : > { %v2282_v24 = vadd.f32 %v2251_v29, %v2182_v55  ;;  %v475_v4 = vstv %s474_s7  ;;  %v6259_v60 = vshrl.u32 %v5339_v28, 16  ;;  %s498_s7 = scalar_select %p489_p3, 1, 0 }
 0x226   : > { %vm476_vm15 = vcmp.eq.s32.totalorder %v475_v4, 1 }
 0x227   : > { %v2335_v63 = vpop.f32.mrf.mxu0  ;;  %v2376_v26 = vrot.slane %v6259_v60, 5 }
 0x228   : > { %3910 = vmatmul.msk.bf16.gmra.mxu2 %vm882_vm3, %v6240_v10  ;;  %v5495_v57 = vadd.f32 %v2335_v63, %v2282_v24 }
 0x22a   : > { %3927 = vmatmul.msk.bf16.gmra.mxu0 %vm882_vm3, %v6242_v41 }
 0x22b   : > { %v2156_v42 = vpop.f32.mrf.mxu2  ;;  %v2083_v21 = vpop.f32.mrf.mxu1 }
 0x22c   : > { %v2184_v15 = vadd.f32 %v2156_v42, %v2106_v18  ;;  %v2253_v1 = vpop.f32.mrf.mxu3  ;;  %v2108_v3 = vadd.f32 %v2083_v21, %v5355_v13  ;;  %v470_v21 = vadd.f32 %v6243_v9, %v468_v48  ;;  %v6261_v48 = vshrl.u32 %v5341_v34, 16 }
 0x22d   : > { %v2283_v62 = vadd.f32 %v2253_v1, %v2183_v19  ;;  %v471_v1 = vadd.f32 %v6243_v9, %v469_v5 }
 0x22e   : > { %3901 = vmatmul.msk.bf16.gmra.mxu1 %vm882_vm3, %v5047_v54  ;;  %v2380_v5 = vrot.slane %v6261_v48, 5 }
 0x22f   : > { %v2337_v55 = vpop.f32.mrf.mxu0  ;;  %v473_v33 = vmax.f32 %v471_v1, 0.0 }
 0x230   : > { %v5503_v25 = vadd.f32 %v2337_v55, %v2283_v62  ;;  %v472_v55 = vmax.f32 %v470_v21, 0.0  ;;  %v2385_v21 = vshrl.u32 %v5359_v45, 16 }
 0x231   : > { %3919 = vmatmul.msk.bf16.gmra.mxu3 %vm882_vm3, %v6244_v17  ;;  %v478_v20 = vsel %vm476_vm15, %v473_v33, 0.0 }
 0x232   : > { %v2387_v48 = vrot.slane %v2385_v21, 5  ;;  %v477_v43 = vsel %vm476_vm15, %v472_v55, 0.0  ;;  %v2469_v21 = vrot.slane %v5341_v34, 6 }
 0x233   : > { %v2158_v18 = vpop.f32.mrf.mxu2  ;;  %v2085_v19 = vpop.f32.mrf.mxu1 }
 0x234   : > { %v2185_v13 = vadd.f32 %v2158_v18, %v2107_v6  ;;  %v2256_v29 = vpop.f32.mrf.mxu3  ;;  %v2109_v24 = vadd.f32 %v2085_v19, %v5377_v2  ;;  %v6260_v18 = vshll.u32 %v5339_v28, 16 }
 0x235   : > { %v2284_v63 = vadd.f32 %v2256_v29, %v2184_v15 }
 0x236   : > { %v2377_v9 = vrot.slane %v6260_v18, 6 }
 0x237   : > { %v2340_v42 = vpop.f32.mrf.mxu0 }
 0x238   : > { %3911 = vmatmul.msk.bf16.gmra.mxu2 %vm882_vm3, %v6245_v50  ;;  %v5515_v62 = vadd.f32 %v2340_v42, %v2284_v63  ;;  %v6262_v63 = vshll.u32 %v5341_v34, 16  ;;  %v2378_v1 = vor.u32 %v2377_v9, %v2376_v26  ;;  %v2472_v34 = vrot.slane %v5359_v45, 6 }
 0x23a   : > { %3928 = vmatmul.msk.bf16.gmra.mxu0 %vm882_vm3, %v6246_v27  ;;  %v2381_v42 = vrot.slane %v6262_v63, 6  ;;  %v2379_v41 = vrot.slane %v2378_v1, 4 }
 0x23b   : > { %v2161_v6 = vpop.f32.mrf.mxu2  ;;  %v2088_v15 = vpop.f32.mrf.mxu1 }
 0x23c   : > { %v2186_v2 = vadd.f32 %v2161_v6, %v2108_v3  ;;  %v2258_v19 = vpop.f32.mrf.mxu3  ;;  %v2110_v29 = vadd.f32 %v2088_v15, %v5401_v39  ;;  %v6263_v6 = vshll.u32 %v5359_v45, 16  ;;  %v2382_v18 = vor.u32 %v2381_v42, %v2380_v5 }
 0x23d   : > { %v2285_v3 = vadd.f32 %v2258_v19, %v2185_v13  ;;  %v558_v13 = vrot.slane %v477_v43, 6  ;;  %v559_v5 = vrot.slane %v478_v20, 6  ;;  %v3904_v20 = vrot.slane %v5339_v28, 10 }
 0x23e   : > { %v2388_v60 = vrot.slane %v6263_v6, 6  ;;  %3902 = vmatmul.msk.bf16.gmra.mxu1 %vm882_vm3, %v5244_v59  ;;  %v2384_v39 = vrot.slane %v2382_v18, 4  ;;  %v2383_v19 = vsel %vm4663_vm12, %v2379_v41, %v2382_v18 }
 0x23f   : > { %v2342_v27 = vpop.f32.mrf.mxu0  ;;  %v2393_v6 = vunpack.c.l.b16 %v2383_v19  ;;  %v610_v43 = vsel %vm527_vm0, 0.0, %v558_v13  ;;  %v560_v41 = vsel %vm527_vm0, %v558_v13, %v559_v5  ;;  %v2470_v28 = vsel %vm4690_vm14, %v3904_v20, %v2469_v21 }
 0x240   : > { %v2389_v15 = vor.u32 %v2388_v60, %v2387_v48  ;;  %v6264_v48 = vld [vmem:[#allocation15_spill] sm:$0xff] }
 0x241   : > { %3920 = vmatmul.msk.bf16.gmra.mxu3 %vm882_vm3, %v6248_v35 }
 0x242   : > { %v2390_v63 = vsel %vm4663_vm12, %v2384_v39, %v2389_v15  ;;  %v5553_v39 = vpack.c.bf16 %v610_v43, %v610_v43  ;;  %v2476_v43 = vunpack.c.l.b16 %v2470_v28 }
 0x243   : > { %v2163_v4 = vpop.f32.mrf.mxu2  ;;  %v2090_v9 = vpop.f32.mrf.mxu1  ;;  %v2394_v60 = vunpack.c.l.b16 %v2390_v63 }
 0x244   : > { %v2187_v26 = vadd.f32 %v2163_v4, %v2109_v24  ;;  %v2261_v42 = vpop.f32.mrf.mxu3  ;;  %v2111_v55 = vadd.f32 %v2090_v9, %v5424_v22  ;;  %v5542_v24 = vadd.f32 %v2342_v27, %v2285_v3  ;;  %v2471_v22 = vrot.slane %v2469_v21, 4 }
 0x245   : > { %v2286_v33 = vadd.f32 %v2261_v42, %v2186_v2  ;;  %v6265_v2 = vld [vmem:[#allocation28_spill] sm:$0xff]  ;;  %v5555_v27 = vpack.c.b16 %v2394_v60, %v2393_v6  ;;  %v5557_v3 = vpack.c.bf16 %v560_v41, %v560_v41  ;;  %v622_v6 = vsel %vm527_vm0, %v559_v5, 0.0  ;;  %v3980_v5 = vld [vmem:[%s6063_s3 + $0x2c] sm:$0x3] }
 0x246   : > { %v2473_v45 = vsel %vm4690_vm14, %v2471_v22, %v2472_v34 }
 0x247   : > { %v2345_v1 = vpop.f32.mrf.mxu0  ;;  %v6159_v60 = vshll.u32 %v5557_v3, 16  ;;  %v2477_v21 = vunpack.c.l.b16 %v2473_v45 }
 0x248   : > { %3912 = vmatmul.msk.bf16.gmra.mxu2 %vm882_vm3, %v6264_v48  ;;  %v5547_v18 = vadd.f32 %v2345_v1, %v2286_v33  ;;  %v6154_v33 = vshrl.u32 %v5553_v39, 16 }
 0x249   : > { %v5589_v45 = vpack.c.b16 %v2477_v21, %v2476_v43  ;;  %v3970_v21 = vld [vmem:[%s6063_s3 + $0x2a] sm:$0x3] }
 0x24a   : > { %3929 = vmatmul.msk.bf16.gmra.mxu0 %vm882_vm3, %v6265_v2  ;;  %v2631_v20 = vrot.slane %v6154_v33, 4 }
 0x24b   : > { %v2166_v15 = vpop.f32.mrf.mxu2  ;;  %v2093_v9 = vpop.f32.mrf.mxu1 }
 0x24c   : > { %v2188_v4 = vadd.f32 %v2166_v15, %v2110_v29  ;;  %v2263_v13 = vpop.f32.mrf.mxu3  ;;  %v2112_v19 = vadd.f32 %v2093_v9, %v5433_v11  ;;  %v6156_v29 = vshll.u32 %v5553_v39, 16  ;;  %v6160_v11 = vshrl.u32 %v5557_v3, 16 }
 0x24d   : > { %v2287_v42 = vadd.f32 %v2263_v13, %v2187_v26  ;;  %v5575_v26 = vpack.c.bf16 %v622_v6, %v622_v6  ;;  %v2640_v15 = vrot.slane %v6159_v60, 5  ;;  %v3181_v13 = vsel %vm527_vm0, %v3980_v5, 0  ;;  %v3989_v60 = vld [vmem:[%s6063_s3 + $0x2e] sm:$0x3] }
 0x24e   : > { %3903 = vmatmul.msk.bf16.gmra.mxu1 %vm882_vm3, %v5555_v27  ;;  %v2634_v34 = vrot.slane %v6156_v29, 5  ;;  %v2644_v9 = vrot.slane %v6160_v11, 4  ;;  %3190 = vmatpush.bf16.msra.mxu2 %v3181_v13 }
 0x24f   : > { %v2347_v1 = vpop.f32.mrf.mxu0  ;;  %v6161_v14 = vshll.u32 %v5575_v26, 16 }
 0x250   : > { %v5571_v41 = vadd.f32 %v2347_v1, %v2287_v42  ;;  %v2635_v63 = vor.u32 %v2634_v34, %v2631_v20  ;;  %v2645_v29 = vor.u32 %v2644_v9, %v2640_v15 }
 0x251   : > { %3921 = vmatmul.msk.bf16.gmra.mxu3 %vm882_vm3, %v5387_v23 }
 0x252   : > { %v2636_v5 = vrot.slane %v2635_v63, 4 }
 0x253   : > { %v2168_v22 = vpop.f32.mrf.mxu2  ;;  %v2095_v42 = vpop.f32.mrf.mxu1 }
 0x254   : > { %v2189_v28 = vadd.f32 %v2168_v22, %v2111_v55  ;;  %v2266_v1 = vpop.f32.mrf.mxu3  ;;  %v2113_v6 = vadd.f32 %v2095_v42, %v5440_v58  ;;  %v3272_v55 = vsel %vm527_vm0, %v3989_v60, 0  ;;  %v2554_v58 = vunpack.c.l.b16 %v5553_v39 }
 0x255   : > { %v2288_v33 = vadd.f32 %v2266_v1, %v2188_v4  ;;  %3281 = vmatpush.bf16.msra.mxu3 %v3272_v55  ;;  %v2555_v4 = vunpack.c.l.b16 %v5557_v3  ;;  %v2646_v22 = vrot.slane %v2645_v29, 4  ;;  %v2650_v60 = vrot.slane %v6161_v14, 5  ;;  %v6267_v29 = vld [vmem:[#allocation11_spill] sm:$0xff] }
 0x256   : > { %v2641_v11 = vsel %vm4351_vm4, %v2636_v5, %v2640_v15 }
 0x257   : > { %v2350_v2 = vpop.f32.mrf.mxu0  ;;  %v5612_v1 = vpack.c.b16 %v2555_v4, %v2554_v58  ;;  %v2651_v63 = vsel %vm4351_vm4, %v2646_v22, %v2650_v60 }
 0x258   : > { %3913 = vmatmul.msk.bf16.gmra.mxu2 %vm882_vm3, %v5589_v45  ;;  %v5599_v43 = vadd.f32 %v2350_v2, %v2288_v33  ;;  %v3097_v2 = vsel %vm527_vm0, %v3970_v21, 0  ;;  %v2655_v15 = vunpack.c.l.b16 %v2651_v63 }
 0x259   : > { %3106 = vmatpush.bf16.msra.mxu1 %v3097_v2 }
 0x25a   : > { %3930 = vmatmul.msk.bf16.gmra.mxu0 %vm882_vm3, %v5412_v46 }
 0x25b   : > { %v2171_v20 = vpop.f32.mrf.mxu2  ;;  %v2411_v34 = vpop.f32.mrf.mxu1 }
 0x25c   : > { %v2190_v33 = vadd.f32 %v2171_v20, %v2112_v19  ;;  %v2268_v9 = vpop.f32.mrf.mxu3  ;;  %v2451_v13 = vadd.f32 %v2411_v34, %v5447_v0  ;;  %v3999_v19 = vld [vmem:[%s6063_s3 + $0x30] sm:$0x3] }
 0x25d   : > { %v2289_v42 = vadd.f32 %v2268_v9, %v2189_v28  ;;  %v3355_v21 = vsel %vm527_vm0, %v3999_v19, 0  ;;  %v2654_v28 = vunpack.c.l.b16 %v2641_v11 }
 0x25e   : > { %3934 = vmatmul.msk.bf16.vlgmr.msrb.gmra.mxu1 %vm882_vm3, %v6267_v29  ;;  %3364 = vmatpush.bf16.msra.mxu0 %v3355_v21 }
 0x25f   : > { %v2352_v55 = vpop.f32.mrf.mxu0  ;;  %v5629_v2 = vpack.c.b16 %v2655_v15, %v2654_v28 }
 0x260   : > { %v5624_v0 = vadd.f32 %v2352_v55, %v2289_v42 }
 0x261   : > { %3922 = vmatmul.msk.bf16.gmra.mxu3 %vm882_vm3, %v5612_v1  ;;  %6268 = vst [vmem:[#allocation23_spill] sm:$0xff] %v5629_v2 }
 0x263   : > { %v2173_v58 = vpop.f32.mrf.mxu2  ;;  %v2413_v20 = vpop.f32.mrf.mxu1 }
 0x264   : > { %v2191_v4 = vadd.f32 %v2173_v58, %v2113_v6  ;;  %v2271_v5 = vpop.f32.mrf.mxu3  ;;  %v2452_v22 = vadd.f32 %v2413_v20, %v5454_v32 }
 0x265   : > { %v2290_v60 = vadd.f32 %v2271_v5, %v2190_v33  ;;  %v6269_v33 = vld [vmem:[#allocation12_spill] sm:$0xff] }
 0x267   : > { %v2355_v34 = vpop.f32.mrf.mxu0 }
 0x268   : > { %3943 = vmatmul.msk.bf16.vlgmr.msrb.gmra.mxu2 %vm882_vm3, %v6255_v36  ;;  %v5633_v9 = vadd.f32 %v2355_v34, %v2290_v60 }
 0x26a   : > { %3931 = vmatmul.msk.bf16.gmra.mxu0 %vm882_vm3, %v5629_v2 }
 0x26b   : > { %v2494_v11 = vpop.f32.mrf.mxu2  ;;  %v2416_v55 = vpop.f32.mrf.mxu1 }
 0x26c   : > { %v2534_v42 = vadd.f32 %v2494_v11, %v2451_v13  ;;  %v2273_v6 = vpop.f32.mrf.mxu3  ;;  %v2453_v63 = vadd.f32 %v2416_v55, %v5461_v7  ;;  %v6270_v55 = vld [vmem:[#allocation14_spill] sm:$0xff] }
 0x26d   : > { %v2291_v29 = vadd.f32 %v2273_v6, %v2191_v4 }
 0x26e   : > { %3935 = vmatmul.msk.bf16.gmra.mxu1 %vm882_vm3, %v6269_v33 }
 0x26f   : > { %v2357_v32 = vpop.f32.mrf.mxu0 }
 0x270   : > { %v5640_v19 = vadd.f32 %v2357_v32, %v2291_v29 }
 0x271   : > { %3953 = vmatmul.msk.bf16.vlgmr.msrb.gmra.mxu3 %vm882_vm3, %v4864_v38 }
 0x273   : > { %v2496_v36 = vpop.f32.mrf.mxu2  ;;  %v2418_v28 = vpop.f32.mrf.mxu1 }
 0x274   : > { %v2535_v21 = vadd.f32 %v2496_v36, %v2452_v22  ;;  %v2572_v15 = vpop.f32.mrf.mxu3  ;;  %v2454_v13 = vadd.f32 %v2418_v28, %v5468_v16 }
 0x275   : > { %v2612_v58 = vadd.f32 %v2572_v15, %v2534_v42 }
 0x277   : > { %v2672_v20 = vpop.f32.mrf.mxu0 }
 0x278   : > { %3944 = vmatmul.msk.bf16.gmra.mxu2 %vm882_vm3, %v6256_v44  ;;  %v5647_v7 = vadd.f32 %v2672_v20, %v2612_v58 }
 0x27a   : > { %3962 = vmatmul.msk.bf16.vlgmr.msrb.gmra.mxu0 %vm882_vm3, %v4836_v52 }
 0x27b   : > { %v2499_v4 = vpop.f32.mrf.mxu2  ;;  %v2421_v60 = vpop.f32.mrf.mxu1 }
 0x27c   : > { %v2536_v5 = vadd.f32 %v2499_v4, %v2453_v63  ;;  %v2574_v38 = vpop.f32.mrf.mxu3  ;;  %v2455_v22 = vadd.f32 %v2421_v60, %v5475_v31  ;;  %v6271_v60 = vld [vmem:[#allocation18_spill] sm:$0xff] }
 0x27d   : > { %v2613_v34 = vadd.f32 %v2574_v38, %v2535_v21 }
 0x27e   : > { %3936 = vmatmul.msk.bf16.gmra.mxu1 %vm882_vm3, %v6270_v55 }
 0x27f   : > { %v2674_v11 = vpop.f32.mrf.mxu0 }
 0x280   : > { %v5654_v16 = vadd.f32 %v2674_v11, %v2613_v34 }
 0x281   : > { %3954 = vmatmul.msk.bf16.gmra.mxu3 %vm882_vm3, %v6235_v47 }
 0x283   : > { %v2501_v42 = vpop.f32.mrf.mxu2  ;;  %v2423_v29 = vpop.f32.mrf.mxu1 }
 0x284   : > { %v2537_v6 = vadd.f32 %v2501_v42, %v2454_v13  ;;  %v2577_v52 = vpop.f32.mrf.mxu3  ;;  %v2456_v63 = vadd.f32 %v2423_v29, %v5487_v12 }
 0x285   : > { %v2614_v32 = vadd.f32 %v2577_v52, %v2536_v5 }
 0x287   : > { %v2677_v36 = vpop.f32.mrf.mxu0 }
 0x288   : > { %3945 = vmatmul.msk.bf16.gmra.mxu2 %vm882_vm3, %v6257_v51  ;;  %v5661_v31 = vadd.f32 %v2677_v36, %v2614_v32 }
 0x28a   : > { %3963 = vmatmul.msk.bf16.gmra.mxu0 %vm882_vm3, %v4885_v56 }
 0x28b   : > { %v2504_v21 = vpop.f32.mrf.mxu2  ;;  %v2426_v15 = vpop.f32.mrf.mxu1 }
 0x28c   : > { %v2538_v28 = vadd.f32 %v2504_v21, %v2455_v22  ;;  %v2579_v58 = vpop.f32.mrf.mxu3  ;;  %v2457_v13 = vadd.f32 %v2426_v15, %v5495_v57 }
 0x28d   : > { %v2615_v20 = vadd.f32 %v2579_v58, %v2537_v6 }
 0x28e   : > { %3937 = vmatmul.msk.bf16.gmra.mxu1 %vm882_vm3, %v6271_v60 }
 0x28f   : > { %v2679_v4 = vpop.f32.mrf.mxu0 }
 0x290   : > { %v5668_v12 = vadd.f32 %v2679_v4, %v2615_v20 }
 0x291   : > { %3955 = vmatmul.msk.bf16.gmra.mxu3 %vm882_vm3, %v6236_v30 }
 0x293   : > { %v2506_v5 = vpop.f32.mrf.mxu2  ;;  %v2428_v34 = vpop.f32.mrf.mxu1 }
 0x294   : > { %v2539_v38 = vadd.f32 %v2506_v5, %v2456_v63  ;;  %v2582_v56 = vpop.f32.mrf.mxu3  ;;  %v2458_v22 = vadd.f32 %v2428_v34, %v5503_v25  ;;  %v6272_v25 = vld [vmem:[#allocation22_spill] sm:$0xff] }
 0x295   : > { %v2616_v11 = vadd.f32 %v2582_v56, %v2538_v28 }
 0x297   : > { %v2682_v42 = vpop.f32.mrf.mxu0 }
 0x298   : > { %3946 = vmatmul.msk.bf16.gmra.mxu2 %vm882_vm3, %v6258_v40  ;;  %v5675_v57 = vadd.f32 %v2682_v42, %v2616_v11 }
 0x29a   : > { %3964 = vmatmul.msk.bf16.gmra.mxu0 %vm882_vm3, %v6238_v49 }
 0x29b   : > { %v2509_v6 = vpop.f32.mrf.mxu2  ;;  %v2431_v52 = vpop.f32.mrf.mxu1 }
 0x29c   : > { %v2540_v29 = vadd.f32 %v2509_v6, %v2457_v13  ;;  %v2584_v32 = vpop.f32.mrf.mxu3  ;;  %v2459_v63 = vadd.f32 %v2431_v52, %v5515_v62 }
 0x29d   : > { %v2617_v36 = vadd.f32 %v2584_v32, %v2539_v38 }
 0x29e   : > { %3938 = vmatmul.msk.bf16.gmra.mxu1 %vm882_vm3, %v6272_v25 }
 0x29f   : > { %v2684_v21 = vpop.f32.mrf.mxu0 }
 0x2a0   : > { %v5682_v28 = vadd.f32 %v2684_v21, %v2617_v36 }
 0x2a1   : > { %3956 = vmatmul.msk.bf16.gmra.mxu3 %vm882_vm3, %v6240_v10 }
 0x2a3   : > { %v2511_v15 = vpop.f32.mrf.mxu2  ;;  %v2433_v49 = vpop.f32.mrf.mxu1 }
 0x2a4   : > { %v2541_v58 = vadd.f32 %v2511_v15, %v2458_v22  ;;  %v2587_v20 = vpop.f32.mrf.mxu3  ;;  %v2460_v13 = vadd.f32 %v2433_v49, %v5542_v24 }
 0x2a5   : > { %v2618_v4 = vadd.f32 %v2587_v20, %v2540_v29 }
 0x2a7   : > { %v2687_v5 = vpop.f32.mrf.mxu0 }
 0x2a8   : > { %3947 = vmatmul.msk.bf16.gmra.mxu2 %vm882_vm3, %v5047_v54  ;;  %v5689_v62 = vadd.f32 %v2687_v5, %v2618_v4  ;;  %v2731_v4 = vrot.slane %v5557_v3, 5 }
 0x2aa   : > { %3965 = vmatmul.msk.bf16.gmra.mxu0 %vm882_vm3, %v6244_v17 }
 0x2ab   : > { %v2514_v38 = vpop.f32.mrf.mxu2  ;;  %v2436_v56 = vpop.f32.mrf.mxu1 }
 0x2ac   : > { %v2542_v34 = vadd.f32 %v2514_v38, %v2459_v63  ;;  %v2589_v22 = vpop.f32.mrf.mxu3  ;;  %v2461_v24 = vadd.f32 %v2436_v56, %v5547_v18  ;;  %v6273_v38 = vshrl.u32 %v5553_v39, 16  ;;  %v2733_v56 = vrot.slane %v2731_v4, 4 }
 0x2ad   : > { %v2619_v11 = vadd.f32 %v2589_v22, %v2541_v58  ;;  %v2734_v22 = vrot.slane %v5575_v26, 5 }
 0x2ae   : > { %3939 = vmatmul.msk.bf16.gmra.mxu1 %vm882_vm3, %v5226_v61 }
 0x2af   : > { %v2689_v42 = vpop.f32.mrf.mxu0 }
 0x2b0   : > { %v5700_v6 = vadd.f32 %v2689_v42, %v2619_v11  ;;  %v6275_v42 = vshrl.u32 %v5557_v3, 16 }
 0x2b1   : > { %3957 = vmatmul.msk.bf16.gmra.mxu3 %vm882_vm3, %v6245_v50 }
 0x2b3   : > { %v2516_v17 = vpop.f32.mrf.mxu2  ;;  %v2438_v52 = vpop.f32.mrf.mxu1 }
 0x2b4   : > { %v2543_v29 = vadd.f32 %v2516_v17, %v2460_v13  ;;  %v2592_v32 = vpop.f32.mrf.mxu3  ;;  %v2462_v18 = vadd.f32 %v2438_v52, %v5571_v41  ;;  %v2816_v17 = vrot.slane %v6275_v42, 5 }
 0x2b5   : > { %v2620_v63 = vadd.f32 %v2592_v32, %v2542_v34  ;;  %v2812_v34 = vrot.slane %v6273_v38, 5  ;;  %v2821_v32 = vshrl.u32 %v5575_v26, 16 }
 0x2b7   : > { %v2692_v36 = vpop.f32.mrf.mxu0  ;;  %v2823_v2 = vrot.slane %v2821_v32, 5 }
 0x2b8   : > { %3948 = vmatmul.msk.bf16.gmra.mxu2 %vm882_vm3, %v5244_v59  ;;  %v5709_v21 = vadd.f32 %v2692_v36, %v2620_v63 }
 0x2ba   : > { %3966 = vmatmul.msk.bf16.gmra.mxu0 %vm882_vm3, %v6248_v35  ;;  %v3932_v35 = vrot.slane %v5553_v39, 9 }
 0x2bb   : > { %v2519_v15 = vpop.f32.mrf.mxu2  ;;  %v2441_v49 = vpop.f32.mrf.mxu1 }
 0x2bc   : > { %v2544_v58 = vadd.f32 %v2519_v15, %v2461_v24  ;;  %v2594_v20 = vpop.f32.mrf.mxu3  ;;  %v2463_v13 = vadd.f32 %v2441_v49, %v5599_v43  ;;  %v6274_v24 = vshll.u32 %v5553_v39, 16  ;;  %v4070_v43 = vld [vmem:[%s486_s28] sm:$0xff]   ;;  %v2732_v38 = vsel %vm4612_vm9, %v3932_v35, %v2731_v4 }
 0x2bd   : > { %v2621_v41 = vadd.f32 %v2594_v20, %v2543_v29  ;;  %v6276_v29 = vshll.u32 %v5557_v3, 16  ;;  %v4071_v36 = vunpack.c.l.bf16 %v4070_v43  ;;  %v4072_v15 = vunpack.c.h.bf16 %v4070_v43 }
 0x2be   : > { %3940 = vmatmul.msk.bf16.gmra.mxu1 %vm882_vm3, %v5429_v53  ;;  %v2813_v11 = vrot.slane %v6274_v24, 6  ;;  %v2735_v24 = vsel %vm4612_vm9, %v2733_v56, %v2734_v22  ;;  %v6277_v53 = vshll.u32 %v5575_v26, 16  ;;  %v2738_v43 = vunpack.c.l.b16 %v2732_v38 }
 0x2bf   : > { %v2694_v5 = vpop.f32.mrf.mxu0  ;;  %v2817_v52 = vrot.slane %v6276_v29, 6 }
 0x2c0   : > { %v2814_v42 = vor.u32 %v2813_v11, %v2812_v34  ;;  %v5739_v46 = vadd.f32 %v2694_v5, %v2621_v41 }
 0x2c1   : > { %3958 = vmatmul.msk.bf16.gmra.mxu3 %vm882_vm3, %v6264_v48  ;;  %v2818_v37 = vor.u32 %v2817_v52, %v2816_v17  ;;  %v2824_v48 = vrot.slane %v6277_v53, 6 }
 0x2c2   : > { %v2815_v4 = vrot.slane %v2814_v42, 4 }
 0x2c3   : > { %v2521_v63 = vpop.f32.mrf.mxu2  ;;  %v2443_v20 = vpop.f32.mrf.mxu1  ;;  %v2820_v53 = vrot.slane %v2818_v37, 4 }
 0x2c4   : > { %v2545_v49 = vadd.f32 %v2521_v63, %v2462_v18  ;;  %v2597_v14 = vpop.f32.mrf.mxu3  ;;  %v2464_v29 = vadd.f32 %v2443_v20, %v5624_v0  ;;  %v2739_v63 = vunpack.c.l.b16 %v2735_v24  ;;  %v4127_v0 = vld [vmem:[%s6061_s1] ss:$0 sm:$0xff]  ;;  %v2819_v17 = vsel %vm4663_vm12, %v2815_v4, %v2818_v37 }
 0x2c5   : > { %v2622_v59 = vadd.f32 %v2597_v14, %v2544_v58  ;;  %v492_v34 = vmul.f32 %v4127_v0, %v4071_v36  ;;  %v493_v35 = vmul.f32 %v4127_v0, %v4072_v15  ;;  %v2825_v14 = vor.u32 %v2824_v48, %v2823_v2 }
 0x2c6   : > { %v5752_v41 = vpack.c.b16 %v2739_v63, %v2738_v43  ;;  %v499_v15 = vstv %s498_s7  ;;  %v2905_v37 = vrot.slane %v5557_v3, 6  ;;  %v2908_v63 = vrot.slane %v5575_v26, 6 }
 0x2c7   : > { %v2697_v18 = vpop.f32.mrf.mxu0  ;;  %vm500_vm1 = vcmp.eq.s32.totalorder %v499_v15, 1 }
 0x2c8   : > { %3949 = vmatmul.msk.bf16.gmra.mxu2 %vm882_vm3, %v5555_v27  ;;  %v5746_v56 = vadd.f32 %v2697_v18, %v2622_v59  ;;  %v4128_v59 = vld [vmem:[%s6062_s2] ss:$0 sm:$0xff]  ;;  %v2907_v43 = vrot.slane %v2905_v37, 4 }
 0x2c9   : > { %v494_v52 = vadd.f32 %v4128_v59, %v492_v34  ;;  %v495_v32 = vadd.f32 %v4128_v59, %v493_v35 }
 0x2ca   : > { %3967 = vmatmul.msk.bf16.gmra.mxu0 %vm882_vm3, %v5387_v23  ;;  %v2826_v23 = vsel %vm4663_vm12, %v2820_v53, %v2825_v14 }
 0x2cb   : > { %v2524_v58 = vpop.f32.mrf.mxu2  ;;  %v2446_v22 = vpop.f32.mrf.mxu1  ;;  %v2830_v38 = vunpack.c.l.b16 %v2826_v23  ;;  %v496_v24 = vmax.f32 %v494_v52, 0.0  ;;  %v497_v42 = vmax.f32 %v495_v32, 0.0 }
 0x2cc   : > { %v2546_v5 = vadd.f32 %v2524_v58, %v2463_v13  ;;  %v2599_v48 = vpop.f32.mrf.mxu3  ;;  %v2465_v2 = vadd.f32 %v2446_v22, %v5633_v9  ;;  %v2829_v13 = vunpack.c.l.b16 %v2819_v17 }
 0x2cd   : > { %v2623_v36 = vadd.f32 %v2599_v48, %v2545_v49  ;;  %v3951_v49 = vrot.slane %v5553_v39, 10  ;;  %v501_v34 = vsel %vm500_vm1, %v496_v24, 0.0  ;;  %v5773_v3 = vsel %vm500_vm1, %v497_v42, 0.0 }
 0x2ce   : > { %3941 = vmatmul.msk.bf16.gmra.mxu1 %vm882_vm3, %v5752_v41  ;;  %v5771_v0 = vpack.c.b16 %v2830_v38, %v2829_v13  ;;  %v2909_v39 = vsel %vm4690_vm14, %v2907_v43, %v2908_v63  ;;  %v561_v52 = vrot.slane %v501_v34, 6  ;;  %v562_v26 = vrot.slane %v5773_v3, 6 }
 0x2cf   : > { %v2699_v20 = vpop.f32.mrf.mxu0  ;;  %v2906_v59 = vsel %vm4690_vm14, %v3951_v49, %v2905_v37 }
 0x2d0   : > { %v5765_v18 = vadd.f32 %v2699_v20, %v2623_v36  ;;  %v563_v48 = vsel %vm527_vm0, %v561_v52, %v562_v26  ;;  %v611_v23 = vsel %vm527_vm0, 0.0, %v561_v52 }
 0x2d1   : > { %3959 = vmatmul.msk.bf16.gmra.mxu3 %vm882_vm3, %v5589_v45  ;;  %v5794_v24 = vpack.c.bf16 %v611_v23, %v611_v23  ;;  %v6281_v23 = vld [vmem:[#allocation5_spill] sm:$0xff] }
 0x2d3   : > { %v2526_v9 = vpop.f32.mrf.mxu2  ;;  %v2448_v35 = vpop.f32.mrf.mxu1 }
 0x2d4   : > { %v2547_v4 = vadd.f32 %v2526_v9, %v2464_v29  ;;  %v2602_v53 = vpop.f32.mrf.mxu3  ;;  %v2466_v14 = vadd.f32 %v2448_v35, %v5640_v19  ;;  %v2912_v19 = vunpack.c.l.b16 %v2906_v59  ;;  %v6280_v9 = vld [vmem:[#allocation3_spill] sm:$0xff] }
 0x2d5   : > { %v2624_v58 = vadd.f32 %v2602_v53, %v2546_v5  ;;  %v2913_v5 = vunpack.c.l.b16 %v2909_v39 }
 0x2d7   : > { %v2702_v22 = vpop.f32.mrf.mxu0  ;;  %v5792_v38 = vpack.c.b16 %v2913_v5, %v2912_v19 }
 0x2d8   : > { %3950 = vmatmul.msk.bf16.gmra.mxu2 %vm882_vm3, %v5771_v0  ;;  %v5783_v29 = vadd.f32 %v2702_v22, %v2624_v58 }
 0x2da   : > { %3968 = vmatmul.msk.bf16.gmra.mxu0 %vm882_vm3, %v5612_v1  ;;  %v5796_v1 = vpack.c.bf16 %v563_v48, %v563_v48 }
 0x2db   : > { %v2529_v32 = vpop.f32.mrf.mxu2  ;;  %v2756_v15 = vpop.f32.mrf.mxu1 }
 0x2dc   : > { %v2548_v36 = vadd.f32 %v2529_v32, %v2465_v2  ;;  %v2604_v20 = vpop.f32.mrf.mxu3  ;;  %v2796_v13 = vadd.f32 %v2756_v15, %v5647_v7  ;;  %v2990_v2 = vunpack.c.l.b16 %v5794_v24  ;;  %v2991_v7 = vunpack.c.l.b16 %v5796_v1 }
 0x2dd   : > { %v2625_v37 = vadd.f32 %v2604_v20, %v2547_v4 }
 0x2de   : > { %3971 = vmatmul.msk.bf16.vlgmr.msra.gmra.mxu1 %vm882_vm3, %v6280_v9  ;;  %v2992_v58 = vpack.c.b16 %v2991_v7, %v2990_v2 }
 0x2df   : > { %v2704_v42 = vpop.f32.mrf.mxu0 }
 0x2e0   : > { %v5800_v49 = vadd.f32 %v2704_v42, %v2625_v37 }
 0x2e1   : > { %3960 = vmatmul.msk.bf16.gmra.mxu3 %vm882_vm3, %v5792_v38 }
 0x2e3   : > { %v2531_v43 = vpop.f32.mrf.mxu2  ;;  %v2758_v4 = vpop.f32.mrf.mxu1 }
 0x2e4   : > { %v2549_v63 = vadd.f32 %v2531_v43, %v2466_v14  ;;  %v2607_v34 = vpop.f32.mrf.mxu3  ;;  %v2797_v35 = vadd.f32 %v2758_v4, %v5654_v16 }
 0x2e5   : > { %v2626_v53 = vadd.f32 %v2607_v34, %v2548_v36  ;;  %v6282_v34 = vld [vmem:[#allocation4_spill] sm:$0xff] }
 0x2e7   : > { %v2707_v22 = vpop.f32.mrf.mxu0 }
 0x2e8   : > { %3981 = vmatmul.msk.bf16.vlgmr.msra.gmra.mxu2 %vm882_vm3, %v6269_v33  ;;  %v5809_v59 = vadd.f32 %v2707_v22, %v2626_v53 }
 0x2ea   : > { %3969 = vmatmul.msk.bf16.gmra.mxu0 %vm882_vm3, %v2992_v58 }
 0x2eb   : > { %v2847_v39 = vpop.f32.mrf.mxu2  ;;  %v2761_v19 = vpop.f32.mrf.mxu1 }
 0x2ec   : > { %v2887_v52 = vadd.f32 %v2847_v39, %v2796_v13  ;;  %v2609_v5 = vpop.f32.mrf.mxu3  ;;  %v2798_v14 = vadd.f32 %v2761_v19, %v5661_v31 }
 0x2ed   : > { %v2627_v32 = vadd.f32 %v2609_v5, %v2549_v63 }
 0x2ee   : > { %3972 = vmatmul.msk.bf16.gmra.mxu1 %vm882_vm3, %v6281_v23  ;;  %v6283_v23 = vld [vmem:[#allocation6_spill] sm:$0xff] }
 0x2ef   : > { %v2709_v48 = vpop.f32.mrf.mxu0 }
 0x2f0   : > { %v5815_v16 = vadd.f32 %v2709_v48, %v2627_v32 }
 0x2f1   : > { %3990 = vmatmul.msk.bf16.vlgmr.msra.gmra.mxu3 %vm882_vm3, %v6256_v44 }
 0x2f3   : > { %v2849_v33 = vpop.f32.mrf.mxu2  ;;  %v2763_v15 = vpop.f32.mrf.mxu1 }
 0x2f4   : > { %v2888_v36 = vadd.f32 %v2849_v33, %v2797_v35  ;;  %v2930_v20 = vpop.f32.mrf.mxu3  ;;  %v2799_v13 = vadd.f32 %v2763_v15, %v5668_v12 }
 0x2f5   : > { %v2970_v37 = vadd.f32 %v2930_v20, %v2887_v52 }
 0x2f7   : > { %v3008_v42 = vpop.f32.mrf.mxu0 }
 0x2f8   : > { %3982 = vmatmul.msk.bf16.gmra.mxu2 %vm882_vm3, %v6270_v55  ;;  %v5822_v31 = vadd.f32 %v3008_v42, %v2970_v37 }
 0x2fa   : > { %4000 = vmatmul.msk.bf16.vlgmr.msra.gmra.mxu0 %vm882_vm3, %v6235_v47 }
 0x2fb   : > { %v2852_v9 = vpop.f32.mrf.mxu2  ;;  %v2766_v7 = vpop.f32.mrf.mxu1 }
 0x2fc   : > { %v2889_v2 = vadd.f32 %v2852_v9, %v2798_v14  ;;  %v2932_v44 = vpop.f32.mrf.mxu3  ;;  %v2800_v43 = vadd.f32 %v2766_v7, %v5675_v57 }
 0x2fd   : > { %v2971_v63 = vadd.f32 %v2932_v44, %v2888_v36 }
 0x2fe   : > { %3973 = vmatmul.msk.bf16.gmra.mxu1 %vm882_vm3, %v6282_v34 }
 0x2ff   : > { %v3010_v4 = vpop.f32.mrf.mxu0 }
 0x300   : > { %v5829_v12 = vadd.f32 %v3010_v4, %v2971_v63 }
 0x301   : > { %3991 = vmatmul.msk.bf16.gmra.mxu3 %vm882_vm3, %v6257_v51 }
 0x303   : > { %v2854_v55 = vpop.f32.mrf.mxu2  ;;  %v2768_v53 = vpop.f32.mrf.mxu1 }
 0x304   : > { %v2890_v35 = vadd.f32 %v2854_v55, %v2799_v13  ;;  %v2935_v47 = vpop.f32.mrf.mxu3  ;;  %v2801_v58 = vadd.f32 %v2768_v53, %v5682_v28 }
 0x305   : > { %v2972_v22 = vadd.f32 %v2935_v47, %v2889_v2 }
 0x307   : > { %v3013_v39 = vpop.f32.mrf.mxu0 }
 0x308   : > { %3983 = vmatmul.msk.bf16.gmra.mxu2 %vm882_vm3, %v6271_v60  ;;  %v5836_v57 = vadd.f32 %v3013_v39, %v2972_v22 }
 0x30a   : > { %4001 = vmatmul.msk.bf16.gmra.mxu0 %vm882_vm3, %v6236_v30 }
 0x30b   : > { %v2857_v52 = vpop.f32.mrf.mxu2  ;;  %v2771_v5 = vpop.f32.mrf.mxu1 }
 0x30c   : > { %v2891_v19 = vadd.f32 %v2857_v52, %v2800_v43  ;;  %v2937_v51 = vpop.f32.mrf.mxu3  ;;  %v2802_v14 = vadd.f32 %v2771_v5, %v5689_v62  ;;  %v6284_v43 = vld [vmem:[#allocation28_spill] sm:$0xff]  ;;  %v6286_v5 = vld [vmem:[#allocation29_spill] sm:$0xff] }
 0x30d   : > { %v2973_v32 = vadd.f32 %v2937_v51, %v2890_v35 }
 0x30e   : > { %3974 = vmatmul.msk.bf16.gmra.mxu1 %vm882_vm3, %v6283_v23 }
 0x30f   : > { %v3015_v48 = vpop.f32.mrf.mxu0 }
 0x310   : > { %v5843_v28 = vadd.f32 %v3015_v48, %v2973_v32 }
 0x311   : > { %3992 = vmatmul.msk.bf16.gmra.mxu3 %vm882_vm3, %v6258_v40 }
 0x313   : > { %v2859_v60 = vpop.f32.mrf.mxu2  ;;  %v2773_v36 = vpop.f32.mrf.mxu1 }
 0x314   : > { %v2892_v33 = vadd.f32 %v2859_v60, %v2801_v58  ;;  %v2940_v30 = vpop.f32.mrf.mxu3  ;;  %v2803_v15 = vadd.f32 %v2773_v36, %v5700_v6  ;;  %v6287_v60 = vld [vmem:[#allocation16_spill] sm:$0xff]  ;;  %v6288_v36 = vld [vmem:[#allocation15_spill] sm:$0xff] }
 0x315   : > { %v2974_v20 = vadd.f32 %v2940_v30, %v2891_v19  ;;  %v6285_v19 = vld [vmem:[#allocation19_spill] sm:$0xff] }
 0x317   : > { %v3018_v13 = vpop.f32.mrf.mxu0 }
 0x318   : > { %3984 = vmatmul.msk.bf16.gmra.mxu2 %vm882_vm3, %v6272_v25  ;;  %v5850_v62 = vadd.f32 %v3018_v13, %v2974_v20  ;;  %v3074_v20 = vshll.u32 %v5796_v1, 16 }
 0x31a   : > { %4002 = vmatmul.msk.bf16.gmra.mxu0 %vm882_vm3, %v6240_v10 }
 0x31b   : > { %v2862_v37 = vpop.f32.mrf.mxu2  ;;  %v2776_v9 = vpop.f32.mrf.mxu1 }
 0x31c   : > { %v2893_v42 = vadd.f32 %v2862_v37, %v2802_v14  ;;  %v2942_v40 = vpop.f32.mrf.mxu3  ;;  %v2804_v2 = vadd.f32 %v2776_v9, %v5709_v21  ;;  %v3078_v37 = vshrl.u32 %v5796_v1, 16 }
 0x31d   : > { %v2975_v7 = vadd.f32 %v2942_v40, %v2892_v33  ;;  %v623_v33 = vsel %vm527_vm0, %v562_v26, 0.0  ;;  %vm3438_vm0 = vcmask 60416  }
 0x31e   : > { %3975 = vmatmul.msk.bf16.gmra.mxu1 %vm882_vm3, %v6284_v43  ;;  %v5885_v30 = vpack.c.bf16 %v623_v33, %v623_v33 }
 0x31f   : > { %v3020_v44 = vpop.f32.mrf.mxu0 }
 0x320   : > { %v5857_v6 = vadd.f32 %v3020_v44, %v2975_v7  ;;  %v3080_v44 = vrot.slane %v3078_v37, 4 }
 0x321   : > { %3993 = vmatmul.msk.bf16.gmra.mxu3 %vm882_vm3, %v5047_v54 }
 0x323   : > { %v2864_v25 = vpop.f32.mrf.mxu2  ;;  %v2778_v4 = vpop.f32.mrf.mxu1 }
 0x324   : > { %v2894_v63 = vadd.f32 %v2864_v25, %v2803_v15  ;;  %v2945_v10 = vpop.f32.mrf.mxu3  ;;  %v2805_v34 = vadd.f32 %v2778_v4, %v5739_v46  ;;  %v3065_v15 = vshrl.u32 %v5794_v24, 16 }
 0x325   : > { %v2976_v55 = vadd.f32 %v2945_v10, %v2893_v42  ;;  %v6289_v10 = vld [vmem:[#allocation23_spill] sm:$0xff] }
 0x326   : > { %v3067_v40 = vrot.slane %v3065_v15, 4 }
 0x327   : > { %v3023_v35 = vpop.f32.mrf.mxu0 }
 0x328   : > { %3985 = vmatmul.msk.bf16.gmra.mxu2 %vm882_vm3, %v5226_v61  ;;  %v5864_v21 = vadd.f32 %v3023_v35, %v2976_v55 }
 0x32a   : > { %4003 = vmatmul.msk.bf16.gmra.mxu0 %vm882_vm3, %v6245_v50 }
 0x32b   : > { %v2867_v53 = vpop.f32.mrf.mxu2  ;;  %v2781_v58 = vpop.f32.mrf.mxu1 }
 0x32c   : > { %v2895_v47 = vadd.f32 %v2867_v53, %v2804_v2  ;;  %v2947_v54 = vpop.f32.mrf.mxu3  ;;  %v2806_v22 = vadd.f32 %v2781_v58, %v5746_v56  ;;  %v3076_v2 = vrot.slane %v3074_v20, 5 }
 0x32d   : > { %v2977_v39 = vadd.f32 %v2947_v54, %v2894_v63  ;;  %v3084_v63 = vshll.u32 %v5885_v30, 16 }
 0x32e   : > { %3976 = vmatmul.msk.bf16.gmra.mxu1 %vm882_vm3, %v6285_v19 }
 0x32f   : > { %v3025_v52 = vpop.f32.mrf.mxu0  ;;  %v3086_v35 = vrot.slane %v3084_v63, 5 }
 0x330   : > { %v5871_v46 = vadd.f32 %v3025_v52, %v2977_v39 }
 0x331   : > { %3994 = vmatmul.msk.bf16.gmra.mxu3 %vm882_vm3, %v6286_v5  ;;  %v3167_v5 = vrot.slane %v5796_v1, 5 }
 0x333   : > { %v2869_v61 = vpop.f32.mrf.mxu2  ;;  %v2783_v14 = vpop.f32.mrf.mxu1 }
 0x334   : > { %v2896_v51 = vadd.f32 %v2869_v61, %v2805_v34  ;;  %v2950_v50 = vpop.f32.mrf.mxu3  ;;  %v2807_v32 = vadd.f32 %v2783_v14, %v5765_v18  ;;  %v3068_v18 = vshll.u32 %v5794_v24, 16  ;;  %v3081_v34 = vor.u32 %v3080_v44, %v3076_v2 }
 0x335   : > { %v2978_v48 = vadd.f32 %v2950_v50, %v2895_v47 }
 0x336   : > { %v3070_v3 = vrot.slane %v3068_v18, 5  ;;  %v3082_v53 = vrot.slane %v3081_v34, 4  ;;  %v3249_v33 = vrot.slane %v3068_v18, 6 }
 0x337   : > { %v3028_v23 = vpop.f32.mrf.mxu0 }
 0x338   : > { %3986 = vmatmul.msk.bf16.gmra.mxu2 %vm882_vm3, %v6287_v60  ;;  %v5878_v56 = vadd.f32 %v3028_v23, %v2978_v48  ;;  %v3071_v25 = vor.u32 %v3070_v3, %v3067_v40  ;;  %v3087_v39 = vsel %vm4351_vm4, %v3082_v53, %v3086_v35  ;;  %v3169_v23 = vrot.slane %v3167_v5, 4 }
 0x339   : > { %v3091_v50 = vunpack.c.l.b16 %v3087_v39  ;;  %v3170_v60 = vrot.slane %v5885_v30, 5  ;;  %v3257_v40 = vshrl.u32 %v5885_v30, 16 }
 0x33a   : > { %4004 = vmatmul.msk.bf16.gmra.mxu0 %vm882_vm3, %v6288_v36  ;;  %v3072_v55 = vrot.slane %v3071_v25, 4  ;;  %v3260_v25 = vrot.slane %v3084_v63, 6 }
 0x33b   : > { %v2872_v13 = vpop.f32.mrf.mxu2  ;;  %v2786_v9 = vpop.f32.mrf.mxu1 }
 0x33c   : > { %v2897_v42 = vadd.f32 %v2872_v13, %v2806_v22  ;;  %v2952_v26 = vpop.f32.mrf.mxu3  ;;  %v2808_v7 = vadd.f32 %v2786_v9, %v5783_v29  ;;  %v3077_v22 = vsel %vm4351_vm4, %v3072_v55, %v3076_v2  ;;  %v3253_v9 = vrot.slane %v3074_v20, 6 }
 0x33d   : > { %v2979_v43 = vadd.f32 %v2952_v26, %v2896_v51  ;;  %v3090_v14 = vunpack.c.l.b16 %v3077_v22  ;;  %v3259_v20 = vrot.slane %v3257_v40, 5 }
 0x33e   : > { %3977 = vmatmul.msk.bf16.gmra.mxu1 %vm882_vm3, %v6289_v10 }
 0x33f   : > { %v3030_v4 = vpop.f32.mrf.mxu0  ;;  %v3092_v13 = vpack.c.b16 %v3091_v50, %v3090_v14  ;;  %v3261_v8 = vor.u32 %v3260_v25, %v3259_v20  ;;  %v3344_v14 = vrot.slane %v5885_v30, 6 }
 0x340   : > { %v5903_v48 = vadd.f32 %v3030_v4, %v2979_v43  ;;  %v3171_v43 = vsel %vm4612_vm9, %v3169_v23, %v3170_v60 }
 0x341   : > { %3995 = vmatmul.msk.bf16.gmra.mxu3 %vm882_vm3, %v5555_v27 }
 0x343   : > { %v2874_v47 = vpop.f32.mrf.mxu2  ;;  %v2788_v54 = vpop.f32.mrf.mxu1 }
 0x344   : > { %v2898_v58 = vadd.f32 %v2874_v47, %v2807_v32  ;;  %v2955_v52 = vpop.f32.mrf.mxu3  ;;  %v2809_v19 = vadd.f32 %v2788_v54, %v5800_v49  ;;  %v3979_v32 = vrot.slane %v5794_v24, 9  ;;  %v3248_v49 = vrot.slane %v3065_v15, 5 }
 0x345   : > { %v2980_v61 = vadd.f32 %v2955_v52, %v2897_v42  ;;  %v3252_v42 = vrot.slane %v3078_v37, 5 }
 0x346   : > { %v3168_v44 = vsel %vm4612_vm9, %v3979_v32, %v3167_v5  ;;  %v3250_v18 = vor.u32 %v3249_v33, %v3248_v49 }
 0x347   : > { %v3033_v51 = vpop.f32.mrf.mxu0  ;;  %v3254_v37 = vor.u32 %v3253_v9, %v3252_v42  ;;  %v3174_v4 = vunpack.c.l.b16 %v3168_v44 }
 0x348   : > { %3987 = vmatmul.msk.bf16.gmra.mxu2 %vm882_vm3, %v5752_v41  ;;  %v5907_v27 = vadd.f32 %v3033_v51, %v2980_v61  ;;  %v3251_v34 = vrot.slane %v3250_v18, 4  ;;  %v3998_v61 = vrot.slane %v5794_v24, 10 }
 0x349   : > { %v3256_v55 = vrot.slane %v3254_v37, 4 }
 0x34a   : > { %4005 = vmatmul.msk.bf16.gmra.mxu0 %vm882_vm3, %v5589_v45  ;;  %v3255_v63 = vsel %vm4663_vm12, %v3251_v34, %v3254_v37 }
 0x34b   : > { %v2877_v36 = vpop.f32.mrf.mxu2  ;;  %v2791_v41 = vpop.f32.mrf.mxu1  ;;  %v3262_v39 = vsel %vm4663_vm12, %v3256_v55, %v3261_v8 }
 0x34c   : > { %v2899_v3 = vadd.f32 %v2877_v36, %v2808_v7  ;;  %v2957_v2 = vpop.f32.mrf.mxu3  ;;  %v2810_v26 = vadd.f32 %v2791_v41, %v5809_v59  ;;  %v3175_v7 = vunpack.c.l.b16 %v3171_v43  ;;  %v3266_v5 = vunpack.c.l.b16 %v3262_v39 }
 0x34d   : > { %v2981_v45 = vadd.f32 %v2957_v2, %v2898_v58 }
 0x34e   : > { %3978 = vmatmul.msk.bf16.gmra.mxu1 %vm882_vm3, %v3092_v13  ;;  %v3176_v53 = vpack.c.b16 %v3175_v7, %v3174_v4 }
 0x34f   : > { %v3035_v15 = vpop.f32.mrf.mxu0 }
 0x350   : > { %v5920_v10 = vadd.f32 %v3035_v15, %v2981_v45 }
 0x351   : > { %3996 = vmatmul.msk.bf16.gmra.mxu3 %vm882_vm3, %v5771_v0  ;;  %v3341_v0 = vrot.slane %v5796_v1, 6 }
 0x353   : > { %v2879_v59 = vpop.f32.mrf.mxu2  ;;  %v2793_v47 = vpop.f32.mrf.mxu1  ;;  %v3343_v51 = vrot.slane %v3341_v0, 4  ;;  %v3342_v49 = vsel %vm4690_vm14, %v3998_v61, %v3341_v0 }
 0x354   : > { %v2900_v35 = vadd.f32 %v2879_v59, %v2809_v19  ;;  %v2960_v58 = vpop.f32.mrf.mxu3  ;;  %v2811_v54 = vadd.f32 %v2793_v47, %v5815_v16  ;;  %v3265_v19 = vunpack.c.l.b16 %v3255_v63  ;;  %v3348_v24 = vunpack.c.l.b16 %v3342_v49 }
 0x355   : > { %v2982_v29 = vadd.f32 %v2960_v58, %v2899_v3 }
 0x356   : > { %v3267_v1 = vpack.c.b16 %v3266_v5, %v3265_v19 }
 0x357   : > { %v3038_v22 = vpop.f32.mrf.mxu0 }
 0x358   : > { %3988 = vmatmul.msk.bf16.gmra.mxu2 %vm882_vm3, %v3176_v53  ;;  %v5931_v52 = vadd.f32 %v3038_v22, %v2982_v29 }
 0x35a   : > { %4006 = vmatmul.msk.bf16.gmra.mxu0 %vm882_vm3, %v5792_v38  ;;  %v3345_v38 = vsel %vm4690_vm14, %v3343_v51, %v3344_v14 }
 0x35b   : > { %v2882_v16 = vpop.f32.mrf.mxu2  ;;  %v3108_v11 = vpop.f32.mrf.mxu1  ;;  %v3349_v30 = vunpack.c.l.b16 %v3345_v38 }
 0x35c   : > { %v2901_v50 = vadd.f32 %v2882_v16, %v2810_v26  ;;  %v2962_v32 = vpop.f32.mrf.mxu3  ;;  %v3148_v15 = vadd.f32 %v3108_v11, %v5822_v31 }
 0x35d   : > { %v2983_v23 = vadd.f32 %v2962_v32, %v2900_v35  ;;  %v3350_v3 = vpack.c.b16 %v3349_v30, %v3348_v24 }
 0x35f   : > { %v3040_v60 = vpop.f32.mrf.mxu0 }
 0x360   : > { %v5941_v33 = vadd.f32 %v3040_v60, %v2983_v23 }
 0x361   : > { %3997 = vmatmul.msk.bf16.gmra.mxu3 %vm882_vm3, %v3267_v1 }
 0x363   : > { %v2884_v36 = vpop.f32.mrf.mxu2  ;;  %v3110_v42 = vpop.f32.mrf.mxu1 }
 0x364   : > { %v2902_v13 = vadd.f32 %v2884_v36, %v2811_v54  ;;  %v2965_v9 = vpop.f32.mrf.mxu3  ;;  %v3149_v55 = vadd.f32 %v3110_v42, %v5829_v12 }
 0x365   : > { %v2984_v40 = vadd.f32 %v2965_v9, %v2901_v50 }
 0x367   : > { %v3043_v41 = vpop.f32.mrf.mxu0 }
 0x368   : > { %v5945_v2 = vadd.f32 %v3043_v41, %v2984_v40 }
 0x36a   : > { %4007 = vmatmul.msk.bf16.gmra.mxu0 %vm882_vm3, %v3350_v3  ;;  %vm3493_vm3 = vcmask 57344  }
 0x36b   : > { %v3192_v17 = vpop.f32.mrf.mxu2  ;;  %v3113_v26 = vpop.f32.mrf.mxu1 }
 0x36c   : > { %v2967_v44 = vpop.f32.mrf.mxu3  ;;  %v3232_v37 = vadd.f32 %v3192_v17, %v3148_v15  ;;  %v3150_v22 = vadd.f32 %v3113_v26, %v5836_v57 }
 0x36d   : > { %v2985_v43 = vadd.f32 %v2967_v44, %v2902_v13 }
 0x36f   : > { %v3045_v45 = vpop.f32.mrf.mxu0 }
 0x370   : > { %v5951_v18 = vadd.f32 %v3045_v45, %v2985_v43 }
 0x373   : > { %v3194_v20 = vpop.f32.mrf.mxu2  ;;  %v3115_v25 = vpop.f32.mrf.mxu1 }
 0x374   : > { %v3283_v4 = vpop.f32.mrf.mxu3  ;;  %v3233_v8 = vadd.f32 %v3194_v20, %v3149_v55  ;;  %v3151_v60 = vadd.f32 %v3115_v25, %v5843_v28 }
 0x375   : > { %v3323_v7 = vadd.f32 %v3283_v4, %v3232_v37 }
 0x377   : > { %v3366_v59 = vpop.f32.mrf.mxu0 }
 0x378   : > { %v3406_v34 = vadd.f32 %v3366_v59, %v3323_v7 }
 0x37a   : > { %v3422_v31 = vpack.c.bf16 %v3406_v34, %v3406_v34  ;;  %v3495_v29 = vmul.f32 %v3406_v34, %v3406_v34  ;;  %v3456_v63 = vsel %vm3455_vm2, %v3406_v34, 0.0 }
 0x37b   : > { %v3197_v35 = vpop.f32.mrf.mxu2  ;;  %v3118_v53 = vpop.f32.mrf.mxu1 }
 0x37c   : > { %3439 = vst.msk [vmem:[%s5957_s11] sm:$0xf] %vm3438_vm0, %v3422_v31  ;;  %v3285_v47 = vpop.f32.mrf.mxu3  ;;  %v3234_v5 = vadd.f32 %v3197_v35, %v3150_v22  ;;  %v3511_v51 = vsel %vm3455_vm2, %v3495_v29, 0.0  ;;  %v3152_v28 = vadd.f32 %v3118_v53, %v5850_v62 }
 0x37d   : > { %v3324_v58 = vadd.f32 %v3285_v47, %v3233_v8 }
 0x37f   : > { %v3368_v54 = vpop.f32.mrf.mxu0 }
 0x380   : > { %v3407_v12 = vadd.f32 %v3368_v54, %v3324_v58 }
 0x382   : > { %v3423_v39 = vpack.c.bf16 %v3407_v12, %v3407_v12  ;;  %v3457_v0 = vsel %vm3455_vm2, %v3407_v12, 0.0  ;;  %v3496_v19 = vmul.f32 %v3407_v12, %v3407_v12 }
 0x383   : > { %v3458_v16 = vadd.f32 %v3457_v0, %v3456_v63  ;;  %v3199_v61 = vpop.f32.mrf.mxu2  ;;  %v3120_v50 = vpop.f32.mrf.mxu1 }
 0x384   : > { %3440 = vst.msk [vmem:[%s5957_s11 + $0x4] sm:$0xf] %vm3438_vm0, %v3423_v39  ;;  %v3512_v14 = vsel %vm3455_vm2, %v3496_v19, 0.0  ;;  %v3288_v32 = vpop.f32.mrf.mxu3  ;;  %v3235_v30 = vadd.f32 %v3199_v61, %v3151_v60  ;;  %v3153_v62 = vadd.f32 %v3120_v50, %v5857_v6 }
 0x385   : > { %v3513_v11 = vadd.f32 %v3512_v14, %v3511_v51  ;;  %v3325_v57 = vadd.f32 %v3288_v32, %v3234_v5 }
 0x387   : > { %v3371_v23 = vpop.f32.mrf.mxu0 }
 0x388   : > { %v3408_v1 = vadd.f32 %v3371_v23, %v3325_v57 }
 0x38a   : > { %v3424_v49 = vpack.c.bf16 %v3408_v1, %v3408_v1  ;;  %v3459_v38 = vsel %vm3455_vm2, %v3408_v1, 0.0  ;;  %v3497_v24 = vmul.f32 %v3408_v1, %v3408_v1 }
 0x38b   : > { %v3460_v36 = vadd.f32 %v3459_v38, %v3458_v16  ;;  %v3202_v13 = vpop.f32.mrf.mxu2  ;;  %v3123_v9 = vpop.f32.mrf.mxu1 }
 0x38c   : > { %3441 = vst.msk [vmem:[%s5957_s11 + $0x8] sm:$0xf] %vm3438_vm0, %v3424_v49  ;;  %v3514_v42 = vsel %vm3455_vm2, %v3497_v24, 0.0  ;;  %v3290_v3 = vpop.f32.mrf.mxu3  ;;  %v3236_v15 = vadd.f32 %v3202_v13, %v3152_v28  ;;  %v3154_v6 = vadd.f32 %v3123_v9, %v5864_v21 }
 0x38d   : > { %v3515_v40 = vadd.f32 %v3514_v42, %v3513_v11  ;;  %v3326_v41 = vadd.f32 %v3290_v3, %v3235_v30 }
 0x38f   : > { %v3373_v17 = vpop.f32.mrf.mxu0 }
 0x390   : > { %v3409_v26 = vadd.f32 %v3373_v17, %v3326_v41 }
 0x392   : > { %v3425_v44 = vpack.c.bf16 %v3409_v26, %v3409_v26  ;;  %v3461_v43 = vsel %vm3455_vm2, %v3409_v26, 0.0  ;;  %v3498_v45 = vmul.f32 %v3409_v26, %v3409_v26 }
 0x393   : > { %v3462_v37 = vadd.f32 %v3461_v43, %v3460_v36  ;;  %v3204_v20 = vpop.f32.mrf.mxu2  ;;  %v3125_v59 = vpop.f32.mrf.mxu1 }
 0x394   : > { %3442 = vst.msk [vmem:[%s5957_s11 + $0xc] sm:$0xf] %vm3438_vm0, %v3425_v44  ;;  %v3516_v25 = vsel %vm3455_vm2, %v3498_v45, 0.0  ;;  %v3293_v7 = vpop.f32.mrf.mxu3  ;;  %v3237_v47 = vadd.f32 %v3204_v20, %v3153_v62  ;;  %v3155_v49 = vadd.f32 %v3125_v59, %v5871_v46 }
 0x395   : > { %v3517_v4 = vadd.f32 %v3516_v25, %v3515_v40  ;;  %v3327_v34 = vadd.f32 %v3293_v7, %v3236_v15 }
 0x397   : > { %v3376_v55 = vpop.f32.mrf.mxu0 }
 0x398   : > { %v3410_v31 = vadd.f32 %v3376_v55, %v3327_v34 }
 0x39a   : > { %v3426_v8 = vpack.c.bf16 %v3410_v31, %v3410_v31  ;;  %v3463_v35 = vsel %vm3455_vm2, %v3410_v31, 0.0  ;;  %v3499_v53 = vmul.f32 %v3410_v31, %v3410_v31 }
 0x39b   : > { %v3464_v58 = vadd.f32 %v3463_v35, %v3462_v37  ;;  %v3207_v54 = vpop.f32.mrf.mxu2  ;;  %v3128_v0 = vpop.f32.mrf.mxu1 }
 0x39c   : > { %3443 = vst.msk [vmem:[%s5957_s11 + $0x10] sm:$0xf] %vm3438_vm0, %v3426_v8  ;;  %v3518_v29 = vsel %vm3455_vm2, %v3499_v53, 0.0  ;;  %v3295_v22 = vpop.f32.mrf.mxu3  ;;  %v3238_v51 = vadd.f32 %v3207_v54, %v3154_v6  ;;  %v3156_v46 = vadd.f32 %v3128_v0, %v5878_v56 }
 0x39d   : > { %v3519_v12 = vadd.f32 %v3518_v29, %v3517_v4  ;;  %v3328_v63 = vadd.f32 %v3295_v22, %v3237_v47 }
 0x39f   : > { %v3378_v39 = vpop.f32.mrf.mxu0 }
 0x3a0   : > { %v3411_v19 = vadd.f32 %v3378_v39, %v3328_v63 }
 0x3a2   : > { %v3427_v5 = vpack.c.bf16 %v3411_v19, %v3411_v19  ;;  %v3465_v16 = vsel %vm3455_vm2, %v3411_v19, 0.0  ;;  %v3500_v61 = vmul.f32 %v3411_v19, %v3411_v19 }
 0x3a3   : > { %v3466_v14 = vadd.f32 %v3465_v16, %v3464_v58  ;;  %v3209_v50 = vpop.f32.mrf.mxu2  ;;  %v3130_v21 = vpop.f32.mrf.mxu1 }
 0x3a4   : > { %3444 = vst.msk [vmem:[%s5957_s11 + $0x14] sm:$0xf] %vm3438_vm0, %v3427_v5  ;;  %v3520_v11 = vsel %vm3455_vm2, %v3500_v61, 0.0  ;;  %v3298_v57 = vpop.f32.mrf.mxu3  ;;  %v3239_v36 = vadd.f32 %v3209_v50, %v3155_v49  ;;  %v3157_v56 = vadd.f32 %v3130_v21, %v5903_v48 }
 0x3a5   : > { %v3521_v32 = vadd.f32 %v3520_v11, %v3519_v12  ;;  %v3329_v23 = vadd.f32 %v3298_v57, %v3238_v51 }
 0x3a7   : > { %v3381_v1 = vpop.f32.mrf.mxu0 }
 0x3a8   : > { %v3412_v60 = vadd.f32 %v3381_v1, %v3329_v23 }
 0x3aa   : > { %v3428_v38 = vpack.c.bf16 %v3412_v60, %v3412_v60  ;;  %v3467_v24 = vsel %vm3455_vm2, %v3412_v60, 0.0  ;;  %v3501_v30 = vmul.f32 %v3412_v60, %v3412_v60 }
 0x3ab   : > { %v3468_v13 = vadd.f32 %v3467_v24, %v3466_v14  ;;  %v3212_v42 = vpop.f32.mrf.mxu2  ;;  %v3133_v20 = vpop.f32.mrf.mxu1 }
 0x3ac   : > { %3445 = vst.msk [vmem:[%s5957_s11 + $0x18] sm:$0xf] %vm3438_vm0, %v3428_v38  ;;  %v3522_v9 = vsel %vm3455_vm2, %v3501_v30, 0.0  ;;  %v3300_v3 = vpop.f32.mrf.mxu3  ;;  %v3240_v45 = vadd.f32 %v3212_v42, %v3156_v46  ;;  %v3158_v48 = vadd.f32 %v3133_v20, %v5907_v27 }
 0x3ad   : > { %v3523_v40 = vadd.f32 %v3522_v9, %v3521_v32  ;;  %v3330_v41 = vadd.f32 %v3300_v3, %v3239_v36 }
 0x3af   : > { %v3383_v17 = vpop.f32.mrf.mxu0 }
 0x3b0   : > { %v3413_v26 = vadd.f32 %v3383_v17, %v3330_v41 }
 0x3b2   : > { %v3429_v28 = vpack.c.bf16 %v3413_v26, %v3413_v26  ;;  %v3469_v44 = vsel %vm3455_vm2, %v3413_v26, 0.0  ;;  %v3502_v43 = vmul.f32 %v3413_v26, %v3413_v26 }
 0x3b3   : > { %v3470_v15 = vadd.f32 %v3469_v44, %v3468_v13  ;;  %v3214_v37 = vpop.f32.mrf.mxu2  ;;  %v3135_v12 = vpop.f32.mrf.mxu1 }
 0x3b4   : > { %3446 = vst.msk [vmem:[%s5957_s11 + $0x1c] sm:$0xf] %vm3438_vm0, %v3429_v28  ;;  %v3524_v25 = vsel %vm3455_vm2, %v3502_v43, 0.0  ;;  %v3303_v7 = vpop.f32.mrf.mxu3  ;;  %v3241_v35 = vadd.f32 %v3214_v37, %v3157_v56  ;;  %v3159_v27 = vadd.f32 %v3135_v12, %v5920_v10 }
 0x3b5   : > { %v3525_v4 = vadd.f32 %v3524_v25, %v3523_v40  ;;  %v3331_v59 = vadd.f32 %v3303_v7, %v3240_v45 }
 0x3b7   : > { %v3386_v34 = vpop.f32.mrf.mxu0 }
 0x3b8   : > { %v3414_v55 = vadd.f32 %v3386_v34, %v3331_v59 }
 0x3ba   : > { %v3430_v31 = vpack.c.bf16 %v3414_v55, %v3414_v55  ;;  %v3471_v62 = vsel %vm3455_vm2, %v3414_v55, 0.0  ;;  %v3503_v8 = vmul.f32 %v3414_v55, %v3414_v55 }
 0x3bb   : > { %v3472_v53 = vadd.f32 %v3471_v62, %v3470_v15  ;;  %v3217_v47 = vpop.f32.mrf.mxu2  ;;  %v3138_v57 = vpop.f32.mrf.mxu1 }
 0x3bc   : > { %3447 = vst.msk [vmem:[%s5957_s11 + $0x20] sm:$0xf] %vm3438_vm0, %v3430_v31  ;;  %v3526_v58 = vsel %vm3455_vm2, %v3503_v8, 0.0  ;;  %v3305_v29 = vpop.f32.mrf.mxu3  ;;  %v3242_v5 = vadd.f32 %v3217_v47, %v3158_v48  ;;  %v3160_v3 = vadd.f32 %v3138_v57, %v5931_v52 }
 0x3bd   : > { %v3527_v54 = vadd.f32 %v3526_v58, %v3525_v4  ;;  %v3332_v22 = vadd.f32 %v3305_v29, %v3241_v35 }
 0x3bf   : > { %v3388_v63 = vpop.f32.mrf.mxu0 }
 0x3c0   : > { %v3415_v39 = vadd.f32 %v3388_v63, %v3332_v22 }
 0x3c2   : > { %v3431_v0 = vpack.c.bf16 %v3415_v39, %v3415_v39  ;;  %v3473_v19 = vsel %vm3455_vm2, %v3415_v39, 0.0  ;;  %v3504_v6 = vmul.f32 %v3415_v39, %v3415_v39 }
 0x3c3   : > { %v3474_v16 = vadd.f32 %v3473_v19, %v3472_v53  ;;  %v3219_v61 = vpop.f32.mrf.mxu2  ;;  %v3140_v10 = vpop.f32.mrf.mxu1 }
 0x3c4   : > { %3448 = vst.msk [vmem:[%s5957_s11 + $0x24] sm:$0xf] %vm3438_vm0, %v3431_v0  ;;  %v3528_v51 = vsel %vm3455_vm2, %v3504_v6, 0.0  ;;  %v3308_v50 = vpop.f32.mrf.mxu3  ;;  %v3243_v21 = vadd.f32 %v3219_v61, %v3159_v27  ;;  %v3161_v52 = vadd.f32 %v3140_v10, %v5941_v33 }
 0x3c5   : > { %v3529_v14 = vadd.f32 %v3528_v51, %v3527_v54  ;;  %v3333_v11 = vadd.f32 %v3308_v50, %v3242_v5 }
 0x3c7   : > { %v3391_v32 = vpop.f32.mrf.mxu0 }
 0x3c8   : > { %v3416_v23 = vadd.f32 %v3391_v32, %v3333_v11 }
 0x3ca   : > { %v3432_v1 = vpack.c.bf16 %v3416_v23, %v3416_v23  ;;  %v3475_v60 = vsel %vm3455_vm2, %v3416_v23, 0.0  ;;  %v3505_v49 = vmul.f32 %v3416_v23, %v3416_v23 }
 0x3cb   : > { %v3476_v38 = vadd.f32 %v3475_v60, %v3474_v16  ;;  %v3222_v24 = vpop.f32.mrf.mxu2  ;;  %v3143_v56 = vpop.f32.mrf.mxu1 }
 0x3cc   : > { %3449 = vst.msk [vmem:[%s5957_s11 + $0x28] sm:$0xf] %vm3438_vm0, %v3432_v1  ;;  %v3530_v30 = vsel %vm3455_vm2, %v3505_v49, 0.0  ;;  %v3310_v13 = vpop.f32.mrf.mxu3  ;;  %v3244_v46 = vadd.f32 %v3222_v24, %v3160_v3  ;;  %v3162_v33 = vadd.f32 %v3143_v56, %v5945_v2 }
 0x3cd   : > { %v3531_v36 = vadd.f32 %v3530_v30, %v3529_v14  ;;  %v3334_v42 = vadd.f32 %v3310_v13, %v3243_v21 }
 0x3cf   : > { %v3393_v9 = vpop.f32.mrf.mxu0 }
 0x3d0   : > { %v3417_v40 = vadd.f32 %v3393_v9, %v3334_v42 }
 0x3d2   : > { %v3433_v41 = vpack.c.bf16 %v3417_v40, %v3417_v40  ;;  %v3477_v17 = vsel %vm3455_vm2, %v3417_v40, 0.0  ;;  %v3506_v26 = vmul.f32 %v3417_v40, %v3417_v40 }
 0x3d3   : > { %v3478_v28 = vadd.f32 %v3477_v17, %v3476_v38  ;;  %v3224_v44 = vpop.f32.mrf.mxu2  ;;  %v3145_v19 = vpop.f32.mrf.mxu1 }
 0x3d4   : > { %3450 = vst.msk [vmem:[%s5957_s11 + $0x2c] sm:$0xf] %vm3438_vm0, %v3433_v41  ;;  %v3532_v43 = vsel %vm3455_vm2, %v3506_v26, 0.0  ;;  %v3313_v15 = vpop.f32.mrf.mxu3  ;;  %v3245_v34 = vadd.f32 %v3224_v44, %v3161_v52  ;;  %v3163_v2 = vadd.f32 %v3145_v19, %v5951_v18 }
 0x3d5   : > { %v3533_v45 = vadd.f32 %v3532_v43, %v3531_v36  ;;  %v3335_v37 = vadd.f32 %v3313_v15, %v3244_v46 }
 0x3d7   : > { %v3396_v20 = vpop.f32.mrf.mxu0 }
 0x3d8   : > { %v3418_v25 = vadd.f32 %v3396_v20, %v3335_v37 }
 0x3da   : > { %v3434_v4 = vpack.c.bf16 %v3418_v25, %v3418_v25  ;;  %v3479_v7 = vsel %vm3455_vm2, %v3418_v25, 0.0  ;;  %v3507_v59 = vmul.f32 %v3418_v25, %v3418_v25 }
 0x3db   : > { %v3480_v55 = vadd.f32 %v3479_v7, %v3478_v28  ;;  %v3227_v35 = vpop.f32.mrf.mxu2 }
 0x3dc   : > { %3451 = vst.msk [vmem:[%s5957_s11 + $0x30] sm:$0xf] %vm3438_vm0, %v3434_v4  ;;  %v3534_v31 = vsel %vm3455_vm2, %v3507_v59, 0.0  ;;  %v3315_v8 = vpop.f32.mrf.mxu3  ;;  %v3246_v22 = vadd.f32 %v3227_v35, %v3162_v33 }
 0x3dd   : > { %v3535_v62 = vadd.f32 %v3534_v31, %v3533_v45  ;;  %v3336_v53 = vadd.f32 %v3315_v8, %v3245_v34 }
 0x3df   : > { %v3398_v47 = vpop.f32.mrf.mxu0 }
 0x3e0   : > { %v3419_v58 = vadd.f32 %v3398_v47, %v3336_v53 }
 0x3e2   : > { %v3435_v54 = vpack.c.bf16 %v3419_v58, %v3419_v58  ;;  %v3481_v29 = vsel %vm3455_vm2, %v3419_v58, 0.0  ;;  %v3508_v12 = vmul.f32 %v3419_v58, %v3419_v58 }
 0x3e3   : > { %v3482_v63 = vadd.f32 %v3481_v29, %v3480_v55  ;;  %v3229_v16 = vpop.f32.mrf.mxu2 }
 0x3e4   : > { %3452 = vst.msk [vmem:[%s5957_s11 + $0x34] sm:$0xf] %vm3438_vm0, %v3435_v54  ;;  %v3536_v39 = vsel %vm3455_vm2, %v3508_v12, 0.0  ;;  %v3318_v0 = vpop.f32.mrf.mxu3  ;;  %v3247_v11 = vadd.f32 %v3229_v16, %v3163_v2 }
 0x3e5   : > { %v3537_v48 = vadd.f32 %v3536_v39, %v3535_v62  ;;  %v3337_v6 = vadd.f32 %v3318_v0, %v3246_v22 }
 0x3e7   : > { %v3401_v5 = vpop.f32.mrf.mxu0 }
 0x3e8   : > { %v3420_v61 = vadd.f32 %v3401_v5, %v3337_v6 }
 0x3ea   : > { %v3436_v51 = vpack.c.bf16 %v3420_v61, %v3420_v61  ;;  %v3483_v14 = vsel %vm3455_vm2, %v3420_v61, 0.0  ;;  %v3509_v50 = vmul.f32 %v3420_v61, %v3420_v61 }
 0x3eb   : > { %v3484_v32 = vadd.f32 %v3483_v14, %v3482_v63 }
 0x3ec   : > { %3453 = vst.msk [vmem:[%s5957_s11 + $0x38] sm:$0xf] %vm3438_vm0, %v3436_v51  ;;  %v3538_v57 = vsel %vm3455_vm2, %v3509_v50, 0.0  ;;  %v3320_v27 = vpop.f32.mrf.mxu3 }
 0x3ed   : > { %v3539_v23 = vadd.f32 %v3538_v57, %v3537_v48  ;;  %v3338_v1 = vadd.f32 %v3320_v27, %v3247_v11 }
 0x3ef   : > { %v3403_v60 = vpop.f32.mrf.mxu0 }
 0x3f0   : > { %v3421_v49 = vadd.f32 %v3403_v60, %v3338_v1 }
 0x3f2   : > { %v3437_v21 = vpack.c.bf16 %v3421_v49, %v3421_v49  ;;  %v3485_v18 = vsel %vm3455_vm2, %v3421_v49, 0.0  ;;  %v3510_v38 = vmul.f32 %v3421_v49, %v3421_v49 }
 0x3f3   : > { %v3486_v24 = vadd.f32 %v3485_v18, %v3484_v32 }
 0x3f4   : > { %3454 = vst.msk [vmem:[%s5957_s11 + $0x3c] sm:$0xf] %vm3438_vm0, %v3437_v21  ;;  %v3540_v30 = vsel %vm3455_vm2, %v3510_v38, 0.0 }
 0x3f5   : > { %v3487_v36 = vrot.slane %v3486_v24, 4  ;;  %v3541_v13 = vadd.f32 %v3540_v30, %v3539_v23 }
 0x3f7   : > { %v3488_v42 = vadd.f32 %v3487_v36, %v3486_v24  ;;  %v3542_v9 = vrot.slane %v3541_v13, 4 }
 0x3f9   : > { %v3489_v40 = vrot.slane %v3488_v42, 2  ;;  %v3543_v3 = vadd.f32 %v3542_v9, %v3541_v13 }
 0x3fb   : > { %v3490_v10 = vadd.f32 %v3489_v40, %v3488_v42  ;;  %v3544_v41 = vrot.slane %v3543_v3, 2 }
 0x3fd   : > { %v3491_v17 = vrot.slane %v3490_v10, 1  ;;  %v3545_v26 = vadd.f32 %v3544_v41, %v3543_v3 }
 0x3ff   : > { %v3492_v46 = vadd.f32 %v3491_v17, %v3490_v10  ;;  %v3546_v28 = vrot.slane %v3545_v26, 1 }
 0x401   : > { %3494 = vst.msk [vmem:[%s304_s21] sm:$0x1] %vm3493_vm3, %v3492_v46  ;;  %v3547_v44 = vadd.f32 %v3546_v28, %v3545_v26 }
 0x403   : > { %3548 = vst.msk [vmem:[%s311_s10] sm:$0x1] %vm3493_vm3, %v3547_v44 }
 0x404 PF: > { %s17_s25 = sadd.s32 1, %s4167_s25   ;;  %s6291_s21 = smov %s4159_s23 }
 0x405   : > { %p14_p6 = scmp.ge.s32.totalorder %s17_s25, 6   ;;  %s6292_s22 = smov %s4163_s24 }
 0x406   : > { %s6293_s23 = smov %s6296_s26  ;;  %s6294_s24 = smov %s6300_s27 }
 0x407   :  { %16 = sbr.rel (!%p14_p6) target bundleno = 3 (0x3), region = 119 }

</bundles_post_ra>
